<compile_context>
chip_gen: v7x
topology: tpu7x:2x2x1
jax: 0.10.0
libtpu: 0.0.40
codegen_flags: <defaults>
</compile_context>

<pallas_src>
import functools

import jax
import jax.numpy as jnp
from jax import lax
from jax.experimental import pallas as pl
from jax.experimental.pallas import tpu as pltpu

BN_EPS = 1e-5
LANE = 128
_VMEM_TILE_BUDGET = 20 * 1024 * 1024   # target working-set per kernel step
_VMEM_LIMIT = 48 * 1024 * 1024         # explicit scoped-VMEM limit (fits v7x)


def _round_up(x, m):
    return (x + m - 1) // m * m


def _pad_channels(c):
    # Lane-dense padding only when it does not inflate FLOPs/bytes for narrow
    # layers (don't pad 4 -> 128).
    return _round_up(c, LANE) if c >= LANE else c


def _largest_divisor_tile(n, per_unit_bytes, fixed_bytes, budget):
    best = 1
    for d in range(1, n + 1):
        if n % d == 0 and fixed_bytes + d * per_unit_bytes <= budget:
            best = d
    return best


# ---------------------------------------------------------------------------
# Kernel 1: [optional fused previous-layer BN affine + ReLU on the main rows]
#           -> 3x3 SAME conv as 9 per-tap accumulating MXU matmuls (bf16 in,
#           f32 acc) -> bf16 conv output + per-(batch, tile) (sum, sum_sq)
#           partials for two-pass training-mode BatchNorm.
# ---------------------------------------------------------------------------
def _conv_stats_kernel(x_ref, halo_ref, w_ref, *rest, pre_act, tr, w, cin, cout):
    if pre_act:
        sc_ref, bs_ref, y_ref, st_ref, xpad_ref = rest
    else:
        y_ref, st_ref, xpad_ref = rest

    # Main rows of the tile (fuse previous layer's folded BN + ReLU here so the
    # activated tensor never takes an extra HBM round trip).
    x = x_ref[0].astype(jnp.float32)                       # (tr, w, cin)
    if pre_act:
        x = jnp.maximum(x * sc_ref[...] + bs_ref[...], 0.0)

    # Assemble the zero-padded tile.  Only the 1-pixel border strips are
    # zeroed; every step rewrites everything it reads (parallel-safe).
    xpad_ref[:, 0:1, :] = jnp.zeros((tr + 2, 1, cin), jnp.bfloat16)
    xpad_ref[:, w + 1:w + 2, :] = jnp.zeros((tr + 2, 1, cin), jnp.bfloat16)
    xpad_ref[1:tr + 1, 1:w + 1, :] = x.astype(jnp.bfloat16)
    # Halo rows arrive already in conv-input (post-activation) domain; image
    # boundary rows are exact zeros (correct SAME-padding semantics).
    xpad_ref[0, 1:w + 1, :] = halo_ref[0, 0].astype(jnp.bfloat16)
    xpad_ref[tr + 1, 1:w + 1, :] = halo_ref[0, 1].astype(jnp.bfloat16)

    # 9 accumulating MXU matmuls (one per tap) -- no im2col patch buffer.
    acc = jnp.zeros((tr * w, cout), jnp.float32)
    for ky in range(3):
        for kx in range(3):
            lhs = xpad_ref[ky:ky + tr, kx:kx + w, :].reshape(tr * w, cin)
            acc = acc + jnp.dot(lhs, w_ref[ky * 3 + kx],
                                preferred_element_type=jnp.float32)

    y_ref[...] = acc.reshape(1, tr, w, cout).astype(y_ref.dtype)

    # Per-(batch, row-tile) partial BatchNorm statistics.
    st_ref[0, 0, 0:1, :] = jnp.sum(acc, axis=0, keepdims=True)
    st_ref[0, 0, 1:2, :] = jnp.sum(acc * acc, axis=0, keepdims=True)


def _build_halo(x, tr, nt, pre_scale, pre_bias):
    """(N, 2*nt, W, C) bf16: rows [i*tr-1, (i+1)*tr] per tile, activated,
    zeros at the image boundary.  Reads only 2 rows per tile from HBM."""
    n, _, wd, c = x.shape
    zero = jnp.zeros((n, 1, wd, c), jnp.bfloat16)

    def prep(rows):
        rows = rows.astype(jnp.float32)
        if pre_scale is not None:
            rows = jnp.maximum(rows * pre_scale + pre_bias, 0.0)
        return rows.astype(jnp.bfloat16)

    if nt > 1:
        tops = jnp.concatenate([zero, prep(x[:, tr - 1::tr][:, :nt - 1])], axis=1)
        bots = jnp.concatenate([prep(x[:, tr::tr][:, :nt - 1]), zero], axis=1)
    else:
        tops, bots = zero, zero
    return jnp.stack([tops, bots], axis=2).reshape(n, 2 * nt, wd, c)


def _conv_layer(x, w_hwio, cout_pad, pre_scale=None, pre_bias=None):
    """3x3 SAME conv (bias-free) + per-channel (sum, sumsq) stats.
    If pre_scale/pre_bias are given, relu(x*scale+bias) is fused on the input."""
    n, h, wd, cin = x.shape
    pre_act = pre_scale is not None
    in_bytes = x.dtype.itemsize

    per_row = (2 * wd * cin * in_bytes       # input block, double buffered
               + 2 * wd * cout_pad * 2       # bf16 output block, double buffered
               + (wd + 2) * cin * 2          # bf16 padded-tile scratch
               + wd * cout_pad * 4           # f32 accumulator value
               + 2 * wd * cin * 4)           # tap-slice / f32 input temporaries
    fixed = (2 * 9 * cin * cout_pad * 2      # bf16 weights, double buffered
             + 2 * 2 * wd * cin * 2          # halo block
             + 4 * 2 * cout_pad * 4)         # stats blocks
    tr = _largest_divisor_tile(h, per_row, fixed, _VMEM_TILE_BUDGET)
    nt = h // tr

    halo = _build_halo(x, tr, nt, pre_scale, pre_bias)
    w_taps = w_hwio.reshape(9, cin, cout_pad).astype(jnp.bfloat16)

    kernel = functools.partial(_conv_stats_kernel, pre_act=pre_act,
                               tr=tr, w=wd, cin=cin, cout=cout_pad)

    in_specs = [
        pl.BlockSpec((1, tr, wd, cin), lambda b, i: (b, i, 0, 0)),
        pl.BlockSpec((1, 2, wd, cin), lambda b, i: (b, i, 0, 0)),
        pl.BlockSpec((9, cin, cout_pad), lambda b, i: (0, 0, 0)),
    ]
    args = [x, halo, w_taps]
    if pre_act:
        in_specs += [pl.BlockSpec((1, cin), lambda b, i: (0, 0)),
                     pl.BlockSpec((1, cin), lambda b, i: (0, 0))]
        args += [pre_scale, pre_bias]

    y, st = pl.pallas_call(
        kernel,
        grid=(n, nt),
        in_specs=in_specs,
        out_specs=(
            pl.BlockSpec((1, tr, wd, cout_pad), lambda b, i: (b, i, 0, 0)),
            pl.BlockSpec((1, 1, 2, cout_pad), lambda b, i: (b, i, 0, 0)),
        ),
        out_shape=(
            jax.ShapeDtypeStruct((n, h, wd, cout_pad), jnp.bfloat16),
            jax.ShapeDtypeStruct((n, nt, 2, cout_pad), jnp.float32),
        ),
        scratch_shapes=[pltpu.VMEM((tr + 2, wd + 2, cin), jnp.bfloat16)],
        compiler_params=pltpu.CompilerParams(
            dimension_semantics=("parallel", "parallel"),
            vmem_limit_bytes=_VMEM_LIMIT),
    )(*args)
    return y, st


def _fold_bn(stats, count, gamma, beta):
    # stats: (N, tiles, 2, C) partial (sum, sum_sq); training-mode (biased) BN.
    s = jnp.sum(stats[:, :, 0, :], axis=(0, 1))
    ss = jnp.sum(stats[:, :, 1, :], axis=(0, 1))
    mean = s / count
    var = jnp.maximum(ss / count - mean * mean, 0.0)
    scale = gamma * lax.rsqrt(var + BN_EPS)
    bias = beta - mean * scale
    return scale.reshape(1, -1), bias.reshape(1, -1)


# ---------------------------------------------------------------------------
# Kernel 2: folded BN2 affine + ReLU + 2x2 ceil-mode max-pool, row-tiled.
# Input is presented as a free row-major view (N, Ho, 2, Wo, 2*C) so the four
# pool corners are integer / contiguous lane slices.
# ---------------------------------------------------------------------------
def _bn_relu_pool_kernel(y_ref, sc_ref, bs_ref, o_ref, *, tpr, ho, wo, c,
                         hpad, wpad):
    sc = sc_ref[...]
    bs = bs_ref[...]
    r0 = y_ref[0, :, 0, :, :].astype(jnp.float32)          # even rows (tpr, wo, 2c)
    r1 = y_ref[0, :, 1, :, :].astype(jnp.float32)          # odd rows
    a00 = jnp.maximum(r0[:, :, :c] * sc + bs, 0.0)
    a01 = jnp.maximum(r0[:, :, c:] * sc + bs, 0.0)
    a10 = jnp.maximum(r1[:, :, :c] * sc + bs, 0.0)
    a11 = jnp.maximum(r1[:, :, c:] * sc + bs, 0.0)
    # Ceil-mode edge handling: padded positions are forced to 0 AFTER the ReLU
    # floor, so they can never win the max regardless of gamma's sign.
    if wpad:
        col = lax.broadcasted_iota(jnp.int32, (tpr, wo, c), 1)
        a01 = jnp.where(col == wo - 1, 0.0, a01)
        a11 = jnp.where(col == wo - 1, 0.0, a11)
    if hpad:
        row = lax.broadcasted_iota(jnp.int32, (tpr, wo, c), 0) + pl.program_id(1) * tpr
        a10 = jnp.where(row == ho - 1, 0.0, a10)
        a11 = jnp.where(row == ho - 1, 0.0, a11)
    m = jnp.maximum(jnp.maximum(a00, a01), jnp.maximum(a10, a11))
    o_ref[...] = m.reshape(1, tpr, wo, c).astype(o_ref.dtype)


def _bn_relu_maxpool(y, scale, bias):
    n, h, wd, c = y.shape
    ho, wo = -(-h // 2), -(-wd // 2)                       # ceil_mode output size
    hpad, wpad = 2 * ho - h, 2 * wo - wd
    if hpad or wpad:
        # TODO(synk): handle odd H/W fully in-kernel to avoid this extra pass.
        y = jnp.pad(y, ((0, 0), (0, hpad), (0, wpad), (0, 0)))
    yv = y.reshape(n, ho, 2, wo, 2 * c)                    # free row-major view

    in_bytes = y.dtype.itemsize
    per_row = (2 * 4 * wo * c * in_bytes                   # input block x2
               + 2 * wo * c * 4                            # output block x2
               + 4 * wo * c * 4)                           # f32 corner temporaries
    tpr = _largest_divisor_tile(ho, per_row, 0, _VMEM_TILE_BUDGET)
    nt = ho // tpr

    kernel = functools.partial(_bn_relu_pool_kernel, tpr=tpr, ho=ho, wo=wo,
                               c=c, hpad=hpad, wpad=wpad)
    return pl.pallas_call(
        kernel,
        grid=(n, nt),
        in_specs=[
            pl.BlockSpec((1, tpr, 2, wo, 2 * c), lambda b, i: (b, i, 0, 0, 0)),
            pl.BlockSpec((1, c), lambda b, i: (0, 0)),
            pl.BlockSpec((1, c), lambda b, i: (0, 0)),
        ],
        out_specs=pl.BlockSpec((1, tpr, wo, c), lambda b, i: (b, i, 0, 0)),
        out_shape=jax.ShapeDtypeStruct((n, ho, wo, c), jnp.float32),
        compiler_params=pltpu.CompilerParams(
            dimension_semantics=("parallel", "parallel"),
            vmem_limit_bytes=_VMEM_LIMIT),
    )(yv, scale, bias)


# ---------------------------------------------------------------------------
# Parameters / forward
# ---------------------------------------------------------------------------
def init_encoder_params(key, in_channels, out_channels):
    inner = out_channels // 2
    k1, k2 = jax.random.split(key)
    return {
        # HWIO conv weights (same values as PyTorch's OIHW Conv2d, bias=False).
        "w1": 0.1 * jax.random.normal(k1, (3, 3, in_channels, inner), jnp.float32),
        "g1": jnp.ones((inner,), jnp.float32),
        "b1": jnp.zeros((inner,), jnp.float32),
        "w2": 0.1 * jax.random.normal(k2, (3, 3, inner, out_channels), jnp.float32),
        "g2": jnp.ones((out_channels,), jnp.float32),
        "b2": jnp.zeros((out_channels,), jnp.float32),
    }


@jax.jit
def encoder_forward(x_nchw, params):
    x = jnp.transpose(x_nchw, (0, 2, 3, 1)).astype(jnp.float32)   # NCHW -> NHWC
    n, h, wd, _ = x.shape
    inner = params["w1"].shape[-1]
    cout = params["w2"].shape[-1]
    cp1 = _pad_channels(inner)
    cp2 = _pad_channels(cout)
    count = float(n * h * wd)

    # ---- conv1 + BN1 statistics --------------------------------------------
    w1 = jnp.pad(params["w1"], ((0, 0), (0, 0), (0, 0), (0, cp1 - inner)))
    y1, st1 = _conv_layer(x, w1, cp1)

    g1 = jnp.pad(params["g1"], (0, cp1 - inner))
    b1 = jnp.pad(params["b1"], (0, cp1 - inner))
    sc1, bi1 = _fold_bn(st1, count, g1, b1)                # (1, cp1) each

    # ---- BN1 affine + ReLU (fused) + conv2 + BN2 statistics -----------------
    w2 = jnp.pad(params["w2"],
                 ((0, 0), (0, 0), (0, cp1 - inner), (0, cp2 - cout)))
    y2, st2 = _conv_layer(y1, w2, cp2, pre_scale=sc1, pre_bias=bi1)

    g2 = jnp.pad(params["g2"], (0, cp2 - cout))
    b2 = jnp.pad(params["b2"], (0, cp2 - cout))
    sc2, bi2 = _fold_bn(st2, count, g2, b2)

    # ---- BN2 affine + ReLU + 2x2 ceil-mode max-pool (fused) -----------------
    pooled = _bn_relu_maxpool(y2, sc2, bi2)                # (n, ho, wo, cp2) f32
    if cp2 != cout:
        pooled = pooled[..., :cout]
    return jnp.transpose(pooled, (0, 3, 1, 2))             # NHWC -> NCHW


# ---------------------------------------------------------------------------
# Pure-JAX reference (f32 everywhere) for the correctness check
# ---------------------------------------------------------------------------
def _ref_conv_bn_relu(x_nhwc, w_hwio, gamma, beta):
    y = lax.conv_general_dilated(
        x_nhwc, w_hwio, window_strides=(1, 1), padding="SAME",
        dimension_numbers=("NHWC", "HWIO", "NHWC"))
    mean = jnp.mean(y, axis=(0, 1, 2), keepdims=True)
    var = jnp.mean((y - mean) ** 2, axis=(0, 1, 2), keepdims=True)
    y = (y - mean) * lax.rsqrt(var + BN_EPS) * gamma + beta
    return jnp.maximum(y, 0.0)


def _ref_encoder(x_nchw, params):
    x = jnp.transpose(x_nchw, (0, 2, 3, 1))
    x = _ref_conv_bn_relu(x, params["w1"], params["g1"], params["b1"])
    x = _ref_conv_bn_relu(x, params["w2"], params["g2"], params["b2"])
    n, h, w, c = x.shape
    ho, wo = -(-h // 2), -(-w // 2)
    x = jnp.pad(x, ((0, 0), (0, 2 * ho - h), (0, 2 * wo - w), (0, 0)),
                constant_values=-jnp.inf)
    x = x.reshape(n, ho, 2, wo, 2, c).max(axis=(2, 4))
    return jnp.transpose(x, (0, 3, 1, 2))


if __name__ == "__main__":
    key = jax.random.PRNGKey(0)
    kx, kp = jax.random.split(key)

    batch, in_ch, out_ch, hw = 2, 4, 8, 16
    x = jax.random.normal(kx, (batch, in_ch, hw, hw), jnp.float32)   # NCHW
    params = init_encoder_params(kp, in_ch, out_ch)

    out = jax.block_until_ready(encoder_forward(x, params))
    assert out.shape == (batch, out_ch, hw // 2, hw // 2), out.shape

    ref = _ref_encoder(x, params)
    # bf16 MXU operands (per perf review) => ~1e-2-level deviation vs f32 ref.
    if not jnp.allclose(out, ref, atol=5e-2, rtol=5e-2):
        err = float(jnp.max(jnp.abs(out - ref)))
        raise AssertionError(f"Pallas encoder mismatch, max abs err = {err}")

    print("KERNEL_OK")
</pallas_src>

<mosaic_0001>
module attributes {stable_mosaic.version = 11 : i64} {
  func.func @_conv_stats_kernel(%arg0: i32, %arg1: i32, %arg2: memref<1x16x16x4xf32, #tpu.memory_space<vmem>>, %arg3: memref<1x2x16x4xbf16, #tpu.memory_space<vmem>>, %arg4: memref<9x4x4xbf16, #tpu.memory_space<vmem>>, %arg5: memref<1x16x16x4xbf16, #tpu.memory_space<vmem>>, %arg6: memref<1x1x2x4xf32, #tpu.memory_space<vmem>>, %arg7: memref<18x18x4xbf16, #tpu.memory_space<vmem>>) attributes {dimension_semantics = [#tpu.dimension_semantics<parallel>, #tpu.dimension_semantics<parallel>], iteration_bounds = array<i64: 2, 1>, scalar_prefetch = 0 : i64, scratch_operands = 1 : i64, tpu.core_type = #tpu.core_type<tc>, window_params = [{transform_indices = @transform_0, window_bounds = array<i64: 1, 16, 16, 4>}, {transform_indices = @transform_1, window_bounds = array<i64: 1, 2, 16, 4>}, {pipeline_mode = #tpu.pipeline_mode<synchronous>, transform_indices = @transform_2, window_bounds = array<i64: 9, 4, 4>}, {transform_indices = @transform_3, window_bounds = array<i64: 1, 16, 16, 4>}, {transform_indices = @transform_4, window_bounds = array<i64: 1, 1, 2, 4>}]} {
    %c0 = arith.constant 0 : index
    %c0_0 = arith.constant 0 : index
    %c0_1 = arith.constant 0 : index
    %c0_2 = arith.constant 0 : index
    %0 = vector.load %arg2[%c0, %c0_0, %c0_1, %c0_2] : memref<1x16x16x4xf32, #tpu.memory_space<vmem>>, vector<1x16x16x4xf32>
    %1 = vector.shape_cast %0 : vector<1x16x16x4xf32> to vector<16x16x4xf32>
    %cst = arith.constant 0.000000e+00 : bf16
    %2 = vector.broadcast %cst : bf16 to vector<18x1x4xbf16>
    %c0_3 = arith.constant 0 : index
    %c0_4 = arith.constant 0 : index
    %c0_5 = arith.constant 0 : index
    %3 = vector.load %arg7[%c0_3, %c0_4, %c0_5] : memref<18x18x4xbf16, #tpu.memory_space<vmem>>, vector<18x1x4xbf16>
    tpu.vector_store %arg7[%c0_3, %c0_4, %c0_5], %2 {strides = array<i32>} : memref<18x18x4xbf16, #tpu.memory_space<vmem>>, vector<18x1x4xbf16>,
    %cst_6 = arith.constant 0.000000e+00 : bf16
    %4 = vector.broadcast %cst_6 : bf16 to vector<18x1x4xbf16>
    %c0_7 = arith.constant 0 : index
    %c17 = arith.constant 17 : index
    %c0_8 = arith.constant 0 : index
    %5 = vector.load %arg7[%c0_7, %c17, %c0_8] : memref<18x18x4xbf16, #tpu.memory_space<vmem>>, vector<18x1x4xbf16>
    tpu.vector_store %arg7[%c0_7, %c17, %c0_8], %4 {strides = array<i32>} : memref<18x18x4xbf16, #tpu.memory_space<vmem>>, vector<18x1x4xbf16>,
    %6 = arith.truncf %1 : vector<16x16x4xf32> to vector<16x16x4xbf16>
    %c1 = arith.constant 1 : index
    %c1_9 = arith.constant 1 : index
    %c0_10 = arith.constant 0 : index
    %7 = vector.load %arg7[%c1, %c1_9, %c0_10] : memref<18x18x4xbf16, #tpu.memory_space<vmem>>, vector<16x16x4xbf16>
    tpu.vector_store %arg7[%c1, %c1_9, %c0_10], %6 {strides = array<i32>} : memref<18x18x4xbf16, #tpu.memory_space<vmem>>, vector<16x16x4xbf16>,
    %c0_11 = arith.constant 0 : index
    %c0_12 = arith.constant 0 : index
    %c0_13 = arith.constant 0 : index
    %c0_14 = arith.constant 0 : index
    %8 = vector.load %arg3[%c0_11, %c0_12, %c0_13, %c0_14] : memref<1x2x16x4xbf16, #tpu.memory_space<vmem>>, vector<1x1x16x4xbf16>
    %9 = vector.shape_cast %8 : vector<1x1x16x4xbf16> to vector<16x4xbf16>
    %c0_15 = arith.constant 0 : index
    %c1_16 = arith.constant 1 : index
    %c0_17 = arith.constant 0 : index
    %10 = vector.load %arg7[%c0_15, %c1_16, %c0_17] : memref<18x18x4xbf16, #tpu.memory_space<vmem>>, vector<1x16x4xbf16>
    %11 = vector.shape_cast %10 : vector<1x16x4xbf16> to vector<16x4xbf16>
    %12 = vector.shape_cast %9 : vector<16x4xbf16> to vector<1x16x4xbf16>
    tpu.vector_store %arg7[%c0_15, %c1_16, %c0_17], %12 {strides = array<i32>} : memref<18x18x4xbf16, #tpu.memory_space<vmem>>, vector<1x16x4xbf16>,
    %c0_18 = arith.constant 0 : index
    %c1_19 = arith.constant 1 : index
    %c0_20 = arith.constant 0 : index
    %c0_21 = arith.constant 0 : index
    %13 = vector.load %arg3[%c0_18, %c1_19, %c0_20, %c0_21] : memref<1x2x16x4xbf16, #tpu.memory_space<vmem>>, vector<1x1x16x4xbf16>
    %14 = vector.shape_cast %13 : vector<1x1x16x4xbf16> to vector<16x4xbf16>
    %c17_22 = arith.constant 17 : index
    %c1_23 = arith.constant 1 : index
    %c0_24 = arith.constant 0 : index
    %15 = vector.load %arg7[%c17_22, %c1_23, %c0_24] : memref<18x18x4xbf16, #tpu.memory_space<vmem>>, vector<1x16x4xbf16>
    %16 = vector.shape_cast %15 : vector<1x16x4xbf16> to vector<16x4xbf16>
    %17 = vector.shape_cast %14 : vector<16x4xbf16> to vector<1x16x4xbf16>
    tpu.vector_store %arg7[%c17_22, %c1_23, %c0_24], %17 {strides = array<i32>} : memref<18x18x4xbf16, #tpu.memory_space<vmem>>, vector<1x16x4xbf16>,
    %cst_25 = arith.constant 0.000000e+00 : f32
    %18 = vector.broadcast %cst_25 : f32 to vector<256x4xf32>
    %c0_26 = arith.constant 0 : index
    %c0_27 = arith.constant 0 : index
    %c0_28 = arith.constant 0 : index
    %19 = vector.load %arg7[%c0_26, %c0_27, %c0_28] : memref<18x18x4xbf16, #tpu.memory_space<vmem>>, vector<16x16x4xbf16>
    %20 = vector.shape_cast %19 : vector<16x16x4xbf16> to vector<256x4xbf16>
    %c0_29 = arith.constant 0 : index
    %c0_30 = arith.constant 0 : index
    %c0_31 = arith.constant 0 : index
    %21 = vector.load %arg4[%c0_29, %c0_30, %c0_31] : memref<9x4x4xbf16, #tpu.memory_space<vmem>>, vector<1x4x4xbf16>
    %22 = vector.shape_cast %21 : vector<1x4x4xbf16> to vector<4x4xbf16>
    %cst_32 = arith.constant dense<0.000000e+00> : vector<256x4xf32>
    %23 = tpu.matmul %20, %22, %cst_32 {dimension_numbers = #tpu.dot_dimension_numbers<[1], [0], [0], [1], [0, 0, 1, 1], [], []>} : vector<256x4xbf16>, vector<4x4xbf16>, vector<256x4xf32> -> vector<256x4xf32>
    %24 = arith.addf %18, %23 : vector<256x4xf32>
    %c0_33 = arith.constant 0 : index
    %c1_34 = arith.constant 1 : index
    %c0_35 = arith.constant 0 : index
    %25 = vector.load %arg7[%c0_33, %c1_34, %c0_35] : memref<18x18x4xbf16, #tpu.memory_space<vmem>>, vector<16x16x4xbf16>
    %26 = vector.shape_cast %25 : vector<16x16x4xbf16> to vector<256x4xbf16>
    %c1_36 = arith.constant 1 : index
    %c0_37 = arith.constant 0 : index
    %c0_38 = arith.constant 0 : index
    %27 = vector.load %arg4[%c1_36, %c0_37, %c0_38] : memref<9x4x4xbf16, #tpu.memory_space<vmem>>, vector<1x4x4xbf16>
    %28 = vector.shape_cast %27 : vector<1x4x4xbf16> to vector<4x4xbf16>
    %cst_39 = arith.constant dense<0.000000e+00> : vector<256x4xf32>
    %29 = tpu.matmul %26, %28, %cst_39 {dimension_numbers = #tpu.dot_dimension_numbers<[1], [0], [0], [1], [0, 0, 1, 1], [], []>} : vector<256x4xbf16>, vector<4x4xbf16>, vector<256x4xf32> -> vector<256x4xf32>
    %30 = arith.addf %24, %29 : vector<256x4xf32>
    %c0_40 = arith.constant 0 : index
    %c2 = arith.constant 2 : index
    %c0_41 = arith.constant 0 : index
    %31 = vector.load %arg7[%c0_40, %c2, %c0_41] : memref<18x18x4xbf16, #tpu.memory_space<vmem>>, vector<16x16x4xbf16>
    %32 = vector.shape_cast %31 : vector<16x16x4xbf16> to vector<256x4xbf16>
    %c2_42 = arith.constant 2 : index
    %c0_43 = arith.constant 0 : index
    %c0_44 = arith.constant 0 : index
    %33 = vector.load %arg4[%c2_42, %c0_43, %c0_44] : memref<9x4x4xbf16, #tpu.memory_space<vmem>>, vector<1x4x4xbf16>
    %34 = vector.shape_cast %33 : vector<1x4x4xbf16> to vector<4x4xbf16>
    %cst_45 = arith.constant dense<0.000000e+00> : vector<256x4xf32>
    %35 = tpu.matmul %32, %34, %cst_45 {dimension_numbers = #tpu.dot_dimension_numbers<[1], [0], [0], [1], [0, 0, 1, 1], [], []>} : vector<256x4xbf16>, vector<4x4xbf16>, vector<256x4xf32> -> vector<256x4xf32>
    %36 = arith.addf %30, %35 : vector<256x4xf32>
    %c1_46 = arith.constant 1 : index
    %c0_47 = arith.constant 0 : index
    %c0_48 = arith.constant 0 : index
    %37 = vector.load %arg7[%c1_46, %c0_47, %c0_48] : memref<18x18x4xbf16, #tpu.memory_space<vmem>>, vector<16x16x4xbf16>
    %38 = vector.shape_cast %37 : vector<16x16x4xbf16> to vector<256x4xbf16>
    %c3 = arith.constant 3 : index
    %c0_49 = arith.constant 0 : index
    %c0_50 = arith.constant 0 : index
    %39 = vector.load %arg4[%c3, %c0_49, %c0_50] : memref<9x4x4xbf16, #tpu.memory_space<vmem>>, vector<1x4x4xbf16>
    %40 = vector.shape_cast %39 : vector<1x4x4xbf16> to vector<4x4xbf16>
    %cst_51 = arith.constant dense<0.000000e+00> : vector<256x4xf32>
    %41 = tpu.matmul %38, %40, %cst_51 {dimension_numbers = #tpu.dot_dimension_numbers<[1], [0], [0], [1], [0, 0, 1, 1], [], []>} : vector<256x4xbf16>, vector<4x4xbf16>, vector<256x4xf32> -> vector<256x4xf32>
    %42 = arith.addf %36, %41 : vector<256x4xf32>
    %c1_52 = arith.constant 1 : index
    %c1_53 = arith.constant 1 : index
    %c0_54 = arith.constant 0 : index
    %43 = vector.load %arg7[%c1_52, %c1_53, %c0_54] : memref<18x18x4xbf16, #tpu.memory_space<vmem>>, vector<16x16x4xbf16>
    %44 = vector.shape_cast %43 : vector<16x16x4xbf16> to vector<256x4xbf16>
    %c4 = arith.constant 4 : index
    %c0_55 = arith.constant 0 : index
    %c0_56 = arith.constant 0 : index
    %45 = vector.load %arg4[%c4, %c0_55, %c0_56] : memref<9x4x4xbf16, #tpu.memory_space<vmem>>, vector<1x4x4xbf16>
    %46 = vector.shape_cast %45 : vector<1x4x4xbf16> to vector<4x4xbf16>
    %cst_57 = arith.constant dense<0.000000e+00> : vector<256x4xf32>
    %47 = tpu.matmul %44, %46, %cst_57 {dimension_numbers = #tpu.dot_dimension_numbers<[1], [0], [0], [1], [0, 0, 1, 1], [], []>} : vector<256x4xbf16>, vector<4x4xbf16>, vector<256x4xf32> -> vector<256x4xf32>
    %48 = arith.addf %42, %47 : vector<256x4xf32>
    %c1_58 = arith.constant 1 : index
    %c2_59 = arith.constant 2 : index
    %c0_60 = arith.constant 0 : index
    %49 = vector.load %arg7[%c1_58, %c2_59, %c0_60] : memref<18x18x4xbf16, #tpu.memory_space<vmem>>, vector<16x16x4xbf16>
    %50 = vector.shape_cast %49 : vector<16x16x4xbf16> to vector<256x4xbf16>
    %c5 = arith.constant 5 : index
    %c0_61 = arith.constant 0 : index
    %c0_62 = arith.constant 0 : index
    %51 = vector.load %arg4[%c5, %c0_61, %c0_62] : memref<9x4x4xbf16, #tpu.memory_space<vmem>>, vector<1x4x4xbf16>
    %52 = vector.shape_cast %51 : vector<1x4x4xbf16> to vector<4x4xbf16>
    %cst_63 = arith.constant dense<0.000000e+00> : vector<256x4xf32>
    %53 = tpu.matmul %50, %52, %cst_63 {dimension_numbers = #tpu.dot_dimension_numbers<[1], [0], [0], [1], [0, 0, 1, 1], [], []>} : vector<256x4xbf16>, vector<4x4xbf16>, vector<256x4xf32> -> vector<256x4xf32>
    %54 = arith.addf %48, %53 : vector<256x4xf32>
    %c2_64 = arith.constant 2 : index
    %c0_65 = arith.constant 0 : index
    %c0_66 = arith.constant 0 : index
    %55 = vector.load %arg7[%c2_64, %c0_65, %c0_66] : memref<18x18x4xbf16, #tpu.memory_space<vmem>>, vector<16x16x4xbf16>
    %56 = vector.shape_cast %55 : vector<16x16x4xbf16> to vector<256x4xbf16>
    %c6 = arith.constant 6 : index
    %c0_67 = arith.constant 0 : index
    %c0_68 = arith.constant 0 : index
    %57 = vector.load %arg4[%c6, %c0_67, %c0_68] : memref<9x4x4xbf16, #tpu.memory_space<vmem>>, vector<1x4x4xbf16>
    %58 = vector.shape_cast %57 : vector<1x4x4xbf16> to vector<4x4xbf16>
    %cst_69 = arith.constant dense<0.000000e+00> : vector<256x4xf32>
    %59 = tpu.matmul %56, %58, %cst_69 {dimension_numbers = #tpu.dot_dimension_numbers<[1], [0], [0], [1], [0, 0, 1, 1], [], []>} : vector<256x4xbf16>, vector<4x4xbf16>, vector<256x4xf32> -> vector<256x4xf32>
    %60 = arith.addf %54, %59 : vector<256x4xf32>
    %c2_70 = arith.constant 2 : index
    %c1_71 = arith.constant 1 : index
    %c0_72 = arith.constant 0 : index
    %61 = vector.load %arg7[%c2_70, %c1_71, %c0_72] : memref<18x18x4xbf16, #tpu.memory_space<vmem>>, vector<16x16x4xbf16>
    %62 = vector.shape_cast %61 : vector<16x16x4xbf16> to vector<256x4xbf16>
    %c7 = arith.constant 7 : index
    %c0_73 = arith.constant 0 : index
    %c0_74 = arith.constant 0 : index
    %63 = vector.load %arg4[%c7, %c0_73, %c0_74] : memref<9x4x4xbf16, #tpu.memory_space<vmem>>, vector<1x4x4xbf16>
    %64 = vector.shape_cast %63 : vector<1x4x4xbf16> to vector<4x4xbf16>
    %cst_75 = arith.constant dense<0.000000e+00> : vector<256x4xf32>
    %65 = tpu.matmul %62, %64, %cst_75 {dimension_numbers = #tpu.dot_dimension_numbers<[1], [0], [0], [1], [0, 0, 1, 1], [], []>} : vector<256x4xbf16>, vector<4x4xbf16>, vector<256x4xf32> -> vector<256x4xf32>
    %66 = arith.addf %60, %65 : vector<256x4xf32>
    %c2_76 = arith.constant 2 : index
    %c2_77 = arith.constant 2 : index
    %c0_78 = arith.constant 0 : index
    %67 = vector.load %arg7[%c2_76, %c2_77, %c0_78] : memref<18x18x4xbf16, #tpu.memory_space<vmem>>, vector<16x16x4xbf16>
    %68 = vector.shape_cast %67 : vector<16x16x4xbf16> to vector<256x4xbf16>
    %c8 = arith.constant 8 : index
    %c0_79 = arith.constant 0 : index
    %c0_80 = arith.constant 0 : index
    %69 = vector.load %arg4[%c8, %c0_79, %c0_80] : memref<9x4x4xbf16, #tpu.memory_space<vmem>>, vector<1x4x4xbf16>
    %70 = vector.shape_cast %69 : vector<1x4x4xbf16> to vector<4x4xbf16>
    %cst_81 = arith.constant dense<0.000000e+00> : vector<256x4xf32>
    %71 = tpu.matmul %68, %70, %cst_81 {dimension_numbers = #tpu.dot_dimension_numbers<[1], [0], [0], [1], [0, 0, 1, 1], [], []>} : vector<256x4xbf16>, vector<4x4xbf16>, vector<256x4xf32> -> vector<256x4xf32>
    %72 = arith.addf %66, %71 : vector<256x4xf32>
    %73 = vector.shape_cast %72 : vector<256x4xf32> to vector<1x16x16x4xf32>
    %74 = arith.truncf %73 : vector<1x16x16x4xf32> to vector<1x16x16x4xbf16>
    %c0_82 = arith.constant 0 : index
    %c0_83 = arith.constant 0 : index
    %c0_84 = arith.constant 0 : index
    %c0_85 = arith.constant 0 : index
    %75 = vector.load %arg5[%c0_82, %c0_83, %c0_84, %c0_85] : memref<1x16x16x4xbf16, #tpu.memory_space<vmem>>, vector<1x16x16x4xbf16>
    tpu.vector_store %arg5[%c0_82, %c0_83, %c0_84, %c0_85], %74 {strides = array<i32>} : memref<1x16x16x4xbf16, #tpu.memory_space<vmem>>, vector<1x16x16x4xbf16>,
    %cst_86 = arith.constant dense<0.000000e+00> : vector<4xf32>
    %76 = vector.multi_reduction <add>, %72, %cst_86 [0] : vector<256x4xf32> to vector<4xf32>
    %77 = vector.shape_cast %76 : vector<4xf32> to vector<1x4xf32>
    %c0_87 = arith.constant 0 : index
    %c0_88 = arith.constant 0 : index
    %c0_89 = arith.constant 0 : index
    %c0_90 = arith.constant 0 : index
    %78 = vector.load %arg6[%c0_87, %c0_88, %c0_89, %c0_90] : memref<1x1x2x4xf32, #tpu.memory_space<vmem>>, vector<1x1x1x4xf32>
    %79 = vector.shape_cast %78 : vector<1x1x1x4xf32> to vector<1x4xf32>
    %80 = vector.shape_cast %77 : vector<1x4xf32> to vector<1x1x1x4xf32>
    tpu.vector_store %arg6[%c0_87, %c0_88, %c0_89, %c0_90], %80 {strides = array<i32>} : memref<1x1x2x4xf32, #tpu.memory_space<vmem>>, vector<1x1x1x4xf32>,
    %81 = arith.mulf %72, %72 : vector<256x4xf32>
    %cst_91 = arith.constant dense<0.000000e+00> : vector<4xf32>
    %82 = vector.multi_reduction <add>, %81, %cst_91 [0] : vector<256x4xf32> to vector<4xf32>
    %83 = vector.shape_cast %82 : vector<4xf32> to vector<1x4xf32>
    %c0_92 = arith.constant 0 : index
    %c0_93 = arith.constant 0 : index
    %c1_94 = arith.constant 1 : index
    %c0_95 = arith.constant 0 : index
    %84 = vector.load %arg6[%c0_92, %c0_93, %c1_94, %c0_95] : memref<1x1x2x4xf32, #tpu.memory_space<vmem>>, vector<1x1x1x4xf32>
    %85 = vector.shape_cast %84 : vector<1x1x1x4xf32> to vector<1x4xf32>
    %86 = vector.shape_cast %83 : vector<1x4xf32> to vector<1x1x1x4xf32>
    tpu.vector_store %arg6[%c0_92, %c0_93, %c1_94, %c0_95], %86 {strides = array<i32>} : memref<1x1x2x4xf32, #tpu.memory_space<vmem>>, vector<1x1x1x4xf32>,
    return
  }
  func.func @transform_0(%arg0: i32, %arg1: i32) -> (i32, i32, i32, i32) {
    %c0_i32 = arith.constant 0 : i32
    %c0_i32_0 = arith.constant 0 : i32
    %c0_i32_1 = arith.constant 0 : i32
    return %arg0, %arg1, %c0_i32, %c0_i32_0 : i32, i32, i32, i32
  }
  func.func @transform_1(%arg0: i32, %arg1: i32) -> (i32, i32, i32, i32) {
    %c0_i32 = arith.constant 0 : i32
    %c0_i32_0 = arith.constant 0 : i32
    %c0_i32_1 = arith.constant 0 : i32
    return %arg0, %arg1, %c0_i32, %c0_i32_0 : i32, i32, i32, i32
  }
  func.func @transform_2(%arg0: i32, %arg1: i32) -> (i32, i32, i32) {
    %c0_i32 = arith.constant 0 : i32
    %c0_i32_0 = arith.constant 0 : i32
    %c0_i32_1 = arith.constant 0 : i32
    %c0_i32_2 = arith.constant 0 : i32
    return %c0_i32, %c0_i32_0, %c0_i32_1 : i32, i32, i32
  }
  func.func @transform_3(%arg0: i32, %arg1: i32) -> (i32, i32, i32, i32) {
    %c0_i32 = arith.constant 0 : i32
    %c0_i32_0 = arith.constant 0 : i32
    %c0_i32_1 = arith.constant 0 : i32
    return %arg0, %arg1, %c0_i32, %c0_i32_0 : i32, i32, i32, i32
  }
  func.func @transform_4(%arg0: i32, %arg1: i32) -> (i32, i32, i32, i32) {
    %c0_i32 = arith.constant 0 : i32
    %c0_i32_0 = arith.constant 0 : i32
    %c0_i32_1 = arith.constant 0 : i32
    return %arg0, %arg1, %c0_i32, %c0_i32_0 : i32, i32, i32, i32
  }
}

module attributes {stable_mosaic.version = 11 : i64} {
  func.func @_conv_stats_kernel(%arg0: i32, %arg1: i32, %arg2: memref<1x16x16x4xbf16, #tpu.memory_space<vmem>>, %arg3: memref<1x2x16x4xbf16, #tpu.memory_space<vmem>>, %arg4: memref<9x4x8xbf16, #tpu.memory_space<vmem>>, %arg5: memref<1x4xf32, #tpu.memory_space<vmem>>, %arg6: memref<1x4xf32, #tpu.memory_space<vmem>>, %arg7: memref<1x16x16x8xbf16, #tpu.memory_space<vmem>>, %arg8: memref<1x1x2x8xf32, #tpu.memory_space<vmem>>, %arg9: memref<18x18x4xbf16, #tpu.memory_space<vmem>>) attributes {dimension_semantics = [#tpu.dimension_semantics<parallel>, #tpu.dimension_semantics<parallel>], iteration_bounds = array<i64: 2, 1>, scalar_prefetch = 0 : i64, scratch_operands = 1 : i64, tpu.core_type = #tpu.core_type<tc>, window_params = [{transform_indices = @transform_0, window_bounds = array<i64: 1, 16, 16, 4>}, {transform_indices = @transform_1, window_bounds = array<i64: 1, 2, 16, 4>}, {pipeline_mode = #tpu.pipeline_mode<synchronous>, transform_indices = @transform_2, window_bounds = array<i64: 9, 4, 8>}, {pipeline_mode = #tpu.pipeline_mode<synchronous>, transform_indices = @transform_3, window_bounds = array<i64: 1, 4>}, {pipeline_mode = #tpu.pipeline_mode<synchronous>, transform_indices = @transform_4, window_bounds = array<i64: 1, 4>}, {transform_indices = @transform_5, window_bounds = array<i64: 1, 16, 16, 8>}, {transform_indices = @transform_6, window_bounds = array<i64: 1, 1, 2, 8>}]} {
    %c0 = arith.constant 0 : index
    %c0_0 = arith.constant 0 : index
    %c0_1 = arith.constant 0 : index
    %c0_2 = arith.constant 0 : index
    %0 = vector.load %arg2[%c0, %c0_0, %c0_1, %c0_2] : memref<1x16x16x4xbf16, #tpu.memory_space<vmem>>, vector<1x16x16x4xbf16>
    %1 = vector.shape_cast %0 : vector<1x16x16x4xbf16> to vector<16x16x4xbf16>
    %2 = arith.extf %1 : vector<16x16x4xbf16> to vector<16x16x4xf32>
    %c0_3 = arith.constant 0 : index
    %c0_4 = arith.constant 0 : index
    %3 = vector.load %arg5[%c0_3, %c0_4] : memref<1x4xf32, #tpu.memory_space<vmem>>, vector<1x4xf32>
    %4 = vector.shape_cast %3 : vector<1x4xf32> to vector<1x1x4xf32>
    %5 = vector.broadcast %4 : vector<1x1x4xf32> to vector<16x16x4xf32>
    %6 = arith.mulf %2, %5 : vector<16x16x4xf32>
    %c0_5 = arith.constant 0 : index
    %c0_6 = arith.constant 0 : index
    %7 = vector.load %arg6[%c0_5, %c0_6] : memref<1x4xf32, #tpu.memory_space<vmem>>, vector<1x4xf32>
    %8 = vector.shape_cast %7 : vector<1x4xf32> to vector<1x1x4xf32>
    %9 = vector.broadcast %8 : vector<1x1x4xf32> to vector<16x16x4xf32>
    %10 = arith.addf %6, %9 : vector<16x16x4xf32>
    %cst = arith.constant 0.000000e+00 : f32
    %11 = vector.broadcast %cst : f32 to vector<16x16x4xf32>
    %12 = arith.maximumf %10, %11 : vector<16x16x4xf32>
    %cst_7 = arith.constant 0.000000e+00 : bf16
    %13 = vector.broadcast %cst_7 : bf16 to vector<18x1x4xbf16>
    %c0_8 = arith.constant 0 : index
    %c0_9 = arith.constant 0 : index
    %c0_10 = arith.constant 0 : index
    %14 = vector.load %arg9[%c0_8, %c0_9, %c0_10] : memref<18x18x4xbf16, #tpu.memory_space<vmem>>, vector<18x1x4xbf16>
    tpu.vector_store %arg9[%c0_8, %c0_9, %c0_10], %13 {strides = array<i32>} : memref<18x18x4xbf16, #tpu.memory_space<vmem>>, vector<18x1x4xbf16>,
    %cst_11 = arith.constant 0.000000e+00 : bf16
    %15 = vector.broadcast %cst_11 : bf16 to vector<18x1x4xbf16>
    %c0_12 = arith.constant 0 : index
    %c17 = arith.constant 17 : index
    %c0_13 = arith.constant 0 : index
    %16 = vector.load %arg9[%c0_12, %c17, %c0_13] : memref<18x18x4xbf16, #tpu.memory_space<vmem>>, vector<18x1x4xbf16>
    tpu.vector_store %arg9[%c0_12, %c17, %c0_13], %15 {strides = array<i32>} : memref<18x18x4xbf16, #tpu.memory_space<vmem>>, vector<18x1x4xbf16>,
    %17 = arith.truncf %12 : vector<16x16x4xf32> to vector<16x16x4xbf16>
    %c1 = arith.constant 1 : index
    %c1_14 = arith.constant 1 : index
    %c0_15 = arith.constant 0 : index
    %18 = vector.load %arg9[%c1, %c1_14, %c0_15] : memref<18x18x4xbf16, #tpu.memory_space<vmem>>, vector<16x16x4xbf16>
    tpu.vector_store %arg9[%c1, %c1_14, %c0_15], %17 {strides = array<i32>} : memref<18x18x4xbf16, #tpu.memory_space<vmem>>, vector<16x16x4xbf16>,
    %c0_16 = arith.constant 0 : index
    %c0_17 = arith.constant 0 : index
    %c0_18 = arith.constant 0 : index
    %c0_19 = arith.constant 0 : index
    %19 = vector.load %arg3[%c0_16, %c0_17, %c0_18, %c0_19] : memref<1x2x16x4xbf16, #tpu.memory_space<vmem>>, vector<1x1x16x4xbf16>
    %20 = vector.shape_cast %19 : vector<1x1x16x4xbf16> to vector<16x4xbf16>
    %c0_20 = arith.constant 0 : index
    %c1_21 = arith.constant 1 : index
    %c0_22 = arith.constant 0 : index
    %21 = vector.load %arg9[%c0_20, %c1_21, %c0_22] : memref<18x18x4xbf16, #tpu.memory_space<vmem>>, vector<1x16x4xbf16>
    %22 = vector.shape_cast %21 : vector<1x16x4xbf16> to vector<16x4xbf16>
    %23 = vector.shape_cast %20 : vector<16x4xbf16> to vector<1x16x4xbf16>
    tpu.vector_store %arg9[%c0_20, %c1_21, %c0_22], %23 {strides = array<i32>} : memref<18x18x4xbf16, #tpu.memory_space<vmem>>, vector<1x16x4xbf16>,
    %c0_23 = arith.constant 0 : index
    %c1_24 = arith.constant 1 : index
    %c0_25 = arith.constant 0 : index
    %c0_26 = arith.constant 0 : index
    %24 = vector.load %arg3[%c0_23, %c1_24, %c0_25, %c0_26] : memref<1x2x16x4xbf16, #tpu.memory_space<vmem>>, vector<1x1x16x4xbf16>
    %25 = vector.shape_cast %24 : vector<1x1x16x4xbf16> to vector<16x4xbf16>
    %c17_27 = arith.constant 17 : index
    %c1_28 = arith.constant 1 : index
    %c0_29 = arith.constant 0 : index
    %26 = vector.load %arg9[%c17_27, %c1_28, %c0_29] : memref<18x18x4xbf16, #tpu.memory_space<vmem>>, vector<1x16x4xbf16>
    %27 = vector.shape_cast %26 : vector<1x16x4xbf16> to vector<16x4xbf16>
    %28 = vector.shape_cast %25 : vector<16x4xbf16> to vector<1x16x4xbf16>
    tpu.vector_store %arg9[%c17_27, %c1_28, %c0_29], %28 {strides = array<i32>} : memref<18x18x4xbf16, #tpu.memory_space<vmem>>, vector<1x16x4xbf16>,
    %cst_30 = arith.constant 0.000000e+00 : f32
    %29 = vector.broadcast %cst_30 : f32 to vector<256x8xf32>
    %c0_31 = arith.constant 0 : index
    %c0_32 = arith.constant 0 : index
    %c0_33 = arith.constant 0 : index
    %30 = vector.load %arg9[%c0_31, %c0_32, %c0_33] : memref<18x18x4xbf16, #tpu.memory_space<vmem>>, vector<16x16x4xbf16>
    %31 = vector.shape_cast %30 : vector<16x16x4xbf16> to vector<256x4xbf16>
    %c0_34 = arith.constant 0 : index
    %c0_35 = arith.constant 0 : index
    %c0_36 = arith.constant 0 : index
    %32 = vector.load %arg4[%c0_34, %c0_35, %c0_36] : memref<9x4x8xbf16, #tpu.memory_space<vmem>>, vector<1x4x8xbf16>
    %33 = vector.shape_cast %32 : vector<1x4x8xbf16> to vector<4x8xbf16>
    %cst_37 = arith.constant dense<0.000000e+00> : vector<256x8xf32>
    %34 = tpu.matmul %31, %33, %cst_37 {dimension_numbers = #tpu.dot_dimension_numbers<[1], [0], [0], [1], [0, 0, 1, 1], [], []>} : vector<256x4xbf16>, vector<4x8xbf16>, vector<256x8xf32> -> vector<256x8xf32>
    %35 = arith.addf %29, %34 : vector<256x8xf32>
    %c0_38 = arith.constant 0 : index
    %c1_39 = arith.constant 1 : index
    %c0_40 = arith.constant 0 : index
    %36 = vector.load %arg9[%c0_38, %c1_39, %c0_40] : memref<18x18x4xbf16, #tpu.memory_space<vmem>>, vector<16x16x4xbf16>
    %37 = vector.shape_cast %36 : vector<16x16x4xbf16> to vector<256x4xbf16>
    %c1_41 = arith.constant 1 : index
    %c0_42 = arith.constant 0 : index
    %c0_43 = arith.constant 0 : index
    %38 = vector.load %arg4[%c1_41, %c0_42, %c0_43] : memref<9x4x8xbf16, #tpu.memory_space<vmem>>, vector<1x4x8xbf16>
    %39 = vector.shape_cast %38 : vector<1x4x8xbf16> to vector<4x8xbf16>
    %cst_44 = arith.constant dense<0.000000e+00> : vector<256x8xf32>
    %40 = tpu.matmul %37, %39, %cst_44 {dimension_numbers = #tpu.dot_dimension_numbers<[1], [0], [0], [1], [0, 0, 1, 1], [], []>} : vector<256x4xbf16>, vector<4x8xbf16>, vector<256x8xf32> -> vector<256x8xf32>
    %41 = arith.addf %35, %40 : vector<256x8xf32>
    %c0_45 = arith.constant 0 : index
    %c2 = arith.constant 2 : index
    %c0_46 = arith.constant 0 : index
    %42 = vector.load %arg9[%c0_45, %c2, %c0_46] : memref<18x18x4xbf16, #tpu.memory_space<vmem>>, vector<16x16x4xbf16>
    %43 = vector.shape_cast %42 : vector<16x16x4xbf16> to vector<256x4xbf16>
    %c2_47 = arith.constant 2 : index
    %c0_48 = arith.constant 0 : index
    %c0_49 = arith.constant 0 : index
    %44 = vector.load %arg4[%c2_47, %c0_48, %c0_49] : memref<9x4x8xbf16, #tpu.memory_space<vmem>>, vector<1x4x8xbf16>
    %45 = vector.shape_cast %44 : vector<1x4x8xbf16> to vector<4x8xbf16>
    %cst_50 = arith.constant dense<0.000000e+00> : vector<256x8xf32>
    %46 = tpu.matmul %43, %45, %cst_50 {dimension_numbers = #tpu.dot_dimension_numbers<[1], [0], [0], [1], [0, 0, 1, 1], [], []>} : vector<256x4xbf16>, vector<4x8xbf16>, vector<256x8xf32> -> vector<256x8xf32>
    %47 = arith.addf %41, %46 : vector<256x8xf32>
    %c1_51 = arith.constant 1 : index
    %c0_52 = arith.constant 0 : index
    %c0_53 = arith.constant 0 : index
    %48 = vector.load %arg9[%c1_51, %c0_52, %c0_53] : memref<18x18x4xbf16, #tpu.memory_space<vmem>>, vector<16x16x4xbf16>
    %49 = vector.shape_cast %48 : vector<16x16x4xbf16> to vector<256x4xbf16>
    %c3 = arith.constant 3 : index
    %c0_54 = arith.constant 0 : index
    %c0_55 = arith.constant 0 : index
    %50 = vector.load %arg4[%c3, %c0_54, %c0_55] : memref<9x4x8xbf16, #tpu.memory_space<vmem>>, vector<1x4x8xbf16>
    %51 = vector.shape_cast %50 : vector<1x4x8xbf16> to vector<4x8xbf16>
    %cst_56 = arith.constant dense<0.000000e+00> : vector<256x8xf32>
    %52 = tpu.matmul %49, %51, %cst_56 {dimension_numbers = #tpu.dot_dimension_numbers<[1], [0], [0], [1], [0, 0, 1, 1], [], []>} : vector<256x4xbf16>, vector<4x8xbf16>, vector<256x8xf32> -> vector<256x8xf32>
    %53 = arith.addf %47, %52 : vector<256x8xf32>
    %c1_57 = arith.constant 1 : index
    %c1_58 = arith.constant 1 : index
    %c0_59 = arith.constant 0 : index
    %54 = vector.load %arg9[%c1_57, %c1_58, %c0_59] : memref<18x18x4xbf16, #tpu.memory_space<vmem>>, vector<16x16x4xbf16>
    %55 = vector.shape_cast %54 : vector<16x16x4xbf16> to vector<256x4xbf16>
    %c4 = arith.constant 4 : index
    %c0_60 = arith.constant 0 : index
    %c0_61 = arith.constant 0 : index
    %56 = vector.load %arg4[%c4, %c0_60, %c0_61] : memref<9x4x8xbf16, #tpu.memory_space<vmem>>, vector<1x4x8xbf16>
    %57 = vector.shape_cast %56 : vector<1x4x8xbf16> to vector<4x8xbf16>
    %cst_62 = arith.constant dense<0.000000e+00> : vector<256x8xf32>
    %58 = tpu.matmul %55, %57, %cst_62 {dimension_numbers = #tpu.dot_dimension_numbers<[1], [0], [0], [1], [0, 0, 1, 1], [], []>} : vector<256x4xbf16>, vector<4x8xbf16>, vector<256x8xf32> -> vector<256x8xf32>
    %59 = arith.addf %53, %58 : vector<256x8xf32>
    %c1_63 = arith.constant 1 : index
    %c2_64 = arith.constant 2 : index
    %c0_65 = arith.constant 0 : index
    %60 = vector.load %arg9[%c1_63, %c2_64, %c0_65] : memref<18x18x4xbf16, #tpu.memory_space<vmem>>, vector<16x16x4xbf16>
    %61 = vector.shape_cast %60 : vector<16x16x4xbf16> to vector<256x4xbf16>
    %c5 = arith.constant 5 : index
    %c0_66 = arith.constant 0 : index
    %c0_67 = arith.constant 0 : index
    %62 = vector.load %arg4[%c5, %c0_66, %c0_67] : memref<9x4x8xbf16, #tpu.memory_space<vmem>>, vector<1x4x8xbf16>
    %63 = vector.shape_cast %62 : vector<1x4x8xbf16> to vector<4x8xbf16>
    %cst_68 = arith.constant dense<0.000000e+00> : vector<256x8xf32>
    %64 = tpu.matmul %61, %63, %cst_68 {dimension_numbers = #tpu.dot_dimension_numbers<[1], [0], [0], [1], [0, 0, 1, 1], [], []>} : vector<256x4xbf16>, vector<4x8xbf16>, vector<256x8xf32> -> vector<256x8xf32>
    %65 = arith.addf %59, %64 : vector<256x8xf32>
    %c2_69 = arith.constant 2 : index
    %c0_70 = arith.constant 0 : index
    %c0_71 = arith.constant 0 : index
    %66 = vector.load %arg9[%c2_69, %c0_70, %c0_71] : memref<18x18x4xbf16, #tpu.memory_space<vmem>>, vector<16x16x4xbf16>
    %67 = vector.shape_cast %66 : vector<16x16x4xbf16> to vector<256x4xbf16>
    %c6 = arith.constant 6 : index
    %c0_72 = arith.constant 0 : index
    %c0_73 = arith.constant 0 : index
    %68 = vector.load %arg4[%c6, %c0_72, %c0_73] : memref<9x4x8xbf16, #tpu.memory_space<vmem>>, vector<1x4x8xbf16>
    %69 = vector.shape_cast %68 : vector<1x4x8xbf16> to vector<4x8xbf16>
    %cst_74 = arith.constant dense<0.000000e+00> : vector<256x8xf32>
    %70 = tpu.matmul %67, %69, %cst_74 {dimension_numbers = #tpu.dot_dimension_numbers<[1], [0], [0], [1], [0, 0, 1, 1], [], []>} : vector<256x4xbf16>, vector<4x8xbf16>, vector<256x8xf32> -> vector<256x8xf32>
    %71 = arith.addf %65, %70 : vector<256x8xf32>
    %c2_75 = arith.constant 2 : index
    %c1_76 = arith.constant 1 : index
    %c0_77 = arith.constant 0 : index
    %72 = vector.load %arg9[%c2_75, %c1_76, %c0_77] : memref<18x18x4xbf16, #tpu.memory_space<vmem>>, vector<16x16x4xbf16>
    %73 = vector.shape_cast %72 : vector<16x16x4xbf16> to vector<256x4xbf16>
    %c7 = arith.constant 7 : index
    %c0_78 = arith.constant 0 : index
    %c0_79 = arith.constant 0 : index
    %74 = vector.load %arg4[%c7, %c0_78, %c0_79] : memref<9x4x8xbf16, #tpu.memory_space<vmem>>, vector<1x4x8xbf16>
    %75 = vector.shape_cast %74 : vector<1x4x8xbf16> to vector<4x8xbf16>
    %cst_80 = arith.constant dense<0.000000e+00> : vector<256x8xf32>
    %76 = tpu.matmul %73, %75, %cst_80 {dimension_numbers = #tpu.dot_dimension_numbers<[1], [0], [0], [1], [0, 0, 1, 1], [], []>} : vector<256x4xbf16>, vector<4x8xbf16>, vector<256x8xf32> -> vector<256x8xf32>
    %77 = arith.addf %71, %76 : vector<256x8xf32>
    %c2_81 = arith.constant 2 : index
    %c2_82 = arith.constant 2 : index
    %c0_83 = arith.constant 0 : index
    %78 = vector.load %arg9[%c2_81, %c2_82, %c0_83] : memref<18x18x4xbf16, #tpu.memory_space<vmem>>, vector<16x16x4xbf16>
    %79 = vector.shape_cast %78 : vector<16x16x4xbf16> to vector<256x4xbf16>
    %c8 = arith.constant 8 : index
    %c0_84 = arith.constant 0 : index
    %c0_85 = arith.constant 0 : index
    %80 = vector.load %arg4[%c8, %c0_84, %c0_85] : memref<9x4x8xbf16, #tpu.memory_space<vmem>>, vector<1x4x8xbf16>
    %81 = vector.shape_cast %80 : vector<1x4x8xbf16> to vector<4x8xbf16>
    %cst_86 = arith.constant dense<0.000000e+00> : vector<256x8xf32>
    %82 = tpu.matmul %79, %81, %cst_86 {dimension_numbers = #tpu.dot_dimension_numbers<[1], [0], [0], [1], [0, 0, 1, 1], [], []>} : vector<256x4xbf16>, vector<4x8xbf16>, vector<256x8xf32> -> vector<256x8xf32>
    %83 = arith.addf %77, %82 : vector<256x8xf32>
    %84 = vector.shape_cast %83 : vector<256x8xf32> to vector<1x16x16x8xf32>
    %85 = arith.truncf %84 : vector<1x16x16x8xf32> to vector<1x16x16x8xbf16>
    %c0_87 = arith.constant 0 : index
    %c0_88 = arith.constant 0 : index
    %c0_89 = arith.constant 0 : index
    %c0_90 = arith.constant 0 : index
    %86 = vector.load %arg7[%c0_87, %c0_88, %c0_89, %c0_90] : memref<1x16x16x8xbf16, #tpu.memory_space<vmem>>, vector<1x16x16x8xbf16>
    tpu.vector_store %arg7[%c0_87, %c0_88, %c0_89, %c0_90], %85 {strides = array<i32>} : memref<1x16x16x8xbf16, #tpu.memory_space<vmem>>, vector<1x16x16x8xbf16>,
    %cst_91 = arith.constant dense<0.000000e+00> : vector<8xf32>
    %87 = vector.multi_reduction <add>, %83, %cst_91 [0] : vector<256x8xf32> to vector<8xf32>
    %88 = vector.shape_cast %87 : vector<8xf32> to vector<1x8xf32>
    %c0_92 = arith.constant 0 : index
    %c0_93 = arith.constant 0 : index
    %c0_94 = arith.constant 0 : index
    %c0_95 = arith.constant 0 : index
    %89 = vector.load %arg8[%c0_92, %c0_93, %c0_94, %c0_95] : memref<1x1x2x8xf32, #tpu.memory_space<vmem>>, vector<1x1x1x8xf32>
    %90 = vector.shape_cast %89 : vector<1x1x1x8xf32> to vector<1x8xf32>
    %91 = vector.shape_cast %88 : vector<1x8xf32> to vector<1x1x1x8xf32>
    tpu.vector_store %arg8[%c0_92, %c0_93, %c0_94, %c0_95], %91 {strides = array<i32>} : memref<1x1x2x8xf32, #tpu.memory_space<vmem>>, vector<1x1x1x8xf32>,
    %92 = arith.mulf %83, %83 : vector<256x8xf32>
    %cst_96 = arith.constant dense<0.000000e+00> : vector<8xf32>
    %93 = vector.multi_reduction <add>, %92, %cst_96 [0] : vector<256x8xf32> to vector<8xf32>
    %94 = vector.shape_cast %93 : vector<8xf32> to vector<1x8xf32>
    %c0_97 = arith.constant 0 : index
    %c0_98 = arith.constant 0 : index
    %c1_99 = arith.constant 1 : index
    %c0_100 = arith.constant 0 : index
    %95 = vector.load %arg8[%c0_97, %c0_98, %c1_99, %c0_100] : memref<1x1x2x8xf32, #tpu.memory_space<vmem>>, vector<1x1x1x8xf32>
    %96 = vector.shape_cast %95 : vector<1x1x1x8xf32> to vector<1x8xf32>
    %97 = vector.shape_cast %94 : vector<1x8xf32> to vector<1x1x1x8xf32>
    tpu.vector_store %arg8[%c0_97, %c0_98, %c1_99, %c0_100], %97 {strides = array<i32>} : memref<1x1x2x8xf32, #tpu.memory_space<vmem>>, vector<1x1x1x8xf32>,
    return
  }
  func.func @transform_0(%arg0: i32, %arg1: i32) -> (i32, i32, i32, i32) {
    %c0_i32 = arith.constant 0 : i32
    %c0_i32_0 = arith.constant 0 : i32
    %c0_i32_1 = arith.constant 0 : i32
    return %arg0, %arg1, %c0_i32, %c0_i32_0 : i32, i32, i32, i32
  }
  func.func @transform_1(%arg0: i32, %arg1: i32) -> (i32, i32, i32, i32) {
    %c0_i32 = arith.constant 0 : i32
    %c0_i32_0 = arith.constant 0 : i32
    %c0_i32_1 = arith.constant 0 : i32
    return %arg0, %arg1, %c0_i32, %c0_i32_0 : i32, i32, i32, i32
  }
  func.func @transform_2(%arg0: i32, %arg1: i32) -> (i32, i32, i32) {
    %c0_i32 = arith.constant 0 : i32
    %c0_i32_0 = arith.constant 0 : i32
    %c0_i32_1 = arith.constant 0 : i32
    %c0_i32_2 = arith.constant 0 : i32
    return %c0_i32, %c0_i32_0, %c0_i32_1 : i32, i32, i32
  }
  func.func @transform_3(%arg0: i32, %arg1: i32) -> (i32, i32) {
    %c0_i32 = arith.constant 0 : i32
    %c0_i32_0 = arith.constant 0 : i32
    %c0_i32_1 = arith.constant 0 : i32
    return %c0_i32, %c0_i32_0 : i32, i32
  }
  func.func @transform_4(%arg0: i32, %arg1: i32) -> (i32, i32) {
    %c0_i32 = arith.constant 0 : i32
    %c0_i32_0 = arith.constant 0 : i32
    %c0_i32_1 = arith.constant 0 : i32
    return %c0_i32, %c0_i32_0 : i32, i32
  }
  func.func @transform_5(%arg0: i32, %arg1: i32) -> (i32, i32, i32, i32) {
    %c0_i32 = arith.constant 0 : i32
    %c0_i32_0 = arith.constant 0 : i32
    %c0_i32_1 = arith.constant 0 : i32
    return %arg0, %arg1, %c0_i32, %c0_i32_0 : i32, i32, i32, i32
  }
  func.func @transform_6(%arg0: i32, %arg1: i32) -> (i32, i32, i32, i32) {
    %c0_i32 = arith.constant 0 : i32
    %c0_i32_0 = arith.constant 0 : i32
    %c0_i32_1 = arith.constant 0 : i32
    return %arg0, %arg1, %c0_i32, %c0_i32_0 : i32, i32, i32, i32
  }
}

module attributes {stable_mosaic.version = 11 : i64} {
  func.func @_bn_relu_pool_kernel(%arg0: i32, %arg1: i32, %arg2: memref<1x8x2x8x16xbf16, #tpu.memory_space<vmem>>, %arg3: memref<1x8xf32, #tpu.memory_space<vmem>>, %arg4: memref<1x8xf32, #tpu.memory_space<vmem>>, %arg5: memref<1x8x8x8xf32, #tpu.memory_space<vmem>>) attributes {dimension_semantics = [#tpu.dimension_semantics<parallel>, #tpu.dimension_semantics<parallel>], iteration_bounds = array<i64: 2, 1>, scalar_prefetch = 0 : i64, scratch_operands = 0 : i64, tpu.core_type = #tpu.core_type<tc>, window_params = [{transform_indices = @transform_0, window_bounds = array<i64: 1, 8, 2, 8, 16>}, {pipeline_mode = #tpu.pipeline_mode<synchronous>, transform_indices = @transform_1, window_bounds = array<i64: 1, 8>}, {pipeline_mode = #tpu.pipeline_mode<synchronous>, transform_indices = @transform_2, window_bounds = array<i64: 1, 8>}, {transform_indices = @transform_3, window_bounds = array<i64: 1, 8, 8, 8>}]} {
    %c0 = arith.constant 0 : index
    %c0_0 = arith.constant 0 : index
    %0 = vector.load %arg3[%c0, %c0_0] : memref<1x8xf32, #tpu.memory_space<vmem>>, vector<1x8xf32>
    %c0_1 = arith.constant 0 : index
    %c0_2 = arith.constant 0 : index
    %1 = vector.load %arg4[%c0_1, %c0_2] : memref<1x8xf32, #tpu.memory_space<vmem>>, vector<1x8xf32>
    %c0_3 = arith.constant 0 : index
    %c0_4 = arith.constant 0 : index
    %c0_5 = arith.constant 0 : index
    %c0_6 = arith.constant 0 : index
    %c0_7 = arith.constant 0 : index
    %2 = vector.load %arg2[%c0_3, %c0_4, %c0_5, %c0_6, %c0_7] : memref<1x8x2x8x16xbf16, #tpu.memory_space<vmem>>, vector<1x8x1x8x16xbf16>
    %3 = vector.shape_cast %2 : vector<1x8x1x8x16xbf16> to vector<8x8x16xbf16>
    %4 = arith.extf %3 : vector<8x8x16xbf16> to vector<8x8x16xf32>
    %c0_8 = arith.constant 0 : index
    %c0_9 = arith.constant 0 : index
    %c1 = arith.constant 1 : index
    %c0_10 = arith.constant 0 : index
    %c0_11 = arith.constant 0 : index
    %5 = vector.load %arg2[%c0_8, %c0_9, %c1, %c0_10, %c0_11] : memref<1x8x2x8x16xbf16, #tpu.memory_space<vmem>>, vector<1x8x1x8x16xbf16>
    %6 = vector.shape_cast %5 : vector<1x8x1x8x16xbf16> to vector<8x8x16xbf16>
    %7 = arith.extf %6 : vector<8x8x16xbf16> to vector<8x8x16xf32>
    %8 = vector.extract_strided_slice %4 {offsets = [0, 0, 0], sizes = [8, 8, 8], strides = [1, 1, 1]} : vector<8x8x16xf32> to vector<8x8x8xf32>
    %9 = vector.shape_cast %0 : vector<1x8xf32> to vector<1x1x8xf32>
    %10 = vector.broadcast %9 : vector<1x1x8xf32> to vector<8x8x8xf32>
    %11 = arith.mulf %8, %10 : vector<8x8x8xf32>
    %12 = vector.shape_cast %1 : vector<1x8xf32> to vector<1x1x8xf32>
    %13 = vector.broadcast %12 : vector<1x1x8xf32> to vector<8x8x8xf32>
    %14 = arith.addf %11, %13 : vector<8x8x8xf32>
    %cst = arith.constant 0.000000e+00 : f32
    %15 = vector.broadcast %cst : f32 to vector<8x8x8xf32>
    %16 = arith.maximumf %14, %15 : vector<8x8x8xf32>
    %17 = vector.extract_strided_slice %4 {offsets = [0, 0, 8], sizes = [8, 8, 8], strides = [1, 1, 1]} : vector<8x8x16xf32> to vector<8x8x8xf32>
    %18 = vector.shape_cast %0 : vector<1x8xf32> to vector<1x1x8xf32>
    %19 = vector.broadcast %18 : vector<1x1x8xf32> to vector<8x8x8xf32>
    %20 = arith.mulf %17, %19 : vector<8x8x8xf32>
    %21 = vector.shape_cast %1 : vector<1x8xf32> to vector<1x1x8xf32>
    %22 = vector.broadcast %21 : vector<1x1x8xf32> to vector<8x8x8xf32>
    %23 = arith.addf %20, %22 : vector<8x8x8xf32>
    %cst_12 = arith.constant 0.000000e+00 : f32
    %24 = vector.broadcast %cst_12 : f32 to vector<8x8x8xf32>
    %25 = arith.maximumf %23, %24 : vector<8x8x8xf32>
    %26 = vector.extract_strided_slice %7 {offsets = [0, 0, 0], sizes = [8, 8, 8], strides = [1, 1, 1]} : vector<8x8x16xf32> to vector<8x8x8xf32>
    %27 = vector.shape_cast %0 : vector<1x8xf32> to vector<1x1x8xf32>
    %28 = vector.broadcast %27 : vector<1x1x8xf32> to vector<8x8x8xf32>
    %29 = arith.mulf %26, %28 : vector<8x8x8xf32>
    %30 = vector.shape_cast %1 : vector<1x8xf32> to vector<1x1x8xf32>
    %31 = vector.broadcast %30 : vector<1x1x8xf32> to vector<8x8x8xf32>
    %32 = arith.addf %29, %31 : vector<8x8x8xf32>
    %cst_13 = arith.constant 0.000000e+00 : f32
    %33 = vector.broadcast %cst_13 : f32 to vector<8x8x8xf32>
    %34 = arith.maximumf %32, %33 : vector<8x8x8xf32>
    %35 = vector.extract_strided_slice %7 {offsets = [0, 0, 8], sizes = [8, 8, 8], strides = [1, 1, 1]} : vector<8x8x16xf32> to vector<8x8x8xf32>
    %36 = vector.shape_cast %0 : vector<1x8xf32> to vector<1x1x8xf32>
    %37 = vector.broadcast %36 : vector<1x1x8xf32> to vector<8x8x8xf32>
    %38 = arith.mulf %35, %37 : vector<8x8x8xf32>
    %39 = vector.shape_cast %1 : vector<1x8xf32> to vector<1x1x8xf32>
    %40 = vector.broadcast %39 : vector<1x1x8xf32> to vector<8x8x8xf32>
    %41 = arith.addf %38, %40 : vector<8x8x8xf32>
    %cst_14 = arith.constant 0.000000e+00 : f32
    %42 = vector.broadcast %cst_14 : f32 to vector<8x8x8xf32>
    %43 = arith.maximumf %41, %42 : vector<8x8x8xf32>
    %44 = arith.maximumf %16, %25 : vector<8x8x8xf32>
    %45 = arith.maximumf %34, %43 : vector<8x8x8xf32>
    %46 = arith.maximumf %44, %45 : vector<8x8x8xf32>
    %47 = vector.shape_cast %46 : vector<8x8x8xf32> to vector<1x8x8x8xf32>
    %c0_15 = arith.constant 0 : index
    %c0_16 = arith.constant 0 : index
    %c0_17 = arith.constant 0 : index
    %c0_18 = arith.constant 0 : index
    %48 = vector.load %arg5[%c0_15, %c0_16, %c0_17, %c0_18] : memref<1x8x8x8xf32, #tpu.memory_space<vmem>>, vector<1x8x8x8xf32>
    tpu.vector_store %arg5[%c0_15, %c0_16, %c0_17, %c0_18], %47 {strides = array<i32>} : memref<1x8x8x8xf32, #tpu.memory_space<vmem>>, vector<1x8x8x8xf32>,
    return
  }
  func.func @transform_0(%arg0: i32, %arg1: i32) -> (i32, i32, i32, i32, i32) {
    %c0_i32 = arith.constant 0 : i32
    %c0_i32_0 = arith.constant 0 : i32
    %c0_i32_1 = arith.constant 0 : i32
    %c0_i32_2 = arith.constant 0 : i32
    return %arg0, %arg1, %c0_i32, %c0_i32_0, %c0_i32_1 : i32, i32, i32, i32, i32
  }
  func.func @transform_1(%arg0: i32, %arg1: i32) -> (i32, i32) {
    %c0_i32 = arith.constant 0 : i32
    %c0_i32_0 = arith.constant 0 : i32
    %c0_i32_1 = arith.constant 0 : i32
    return %c0_i32, %c0_i32_0 : i32, i32
  }
  func.func @transform_2(%arg0: i32, %arg1: i32) -> (i32, i32) {
    %c0_i32 = arith.constant 0 : i32
    %c0_i32_0 = arith.constant 0 : i32
    %c0_i32_1 = arith.constant 0 : i32
    return %c0_i32, %c0_i32_0 : i32, i32
  }
  func.func @transform_3(%arg0: i32, %arg1: i32) -> (i32, i32, i32, i32) {
    %c0_i32 = arith.constant 0 : i32
    %c0_i32_0 = arith.constant 0 : i32
    %c0_i32_1 = arith.constant 0 : i32
    return %arg0, %arg1, %c0_i32, %c0_i32_0 : i32, i32, i32, i32
  }
}

</mosaic_0001>

<bundles_post_ra>
// kernel: encoder_forward.5
= control target key start
LH: loop header
LB: loop body
LE: loop exit
PB: predicated region body
PF: predicated region fallthrough
CT: control target
= control target key end

     0   :  { %s644_s12 = smov 0   ;;  %s646_s13 = smov 0   ;;  %s890_s0 = inlined_call_operand.vmem [shape: bf16[2,8,2,8,16], index: 0, kind: input, shape index: {}]   ;;  %s891_s1 = inlined_call_operand.vmem [shape: f32[1,8], index: 1, kind: input, shape index: {}]   ;;  %s892_s2 = inlined_call_operand.vmem [shape: f32[1,8], index: 2, kind: input, shape index: {}]   ;;  %s893_s3 = inlined_call_operand.vmem [shape: f32[2,8,8,8], index: 3, kind: output, shape index: {}]  }
   0x1   :  { %s648_s14 = smov 0  }
   0x2 LB: > { %s25_s15 = sadd.s32 1, %s616_s13  ;;  %p553_p0 = scmp.ge.s32.totalorder %s620_s14, 1  ;;  %s620_s14 = sphi %s648_s14, %s13_s14   ;;  %s616_s13 = sphi %s646_s13, %s895_s13   ;;  %s612_s12 = sphi %s644_s12, %s894_s12  }
   0x3   : > { %p27_p1 = scmp.ge.s32.totalorder %s25_s15, 2  ;;  %p159_p2 = scmp.lt.s32.totalorder %s620_s14, 3 }
   0x5   : > { %s897_s15 = smov (%p27_p1, %s25_s15), 0  ;;  %p160_p3 = pnand %p553_p0, %p159_p2 }
   0x6   : > { %v665_v0 = vld [vmem:[%s891_s1] ss:$0 sm:$0xff] (!%p160_p3)  ;;  %s622_s18 = smov (!%p160_p3), 8   ;;  %p193_p4 = scmp.lt.s32.totalorder (!%p160_p3), %s612_s12, 1  ;;  %vm450_vm0 = vcmask (!%p160_p3), 64512  }
   0x7   : > { %163 = sbr.rel (%p160_p3) target bundleno = 282 (0x11a), region = 32  ;;  %284 = vrot.lane.b32.xlu0 (!%p160_p3), %v665_v0, %s622_s18  ;;  %v671_v1 = vld [vmem:[%s892_s2] ss:$0 sm:$0xff] (!%p160_p3)  ;;  %s623_s25 = smov (!%p160_p3), 120  }
   0xb   : > { %295 = vrot.lane.b32.xlu0 (!%p160_p3), %v671_v1, %s622_s18 }
   0xe   : > { %s899_s12 = smov (!%p193_p4, %s612_s12), 1 }
   0xf   : > { %s570_s21 = sshll.u32 %s899_s12, 6 }
  0x10   : > { %s682_s24 = scalar_lea.vmem %s890_s0, %s570_s21  ;;  %s841_s28 = scalar_lea.vmem %s893_s3, %s570_s21 }
  0x11   : > { %v685_v2 = vld [vmem:[%s682_s24 + $0x10] sm:$0xff]   ;;  %v688_v3 = vld [vmem:[%s682_s24] sm:$0xff]   ;;  %v694_v5 = vld [vmem:[%s682_s24 + $0x8] sm:$0xff]  }
  0x12   : > { %v691_v4 = vld [vmem:[%s682_s24 + $0x20] sm:$0xff]   ;;  %v225_v6 = vunpack.c.l.bf16 %v685_v2  ;;  %v223_v7 = vunpack.c.l.bf16 %v688_v3  ;;  %v224_v10 = vunpack.c.l.bf16 %v694_v5  ;;  %v703_v11 = vld [vmem:[%s682_s24 + $0x30] sm:$0xff]   ;;  %v706_v12 = vld [vmem:[%s682_s24 + $0x18] sm:$0xff]   ;;  %v240_v29 = vunpack.c.h.bf16 %v688_v3 }
  0x13   : > { %v227_v9 = vunpack.c.l.bf16 %v691_v4  ;;  %v229_v16 = vunpack.c.l.bf16 %v703_v11  ;;  %v226_v17 = vunpack.c.l.bf16 %v706_v12  ;;  %v727_v22 = vld [vmem:[%s682_s24 + $0x28] sm:$0xff]   ;;  %v742_v31 = vld [vmem:[%s682_s24 + $0x38] sm:$0xff]   ;;  %v242_v38 = vunpack.c.h.bf16 %v685_v2 }
  0x14   : > { %v228_v30 = vunpack.c.l.bf16 %v727_v22  ;;  %v230_v39 = vunpack.c.l.bf16 %v742_v31  ;;  %v244_v46 = vunpack.c.h.bf16 %v691_v4  ;;  %v241_v47 = vunpack.c.h.bf16 %v694_v5 }
  0x15   : > { %v246_v54 = vunpack.c.h.bf16 %v703_v11  ;;  %v243_v55 = vunpack.c.h.bf16 %v706_v12  ;;  %v245_v62 = vunpack.c.h.bf16 %v727_v22  ;;  %v255_v2 = vmul.f32 %v665_v0, %v224_v10 }
  0x16   : > { %v315_v4 = vmul.f32 %v665_v0, %v241_v47  ;;  %v260_v5 = vmul.f32 %v665_v0, %v229_v16 }
  0x18   : > { %v323_v11 = vadd.f32 %v671_v1, %v315_v4  ;;  %v274_v12 = vadd.f32 %v671_v1, %v260_v5 }
  0x79   : > { %v698_v8 = vpop.permute.xlu0 %284 }
  0x7a   : > { %v289_v13 = vmul.f32 %v698_v8, %v225_v6  ;;  %v287_v14 = vmul.f32 %v698_v8, %v223_v7  ;;  %v291_v20 = vmul.f32 %v698_v8, %v227_v9  ;;  %v288_v21 = vmul.f32 %v698_v8, %v224_v10 }
  0x7b   : > { %v293_v27 = vmul.f32 %v698_v8, %v229_v16  ;;  %v290_v28 = vmul.f32 %v698_v8, %v226_v17  ;;  %v338_v36 = vmul.f32 %v698_v8, %v240_v29  ;;  %v292_v37 = vmul.f32 %v698_v8, %v228_v30 }
  0x7c   : > { %v340_v44 = vmul.f32 %v698_v8, %v242_v38  ;;  %v294_v45 = vmul.f32 %v698_v8, %v230_v39  ;;  %v342_v52 = vmul.f32 %v698_v8, %v244_v46  ;;  %v339_v53 = vmul.f32 %v698_v8, %v241_v47 }
  0x7d   : > { %v714_v15 = vpop.permute.xlu0 %295  ;;  %v344_v60 = vmul.f32 %v698_v8, %v246_v54  ;;  %v341_v61 = vmul.f32 %v698_v8, %v243_v55  ;;  %v257_v10 = vmul.f32 %v665_v0, %v226_v17  ;;  %v317_v47 = vmul.f32 %v665_v0, %v243_v55 }
  0x7e   : > { %v300_v18 = vadd.f32 %v714_v15, %v289_v13  ;;  %v298_v19 = vadd.f32 %v714_v15, %v287_v14  ;;  %v302_v25 = vadd.f32 %v714_v15, %v291_v20  ;;  %v299_v26 = vadd.f32 %v714_v15, %v288_v21 }
  0x7f   : > { %v304_v34 = vadd.f32 %v714_v15, %v293_v27  ;;  %v301_v35 = vadd.f32 %v714_v15, %v290_v28  ;;  %v346_v42 = vadd.f32 %v338_v36, %v714_v15  ;;  %v303_v43 = vadd.f32 %v714_v15, %v292_v37 }
  0x80   : > { %v308_v23 = vmax.f32 %v300_v18, 0.0  ;;  %v306_v24 = vmax.f32 %v298_v19, 0.0  ;;  %v310_v32 = vmax.f32 %v302_v25, 0.0  ;;  %v307_v33 = vmax.f32 %v299_v26, 0.0 }
  0x81   : > { %v312_v40 = vmax.f32 %v304_v34, 0.0  ;;  %v309_v41 = vmax.f32 %v301_v35, 0.0  ;;  %v354_v48 = vmax.f32 %v346_v42, 0.0  ;;  %v311_v49 = vmax.f32 %v303_v43, 0.0 }
  0x82   : > { %374 = vrot.lane.b32.xlu0 %v308_v23, %s623_s25  ;;  %370 = vrot.lane.b32.xlu1 %v306_v24, %s623_s25  ;;  %v348_v50 = vadd.f32 %v340_v44, %v714_v15  ;;  %v305_v51 = vadd.f32 %v714_v15, %v294_v45  ;;  %v350_v58 = vadd.f32 %v342_v52, %v714_v15  ;;  %v247_v20 = vunpack.c.h.bf16 %v742_v31 }
  0x83   : > { %v347_v59 = vadd.f32 %v339_v53, %v714_v15  ;;  %v352_v14 = vadd.f32 %v344_v60, %v714_v15  ;;  %v349_v18 = vadd.f32 %v341_v61, %v714_v15  ;;  %v343_v19 = vmul.f32 %v698_v8, %v245_v62 }
  0x84   : > { %v356_v56 = vmax.f32 %v348_v50, 0.0  ;;  %v313_v57 = vmax.f32 %v305_v51, 0.0  ;;  %v358_v63 = vmax.f32 %v350_v58, 0.0  ;;  %v345_v25 = vmul.f32 %v698_v8, %v247_v20 }
  0x85   : > { %v355_v13 = vmax.f32 %v347_v59, 0.0  ;;  %v360_v21 = vmax.f32 %v352_v14, 0.0  ;;  %v357_v23 = vmax.f32 %v349_v18, 0.0  ;;  %v351_v24 = vadd.f32 %v343_v19, %v714_v15 }
  0x86   : > { %378 = vrot.lane.b32.xlu0 %v310_v32, %s623_s25  ;;  %372 = vrot.lane.b32.xlu1 %v307_v33, %s623_s25  ;;  %v353_v27 = vadd.f32 %v345_v25, %v714_v15  ;;  %v254_v34 = vmul.f32 %v665_v0, %v223_v7  ;;  %v314_v35 = vmul.f32 %v665_v0, %v240_v29  ;;  %v331_v19 = vmax.f32 %v323_v11, 0.0 }
  0x87   : > { %v359_v26 = vmax.f32 %v351_v24, 0.0  ;;  %v256_v8 = vmul.f32 %v665_v0, %v225_v6  ;;  %v316_v37 = vmul.f32 %v665_v0, %v242_v38  ;;  %v258_v7 = vmul.f32 %v665_v0, %v227_v9 }
  0x88   : > { %v361_v28 = vmax.f32 %v353_v27, 0.0  ;;  %v318_v44 = vmul.f32 %v665_v0, %v244_v46  ;;  %v320_v46 = vmul.f32 %v665_v0, %v246_v54  ;;  %v271_v17 = vadd.f32 %v671_v1, %v257_v10 }
  0x89   : > { %v270_v3 = vadd.f32 %v671_v1, %v256_v8  ;;  %v324_v38 = vadd.f32 %v671_v1, %v316_v37  ;;  %v272_v9 = vadd.f32 %v671_v1, %v258_v7  ;;  %v259_v55 = vmul.f32 %v665_v0, %v228_v30 }
  0x8a   : > { %382 = vrot.lane.b32.xlu0 %v312_v40, %s623_s25  ;;  %376 = vrot.lane.b32.xlu1 %v309_v41, %s623_s25  ;;  %v268_v40 = vadd.f32 %v671_v1, %v254_v34  ;;  %v322_v41 = vadd.f32 %v671_v1, %v314_v35  ;;  %v328_v60 = vadd.f32 %v671_v1, %v320_v46 }
  0x8b   : > { %v278_v45 = vmax.f32 %v270_v3, 0.0  ;;  %v332_v51 = vmax.f32 %v324_v38, 0.0  ;;  %v280_v16 = vmax.f32 %v272_v9, 0.0  ;;  %v325_v61 = vadd.f32 %v671_v1, %v317_v47 }
  0x8c   : > { %v276_v42 = vmax.f32 %v268_v40, 0.0  ;;  %v330_v43 = vmax.f32 %v322_v41, 0.0  ;;  %v261_v30 = vmul.f32 %v665_v0, %v230_v39  ;;  %v273_v24 = vadd.f32 %v671_v1, %v259_v55 }
  0x8d   : > { %v336_v27 = vmax.f32 %v328_v60, 0.0 }
  0x8e   : > { %410 = vrot.lane.b32.xlu0 %v354_v48, %s623_s25  ;;  %380 = vrot.lane.b32.xlu1 %v311_v49, %s623_s25  ;;  %v269_v48 = vadd.f32 %v671_v1, %v255_v2  ;;  %v281_v40 = vmax.f32 %v273_v24, 0.0  ;;  %v275_v41 = vadd.f32 %v671_v1, %v261_v30 }
  0x90   : > { %v283_v4 = vmax.f32 %v275_v41, 0.0 }
  0x92   : > { %414 = vrot.lane.b32.xlu0 %v356_v56, %s623_s25  ;;  %384 = vrot.lane.b32.xlu1 %v313_v57, %s623_s25  ;;  %v326_v56 = vadd.f32 %v671_v1, %v318_v44  ;;  %v277_v57 = vmax.f32 %v269_v48, 0.0 }
  0x94   : > { %v334_v18 = vmax.f32 %v326_v56, 0.0 }
  0x96   : > { %418 = vrot.lane.b32.xlu0 %v358_v63, %s623_s25  ;;  %412 = vrot.lane.b32.xlu1 %v355_v13, %s623_s25  ;;  %v319_v63 = vmul.f32 %v665_v0, %v245_v62  ;;  %v333_v62 = vmax.f32 %v325_v61, 0.0 }
  0x9a   : > { %422 = vrot.lane.b32.xlu0 %v360_v21, %s623_s25  ;;  %416 = vrot.lane.b32.xlu1 %v357_v23, %s623_s25  ;;  %v282_v21 = vmax.f32 %v274_v12, 0.0  ;;  %v279_v23 = vmax.f32 %v271_v17, 0.0 }
  0x9e   : > { %420 = vrot.lane.b32.xlu1 %v359_v26, %s623_s25 }
  0xa2   : > { %424 = vrot.lane.b32.xlu1 %v361_v28, %s623_s25  ;;  %v327_v28 = vadd.f32 %v671_v1, %v319_v63 }
  0xa4   : > { %v335_v31 = vmax.f32 %v327_v28, 0.0 }
  0xf4   : > { %v375_v32 = vpop.permute.xlu0 %374  ;;  %v371_v33 = vpop.permute.xlu1 %370 }
  0xf5   : > { %v394_v52 = vmax.f32 %v276_v42, %v371_v33  ;;  %v396_v13 = vmax.f32 %v278_v45, %v375_v32  ;;  %v321_v32 = vmul.f32 %v665_v0, %v247_v20 }
  0xf7   : > { %v329_v0 = vadd.f32 %v671_v1, %v321_v32 }
  0xf8   : > { %v379_v15 = vpop.permute.xlu0 %378  ;;  %v373_v36 = vpop.permute.xlu1 %372 }
  0xf9   : > { %v398_v33 = vmax.f32 %v280_v16, %v379_v15  ;;  %v395_v34 = vmax.f32 %v277_v57, %v373_v36 }
  0xfc   : > { %v817_v29 = vpop.permute.xlu0 %382  ;;  %v819_v6 = vpop.permute.xlu1 %376 }
  0xfd   : > { %v400_v20 = vmax.f32 %v282_v21, %v817_v29  ;;  %v397_v15 = vmax.f32 %v279_v23, %v819_v6  ;;  %v337_v29 = vmax.f32 %v329_v0, 0.0 }
 0x100   : > { %v411_v49 = vpop.permute.xlu0 %410  ;;  %v381_v50 = vpop.permute.xlu1 %380 }
 0x101   : > { %v434_v53 = vmax.f32 %v330_v43, %v411_v49  ;;  %v399_v44 = vmax.f32 %v281_v40, %v381_v50 }
 0x103   : > { %v442_v54 = vmax.f32 %v394_v52, %v434_v53 }
 0x104   : > { %v415_v58 = vpop.permute.xlu0 %414  ;;  %v385_v59 = vpop.permute.xlu1 %384 }
 0x105   : > { %451 = vst.msk [vmem:[%s841_s28] sm:$0xff] %vm450_vm0, %v442_v54  ;;  %v436_v14 = vmax.f32 %v332_v51, %v415_v58  ;;  %v401_v45 = vmax.f32 %v283_v4, %v385_v59 }
 0x107   : > { %v444_v25 = vmax.f32 %v396_v13, %v436_v14 }
 0x108   : > { %v419_v26 = vpop.permute.xlu0 %418  ;;  %v413_v22 = vpop.permute.xlu1 %412 }
 0x109   : > { %453 = vst.msk [vmem:[%s841_s28 + $0x10] sm:$0xff] %vm450_vm0, %v444_v25  ;;  %v438_v39 = vmax.f32 %v334_v18, %v419_v26  ;;  %v435_v35 = vmax.f32 %v331_v19, %v413_v22 }
 0x10b   : > { %v446_v8 = vmax.f32 %v398_v33, %v438_v39  ;;  %v443_v37 = vmax.f32 %v395_v34, %v435_v35 }
 0x10c   : > { %v423_v7 = vpop.permute.xlu0 %422  ;;  %v417_v3 = vpop.permute.xlu1 %416 }
 0x10d   : > { %455 = vst.msk [vmem:[%s841_s28 + $0x20] sm:$0xff] %vm450_vm0, %v446_v8  ;;  %452 = vst.msk [vmem:[%s841_s28 + $0x8] sm:$0xff] %vm450_vm0, %v443_v37  ;;  %v440_v36 = vmax.f32 %v336_v27, %v423_v7  ;;  %v437_v2 = vmax.f32 %v333_v62, %v417_v3 }
 0x10f   : > { %v448_v38 = vmax.f32 %v400_v20, %v440_v36  ;;  %v445_v42 = vmax.f32 %v397_v15, %v437_v2 }
 0x110   : > { %v421_v43 = vpop.permute.xlu1 %420 }
 0x111   : > { %457 = vst.msk [vmem:[%s841_s28 + $0x30] sm:$0xff] %vm450_vm0, %v448_v38  ;;  %454 = vst.msk [vmem:[%s841_s28 + $0x18] sm:$0xff] %vm450_vm0, %v445_v42  ;;  %v439_v1 = vmax.f32 %v335_v31, %v421_v43 }
 0x113   : > { %v447_v6 = vmax.f32 %v399_v44, %v439_v1 }
 0x114   : > { %v425_v9 = vpop.permute.xlu1 %424 }
 0x115   : > { %456 = vst.msk [vmem:[%s841_s28 + $0x28] sm:$0xff] %vm450_vm0, %v447_v6  ;;  %v441_v5 = vmax.f32 %v337_v29, %v425_v9 }
 0x117   : > { %v449_v10 = vmax.f32 %v401_v45, %v441_v5 }
 0x119   : > { %458 = vst.msk [vmem:[%s841_s28 + $0x38] sm:$0xff] %vm450_vm0, %v449_v10 }
 0x11a PF: > { %s13_s14 = sadd.s32 1, %s620_s14   ;;  %s894_s12 = smov %s616_s13 }
 0x11b   : > { %p10_p5 = scmp.ge.s32.totalorder %s13_s14, 4   ;;  %s895_s13 = smov %s897_s15 }
 0x11d   :  { %12 = sbr.rel (!%p10_p5) target bundleno = 2 (0x2), region = 63 }

// kernel: encoder_forward.3
= control target key start
LH: loop header
LB: loop body
LE: loop exit
PB: predicated region body
PF: predicated region fallthrough
CT: control target
= control target key end

     0   :  { %s7475_s15 = smov 0   ;;  %s7477_s16 = smov 0   ;;  %s9430_s0 = inlined_call_operand.vmem [shape: f32[2,16,16,4], index: 0, kind: input, shape index: {}]   ;;  %s9431_s1 = inlined_call_operand.vmem [shape: bf16[2,2,16,4], index: 1, kind: input, shape index: {}]   ;;  %s9432_s2 = inlined_call_operand.vmem [shape: bf16[9,4,4], index: 2, kind: input, shape index: {}]   ;;  %s9433_s3 = inlined_call_operand.vmem [shape: bf16[2,16,16,4], index: 3, kind: output, shape index: {0}]   ;;  %s9434_s4 = inlined_call_operand.vmem [shape: f32[2,1,2,4], index: 4, kind: output, shape index: {1}]  }
   0x1   :  { %s7479_s17 = smov 0  }
   0x2 LB: > { %s27_s18 = sadd.s32 1, %s7444_s16  ;;  %p6093_p0 = scmp.ge.s32.totalorder %s7448_s17, 1  ;;  %s7448_s17 = sphi %s7479_s17, %s15_s17   ;;  %s7444_s16 = sphi %s7477_s16, %s9520_s16   ;;  %s7440_s15 = sphi %s7475_s15, %s9519_s15  }
   0x3   : > { %p29_p1 = scmp.ge.s32.totalorder %s27_s18, 2  ;;  %p207_p2 = scmp.lt.s32.totalorder %s7448_s17, 3 }
   0x5   : > { %s9522_s18 = smov (%p29_p1, %s27_s18), 0  ;;  %p208_p3 = pnand %p6093_p0, %p207_p2 }
   0x7   : > { %211 = sbr.rel (%p208_p3) target bundleno = 686 (0x2ae), region = 32 }
   0xe   : > { %v6135_v0 = vld [vmem:[%s9432_s2 + $0x2] sm:$0x3]  ;;  %vm1575_vm0 = vcmask 1041408   ;;  %v6282_v1 = vld [vmem:[%s9432_s2 + $0x8] sm:$0x3]  ;;  %p261_p4 = scmp.lt.s32.totalorder %s7440_s15, 1 }
   0xf   : > { %7297 = vmatprep.subr.msk.bf16.mxu1 %vm1575_vm0, %v6135_v0  ;;  %7301 = vmatprep.subr.msk.bf16.mxu0 %vm1575_vm0, %v6282_v1  ;;  %v1577_v2 = vsel %vm1575_vm0, %v6135_v0, 0  ;;  %v7503_v3 = vsel %vm1575_vm0, %v6282_v1, 0  ;;  %vm333_vm1 = vcmask 24576   ;;  %vm334_vm2 = vsmask.f32 256 }
  0x10   : > { %9452 = vst [vmem:[#allocation3_spill] sm:$0xff] %v7503_v3  ;;  %6734 = vmatpush3.bf16.msra.mxu1 %v1577_v2  ;;  %6870 = vmatpush3.bf16.msra.mxu0 %v7503_v3  ;;  %s9524_s15 = smov (!%p261_p4, %s7440_s15), 1  ;;  %vm7510_vm3 = vmand %vm333_vm1, %vm334_vm2  ;;  %v336_v5 = vld [vmem:[#allocation2] sm:$0x1]  ;;  %vm390_vm4 = vsmask.f32 7938 }
  0x11   : > { %v337_v6 = vsel %vm7510_vm3, 0, %v336_v5  ;;  %vm7518_vm5 = vmand %vm333_vm1, %vm390_vm4  ;;  %v392_v8 = vld [vmem:[#allocation2 + $0x8] sm:$0x1]  ;;  %s6513_s23 = sshll.u32 %s9524_s15, 8  ;;  %s6514_s24 = sshll.u32 %s9524_s15, 4  ;;  %vm865_vm7 = vcmask 27648  }
  0x12   : > { %338 = vst [vmem:[#allocation2] sm:$0x1] %v337_v6  ;;  %v393_v9 = vsel %vm7518_vm5, 0, %v392_v8  ;;  %s7529_s27 = scalar_lea.vmem %s9430_s0, %s6513_s23  ;;  %s7534_s30 = scalar_lea.vmem %s9431_s1, %s6514_s24  ;;  %vm542_vm6 = vsmask.f32 4368  ;;  %vm7565_vm9 = vmand %vm865_vm7, %vm390_vm4  ;;  %vm1526_vm12 = vcmask 31744  }
  0x13   : > { %394 = vst [vmem:[#allocation2 + $0x8] sm:$0x1] %v393_v9  ;;  %v339_v10 = vld [vmem:[#allocation2 + $0xc] sm:$0x1]  ;;  %v395_v11 = vld [vmem:[#allocation2 + $0x14] sm:$0x1]  ;;  %vm7553_vm8 = vmor %vm334_vm2, %vm542_vm6 }
  0x14   : > { %v980_v12 = vld [vmem:[%s7534_s30] sm:$0xf]  ;;  %v981_v13 = vld [vmem:[%s7534_s30 + $0x4] sm:$0xf]  ;;  %v340_v14 = vsel %vm7510_vm3, 0, %v339_v10  ;;  %v302_v20 = vld [vmem:[%s7529_s27 + $0x8] sm:$0xff] }
  0x15   : > { %v983_v15 = vshrl.u32 %v980_v12, 16  ;;  %v986_v16 = vshll.u32 %v980_v12, 16  ;;  %v991_v17 = vshrl.u32 %v981_v13, 16  ;;  %v994_v18 = vshll.u32 %v981_v13, 16  ;;  %v301_v19 = vld [vmem:[%s7529_s27] sm:$0xff]  ;;  %v303_v26 = vld [vmem:[%s7529_s27 + $0x10] sm:$0xff] }
  0x16   : > { %341 = vst [vmem:[#allocation2 + $0xc] sm:$0x1] %v340_v14  ;;  %v396_v21 = vsel %vm7518_vm5, 0, %v395_v11  ;;  %v6516_v22 = vpack.c.bf16 %v301_v19, %v301_v19  ;;  %v6517_v23 = vpack.c.bf16 %v302_v20, %v302_v20  ;;  %v1072_v24 = vld [vmem:[%s9432_s2] sm:$0x3]  ;;  %v304_v31 = vld [vmem:[%s7529_s27 + $0x18] sm:$0xff]  ;;  %v6518_v33 = vpack.c.bf16 %v303_v26, %v303_v26 }
  0x17   : > { %v6331_v25 = vld [vmem:[%s9432_s2 + $0xa] sm:$0x3]  ;;  %v985_v28 = vrot.slane %v983_v15, 7  ;;  %v993_v29 = vrot.slane %v991_v17, 7  ;;  %397 = vst [vmem:[#allocation2 + $0x14] sm:$0x1] %v396_v21  ;;  %7298 = vmatprep.subr.msk.bf16.mxu1 %vm1575_vm0, %v1072_v24  ;;  %v6519_v53 = vpack.c.bf16 %v304_v31, %v304_v31 }
  0x18   : > { %7303 = vmatprep.subr.msk.bf16.mxu0 %vm1575_vm0, %v6331_v25  ;;  %v7560_v30 = vsel %vm1575_vm0, %v1072_v24, 0  ;;  %v342_v32 = vld [vmem:[#allocation2 + $0x18] sm:$0x1]  ;;  %v545_v35 = vshrl.u32 %v6516_v22, 16  ;;  %v548_v36 = vshll.u32 %v6516_v22, 16  ;;  %v553_v37 = vshrl.u32 %v6517_v23, 16 }
  0x19   : > { %v556_v38 = vshll.u32 %v6517_v23, 16  ;;  %v398_v39 = vld [vmem:[#allocation2 + $0x20] sm:$0x1]  ;;  %v988_v40 = vor.u32 %v986_v16, %v985_v28  ;;  %v989_v41 = vrot.slane %v985_v28, 4  ;;  %v996_v42 = vor.u32 %v994_v18, %v993_v29  ;;  %v306_v55 = vld [vmem:[%s7529_s27 + $0x28] sm:$0xff]  ;;  %s6515_s29 = sshll.u32 %s9524_s15, 7 }
  0x1a   : > { %v998_v43 = vrot.slane %v993_v29, 4  ;;  %v1002_v44 = vld [vmem:[#allocation2] sm:$0xf]  ;;  %v1006_v45 = vld [vmem:[#allocation2 + $0x8] sm:$0x1]  ;;  %v547_v46 = vrot.slane %v545_v35, 7  ;;  %v7596_v18 = vpack.c.bf16 %v306_v55, %v306_v55  ;;  %s9277_s6 = scalar_lea.vmem %s9433_s3, %s6515_s29 }
  0x1b   : > { %v555_v47 = vrot.slane %v553_v37, 7  ;;  %v343_v48 = vsel %vm7510_vm3, 0, %v342_v32  ;;  %v399_v49 = vsel %vm7518_vm5, 0, %v398_v39  ;;  %v997_v50 = vsel %vm7553_vm8, %v989_v41, %v996_v42  ;;  %v305_v54 = vld [vmem:[%s7529_s27 + $0x20] sm:$0xff]  ;;  %v401_v62 = vld [vmem:[#allocation2 + $0x2c] sm:$0x1] }
  0x1c   : > { %v1003_v51 = vsel %vm7565_vm9, %v988_v40, %v1002_v44  ;;  %v1007_v52 = vsel %vm7510_vm3, %v998_v43, %v1006_v45  ;;  %344 = vst [vmem:[#allocation2 + $0x18] sm:$0x1] %v343_v48  ;;  %400 = vst [vmem:[#allocation2 + $0x20] sm:$0x1] %v399_v49  ;;  %v345_v56 = vld [vmem:[#allocation2 + $0x24] sm:$0x1]  ;;  %v550_v57 = vor.u32 %v548_v36, %v547_v46 }
  0x1d   : > { %1004 = vst [vmem:[#allocation2] sm:$0xf] %v1003_v51  ;;  %1005 = vst.msk [vmem:[#allocation2 + $0x4] sm:$0xf] %vm865_vm7, %v997_v50  ;;  %v551_v58 = vrot.slane %v547_v46, 4  ;;  %v558_v59 = vor.u32 %v556_v38, %v555_v47  ;;  %v560_v60 = vrot.slane %v555_v47, 4  ;;  %v6520_v17 = vpack.c.bf16 %v305_v54, %v305_v54 }
  0x1e   : > { %1008 = vst [vmem:[#allocation2 + $0x8] sm:$0x1] %v1007_v52  ;;  %v867_v61 = vld [vmem:[#allocation2 + $0xc] sm:$0xf]  ;;  %v562_v63 = vshrl.u32 %v6518_v33, 16  ;;  %v565_v0 = vshll.u32 %v6518_v33, 16 }
  0x1f   : > { %v570_v1 = vshrl.u32 %v6519_v53, 16  ;;  %v573_v2 = vshll.u32 %v6519_v53, 16  ;;  %v348_v5 = vld [vmem:[#allocation2 + $0x30] sm:$0x1]  ;;  %vm1089_vm10 = vsmask.f32 3328  ;;  %v559_v6 = vsel %vm7553_vm8, %v551_v58, %v558_v59 }
  0x20   : > { %vm1090_vm11 = vsmask.f32 7440  ;;  %v868_v8 = vsel %vm7565_vm9, %v550_v57, %v867_v61  ;;  %v872_v9 = vld [vmem:[#allocation2 + $0x14] sm:$0x1]  ;;  %v7587_v10 = vsel %vm1575_vm0, %v6331_v25, 0  ;;  %v346_v11 = vsel %vm7510_vm3, 0, %v345_v56 }
  0x21   : > { %v404_v12 = vld [vmem:[#allocation2 + $0x38] sm:$0x1]  ;;  %869 = vst [vmem:[#allocation2 + $0xc] sm:$0xf] %v868_v8  ;;  %871 = vst.msk [vmem:[#allocation2 + $0x10] sm:$0xf] %vm865_vm7, %v559_v6  ;;  %v873_v13 = vsel %vm7510_vm3, %v560_v60, %v872_v9 }
  0x22   : > { %v564_v14 = vrot.slane %v562_v63, 7  ;;  %v572_v15 = vrot.slane %v570_v1, 7  ;;  %347 = vst [vmem:[#allocation2 + $0x24] sm:$0x1] %v346_v11  ;;  %v402_v16 = vsel %vm7518_vm5, 0, %v401_v62  ;;  %v349_v19 = vsel %vm7510_vm3, 0, %v348_v5  ;;  %vm7624_vm13 = vmor %vm1089_vm10, %vm1090_vm11 }
  0x23   : > { %874 = vst [vmem:[#allocation2 + $0x14] sm:$0x1] %v873_v13  ;;  %403 = vst [vmem:[#allocation2 + $0x2c] sm:$0x1] %v402_v16  ;;  %v405_v20 = vsel %vm7518_vm5, 0, %v404_v12  ;;  %v307_v25 = vld [vmem:[%s7529_s27 + $0x30] sm:$0xff] }
  0x24   : > { %v567_v21 = vor.u32 %v565_v0, %v564_v14  ;;  %v568_v22 = vrot.slane %v564_v14, 4  ;;  %v575_v23 = vor.u32 %v573_v2, %v572_v15  ;;  %v577_v24 = vrot.slane %v572_v15, 4  ;;  %350 = vst [vmem:[#allocation2 + $0x30] sm:$0x1] %v349_v19  ;;  %406 = vst [vmem:[#allocation2 + $0x38] sm:$0x1] %v405_v20 }
  0x25   : > { %v875_v26 = vld [vmem:[#allocation2 + $0x18] sm:$0xf]  ;;  %v879_v28 = vld [vmem:[#allocation2 + $0x20] sm:$0x1]  ;;  %v579_v29 = vshrl.u32 %v6520_v17, 16  ;;  %v582_v31 = vshll.u32 %v6520_v17, 16  ;;  %v7615_v48 = vpack.c.bf16 %v307_v25, %v307_v25 }
  0x26   : > { %v1040_v32 = vld [vmem:[#allocation2] sm:$0xf]  ;;  %v1041_v33 = vld [vmem:[#allocation2 + $0x4] sm:$0xf]  ;;  %v1073_v35 = vld [vmem:[#allocation2 + $0x8] sm:$0x1]  ;;  %v576_v36 = vsel %vm7553_vm8, %v568_v22, %v575_v23  ;;  %v876_v37 = vsel %vm7565_vm9, %v567_v21, %v875_v26  ;;  %v880_v38 = vsel %vm7510_vm3, %v577_v24, %v879_v28 }
  0x27   : > { %v1093_v39 = vshrl.u32 %v1040_v32, 16  ;;  %v1096_v40 = vshll.u32 %v1040_v32, 16  ;;  %v1102_v41 = vshll.u32 %v1041_v33, 16  ;;  %v1106_v42 = vshrl.u32 %v1041_v33, 16  ;;  %877 = vst [vmem:[#allocation2 + $0x18] sm:$0xf] %v876_v37 }
  0x28   : > { %878 = vst.msk [vmem:[#allocation2 + $0x1c] sm:$0xf] %vm865_vm7, %v576_v36  ;;  %881 = vst [vmem:[#allocation2 + $0x20] sm:$0x1] %v880_v38  ;;  %v308_v43 = vld [vmem:[%s7529_s27 + $0x38] sm:$0xff]  ;;  %v309_v44 = vld [vmem:[%s7529_s27 + $0x40] sm:$0xff] }
  0x29   : > { %v1112_v45 = vshll.u32 %v1073_v35, 16  ;;  %v7612_v46 = vrot.slane %v579_v29, 7  ;;  %v587_v47 = vshrl.u32 %v7596_v18, 16  ;;  %v1095_v49 = vrot.slane %v1093_v39, 4  ;;  %v1042_v53 = vld [vmem:[#allocation2 + $0xc] sm:$0xf] }
  0x2a   : > { %v1098_v50 = vrot.slane %v1096_v40, 5  ;;  %v1104_v51 = vrot.slane %v1102_v41, 5  ;;  %v1108_v52 = vrot.slane %v1106_v42, 4  ;;  %v1043_v55 = vld [vmem:[#allocation2 + $0x10] sm:$0xf]  ;;  %v1117_v57 = vshrl.u32 %v1042_v53, 16 }
  0x2b   : > { %v1114_v54 = vrot.slane %v1112_v45, 5  ;;  %v1074_v56 = vld [vmem:[#allocation2 + $0x14] sm:$0x1]  ;;  %v7617_v58 = vpack.c.bf16 %v308_v43, %v308_v43  ;;  %v7619_v59 = vpack.c.bf16 %v309_v44, %v309_v44  ;;  %v1120_v62 = vshll.u32 %v1042_v53, 16  ;;  %v2847_v0 = vld [vmem:[#allocation2 + $0xc] sm:$0xf] }
  0x2c   : > { %v1099_v60 = vor.u32 %v1098_v50, %v1095_v49  ;;  %v1109_v61 = vor.u32 %v1108_v52, %v1104_v51  ;;  %v1126_v63 = vshll.u32 %v1043_v55, 16  ;;  %v310_v1 = vld [vmem:[%s7529_s27 + $0x48] sm:$0xff]  ;;  %v1119_v5 = vrot.slane %v1117_v57, 4  ;;  %v7631_v15 = vld [vmem:[#allocation2 + $0x10] sm:$0xf]  ;;  %s6100_s7 = sshll.u32 %s9524_s15, 1 }
  0x2d   : > { %v1130_v6 = vshrl.u32 %v1043_v55, 16  ;;  %v1136_v8 = vshll.u32 %v1074_v56, 16  ;;  %v7629_v9 = vor.u32 %v582_v31, %v7612_v46  ;;  %v1122_v13 = vrot.slane %v1120_v62, 5  ;;  %v7633_v19 = vld [vmem:[#allocation2 + $0x14] sm:$0x1]  ;;  %s299_s10 = scalar_lea.vmem %s9434_s4, %s6100_s7 }
  0x2e   : > { %v1100_v11 = vrot.slane %v1099_v60, 4  ;;  %v1110_v12 = vrot.slane %v1109_v61, 4  ;;  %v1128_v14 = vrot.slane %v1126_v63, 5  ;;  %v2896_v20 = vshrl.u32 %v2847_v0, 16  ;;  %v2850_v32 = vld [vmem:[#allocation2 + $0x18] sm:$0xf] }
  0x2f   : > { %v1132_v16 = vrot.slane %v1130_v6, 4  ;;  %v1138_v17 = vrot.slane %v1136_v8, 5  ;;  %v7635_v21 = vpack.c.bf16 %v310_v1, %v310_v1  ;;  %v1123_v24 = vor.u32 %v1122_v13, %v1119_v5  ;;  %v7644_v38 = vld [vmem:[#allocation2 + $0x1c] sm:$0xf]  ;;  %v7651_v50 = vld [vmem:[#allocation2 + $0x20] sm:$0x1] }
  0x30   : > { %v1105_v22 = vsel %vm7624_vm13, %v1100_v11, %v1104_v51  ;;  %v1115_v23 = vsel %vm7624_vm13, %v1110_v12, %v1114_v54  ;;  %v2899_v25 = vshll.u32 %v2847_v0, 16  ;;  %v2898_v29 = vrot.slane %v2896_v20, 4  ;;  %v1044_v61 = vld [vmem:[#allocation2 + $0x18] sm:$0xf]  ;;  %v1045_v12 = vld [vmem:[#allocation2 + $0x1c] sm:$0xf] }
  0x31   : > { %v6136_v26 = vcombine.low %v1105_v22, %v1115_v23  ;;  %v1133_v28 = vor.u32 %v1132_v16, %v1128_v14  ;;  %v2905_v31 = vshll.u32 %v7631_v15, 16  ;;  %v1124_v33 = vrot.slane %v1123_v24, 4  ;;  %v8371_v34 = vld [vmem:[%s9432_s2 + $0x10] sm:$0x3] }
  0x32   : > { %v2901_v35 = vrot.slane %v2899_v25, 5  ;;  %v2909_v36 = vshrl.u32 %v7631_v15, 16  ;;  %v2915_v37 = vshll.u32 %v7633_v19, 16  ;;  %v3639_v41 = vrot.slane %v7631_v15, 5 }
  0x33   : > { %6735 = vmatprep.mubr.msk.bf16.mxu1 %vm1526_vm12, %v6136_v26  ;;  %v1134_v39 = vrot.slane %v1133_v28, 4  ;;  %v2907_v40 = vrot.slane %v2905_v31, 5  ;;  %v3642_v42 = vrot.slane %v7633_v19, 5  ;;  %v1129_v43 = vsel %vm7624_vm13, %v1124_v33, %v1128_v14 }
  0x34   : > { %v2902_v44 = vor.u32 %v2901_v35, %v2898_v29  ;;  %v2911_v45 = vrot.slane %v2909_v36, 4  ;;  %v2917_v49 = vrot.slane %v2915_v37, 5  ;;  %v2920_v52 = vshrl.u32 %v2850_v32, 16  ;;  %v882_v36 = vld [vmem:[#allocation2 + $0x24] sm:$0xf] }
  0x35   : > { %v1139_v51 = vsel %vm7624_vm13, %v1134_v39, %v1138_v17  ;;  %v2923_v53 = vshll.u32 %v2850_v32, 16  ;;  %v2929_v54 = vshll.u32 %v7644_v38, 16  ;;  %v2933_v60 = vshrl.u32 %v7644_v38, 16  ;;  %v1075_v17 = vld [vmem:[#allocation2 + $0x20] sm:$0x1] }
  0x36   : > { %v6137_v55 = vcombine.low %v1129_v43, %v1139_v51  ;;  %v2903_v56 = vrot.slane %v2902_v44, 4  ;;  %v2912_v57 = vor.u32 %v2911_v45, %v2907_v40  ;;  %v2922_v62 = vrot.slane %v2920_v52, 4  ;;  %v886_v52 = vld [vmem:[#allocation2 + $0x2c] sm:$0x1] }
  0x37   : > { %v2925_v63 = vrot.slane %v2923_v53, 5  ;;  %v2931_v0 = vrot.slane %v2929_v54, 5  ;;  %v2939_v1 = vshll.u32 %v7651_v50, 16  ;;  %v2935_v8 = vrot.slane %v2933_v60, 4 }
  0x38   : > { %6736 = vmatmul.mubr.msk.bf16.vlgmr.msra.gmra.mrb[0].mxu1 %vm1526_vm12, %v6137_v55  ;;  %v2908_v5 = vsel %vm7624_vm13, %v2903_v56, %v2907_v40  ;;  %v2913_v6 = vrot.slane %v2912_v57, 4  ;;  %v3646_v11 = vrot.slane %v7644_v38, 5  ;;  %v3649_v16 = vrot.slane %v7651_v50, 5  ;;  %v351_v57 = vld [vmem:[#allocation2 + $0x3c] sm:$0x1]  ;;  %v326_v38 = vld [vmem:[%s7529_s27 + $0xc8] sm:$0xff] }
  0x39   : > { %6768 = vmatpush3.bf16.msra.mxu1 %v7560_v30  ;;  %v2926_v13 = vor.u32 %v2925_v63, %v2922_v62  ;;  %v2941_v14 = vrot.slane %v2939_v1, 5  ;;  %v1141_v20 = vshrl.u32 %v1044_v61, 16  ;;  %v2936_v23 = vor.u32 %v2935_v8, %v2931_v0  ;;  %v6364_v63 = vld [vmem:[%s9432_s2 + $0xc] sm:$0x3] }
  0x3a   : > { %v2918_v22 = vsel %vm7624_vm13, %v2913_v6, %v2917_v49  ;;  %v7668_v24 = vrot.slane %v3646_v11, 4  ;;  %v1144_v25 = vshll.u32 %v1044_v61, 16  ;;  %v1150_v31 = vshll.u32 %v1045_v12, 16 }
  0x3b   : > { %v6283_v26 = vcombine.low %v2908_v5, %v2918_v22  ;;  %v2927_v28 = vrot.slane %v2926_v13, 4  ;;  %v1143_v29 = vrot.slane %v1141_v20, 4  ;;  %v2937_v30 = vrot.slane %v2936_v23, 4 }
  0x3c   : > { %v1146_v32 = vrot.slane %v1144_v25, 5  ;;  %v1154_v33 = vshrl.u32 %v1045_v12, 16  ;;  %v1160_v35 = vshll.u32 %v1075_v17, 16  ;;  %v1152_v39 = vrot.slane %v1150_v31, 5  ;;  %v354_v12 = vld [vmem:[#allocation2 + $0x48] sm:$0x1] }
  0x3d   : > { %6871 = vmatprep.mubr.msk.bf16.mxu0 %vm1526_vm12, %v6283_v26  ;;  %v2932_v37 = vsel %vm7624_vm13, %v2927_v28, %v2931_v0  ;;  %v585_v40 = vrot.slane %v7612_v46, 4  ;;  %v589_v43 = vrot.slane %v587_v47, 7  ;;  %v2942_v44 = vsel %vm7624_vm13, %v2937_v30, %v2941_v14  ;;  %v407_v46 = vld [vmem:[#allocation2 + $0x44] sm:$0x1]  ;;  %v889_v17 = vld [vmem:[#allocation2 + $0x30] sm:$0xf] }
  0x3e   : > { %v1147_v45 = vor.u32 %v1146_v32, %v1143_v29  ;;  %v1156_v49 = vrot.slane %v1154_v33, 4  ;;  %v1162_v51 = vrot.slane %v1160_v35, 5  ;;  %v6284_v53 = vcombine.low %v2932_v37, %v2942_v44  ;;  %v893_v25 = vld [vmem:[#allocation2 + $0x38] sm:$0x1]  ;;  %v311_v32 = vld [vmem:[%s7529_s27 + $0x50] sm:$0xff] }
  0x3f   : > { %v590_v54 = vshll.u32 %v7596_v18, 16  ;;  %v594_v55 = vrot.slane %v589_v43, 4  ;;  %v883_v56 = vsel %vm7565_vm9, %v7629_v9, %v882_v36  ;;  %v596_v47 = vshrl.u32 %v7615_v48, 16  ;;  %v410_v33 = vld [vmem:[#allocation2 + $0x50] sm:$0x1] }
  0x40   : > { %v1148_v60 = vrot.slane %v1147_v45, 4  ;;  %v1157_v61 = vor.u32 %v1156_v49, %v1152_v39  ;;  %884 = vst [vmem:[#allocation2 + $0x24] sm:$0xf] %v883_v56  ;;  %v599_v62 = vshll.u32 %v7615_v48, 16  ;;  %6872 = vmatmul.mubr.msk.bf16.vlgmr.msra.gmra.mrb[0].mxu0 %vm1526_vm12, %v6284_v53  ;;  %v604_v9 = vshrl.u32 %v7617_v58, 16 }
  0x41   : > { %v592_v18 = vor.u32 %v590_v54, %v589_v43  ;;  %v887_v0 = vsel %vm7510_vm3, %v594_v55, %v886_v52  ;;  %v607_v1 = vshll.u32 %v7617_v58, 16  ;;  %6904 = vmatpush3.bf16.msra.mxu0 %v7587_v10  ;;  %v598_v6 = vrot.slane %v596_v47, 7 }
  0x42   : > { %v1153_v5 = vsel %vm7624_vm13, %v1148_v60, %v1152_v39  ;;  %v1158_v48 = vrot.slane %v1157_v61, 4  ;;  %888 = vst [vmem:[#allocation2 + $0x2c] sm:$0x1] %v887_v0  ;;  %v352_v8 = vsel %vm7510_vm3, 0, %v351_v57  ;;  %v606_v14 = vrot.slane %v604_v9, 7  ;;  %7304 = vmatprep.subr.msk.bf16.mxu0 %vm1575_vm0, %v6364_v63  ;;  %v312_v39 = vld [vmem:[%s7529_s27 + $0x58] sm:$0xff] }
  0x43   : > { %v593_v13 = vsel %vm7553_vm8, %v585_v40, %v592_v18  ;;  %353 = vst [vmem:[#allocation2 + $0x3c] sm:$0x1] %v352_v8  ;;  %v408_v10 = vsel %vm7518_vm5, 0, %v407_v46  ;;  %v613_v58 = vshrl.u32 %v7619_v59, 16  ;;  %v601_v22 = vor.u32 %v599_v62, %v598_v6 }
  0x44   : > { %v1163_v20 = vsel %vm7624_vm13, %v1158_v48, %v1162_v51  ;;  %885 = vst.msk [vmem:[#allocation2 + $0x28] sm:$0xf] %vm865_vm7, %v593_v13  ;;  %v602_v23 = vrot.slane %v598_v6, 4  ;;  %409 = vst [vmem:[#allocation2 + $0x44] sm:$0x1] %v408_v10  ;;  %v616_v26 = vshll.u32 %v7619_v59, 16  ;;  %v609_v29 = vor.u32 %v607_v1, %v606_v14 }
  0x45   : > { %v6138_v28 = vcombine.low %v1153_v5, %v1163_v20  ;;  %v611_v31 = vrot.slane %v606_v14, 4  ;;  %v615_v30 = vrot.slane %v613_v58, 7  ;;  %v890_v35 = vsel %vm7565_vm9, %v601_v22, %v889_v17 }
  0x46   : > { %v621_v36 = vshrl.u32 %v7635_v21, 16  ;;  %v624_v37 = vshll.u32 %v7635_v21, 16  ;;  %v355_v40 = vsel %vm7510_vm3, 0, %v354_v12  ;;  %v610_v44 = vsel %vm7553_vm8, %v602_v23, %v609_v29  ;;  %891 = vst [vmem:[#allocation2 + $0x30] sm:$0xf] %v890_v35 }
  0x47   : > { %6739 = vmatprep.mubr.msk.bf16.mxu1 %vm1526_vm12, %v6138_v28  ;;  %v1046_v59 = vld [vmem:[#allocation2 + $0x24] sm:$0xf]  ;;  %v894_v45 = vsel %vm7510_vm3, %v611_v31, %v893_v25  ;;  %v618_v49 = vor.u32 %v616_v26, %v615_v30  ;;  %v619_v51 = vrot.slane %v615_v30, 4  ;;  %356 = vst [vmem:[#allocation2 + $0x48] sm:$0x1] %v355_v40  ;;  %v411_v46 = vsel %vm7518_vm5, 0, %v410_v33 }
  0x48   : > { %v2853_v43 = vld [vmem:[#allocation2 + $0x24] sm:$0xf]  ;;  %v1165_v52 = vshrl.u32 %v1046_v59, 16  ;;  %v1168_v21 = vshll.u32 %v1046_v59, 16  ;;  %892 = vst.msk [vmem:[#allocation2 + $0x34] sm:$0xf] %vm865_vm7, %v610_v44  ;;  %v7727_v60 = vpack.c.bf16 %v311_v32, %v311_v32  ;;  %v7729_v61 = vpack.c.bf16 %v312_v39, %v312_v39 }
  0x49   : > { %v2944_v53 = vshrl.u32 %v2853_v43, 16  ;;  %v2947_v54 = vshll.u32 %v2853_v43, 16  ;;  %895 = vst [vmem:[#allocation2 + $0x38] sm:$0x1] %v894_v45  ;;  %v1076_v55 = vld [vmem:[#allocation2 + $0x2c] sm:$0x1] }
  0x4a   : > { %v7721_v56 = vld [vmem:[#allocation2 + $0x2c] sm:$0x1]  ;;  %v7723_v57 = vrot.slane %v621_v36, 7  ;;  %v1167_v47 = vrot.slane %v1165_v52, 4  ;;  %v1170_v62 = vrot.slane %v1168_v21, 5  ;;  %v1184_v63 = vshll.u32 %v1076_v55, 16 }
  0x4b   : > { %v2946_v18 = vrot.slane %v2944_v53, 4  ;;  %v896_v0 = vld [vmem:[#allocation2 + $0x3c] sm:$0xf]  ;;  %412 = vst [vmem:[#allocation2 + $0x50] sm:$0x1] %v411_v46  ;;  %v2949_v5 = vrot.slane %v2947_v54, 5 }
  0x4c   : > { %v1047_v9 = vld [vmem:[#allocation2 + $0x28] sm:$0xf]  ;;  %v2963_v48 = vshll.u32 %v7721_v56, 16  ;;  %v626_v6 = vor.u32 %v624_v37, %v7723_v57  ;;  %v897_v8 = vsel %vm7565_vm9, %v618_v49, %v896_v0  ;;  %v1171_v12 = vor.u32 %v1170_v62, %v1167_v47 }
  0x4d   : > { %v7731_v1 = vld [vmem:[#allocation2 + $0x28] sm:$0xf]  ;;  %v1174_v13 = vshll.u32 %v1047_v9, 16  ;;  %v1178_v14 = vshrl.u32 %v1047_v9, 16  ;;  %v1186_v17 = vrot.slane %v1184_v63, 5  ;;  %v2950_v10 = vor.u32 %v2949_v5, %v2946_v18 }
  0x4e   : > { %898 = vst [vmem:[#allocation2 + $0x3c] sm:$0xf] %v897_v8  ;;  %v2953_v58 = vshll.u32 %v7731_v1, 16  ;;  %v2957_v20 = vshrl.u32 %v7731_v1, 16  ;;  %v2965_v22 = vrot.slane %v2963_v48, 5  ;;  %v1172_v23 = vrot.slane %v1171_v12, 4 }
  0x4f   : > { %v1176_v25 = vrot.slane %v1174_v13, 5  ;;  %v1180_v26 = vrot.slane %v1178_v14, 4  ;;  %v2856_v28 = vld [vmem:[#allocation2 + $0x30] sm:$0xf]  ;;  %v627_v29 = vsel %vm7553_vm8, %v619_v51, %v626_v6  ;;  %v2951_v31 = vrot.slane %v2950_v10, 4 }
  0x50   : > { %v2955_v30 = vrot.slane %v2953_v58, 5  ;;  %v2959_v32 = vrot.slane %v2957_v20, 4  ;;  %v7741_v33 = vld [vmem:[#allocation2 + $0x34] sm:$0xf]  ;;  %v2968_v35 = vshrl.u32 %v2856_v28, 16  ;;  %v2971_v40 = vshll.u32 %v2856_v28, 16 }
  0x51   : > { %899 = vst.msk [vmem:[#allocation2 + $0x40] sm:$0xf] %vm865_vm7, %v627_v29  ;;  %v1177_v36 = vsel %vm7624_vm13, %v1172_v23, %v1176_v25  ;;  %v1181_v37 = vor.u32 %v1180_v26, %v1176_v25  ;;  %v7746_v39 = vld [vmem:[#allocation2 + $0x38] sm:$0x1]  ;;  %v2977_v59 = vshll.u32 %v7741_v33, 16  ;;  %v2981_v51 = vshrl.u32 %v7741_v33, 16 }
  0x52   : > { %v1048_v43 = vld [vmem:[#allocation2 + $0x30] sm:$0xf]  ;;  %v2956_v44 = vsel %vm7624_vm13, %v2951_v31, %v2955_v30  ;;  %v2960_v45 = vor.u32 %v2959_v32, %v2955_v30  ;;  %v2970_v49 = vrot.slane %v2968_v35, 4  ;;  %v1049_v52 = vld [vmem:[#allocation2 + $0x34] sm:$0xf]  ;;  %v2973_v53 = vrot.slane %v2971_v40, 5 }
  0x53   : > { %v1182_v21 = vrot.slane %v1181_v37, 4  ;;  %v2979_v54 = vrot.slane %v2977_v59, 5  ;;  %v2987_v55 = vshll.u32 %v7746_v39, 16  ;;  %v2983_v47 = vrot.slane %v2981_v51, 4  ;;  %v1077_v5 = vld [vmem:[#allocation2 + $0x38] sm:$0x1] }
  0x54   : > { %v2961_v46 = vrot.slane %v2960_v45, 4  ;;  %v1189_v62 = vshrl.u32 %v1048_v43, 16  ;;  %v1192_v63 = vshll.u32 %v1048_v43, 16  ;;  %v2974_v0 = vor.u32 %v2973_v53, %v2970_v49  ;;  %v900_v14 = vld [vmem:[#allocation2 + $0x44] sm:$0x1] }
  0x55   : > { %v1187_v18 = vsel %vm7624_vm13, %v1182_v21, %v1186_v17  ;;  %v2989_v9 = vrot.slane %v2987_v55, 5  ;;  %v1198_v48 = vshll.u32 %v1049_v52, 16  ;;  %v2984_v12 = vor.u32 %v2983_v47, %v2979_v54  ;;  %v1050_v10 = vld [vmem:[#allocation2 + $0x3c] sm:$0xf] }
  0x56   : > { %v6139_v6 = vcombine.low %v1177_v36, %v1187_v18  ;;  %v2966_v8 = vsel %vm7624_vm13, %v2961_v46, %v2965_v22  ;;  %v1191_v13 = vrot.slane %v1189_v62, 4  ;;  %v2975_v20 = vrot.slane %v2974_v0, 4  ;;  %v2859_v28 = vld [vmem:[#allocation2 + $0x3c] sm:$0xf]  ;;  %v314_v18 = vld [vmem:[%s7529_s27 + $0x68] sm:$0xff] }
  0x57   : > { %v6285_v58 = vcombine.low %v2956_v44, %v2966_v8  ;;  %v1194_v23 = vrot.slane %v1192_v63, 5  ;;  %v1200_v25 = vrot.slane %v1198_v48, 5  ;;  %v2985_v17 = vrot.slane %v2984_v12, 4  ;;  %v313_v63 = vld [vmem:[%s7529_s27 + $0x60] sm:$0xff] }
  0x58   : > { %v1051_v26 = vld [vmem:[#allocation2 + $0x40] sm:$0xf]  ;;  %6740 = vmatmul.mubr.msk.bf16.gmra.mrb[4].mxu1 %vm1526_vm12, %v6139_v6  ;;  %v1202_v29 = vshrl.u32 %v1049_v52, 16  ;;  %v1208_v31 = vshll.u32 %v1077_v5, 16  ;;  %v628_v30 = vrot.slane %v7723_v57, 4  ;;  %v2980_v22 = vsel %vm7624_vm13, %v2975_v20, %v2979_v54 }
  0x59   : > { %v2860_v32 = vld [vmem:[#allocation2 + $0x40] sm:$0xf]  ;;  %6875 = vmatprep.mubr.msk.bf16.mxu0 %vm1526_vm12, %v6285_v58  ;;  %v1195_v35 = vor.u32 %v1194_v23, %v1191_v13  ;;  %v1213_v36 = vshrl.u32 %v1050_v10, 16  ;;  %v1216_v37 = vshll.u32 %v1050_v10, 16  ;;  %v2990_v40 = vsel %vm7624_vm13, %v2985_v17, %v2989_v9  ;;  %v903_v17 = vld [vmem:[#allocation2 + $0x48] sm:$0xf] }
  0x5a   : > { %v1204_v59 = vrot.slane %v1202_v29, 4  ;;  %v1210_v43 = vrot.slane %v1208_v31, 5  ;;  %v901_v44 = vsel %vm7510_vm3, %v628_v30, %v900_v14  ;;  %v6286_v57 = vcombine.low %v2980_v22, %v2990_v40  ;;  %v357_v29 = vld [vmem:[#allocation2 + $0x54] sm:$0x1]  ;;  %v413_v31 = vld [vmem:[#allocation2 + $0x5c] sm:$0x1] }
  0x5b   : > { %v1196_v45 = vrot.slane %v1195_v35, 4  ;;  %902 = vst [vmem:[#allocation2 + $0x44] sm:$0x1] %v901_v44  ;;  %v1215_v49 = vrot.slane %v1213_v36, 4  ;;  %v1218_v51 = vrot.slane %v1216_v37, 5  ;;  %v1222_v21 = vshll.u32 %v1051_v26, 16 }
  0x5c   : > { %v1205_v52 = vor.u32 %v1204_v59, %v1200_v25  ;;  %v1226_v53 = vshrl.u32 %v1051_v26, 16  ;;  %v2992_v54 = vshrl.u32 %v2859_v28, 16  ;;  %6876 = vmatmul.mubr.msk.bf16.gmra.mrb[4].mxu0 %vm1526_vm12, %v6286_v57  ;;  %v2995_v47 = vshll.u32 %v2859_v28, 16 }
  0x5d   : > { %v1201_v55 = vsel %vm7624_vm13, %v1196_v45, %v1200_v25  ;;  %v1219_v46 = vor.u32 %v1218_v51, %v1215_v49  ;;  %v3001_v62 = vshll.u32 %v2860_v32, 16  ;;  %v1224_v9 = vrot.slane %v1222_v21, 5 }
  0x5e   : > { %v1206_v0 = vrot.slane %v1205_v52, 4  ;;  %v1228_v5 = vrot.slane %v1226_v53, 4  ;;  %v2994_v48 = vrot.slane %v2992_v54, 4  ;;  %v2997_v8 = vrot.slane %v2995_v47, 5  ;;  %v6216_v54 = vld [vmem:[%s9432_s2 + $0x4] sm:$0x3] }
  0x5f   : > { %v1220_v6 = vrot.slane %v1219_v46, 4  ;;  %v3003_v12 = vrot.slane %v3001_v62, 5  ;;  %v3005_v13 = vshrl.u32 %v2860_v32, 16  ;;  %v630_v58 = vshrl.u32 %v7727_v60, 16  ;;  %v315_v62 = vld [vmem:[%s7529_s27 + $0x70] sm:$0xff]  ;;  %7299 = vmatprep.subr.msk.bf16.mxu1 %vm1575_vm0, %v6216_v54 }
  0x60   : > { %v1211_v14 = vsel %vm7624_vm13, %v1206_v0, %v1210_v43  ;;  %v1229_v10 = vor.u32 %v1228_v5, %v1224_v9  ;;  %v633_v20 = vshll.u32 %v7727_v60, 16  ;;  %v2998_v26 = vor.u32 %v2997_v8, %v2994_v48 }
  0x61   : > { %v6140_v23 = vcombine.low %v1201_v55, %v1211_v14  ;;  %v1225_v25 = vsel %vm7624_vm13, %v1220_v6, %v1224_v9  ;;  %v3007_v28 = vrot.slane %v3005_v13, 4  ;;  %v632_v35 = vrot.slane %v630_v58, 7  ;;  %v907_v9 = vld [vmem:[#allocation2 + $0x50] sm:$0x1]  ;;  %v416_v6 = vld [vmem:[#allocation2 + $0x68] sm:$0x1] }
  0x62   : > { %v1078_v30 = vld [vmem:[#allocation2 + $0x44] sm:$0x1]  ;;  %v1230_v22 = vrot.slane %v1229_v10, 4  ;;  %v6528_v36 = vpack.c.bf16 %v313_v63, %v313_v63  ;;  %v6529_v37 = vpack.c.bf16 %v314_v18, %v314_v18  ;;  %v2999_v60 = vrot.slane %v2998_v26, 4  ;;  %v360_v63 = vld [vmem:[#allocation2 + $0x60] sm:$0x1] }
  0x63   : > { %v7777_v32 = vld [vmem:[#allocation2 + $0x44] sm:$0x1]  ;;  %6743 = vmatprep.mubr.msk.bf16.mxu1 %vm1526_vm12, %v6140_v23  ;;  %v1232_v40 = vshll.u32 %v1078_v30, 16  ;;  %v3008_v59 = vor.u32 %v3007_v28, %v3003_v12  ;;  %v635_v44 = vor.u32 %v633_v20, %v632_v35  ;;  %v636_v57 = vrot.slane %v632_v35, 4  ;;  %v316_v10 = vld [vmem:[%s7529_s27 + $0x78] sm:$0xff] }
  0x64   : > { %v3011_v43 = vshll.u32 %v7777_v32, 16  ;;  %v638_v45 = vshrl.u32 %v7729_v61, 16  ;;  %v641_v49 = vshll.u32 %v7729_v61, 16  ;;  %v3004_v52 = vsel %vm7624_vm13, %v2999_v60, %v3003_v12  ;;  %v363_v58 = vld [vmem:[#allocation2 + $0x6c] sm:$0x1] }
  0x65   : > { %v1234_v51 = vrot.slane %v1232_v40, 5  ;;  %v3009_v21 = vrot.slane %v3008_v59, 4  ;;  %v904_v46 = vsel %vm7565_vm9, %v635_v44, %v903_v17  ;;  %v358_v47 = vsel %vm7510_vm3, 0, %v357_v29  ;;  %v419_v17 = vld [vmem:[#allocation2 + $0x74] sm:$0x1] }
  0x66   : > { %v3013_v53 = vrot.slane %v3011_v43, 5  ;;  %v640_v55 = vrot.slane %v638_v45, 7  ;;  %v414_v61 = vsel %vm7518_vm5, 0, %v413_v31  ;;  %905 = vst [vmem:[#allocation2 + $0x48] sm:$0xf] %v904_v46  ;;  %v647_v5 = vshrl.u32 %v6528_v36, 16 }
  0x67   : > { %v1235_v18 = vsel %vm7624_vm13, %v1230_v22, %v1234_v51  ;;  %359 = vst [vmem:[#allocation2 + $0x54] sm:$0x1] %v358_v47  ;;  %415 = vst [vmem:[#allocation2 + $0x5c] sm:$0x1] %v414_v61  ;;  %v650_v48 = vshll.u32 %v6528_v36, 16  ;;  %v655_v23 = vshrl.u32 %v6529_v37, 16  ;;  %v6530_v30 = vpack.c.bf16 %v315_v62, %v315_v62 }
  0x68   : > { %v3014_v0 = vsel %vm7624_vm13, %v3009_v21, %v3013_v53  ;;  %v6141_v8 = vcombine.low %v1225_v25, %v1235_v18  ;;  %v643_v13 = vor.u32 %v641_v49, %v640_v55  ;;  %v645_v14 = vrot.slane %v640_v55, 4  ;;  %v317_v51 = vld [vmem:[%s7529_s27 + $0x80] sm:$0xff]  ;;  %v319_v21 = vld [vmem:[%s7529_s27 + $0x90] sm:$0xff] }
  0x69   : > { %v6287_v12 = vcombine.low %v3004_v52, %v3014_v0  ;;  %v649_v20 = vrot.slane %v647_v5, 7  ;;  %v658_v26 = vshll.u32 %v6529_v37, 16  ;;  %v361_v28 = vsel %vm7510_vm3, 0, %v360_v63  ;;  %v318_v52 = vld [vmem:[%s7529_s27 + $0x88] sm:$0xff] }
  0x6a   : > { %6744 = vmatmul.mubr.msk.bf16.gmra.mrb[8].mxu1 %vm1526_vm12, %v6141_v8  ;;  %v644_v29 = vsel %vm7553_vm8, %v636_v57, %v643_v13  ;;  %v908_v25 = vsel %vm7510_vm3, %v645_v14, %v907_v9  ;;  %362 = vst [vmem:[#allocation2 + $0x60] sm:$0x1] %v361_v28  ;;  %v417_v31 = vsel %vm7518_vm5, 0, %v416_v6  ;;  %v657_v36 = vrot.slane %v655_v23, 7 }
  0x6b   : > { %6879 = vmatprep.mubr.msk.bf16.mxu0 %vm1526_vm12, %v6287_v12  ;;  %906 = vst.msk [vmem:[#allocation2 + $0x4c] sm:$0xf] %vm865_vm7, %v644_v29  ;;  %909 = vst [vmem:[#allocation2 + $0x50] sm:$0x1] %v908_v25  ;;  %v652_v22 = vor.u32 %v650_v48, %v649_v20  ;;  %v653_v35 = vrot.slane %v649_v20, 4  ;;  %v7812_v37 = vpack.c.bf16 %v316_v10, %v316_v10  ;;  %v664_v40 = vshrl.u32 %v6530_v30, 16 }
  0x6c   : > { %418 = vst [vmem:[#allocation2 + $0x68] sm:$0x1] %v417_v31  ;;  %v667_v60 = vshll.u32 %v6530_v30, 16  ;;  %v364_v59 = vsel %vm7510_vm3, 0, %v363_v58  ;;  %v420_v43 = vsel %vm7518_vm5, 0, %v419_v17  ;;  %v660_v44 = vor.u32 %v658_v26, %v657_v36 }
  0x6d   : > { %v662_v57 = vrot.slane %v657_v36, 4  ;;  %v672_v45 = vshrl.u32 %v7812_v37, 16  ;;  %v675_v49 = vshll.u32 %v7812_v37, 16  ;;  %365 = vst [vmem:[#allocation2 + $0x6c] sm:$0x1] %v364_v59  ;;  %v7829_v5 = vrot.slane %v664_v40, 7 }
  0x6e   : > { %421 = vst [vmem:[#allocation2 + $0x74] sm:$0x1] %v420_v43  ;;  %v2862_v53 = vld [vmem:[#allocation2 + $0x48] sm:$0xf]  ;;  %v910_v55 = vld [vmem:[#allocation2 + $0x54] sm:$0xf]  ;;  %v661_v18 = vsel %vm7553_vm8, %v653_v35, %v660_v44  ;;  %v7837_v20 = vpack.c.bf16 %v317_v51, %v317_v51  ;;  %v7839_v23 = vpack.c.bf16 %v318_v52, %v318_v52  ;;  %v7841_v26 = vpack.c.bf16 %v319_v21, %v319_v21 }
  0x6f   : > { %v1052_v54 = vld [vmem:[#allocation2 + $0x48] sm:$0xf]  ;;  %v3016_v46 = vshrl.u32 %v2862_v53, 16  ;;  %v3019_v47 = vshll.u32 %v2862_v53, 16  ;;  %v914_v63 = vld [vmem:[#allocation2 + $0x5c] sm:$0x1]  ;;  %v911_v0 = vsel %vm7565_vm9, %v652_v22, %v910_v55  ;;  %v669_v58 = vor.u32 %v667_v60, %v7829_v5 }
  0x70   : > { %v1237_v61 = vshrl.u32 %v1052_v54, 16  ;;  %v1240_v62 = vshll.u32 %v1052_v54, 16  ;;  %v915_v9 = vsel %vm7510_vm3, %v662_v57, %v914_v63  ;;  %912 = vst [vmem:[#allocation2 + $0x54] sm:$0xf] %v911_v0  ;;  %913 = vst.msk [vmem:[#allocation2 + $0x58] sm:$0xf] %vm865_vm7, %v661_v18 }
  0x71   : > { %v3018_v48 = vrot.slane %v3016_v46, 4  ;;  %v3021_v6 = vrot.slane %v3019_v47, 5  ;;  %916 = vst [vmem:[#allocation2 + $0x5c] sm:$0x1] %v915_v9  ;;  %v320_v40 = vld [vmem:[%s7529_s27 + $0x98] sm:$0xff]  ;;  %v670_v55 = vrot.slane %v7829_v5, 4 }
  0x72   : > { %v1239_v8 = vrot.slane %v1237_v61, 4  ;;  %v1242_v12 = vrot.slane %v1240_v62, 5  ;;  %v7832_v13 = vld [vmem:[#allocation2 + $0x4c] sm:$0xf]  ;;  %v7834_v14 = vld [vmem:[#allocation2 + $0x50] sm:$0x1]  ;;  %v7848_v47 = vpack.c.bf16 %v320_v40, %v320_v40 }
  0x73   : > { %v1053_v10 = vld [vmem:[#allocation2 + $0x4c] sm:$0xf]  ;;  %v3022_v28 = vor.u32 %v3021_v6, %v3018_v48  ;;  %v3025_v17 = vshll.u32 %v7832_v13, 16  ;;  %v3029_v29 = vshrl.u32 %v7832_v13, 16  ;;  %v3035_v25 = vshll.u32 %v7834_v14, 16 }
  0x74   : > { %v1079_v31 = vld [vmem:[#allocation2 + $0x50] sm:$0x1]  ;;  %v1243_v30 = vor.u32 %v1242_v12, %v1239_v8  ;;  %v1246_v22 = vshll.u32 %v1053_v10, 16  ;;  %v1250_v35 = vshrl.u32 %v1053_v10, 16  ;;  %v917_v57 = vld [vmem:[#allocation2 + $0x60] sm:$0xf] }
  0x75   : > { %v1256_v36 = vshll.u32 %v1079_v31, 16  ;;  %v3023_v60 = vrot.slane %v3022_v28, 4  ;;  %v3027_v59 = vrot.slane %v3025_v17, 5  ;;  %v3031_v43 = vrot.slane %v3029_v29, 4 }
  0x76   : > { %v3037_v44 = vrot.slane %v3035_v25, 5  ;;  %v1244_v51 = vrot.slane %v1243_v30, 4  ;;  %v1248_v52 = vrot.slane %v1246_v22, 5  ;;  %v1252_v21 = vrot.slane %v1250_v35, 4 }
  0x77   : > { %v1258_v53 = vrot.slane %v1256_v36, 5  ;;  %v3032_v54 = vor.u32 %v3031_v43, %v3027_v59  ;;  %v674_v46 = vrot.slane %v672_v45, 7  ;;  %v3028_v61 = vsel %vm7624_vm13, %v3023_v60, %v3027_v59  ;;  %v1054_v18 = vld [vmem:[#allocation2 + $0x54] sm:$0xf]  ;;  %v1055_v0 = vld [vmem:[#allocation2 + $0x58] sm:$0xf] }
  0x78   : > { %v1249_v62 = vsel %vm7624_vm13, %v1244_v51, %v1248_v52  ;;  %v1253_v63 = vor.u32 %v1252_v21, %v1248_v52  ;;  %v1080_v9 = vld [vmem:[#allocation2 + $0x5c] sm:$0x1]  ;;  %v918_v48 = vsel %vm7565_vm9, %v669_v58, %v917_v57  ;;  %v1261_v8 = vshrl.u32 %v1054_v18, 16  ;;  %v2865_v45 = vld [vmem:[#allocation2 + $0x54] sm:$0xf] }
  0x79   : > { %v3033_v6 = vrot.slane %v3032_v54, 4  ;;  %v1264_v12 = vshll.u32 %v1054_v18, 16  ;;  %v1270_v5 = vshll.u32 %v1055_v0, 16  ;;  %919 = vst [vmem:[#allocation2 + $0x60] sm:$0xf] %v918_v48  ;;  %v1274_v28 = vshrl.u32 %v1055_v0, 16 }
  0x7a   : > { %v1254_v10 = vrot.slane %v1253_v63, 4  ;;  %v1280_v17 = vshll.u32 %v1080_v9, 16  ;;  %v7856_v29 = vld [vmem:[#allocation2 + $0x58] sm:$0xf]  ;;  %v3040_v25 = vshrl.u32 %v2865_v45, 16  ;;  %v1263_v30 = vrot.slane %v1261_v8, 4 }
  0x7b   : > { %v3038_v31 = vsel %vm7624_vm13, %v3033_v6, %v3037_v44  ;;  %v1266_v22 = vrot.slane %v1264_v12, 5  ;;  %v1272_v35 = vrot.slane %v1270_v5, 5  ;;  %v7860_v36 = vld [vmem:[#allocation2 + $0x5c] sm:$0x1]  ;;  %v1276_v60 = vrot.slane %v1274_v28, 4 }
  0x7c   : > { %v6288_v58 = vcombine.low %v3028_v61, %v3038_v31  ;;  %v1259_v40 = vsel %vm7624_vm13, %v1254_v10, %v1258_v53  ;;  %v1282_v59 = vrot.slane %v1280_v17, 5  ;;  %v921_v43 = vld [vmem:[#allocation2 + $0x68] sm:$0x1]  ;;  %v3042_v52 = vrot.slane %v3040_v25, 4 }
  0x7d   : > { %v6142_v57 = vcombine.low %v1249_v62, %v1259_v40  ;;  %v1267_v51 = vor.u32 %v1266_v22, %v1263_v30  ;;  %v3043_v21 = vshll.u32 %v2865_v45, 16  ;;  %v1277_v54 = vor.u32 %v1276_v60, %v1272_v35 }
  0x7e   : > { %6880 = vmatmul.mubr.msk.bf16.gmra.mrb[8].mxu0 %vm1526_vm12, %v6288_v58  ;;  %v3049_v44 = vshll.u32 %v7856_v29, 16  ;;  %v3053_v63 = vshrl.u32 %v7856_v29, 16  ;;  %v3059_v18 = vshll.u32 %v7860_v36, 16  ;;  %v677_v0 = vor.u32 %v675_v49, %v674_v46 }
  0x7f   : > { %6747 = vmatprep.mubr.msk.bf16.mxu1 %vm1526_vm12, %v6142_v57  ;;  %v1268_v61 = vrot.slane %v1267_v51, 4  ;;  %v3045_v53 = vrot.slane %v3043_v21, 5  ;;  %v679_v62 = vrot.slane %v674_v46, 4  ;;  %v1278_v9 = vrot.slane %v1277_v54, 4 }
  0x80   : > { %v3051_v48 = vrot.slane %v3049_v44, 5  ;;  %v3055_v6 = vrot.slane %v3053_v63, 4  ;;  %v3061_v8 = vrot.slane %v3059_v18, 5  ;;  %v2868_v12 = vld [vmem:[#allocation2 + $0x60] sm:$0xf]  ;;  %v678_v10 = vsel %vm7553_vm8, %v670_v55, %v677_v0  ;;  %v322_v18 = vld [vmem:[%s7529_s27 + $0xa8] sm:$0xff] }
  0x81   : > { %v1273_v5 = vsel %vm7624_vm13, %v1268_v61, %v1272_v35  ;;  %v3046_v45 = vor.u32 %v3045_v53, %v3042_v52  ;;  %v922_v28 = vsel %vm7510_vm3, %v679_v62, %v921_v43  ;;  %v1056_v17 = vld [vmem:[#allocation2 + $0x60] sm:$0xf]  ;;  %v1283_v37 = vsel %vm7624_vm13, %v1278_v9, %v1282_v59  ;;  %920 = vst.msk [vmem:[#allocation2 + $0x64] sm:$0xf] %vm865_vm7, %v678_v10  ;;  %v323_v61 = vld [vmem:[%s7529_s27 + $0xb0] sm:$0xff]  ;;  %v324_v53 = vld [vmem:[%s7529_s27 + $0xb8] sm:$0xff] }
  0x82   : > { %v3056_v49 = vor.u32 %v3055_v6, %v3051_v48  ;;  %923 = vst [vmem:[#allocation2 + $0x68] sm:$0x1] %v922_v28  ;;  %v3064_v46 = vshrl.u32 %v2868_v12, 16  ;;  %v3067_v25 = vshll.u32 %v2868_v12, 16  ;;  %v6143_v31 = vcombine.low %v1273_v5, %v1283_v37  ;;  %v321_v43 = vld [vmem:[%s7529_s27 + $0xa0] sm:$0xff] }
  0x83   : > { %v3047_v30 = vrot.slane %v3046_v45, 4  ;;  %v1285_v22 = vshrl.u32 %v1056_v17, 16  ;;  %v1288_v35 = vshll.u32 %v1056_v17, 16  ;;  %v681_v60 = vshrl.u32 %v7837_v20, 16  ;;  %v924_v17 = vld [vmem:[#allocation2 + $0x6c] sm:$0xf] }
  0x84   : > { %v3057_v55 = vrot.slane %v3056_v49, 4  ;;  %v3066_v58 = vrot.slane %v3064_v46, 4  ;;  %v3069_v40 = vrot.slane %v3067_v25, 5  ;;  %6748 = vmatmul.mubr.msk.bf16.gmra.mrb[12].mxu1 %vm1526_vm12, %v6143_v31  ;;  %v684_v52 = vshll.u32 %v7837_v20, 16  ;;  %v928_v37 = vld [vmem:[#allocation2 + $0x74] sm:$0x1] }
  0x85   : > { %v3052_v59 = vsel %vm7624_vm13, %v3047_v30, %v3051_v48  ;;  %v1287_v57 = vrot.slane %v1285_v22, 4  ;;  %v1290_v51 = vrot.slane %v1288_v35, 5  ;;  %v683_v44 = vrot.slane %v681_v60, 7  ;;  %v325_v48 = vld [vmem:[%s7529_s27 + $0xc0] sm:$0xff]  ;;  %v3573_v35 = vld [vmem:[#allocation2 + $0xc] sm:$0xe] }
  0x86   : > { %v3062_v21 = vsel %vm7624_vm13, %v3057_v55, %v3061_v8  ;;  %v3070_v54 = vor.u32 %v3069_v40, %v3066_v58  ;;  %v689_v63 = vshrl.u32 %v7839_v23, 16  ;;  %v692_v9 = vshll.u32 %v7839_v23, 16 }
  0x87   : > { %v6289_v0 = vcombine.low %v3052_v59, %v3062_v21  ;;  %v1291_v62 = vor.u32 %v1290_v51, %v1287_v57  ;;  %v7893_v6 = vpack.c.bf16 %v321_v43, %v321_v43  ;;  %v687_v20 = vrot.slane %v683_v44, 4  ;;  %v3574_v21 = vld [vmem:[#allocation2 + $0x18] sm:$0xe] }
  0x88   : > { %v7896_v12 = vrot.slane %v3070_v54, 4  ;;  %v691_v5 = vrot.slane %v689_v63, 7  ;;  %vm2080_vm14 = vcmask 1042432   ;;  %v7899_v8 = vld [vmem:[#allocation2 + $0x64] sm:$0xf]  ;;  %v686_v28 = vor.u32 %v684_v52, %v683_v44 }
  0x89   : > { %6883 = vmatprep.mubr.msk.bf16.mxu0 %vm1526_vm12, %v6289_v0  ;;  %v7901_v45 = vld [vmem:[#allocation2 + $0x68] sm:$0x1]  ;;  %v1057_v10 = vld [vmem:[#allocation2 + $0x64] sm:$0xf]  ;;  %v7903_v49 = vpack.c.bf16 %v322_v18, %v322_v18  ;;  %v7905_v23 = vpack.c.bf16 %v323_v61, %v323_v61  ;;  %v7907_v46 = vpack.c.bf16 %v324_v53, %v324_v53  ;;  %v3073_v25 = vshll.u32 %v7899_v8, 16 }
  0x8a   : > { %v3077_v31 = vshrl.u32 %v7899_v8, 16  ;;  %v3083_v30 = vshll.u32 %v7901_v45, 16  ;;  %v1081_v22 = vld [vmem:[#allocation2 + $0x68] sm:$0x1]  ;;  %v7912_v55 = vpack.c.bf16 %v325_v48, %v325_v48  ;;  %v1294_v58 = vshll.u32 %v1057_v10, 16 }
  0x8b   : > { %v1298_v40 = vshrl.u32 %v1057_v10, 16  ;;  %v1304_v60 = vshll.u32 %v1081_v22, 16  ;;  %v694_v43 = vor.u32 %v692_v9, %v691_v5  ;;  %v3075_v59 = vrot.slane %v3073_v25, 5  ;;  %v366_v48 = vld [vmem:[#allocation2 + $0x78] sm:$0x1] }
  0x8c   : > { %v3079_v57 = vrot.slane %v3077_v31, 4  ;;  %v1292_v51 = vrot.slane %v1291_v62, 4  ;;  %v696_v52 = vrot.slane %v691_v5, 4  ;;  %v3085_v54 = vrot.slane %v3083_v30, 5  ;;  %v422_v10 = vld [vmem:[#allocation2 + $0x80] sm:$0x1] }
  0x8d   : > { %v1296_v44 = vrot.slane %v1294_v58, 5  ;;  %v1300_v63 = vrot.slane %v1298_v40, 4  ;;  %v695_v18 = vsel %vm7553_vm8, %v687_v20, %v694_v43  ;;  %v1306_v53 = vrot.slane %v1304_v60, 5  ;;  %v327_v43 = vld [vmem:[%s7529_s27 + $0xd0] sm:$0xff] }
  0x8e   : > { %v3080_v61 = vor.u32 %v3079_v57, %v3075_v59  ;;  %v925_v0 = vsel %vm7565_vm9, %v686_v28, %v924_v17  ;;  %927 = vst.msk [vmem:[#allocation2 + $0x70] sm:$0xf] %vm865_vm7, %v695_v18  ;;  %v929_v9 = vsel %vm7510_vm3, %v696_v52, %v928_v37  ;;  %v3076_v62 = vsel %vm7624_vm13, %v7896_v12, %v3075_v59 }
  0x8f   : > { %v1301_v5 = vor.u32 %v1300_v63, %v1296_v44  ;;  %926 = vst [vmem:[#allocation2 + $0x6c] sm:$0xf] %v925_v0  ;;  %930 = vst [vmem:[#allocation2 + $0x74] sm:$0x1] %v929_v9  ;;  %vm2081_vm15 = vcmask 1046532   ;;  %v6315_v20 = vrot.slane %v3573_v35, 9  ;;  %v1297_v28 = vsel %vm7624_vm13, %v1292_v51, %v1296_v44 }
  0x90   : > { %v3081_v25 = vrot.slane %v3080_v61, 4  ;;  %vm7927_vm2 = vmor %vm2080_vm14, %vm2081_vm15  ;;  %v3641_v37 = vrot.slane %v3639_v41, 4  ;;  %v6316_v31 = vrot.slane %v3574_v21, 9  ;;  %v367_v35 = vsel %vm7510_vm3, 0, %v366_v48 }
  0x91   : > { %v1302_v12 = vrot.slane %v1301_v5, 4  ;;  %v3640_v30 = vsel %vm7927_vm2, %v6315_v20, %v3639_v41  ;;  %v7942_v22 = vsel %vm7927_vm2, %v7668_v24, %v3649_v16  ;;  %368 = vst [vmem:[#allocation2 + $0x78] sm:$0x1] %v367_v35  ;;  %v423_v50 = vsel %vm7518_vm5, 0, %v422_v10  ;;  %v369_v16 = vld [vmem:[#allocation2 + $0x84] sm:$0x1] }
  0x92   : > { %v3086_v58 = vsel %vm7624_vm13, %v3081_v25, %v3085_v54  ;;  %v3643_v15 = vsel %vm7927_vm2, %v3641_v37, %v3642_v42  ;;  %v7956_v41 = vsel %vm7927_vm2, %v6316_v31, %v3646_v11  ;;  %v425_v24 = vld [vmem:[#allocation2 + $0x8c] sm:$0x1]  ;;  %424 = vst [vmem:[#allocation2 + $0x80] sm:$0x1] %v423_v50  ;;  %v698_v11 = vshrl.u32 %v7841_v26, 16 }
  0x93   : > { %v6290_v40 = vcombine.low %v3076_v62, %v3086_v58  ;;  %v1307_v60 = vsel %vm7624_vm13, %v1302_v12, %v1306_v53  ;;  %v6332_v19 = vcombine.low %v3640_v30, %v3643_v15  ;;  %v6333_v42 = vcombine.low %v7956_v41, %v7942_v22 }
  0x94   : > { %v6144_v59 = vcombine.low %v1297_v28, %v1307_v60  ;;  %v701_v57 = vshll.u32 %v7841_v26, 16  ;;  %v706_v51 = vshrl.u32 %v7848_v47, 16  ;;  %v709_v21 = vshll.u32 %v7848_v47, 16 }
  0x95   : > { %6884 = vmatmul.mubr.msk.bf16.gmra.mrb[12].mxu0 %vm1526_vm12, %v6290_v40  ;;  %v1059_v52 = vld [vmem:[#allocation2 + $0x70] sm:$0xf]  ;;  %v370_v54 = vsel %vm7510_vm3, 0, %v369_v16  ;;  %v426_v44 = vsel %vm7518_vm5, 0, %v425_v24  ;;  %v715_v63 = vshrl.u32 %v7893_v6, 16  ;;  %v7978_v0 = vpack.c.bf16 %v326_v38, %v326_v38 }
  0x96   : > { %6751 = vmatprep.mubr.msk.bf16.mxu1 %vm1526_vm12, %v6144_v59  ;;  %v1058_v18 = vld [vmem:[#allocation2 + $0x6c] sm:$0xf]  ;;  %v1082_v61 = vld [vmem:[#allocation2 + $0x74] sm:$0x1]  ;;  %v1318_v26 = vshll.u32 %v1059_v52, 16  ;;  %v1322_v53 = vshrl.u32 %v1059_v52, 16  ;;  %6905 = vmatprep.mubr.msk.bf16.mxu0 %vm1526_vm12, %v6332_v19  ;;  %v7980_v47 = vpack.c.bf16 %v327_v43, %v327_v43 }
  0x97   : > { %371 = vst [vmem:[#allocation2 + $0x84] sm:$0x1] %v370_v54  ;;  %427 = vst [vmem:[#allocation2 + $0x8c] sm:$0x1] %v426_v44  ;;  %v1309_v9 = vshrl.u32 %v1058_v18, 16  ;;  %v1312_v48 = vshll.u32 %v1058_v18, 16 }
  0x98   : > { %v1328_v62 = vshll.u32 %v1082_v61, 16  ;;  %v700_v5 = vrot.slane %v698_v11, 7  ;;  %v1320_v20 = vrot.slane %v1318_v26, 5  ;;  %v1324_v10 = vrot.slane %v1322_v53, 4  ;;  %v931_v22 = vld [vmem:[#allocation2 + $0x78] sm:$0xf] }
  0x99   : > { %v708_v25 = vrot.slane %v706_v51, 7  ;;  %v717_v28 = vrot.slane %v715_v63, 7  ;;  %v1311_v37 = vrot.slane %v1309_v9, 4  ;;  %v1314_v31 = vrot.slane %v1312_v48, 5  ;;  %v935_v50 = vld [vmem:[#allocation2 + $0x80] sm:$0x1] }
  0x9a   : > { %v1330_v12 = vrot.slane %v1328_v62, 5  ;;  %v703_v30 = vor.u32 %v701_v57, %v700_v5  ;;  %v1325_v35 = vor.u32 %v1324_v10, %v1320_v20  ;;  %v704_v58 = vrot.slane %v700_v5, 4  ;;  %v3575_v16 = vld [vmem:[#allocation2 + $0x24] sm:$0xe]  ;;  %v7363_v40 = vld [vmem:[%s9432_s2 + $0xc] sm:$0x3] }
  0x9b   : > { %v711_v15 = vor.u32 %v709_v21, %v708_v25  ;;  %v713_v41 = vrot.slane %v708_v25, 4  ;;  %v1315_v24 = vor.u32 %v1314_v31, %v1311_v37  ;;  %v4207_v60 = vsel %vm1575_vm0, %v7363_v40, 0  ;;  %v3576_v43 = vld [vmem:[#allocation2 + $0x30] sm:$0xe]  ;;  %v372_v52 = vld [vmem:[#allocation2 + $0x90] sm:$0x1] }
  0x9c   : > { %v932_v19 = vsel %vm7565_vm9, %v703_v30, %v931_v22  ;;  %v718_v38 = vshll.u32 %v7893_v6, 16  ;;  %v1326_v59 = vrot.slane %v1325_v35, 4  ;;  %v723_v51 = vshrl.u32 %v7903_v49, 16  ;;  %v7997_v21 = vld [vmem:[%s9432_s2 + $0xe] sm:$0x3] }
  0x9d   : > { %v712_v11 = vsel %vm7553_vm8, %v704_v58, %v711_v15  ;;  %933 = vst [vmem:[#allocation2 + $0x78] sm:$0xf] %v932_v19  ;;  %v936_v57 = vsel %vm7510_vm3, %v713_v41, %v935_v50  ;;  %v1316_v54 = vrot.slane %v1315_v24, 4  ;;  %6906 = vmatmul.mubr.msk.bf16.vlgmr.msra.gmra.mrb[0].mxu0 %vm1526_vm12, %v6333_v42  ;;  %v721_v44 = vrot.slane %v717_v28, 4  ;;  %v428_v48 = vld [vmem:[#allocation2 + $0x98] sm:$0x1] }
  0x9e   : > { %934 = vst.msk [vmem:[#allocation2 + $0x7c] sm:$0xf] %vm865_vm7, %v712_v11  ;;  %937 = vst [vmem:[#allocation2 + $0x80] sm:$0x1] %v936_v57  ;;  %v720_v6 = vor.u32 %v718_v38, %v717_v28  ;;  %v726_v63 = vshll.u32 %v7903_v49, 16  ;;  %v1331_v61 = vsel %vm7624_vm13, %v1326_v59, %v1330_v12  ;;  %6938 = vmatpush3.bf16.msra.mxu0 %v4207_v60  ;;  %v725_v26 = vrot.slane %v723_v51, 7 }
  0x9f   : > { %v938_v18 = vld [vmem:[#allocation2 + $0x84] sm:$0xf]  ;;  %v6317_v53 = vrot.slane %v3575_v16, 9  ;;  %v3653_v9 = vrot.slane %v7731_v1, 5  ;;  %v1321_v42 = vsel %vm7624_vm13, %v1316_v54, %v1320_v20  ;;  %v942_v5 = vld [vmem:[#allocation2 + $0x8c] sm:$0x1]  ;;  %7305 = vmatprep.subr.msk.bf16.mxu0 %vm1575_vm0, %v7997_v21 }
  0xa0   : > { %v939_v62 = vsel %vm7565_vm9, %v720_v6, %v938_v18  ;;  %v3656_v49 = vrot.slane %v7721_v56, 5  ;;  %v6318_v10 = vrot.slane %v3576_v43, 9  ;;  %v6145_v25 = vcombine.low %v1321_v42, %v1331_v61  ;;  %v328_v56 = vld [vmem:[%s7529_s27 + $0xd8] sm:$0xff] }
  0xa1   : > { %v728_v28 = vor.u32 %v726_v63, %v725_v26  ;;  %v730_v37 = vrot.slane %v725_v26, 4  ;;  %940 = vst [vmem:[#allocation2 + $0x84] sm:$0xf] %v939_v62  ;;  %v3654_v1 = vsel %vm7927_vm2, %v6317_v53, %v3653_v9  ;;  %v3655_v31 = vrot.slane %v3653_v9, 4 }
  0xa2   : > { %v3660_v20 = vrot.slane %v7741_v33, 5  ;;  %v3663_v12 = vrot.slane %v7746_v39, 5  ;;  %v373_v30 = vsel %vm7510_vm3, 0, %v372_v52  ;;  %6752 = vmatmul.mubr.msk.bf16.gmra.mrb[16].mxu1 %vm1526_vm12, %v6145_v25  ;;  %v429_v58 = vsel %vm7518_vm5, 0, %v428_v48 }
  0xa3   : > { %v729_v22 = vsel %vm7553_vm8, %v721_v44, %v728_v28  ;;  %v943_v35 = vsel %vm7510_vm3, %v730_v37, %v942_v5  ;;  %374 = vst [vmem:[#allocation2 + $0x90] sm:$0x1] %v373_v30  ;;  %v732_v33 = vshrl.u32 %v7905_v23, 16  ;;  %v3657_v39 = vsel %vm7927_vm2, %v3655_v31, %v3656_v49  ;;  %430 = vst [vmem:[#allocation2 + $0x98] sm:$0x1] %v429_v58  ;;  %v329_v44 = vld [vmem:[%s7529_s27 + $0xe0] sm:$0xff] }
  0xa4   : > { %v8027_v15 = vld [vmem:[#allocation2 + $0x78] sm:$0xf]  ;;  %941 = vst.msk [vmem:[#allocation2 + $0x88] sm:$0xf] %vm865_vm7, %v729_v22  ;;  %944 = vst [vmem:[#allocation2 + $0x8c] sm:$0x1] %v943_v35  ;;  %v3661_v41 = vsel %vm7927_vm2, %v6318_v10, %v3660_v20  ;;  %v6334_v38 = vcombine.low %v3654_v1, %v3657_v39  ;;  %v8039_v43 = vpack.c.bf16 %v328_v56, %v328_v56 }
  0xa5   : > { %v3662_v50 = vrot.slane %v3660_v20, 4  ;;  %v735_v16 = vshll.u32 %v7905_v23, 16  ;;  %v8035_v24 = vld [vmem:[#allocation2 + $0x7c] sm:$0xf]  ;;  %v1083_v40 = vld [vmem:[#allocation2 + $0x80] sm:$0x1]  ;;  %v8058_v30 = vpack.c.bf16 %v329_v44, %v329_v44 }
  0xa6   : > { %v1333_v60 = vshrl.u32 %v8027_v15, 16  ;;  %v1336_v19 = vshll.u32 %v8027_v15, 16  ;;  %v1342_v59 = vshll.u32 %v8035_v24, 16  ;;  %v1346_v11 = vshrl.u32 %v8035_v24, 16  ;;  %6909 = vmatprep.mubr.msk.bf16.mxu0 %vm1526_vm12, %v6334_v38 }
  0xa7   : > { %v1352_v57 = vshll.u32 %v1083_v40, 16  ;;  %v3664_v51 = vsel %vm7927_vm2, %v3662_v50, %v3663_v12  ;;  %v734_v6 = vrot.slane %v732_v33, 7  ;;  %v740_v53 = vshrl.u32 %v7907_v46, 16  ;;  %v431_v40 = vld [vmem:[#allocation2 + $0xa4] sm:$0x1] }
  0xa8   : > { %v1335_v23 = vrot.slane %v1333_v60, 4  ;;  %v1338_v52 = vrot.slane %v1336_v19, 5  ;;  %v6335_v54 = vcombine.low %v3661_v41, %v3664_v51  ;;  %v1344_v63 = vrot.slane %v1342_v59, 5  ;;  %v8047_v26 = vld [vmem:[#allocation2 + $0x84] sm:$0xf] }
  0xa9   : > { %v1348_v18 = vrot.slane %v1346_v11, 4  ;;  %v1354_v61 = vrot.slane %v1352_v57, 5  ;;  %v1357_v48 = vshrl.u32 %v8047_v26, 16  ;;  %v1360_v42 = vshll.u32 %v8047_v26, 16 }
  0xaa   : > { %v1339_v9 = vor.u32 %v1338_v52, %v1335_v23  ;;  %6910 = vmatmul.mubr.msk.bf16.gmra.mrb[4].mxu0 %vm1526_vm12, %v6335_v54  ;;  %v737_v62 = vor.u32 %v735_v16, %v734_v6  ;;  %v738_v49 = vrot.slane %v734_v6, 4  ;;  %v742_v10 = vrot.slane %v740_v53, 7  ;;  %v945_v28 = vld [vmem:[#allocation2 + $0x90] sm:$0xf]  ;;  %v375_v16 = vld [vmem:[#allocation2 + $0x9c] sm:$0x1] }
  0xab   : > { %v1349_v5 = vor.u32 %v1348_v18, %v1344_v63  ;;  %v743_v25 = vshll.u32 %v7907_v46, 16  ;;  %v8054_v1 = vld [vmem:[#allocation2 + $0x88] sm:$0xf]  ;;  %v1084_v31 = vld [vmem:[#allocation2 + $0x8c] sm:$0x1]  ;;  %v1359_v20 = vrot.slane %v1357_v48, 4 }
  0xac   : > { %v1340_v37 = vrot.slane %v1339_v9, 4  ;;  %v946_v12 = vsel %vm7565_vm9, %v737_v62, %v945_v28  ;;  %v1362_v22 = vrot.slane %v1360_v42, 5  ;;  %v1366_v35 = vshll.u32 %v8054_v1, 16  ;;  %v949_v46 = vld [vmem:[#allocation2 + $0x98] sm:$0x1]  ;;  %v330_v52 = vld [vmem:[%s7529_s27 + $0xe8] sm:$0xff] }
  0xad   : > { %v1350_v56 = vrot.slane %v1349_v5, 4  ;;  %v1370_v58 = vshrl.u32 %v8054_v1, 16  ;;  %947 = vst [vmem:[#allocation2 + $0x90] sm:$0xf] %v946_v12  ;;  %v1376_v39 = vshll.u32 %v1084_v31, 16  ;;  %v745_v41 = vor.u32 %v743_v25, %v742_v10 }
  0xae   : > { %v1345_v33 = vsel %vm7624_vm13, %v1340_v37, %v1344_v63  ;;  %v747_v50 = vrot.slane %v742_v10, 4  ;;  %v1363_v19 = vor.u32 %v1362_v22, %v1359_v20  ;;  %v1368_v38 = vrot.slane %v1366_v35, 5  ;;  %v3577_v18 = vld [vmem:[#allocation2 + $0x3c] sm:$0xe]  ;;  %v3578_v42 = vld [vmem:[#allocation2 + $0x48] sm:$0xe] }
  0xaf   : > { %v1355_v60 = vsel %vm7624_vm13, %v1350_v56, %v1354_v61  ;;  %v1372_v59 = vrot.slane %v1370_v58, 4  ;;  %v1378_v57 = vrot.slane %v1376_v39, 5  ;;  %v746_v51 = vsel %vm7553_vm8, %v738_v49, %v745_v41  ;;  %v7364_v49 = vld [vmem:[#allocation2 + $0x40] sm:$0xf] }
  0xb0   : > { %v6146_v11 = vcombine.low %v1345_v33, %v1355_v60  ;;  %v950_v23 = vsel %vm7510_vm3, %v747_v50, %v949_v46  ;;  %v1364_v54 = vrot.slane %v1363_v19, 4  ;;  %948 = vst.msk [vmem:[#allocation2 + $0x94] sm:$0xf] %vm865_vm7, %v746_v51  ;;  %v376_v44 = vsel %vm7510_vm3, 0, %v375_v16 }
  0xb1   : > { %v1373_v6 = vor.u32 %v1372_v59, %v1368_v38  ;;  %951 = vst [vmem:[#allocation2 + $0x98] sm:$0x1] %v950_v23  ;;  %v432_v63 = vsel %vm7518_vm5, 0, %v431_v40  ;;  %377 = vst [vmem:[#allocation2 + $0x9c] sm:$0x1] %v376_v44  ;;  %v749_v61 = vshrl.u32 %v7912_v55, 16  ;;  %v8083_v25 = vpack.c.bf16 %v330_v52, %v330_v52 }
  0xb2   : > { %6755 = vmatprep.mubr.msk.bf16.mxu1 %vm1526_vm12, %v6146_v11  ;;  %433 = vst [vmem:[#allocation2 + $0xa4] sm:$0x1] %v432_v63  ;;  %v752_v53 = vshll.u32 %v7912_v55, 16  ;;  %v757_v9 = vshrl.u32 %v7978_v0, 16  ;;  %v760_v48 = vshll.u32 %v7978_v0, 16  ;;  %v1369_v62 = vsel %vm7624_vm13, %v1364_v54, %v1368_v38 }
  0xb3   : > { %v1374_v5 = vrot.slane %v1373_v6, 4  ;;  %v3667_v10 = vrot.slane %v7364_v49, 5  ;;  %v751_v37 = vrot.slane %v749_v61, 7  ;;  %v6319_v20 = vrot.slane %v3577_v18, 9  ;;  %v378_v40 = vld [vmem:[#allocation2 + $0xa8] sm:$0x1] }
  0xb4   : > { %v8085_v28 = vld [vmem:[#allocation2 + $0x90] sm:$0xf]  ;;  %v759_v31 = vrot.slane %v757_v9, 7  ;;  %v3670_v55 = vrot.slane %v7777_v32, 5  ;;  %v6320_v22 = vrot.slane %v3578_v42, 9  ;;  %v3674_v59 = vrot.slane %v7832_v13, 5 }
  0xb5   : > { %v1379_v12 = vsel %vm7624_vm13, %v1374_v5, %v1378_v57  ;;  %v1381_v0 = vshrl.u32 %v8085_v28, 16  ;;  %v1384_v56 = vshll.u32 %v8085_v28, 16  ;;  %v754_v58 = vor.u32 %v752_v53, %v751_v37  ;;  %v434_v18 = vld [vmem:[#allocation2 + $0xb0] sm:$0x1]  ;;  %v381_v42 = vld [vmem:[#allocation2 + $0xb4] sm:$0x1] }
  0xb6   : > { %v6147_v35 = vcombine.low %v1369_v62, %v1379_v12  ;;  %v755_v46 = vrot.slane %v751_v37, 4  ;;  %v762_v33 = vor.u32 %v760_v48, %v759_v31  ;;  %v764_v50 = vrot.slane %v759_v31, 4  ;;  %v437_v37 = vld [vmem:[#allocation2 + $0xbc] sm:$0x1] }
  0xb7   : > { %v1383_v39 = vrot.slane %v1381_v0, 4  ;;  %v1386_v41 = vrot.slane %v1384_v56, 5  ;;  %v3669_v16 = vrot.slane %v3667_v10, 4  ;;  %v8093_v32 = vld [vmem:[#allocation2 + $0x94] sm:$0xf]  ;;  %v3668_v38 = vsel %vm7927_vm2, %v6319_v20, %v3667_v10 }
  0xb8   : > { %6756 = vmatmul.mubr.msk.bf16.gmra.mrb[20].mxu1 %vm1526_vm12, %v6147_v35  ;;  %v1085_v60 = vld [vmem:[#allocation2 + $0x98] sm:$0x1]  ;;  %v763_v19 = vsel %vm7553_vm8, %v755_v46, %v762_v33  ;;  %v3677_v11 = vrot.slane %v7834_v14, 5  ;;  %v1390_v51 = vshll.u32 %v8093_v32, 16  ;;  %v1394_v23 = vshrl.u32 %v8093_v32, 16 }
  0xb9   : > { %v1387_v57 = vor.u32 %v1386_v41, %v1383_v39  ;;  %v1400_v52 = vshll.u32 %v1085_v60, 16  ;;  %v952_v54 = vld [vmem:[#allocation2 + $0x9c] sm:$0xf]  ;;  %955 = vst.msk [vmem:[#allocation2 + $0xa0] sm:$0xf] %vm865_vm7, %v763_v19  ;;  %v3671_v63 = vsel %vm7927_vm2, %v3669_v16, %v3670_v55  ;;  %v3675_v13 = vsel %vm7927_vm2, %v6320_v22, %v3674_v59 }
  0xba   : > { %v953_v6 = vsel %vm7565_vm9, %v754_v58, %v952_v54  ;;  %v956_v44 = vld [vmem:[#allocation2 + $0xa4] sm:$0x1]  ;;  %v3676_v14 = vrot.slane %v3674_v59, 4  ;;  %v1392_v53 = vrot.slane %v1390_v51, 5  ;;  %v1396_v9 = vrot.slane %v1394_v23, 4 }
  0xbb   : > { %v1388_v61 = vrot.slane %v1387_v57, 4  ;;  %v1402_v48 = vrot.slane %v1400_v52, 5  ;;  %954 = vst [vmem:[#allocation2 + $0x9c] sm:$0xf] %v953_v6  ;;  %v957_v62 = vsel %vm7510_vm3, %v764_v50, %v956_v44  ;;  %v6336_v5 = vcombine.low %v3668_v38, %v3671_v63  ;;  %v3579_v44 = vld [vmem:[#allocation2 + $0x54] sm:$0xe] }
  0xbc   : > { %v3678_v49 = vsel %vm7927_vm2, %v3676_v14, %v3677_v11  ;;  %v379_v10 = vsel %vm7510_vm3, 0, %v378_v40  ;;  %v1397_v20 = vor.u32 %v1396_v9, %v1392_v53  ;;  %958 = vst [vmem:[#allocation2 + $0xa4] sm:$0x1] %v957_v62  ;;  %v435_v12 = vsel %vm7518_vm5, 0, %v434_v18 }
  0xbd   : > { %v1393_v31 = vsel %vm7624_vm13, %v1388_v61, %v1392_v53  ;;  %v6337_v55 = vcombine.low %v3675_v13, %v3678_v49  ;;  %380 = vst [vmem:[#allocation2 + $0xa8] sm:$0x1] %v379_v10  ;;  %6913 = vmatprep.mubr.msk.bf16.mxu0 %vm1526_vm12, %v6336_v5  ;;  %436 = vst [vmem:[#allocation2 + $0xb0] sm:$0x1] %v435_v12  ;;  %v766_v0 = vshrl.u32 %v7980_v47, 16  ;;  %v769_v56 = vshll.u32 %v7980_v47, 16 }
  0xbe   : > { %v774_v22 = vshrl.u32 %v8039_v43, 16  ;;  %v777_v35 = vshll.u32 %v8039_v43, 16  ;;  %v1398_v58 = vrot.slane %v1397_v20, 4  ;;  %v382_v46 = vsel %vm7510_vm3, 0, %v381_v42  ;;  %v3580_v20 = vld [vmem:[#allocation2 + $0x60] sm:$0xe] }
  0xbf   : > { %6914 = vmatmul.mubr.msk.bf16.gmra.mrb[8].mxu0 %vm1526_vm12, %v6337_v55  ;;  %v438_v33 = vsel %vm7518_vm5, 0, %v437_v37  ;;  %v783_v39 = vshrl.u32 %v8058_v30, 16  ;;  %v768_v50 = vrot.slane %v766_v0, 7  ;;  %383 = vst [vmem:[#allocation2 + $0xb4] sm:$0x1] %v382_v46  ;;  %v786_v47 = vshll.u32 %v8058_v30, 16 }
  0xc0   : > { %v8131_v41 = vld [vmem:[#allocation2 + $0xa0] sm:$0xf]  ;;  %v776_v16 = vrot.slane %v774_v22, 7  ;;  %439 = vst [vmem:[#allocation2 + $0xbc] sm:$0x1] %v438_v33  ;;  %v791_v43 = vshrl.u32 %v8083_v25, 16  ;;  %v1403_v40 = vsel %vm7624_vm13, %v1398_v58, %v1402_v48 }
  0xc1   : > { %v1414_v60 = vshll.u32 %v8131_v41, 16  ;;  %v1418_v19 = vshrl.u32 %v8131_v41, 16  ;;  %v785_v38 = vrot.slane %v783_v39, 7  ;;  %v6148_v59 = vcombine.low %v1393_v31, %v1403_v40 }
  0xc2   : > { %v8139_v11 = vld [vmem:[#allocation2 + $0x9c] sm:$0xf]  ;;  %v771_v57 = vor.u32 %v769_v56, %v768_v50  ;;  %v772_v51 = vrot.slane %v768_v50, 4  ;;  %v779_v23 = vor.u32 %v777_v35, %v776_v16  ;;  %v781_v14 = vrot.slane %v776_v16, 4 }
  0xc3   : > { %v1405_v52 = vshrl.u32 %v8139_v11, 16  ;;  %v1408_v30 = vshll.u32 %v8139_v11, 16  ;;  %v1416_v54 = vrot.slane %v1414_v60, 5  ;;  %v1420_v6 = vrot.slane %v1418_v19, 4  ;;  %6759 = vmatprep.mubr.msk.bf16.mxu1 %vm1526_vm12, %v6148_v59  ;;  %v1086_v63 = vld [vmem:[#allocation2 + $0xa4] sm:$0x1] }
  0xc4   : > { %v780_v13 = vsel %vm7553_vm8, %v772_v51, %v779_v23  ;;  %v959_v18 = vld [vmem:[#allocation2 + $0xa8] sm:$0xf]  ;;  %v788_v61 = vor.u32 %v786_v47, %v785_v38  ;;  %v789_v53 = vrot.slane %v785_v38, 4  ;;  %v1424_v62 = vshll.u32 %v1086_v63, 16  ;;  %v963_v5 = vld [vmem:[#allocation2 + $0xb0] sm:$0x1] }
  0xc5   : > { %v1407_v9 = vrot.slane %v1405_v52, 4  ;;  %v1410_v48 = vrot.slane %v1408_v30, 5  ;;  %v1421_v42 = vor.u32 %v1420_v6, %v1416_v54  ;;  %962 = vst.msk [vmem:[#allocation2 + $0xac] sm:$0xf] %vm865_vm7, %v780_v13  ;;  %v960_v49 = vsel %vm7565_vm9, %v771_v57, %v959_v18  ;;  %v3581_v47 = vld [vmem:[#allocation2 + $0x6c] sm:$0xe] }
  0xc6   : > { %v964_v10 = vsel %vm7510_vm3, %v781_v14, %v963_v5  ;;  %v793_v37 = vrot.slane %v791_v43, 7  ;;  %v794_v31 = vshll.u32 %v8083_v25, 16  ;;  %v1426_v0 = vrot.slane %v1424_v62, 5  ;;  %961 = vst [vmem:[#allocation2 + $0xa8] sm:$0xf] %v960_v49 }
  0xc7   : > { %v1411_v55 = vor.u32 %v1410_v48, %v1407_v9  ;;  %v1422_v12 = vrot.slane %v1421_v42, 4  ;;  %965 = vst [vmem:[#allocation2 + $0xb0] sm:$0x1] %v964_v10  ;;  %v966_v56 = vld [vmem:[#allocation2 + $0xb4] sm:$0xf]  ;;  %v6321_v33 = vrot.slane %v3579_v44, 9 }
  0xc8   : > { %v970_v22 = vld [vmem:[#allocation2 + $0xbc] sm:$0x1]  ;;  %v796_v35 = vor.u32 %v794_v31, %v793_v37  ;;  %v798_v58 = vrot.slane %v793_v37, 4  ;;  %v967_v46 = vsel %vm7565_vm9, %v788_v61, %v966_v56  ;;  %v3681_v25 = vrot.slane %v7856_v29, 5  ;;  %v2872_v38 = vld [vmem:[#allocation2 + $0x70] sm:$0xf] }
  0xc9   : > { %v1412_v39 = vrot.slane %v1411_v55, 4  ;;  %v1427_v50 = vsel %vm7624_vm13, %v1422_v12, %v1426_v0  ;;  %968 = vst [vmem:[#allocation2 + $0xb4] sm:$0xf] %v967_v46  ;;  %v3684_v16 = vrot.slane %v7860_v36, 5  ;;  %v6322_v60 = vrot.slane %v3580_v20, 9 }
  0xca   : > { %v797_v43 = vsel %vm7553_vm8, %v789_v53, %v796_v35  ;;  %v971_v40 = vsel %vm7510_vm3, %v798_v58, %v970_v22  ;;  %v3688_v19 = vrot.slane %v7899_v8, 5  ;;  %v3682_v29 = vsel %vm7927_vm2, %v6321_v33, %v3681_v25  ;;  %v2873_v51 = vld [vmem:[#allocation2 + $0x74] sm:$0x1] }
  0xcb   : > { %v1417_v59 = vsel %vm7624_vm13, %v1412_v39, %v1416_v54  ;;  %969 = vst.msk [vmem:[#allocation2 + $0xb8] sm:$0xf] %vm865_vm7, %v797_v43  ;;  %972 = vst [vmem:[#allocation2 + $0xbc] sm:$0x1] %v971_v40  ;;  %v3683_v36 = vrot.slane %v3681_v25, 4  ;;  %v3691_v57 = vrot.slane %v7901_v45, 5 }
  0xcc   : > { %v6149_v23 = vcombine.low %v1417_v59, %v1427_v50  ;;  %v8169_v52 = vld [vmem:[#allocation2 + $0xac] sm:$0xf]  ;;  %v3689_v8 = vsel %vm7927_vm2, %v6322_v60, %v3688_v19  ;;  %v3690_v30 = vrot.slane %v3688_v19, 4  ;;  %v6323_v6 = vrot.slane %v3581_v47, 9  ;;  %v8198_v19 = vld [vmem:[#allocation2 + $0x7c] sm:$0xf] }
  0xcd   : > { %v1438_v54 = vshll.u32 %v8169_v52, 16  ;;  %v1442_v44 = vshrl.u32 %v8169_v52, 16  ;;  %v3685_v63 = vsel %vm7927_vm2, %v3683_v36, %v3684_v16  ;;  %v3695_v13 = vrot.slane %v2872_v38, 5  ;;  %v8178_v45 = vld [vmem:[#allocation2 + $0xa8] sm:$0xf] }
  0xce   : > { %6760 = vmatmul.mubr.msk.bf16.gmra.mrb[24].mxu1 %vm1526_vm12, %v6149_v23  ;;  %v1087_v14 = vld [vmem:[#allocation2 + $0xb0] sm:$0x1]  ;;  %v6338_v18 = vcombine.low %v3682_v29, %v3685_v63  ;;  %v3692_v61 = vsel %vm7927_vm2, %v3690_v30, %v3691_v57  ;;  %v3698_v53 = vrot.slane %v2873_v51, 5  ;;  %v1429_v9 = vshrl.u32 %v8178_v45, 16  ;;  %v3582_v16 = vld [vmem:[#allocation2 + $0x78] sm:$0xe] }
  0xcf   : > { %v1432_v48 = vshll.u32 %v8178_v45, 16  ;;  %v1440_v42 = vrot.slane %v1438_v54, 5  ;;  %v1444_v62 = vrot.slane %v1442_v44, 4  ;;  %v1448_v5 = vshll.u32 %v1087_v14, 16  ;;  %v8202_v36 = vld [vmem:[#allocation2 + $0x80] sm:$0x1] }
  0xd0   : > { %v8184_v49 = vld [vmem:[#allocation2 + $0xb4] sm:$0xf]  ;;  %6917 = vmatprep.mubr.msk.bf16.mxu0 %vm1526_vm12, %v6338_v18  ;;  %v6339_v10 = vcombine.low %v3689_v8, %v3692_v61  ;;  %v3696_v37 = vsel %vm7927_vm2, %v6323_v6, %v3695_v13  ;;  %v3697_v31 = vrot.slane %v3695_v13, 4  ;;  %v1431_v20 = vrot.slane %v1429_v9, 4  ;;  %v3583_v23 = vld [vmem:[#allocation2 + $0x84] sm:$0xe] }
  0xd1   : > { %v1434_v55 = vrot.slane %v1432_v48, 5  ;;  %v1445_v12 = vor.u32 %v1444_v62, %v1440_v42  ;;  %v1453_v0 = vshrl.u32 %v8184_v49, 16  ;;  %v1450_v56 = vrot.slane %v1448_v5, 5  ;;  %v2878_v6 = vld [vmem:[#allocation2 + $0x88] sm:$0xf] }
  0xd2   : > { %v8190_v22 = vld [vmem:[#allocation2 + $0xb8] sm:$0xf]  ;;  %v1088_v35 = vld [vmem:[#allocation2 + $0xbc] sm:$0x1]  ;;  %v1456_v58 = vshll.u32 %v8184_v49, 16  ;;  %6918 = vmatmul.mubr.msk.bf16.gmra.mrb[12].mxu0 %vm1526_vm12, %v6339_v10  ;;  %v3699_v46 = vsel %vm7927_vm2, %v3697_v31, %v3698_v53  ;;  %v6324_v30 = vrot.slane %v3582_v16, 9 }
  0xd3   : > { %v1435_v33 = vor.u32 %v1434_v55, %v1431_v20  ;;  %v1446_v39 = vrot.slane %v1445_v12, 4  ;;  %v1455_v50 = vrot.slane %v1453_v0, 4  ;;  %v1462_v25 = vshll.u32 %v8190_v22, 16  ;;  %v2879_v14 = vld [vmem:[#allocation2 + $0x8c] sm:$0x1] }
  0xd4   : > { %v1458_v47 = vrot.slane %v1456_v58, 5  ;;  %v1466_v43 = vshrl.u32 %v8190_v22, 16  ;;  %v1472_v40 = vshll.u32 %v1088_v35, 16  ;;  %v6340_v60 = vcombine.low %v3696_v37, %v3699_v46  ;;  %v3584_v5 = vld [vmem:[#allocation2 + $0x90] sm:$0xe] }
  0xd5   : > { %v1436_v38 = vrot.slane %v1435_v33, 4  ;;  %v1451_v59 = vsel %vm7624_vm13, %v1446_v39, %v1450_v56  ;;  %v1464_v29 = vrot.slane %v1462_v25, 5  ;;  %v3702_v18 = vrot.slane %v8198_v19, 5  ;;  %v2882_v20 = vld [vmem:[#allocation2 + $0x98] sm:$0x1] }
  0xd6   : > { %v1459_v57 = vor.u32 %v1458_v47, %v1455_v50  ;;  %v1468_v51 = vrot.slane %v1466_v43, 4  ;;  %6921 = vmatprep.mubr.msk.bf16.mxu0 %vm1526_vm12, %v6340_v60  ;;  %v1474_v13 = vrot.slane %v1472_v40, 5  ;;  %v3705_v61 = vrot.slane %v8202_v36, 5  ;;  %v2884_v55 = vld [vmem:[#allocation2 + $0xa0] sm:$0xf] }
  0xd7   : > { %v1441_v8 = vsel %vm7624_vm13, %v1436_v38, %v1440_v42  ;;  %v6325_v53 = vrot.slane %v3583_v23, 9  ;;  %v3709_v62 = vrot.slane %v2878_v6, 5  ;;  %v2881_v42 = vld [vmem:[#allocation2 + $0x94] sm:$0xf]  ;;  %v3703_v10 = vsel %vm7927_vm2, %v6324_v30, %v3702_v18  ;;  %v7365_v0 = vld [vmem:[#allocation2] sm:$0xf] }
  0xd8   : > { %v6150_v54 = vcombine.low %v1441_v8, %v1451_v59  ;;  %v1460_v44 = vrot.slane %v1459_v57, 4  ;;  %v1469_v63 = vor.u32 %v1468_v51, %v1464_v29  ;;  %v3704_v37 = vrot.slane %v3702_v18, 4  ;;  %v8216_v56 = vld [vmem:[#allocation2 + $0x4] sm:$0xf]  ;;  %v3585_v39 = vld [vmem:[#allocation2 + $0x9c] sm:$0xe] }
  0xd9   : > { %v3712_v31 = vrot.slane %v2879_v14, 5  ;;  %v6168_v35 = vcombine.low %v7365_v0, %v8216_v56  ;;  %v3710_v58 = vsel %vm7927_vm2, %v6325_v53, %v3709_v62  ;;  %v3711_v46 = vrot.slane %v3709_v62, 4  ;;  %v2885_v33 = vld [vmem:[#allocation2 + $0xa4] sm:$0x1]  ;;  %v8225_v59 = vld [vmem:[#allocation2 + $0xac] sm:$0xf] }
  0xda   : > { %6763 = vmatprep.mubr.msk.bf16.mxu1 %vm1526_vm12, %v6150_v54  ;;  %v1465_v9 = vsel %vm7624_vm13, %v1460_v44, %v1464_v29  ;;  %v1470_v48 = vrot.slane %v1469_v63, 4  ;;  %v3706_v25 = vsel %vm7927_vm2, %v3704_v37, %v3705_v61  ;;  %v6326_v16 = vrot.slane %v3584_v5, 9  ;;  %v2890_v30 = vld [vmem:[#allocation2 + $0xb8] sm:$0xf]  ;;  %v384_v6 = vld [vmem:[#allocation2 + $0xc0] sm:$0x1] }
  0xdb   : > { %v3716_v47 = vrot.slane %v2881_v42, 5  ;;  %v6341_v43 = vcombine.low %v3703_v10, %v3706_v25  ;;  %v3713_v40 = vsel %vm7927_vm2, %v3711_v46, %v3712_v31  ;;  %v3719_v60 = vrot.slane %v2882_v20, 5  ;;  %v3586_v54 = vld [vmem:[#allocation2 + $0xa8] sm:$0xe]  ;;  %v331_v63 = vld [vmem:[%s7529_s27 + $0xf0] sm:$0xff]  ;;  %v332_v10 = vld [vmem:[%s7529_s27 + $0xf8] sm:$0xff] }
  0xdc   : > { %v1475_v12 = vsel %vm7624_vm13, %v1470_v48, %v1474_v13  ;;  %v3723_v38 = vrot.slane %v2884_v55, 5  ;;  %v6342_v29 = vcombine.low %v3710_v58, %v3713_v40  ;;  %v6327_v51 = vrot.slane %v3585_v39, 9  ;;  %v440_v13 = vld [vmem:[#allocation2 + $0xc8] sm:$0x1]  ;;  %v7367_v14 = vld [vmem:[#allocation2 + $0xc] sm:$0xf] }
  0xdd   : > { %v6151_v50 = vcombine.low %v1465_v9, %v1475_v12  ;;  %v3718_v57 = vrot.slane %v3716_v47, 4  ;;  %v3726_v23 = vrot.slane %v2885_v33, 5  ;;  %6922 = vmatmul.mubr.msk.bf16.gmra.mrb[16].mxu0 %vm1526_vm12, %v6341_v43  ;;  %v3730_v44 = vrot.slane %v8225_v59, 5  ;;  %v8233_v18 = vld [vmem:[#allocation2 + $0x10] sm:$0xf] }
  0xde   : > { %v3725_v8 = vrot.slane %v3723_v38, 4  ;;  %6925 = vmatprep.mubr.msk.bf16.mxu0 %vm1526_vm12, %v6342_v29  ;;  %v6169_v61 = vcombine.low %v7367_v14, %v8233_v18  ;;  %v7369_v53 = vld [vmem:[#allocation2 + $0x18] sm:$0xf]  ;;  %v8236_v9 = vld [vmem:[#allocation2 + $0x1c] sm:$0xf]  ;;  %v3717_v62 = vsel %vm7927_vm2, %v6326_v16, %v3716_v47  ;;  %v3724_v20 = vsel %vm7927_vm2, %v6327_v51, %v3723_v38 }
  0xdf   : > { %6764 = vmatmul.mubr.msk.bf16.gmra.mrb[28].mxu1 %vm1526_vm12, %v6151_v50  ;;  %v6170_v48 = vcombine.low %v7369_v53, %v8236_v9  ;;  %v3720_v42 = vsel %vm7927_vm2, %v3718_v57, %v3719_v60  ;;  %v2888_v5 = vld [vmem:[#allocation2 + $0xb0] sm:$0x1]  ;;  %v7371_v37 = vld [vmem:[%s9432_s2 + $0x4] sm:$0x3]  ;;  %v3587_v12 = vld [vmem:[#allocation2 + $0xb4] sm:$0xe]  ;;  %v6546_v39 = vpack.c.bf16 %v331_v63, %v331_v63  ;;  %v6547_v47 = vpack.c.bf16 %v332_v10, %v332_v10 }
  0xe0   : > { %6769 = vmatprep.mubr.msk.bf16.mxu1 %vm1526_vm12, %v6168_v35  ;;  %v2294_v31 = vsel %vm1575_vm0, %v7371_v37, 0  ;;  %v3727_v55 = vsel %vm7927_vm2, %v3725_v8, %v3726_v23  ;;  %v3737_v0 = vrot.slane %v2890_v30, 5  ;;  %v6328_v35 = vrot.slane %v3586_v54, 9  ;;  %v2891_v58 = vld [vmem:[#allocation2 + $0xbc] sm:$0x1] }
  0xe1   : > { %v385_v46 = vsel %vm7510_vm3, 0, %v384_v6  ;;  %v441_v33 = vsel %vm7518_vm5, 0, %v440_v13  ;;  %v6343_v50 = vcombine.low %v3717_v62, %v3720_v42  ;;  %v3732_v25 = vrot.slane %v3730_v44, 4  ;;  %v8259_v59 = vld [vmem:[%s9432_s2 + $0x6] sm:$0x3] }
  0xe2   : > { %v3733_v16 = vrot.slane %v2888_v5, 5  ;;  %386 = vst [vmem:[#allocation2 + $0xc0] sm:$0x1] %v385_v46  ;;  %442 = vst [vmem:[#allocation2 + $0xc8] sm:$0x1] %v441_v33  ;;  %v6344_v43 = vcombine.low %v3724_v20, %v3727_v55  ;;  %v6329_v40 = vrot.slane %v3587_v12, 9  ;;  %v3731_v13 = vsel %vm7927_vm2, %v6328_v35, %v3730_v44 }
  0xe3   : > { %v800_v60 = vshrl.u32 %v6546_v39, 16  ;;  %v803_v38 = vshll.u32 %v6546_v39, 16  ;;  %v3739_v29 = vrot.slane %v3737_v0, 4  ;;  %v3740_v57 = vrot.slane %v2891_v58, 5  ;;  %v7372_v30 = vld [vmem:[#allocation2 + $0x24] sm:$0xf] }
  0xe4   : > { %v808_v51 = vshrl.u32 %v6547_v47, 16  ;;  %v811_v23 = vshll.u32 %v6547_v47, 16  ;;  %v8263_v6 = vld [vmem:[#allocation2 + $0x28] sm:$0xf]  ;;  %v3734_v14 = vsel %vm7927_vm2, %v3732_v25, %v3733_v16  ;;  %v7374_v10 = vld [vmem:[#allocation2 + $0x30] sm:$0xf] }
  0xe5   : > { %v802_v8 = vrot.slane %v800_v60, 7  ;;  %v6171_v54 = vcombine.low %v7372_v30, %v8263_v6  ;;  %6926 = vmatmul.mubr.msk.bf16.gmra.mrb[20].mxu0 %vm1526_vm12, %v6343_v50  ;;  %v3741_v62 = vsel %vm7927_vm2, %v3739_v29, %v3740_v57  ;;  %v8278_v37 = vld [vmem:[#allocation2 + $0x34] sm:$0xf]  ;;  %v6345_v55 = vcombine.low %v3731_v13, %v3734_v14  ;;  %v7376_v39 = vld [vmem:[#allocation2 + $0x3c] sm:$0xf] }
  0xe6   : > { %v810_v63 = vrot.slane %v808_v51, 7  ;;  %6929 = vmatprep.mubr.msk.bf16.mxu0 %vm1526_vm12, %v6344_v43  ;;  %v3121_v46 = vshll.u32 %v8198_v19, 16  ;;  %v3125_v33 = vshrl.u32 %v8198_v19, 16  ;;  %v8294_v50 = vld [vmem:[#allocation2 + $0x40] sm:$0xf] }
  0xe7   : > { %6770 = vmatmul.mubr.msk.bf16.vlgmr.msra.gmra.mrb[0].mxu1 %vm1526_vm12, %v6169_v61  ;;  %v805_v61 = vor.u32 %v803_v38, %v802_v8  ;;  %v806_v53 = vrot.slane %v802_v8, 4  ;;  %v6173_v25 = vcombine.low %v7376_v39, %v8294_v50  ;;  %v7378_v47 = vld [vmem:[#allocation2 + $0x48] sm:$0xf]  ;;  %v8299_v43 = vld [vmem:[#allocation2 + $0x4c] sm:$0xf] }
  0xe8   : > { %6802 = vmatpush3.bf16.msra.mxu1 %v2294_v31  ;;  %6773 = vmatprep.mubr.msk.bf16.mxu1 %vm1526_vm12, %v6170_v48  ;;  %v3738_v48 = vsel %vm7927_vm2, %v6329_v40, %v3737_v0  ;;  %v813_v42 = vor.u32 %v811_v23, %v810_v63  ;;  %v815_v5 = vrot.slane %v810_v63, 4  ;;  %v6172_v31 = vcombine.low %v7374_v10, %v8278_v37  ;;  %v387_v60 = vld [vmem:[#allocation2 + $0xcc] sm:$0x1]  ;;  %v6133_v63 = vld [vmem:[%s7534_s30 + $0x8] sm:$0xf] }
  0xe9   : > { %7300 = vmatprep.subr.msk.bf16.mxu1 %vm1575_vm0, %v8259_v59  ;;  %v973_v20 = vld [vmem:[#allocation2 + $0xc0] sm:$0xf]  ;;  %v977_v44 = vld [vmem:[#allocation2 + $0xc8] sm:$0x1]  ;;  %v6346_v58 = vcombine.low %v3738_v48, %v3741_v62  ;;  %v8297_v16 = vrot.slane %v3121_v46, 5  ;;  %v6174_v40 = vcombine.low %v7378_v47, %v8299_v43  ;;  %v3127_v57 = vrot.slane %v3125_v33, 4 }
  0xea   : > { %v814_v12 = vsel %vm7553_vm8, %v806_v53, %v813_v42  ;;  %v974_v35 = vsel %vm7565_vm9, %v805_v61, %v973_v20  ;;  %v978_v0 = vsel %vm7510_vm3, %v815_v5, %v977_v44  ;;  %v8307_v13 = vld [vmem:[#allocation2 + $0x8] sm:$0x1]  ;;  %v3131_v61 = vshll.u32 %v8202_v36, 16  ;;  %v6134_v48 = vld [vmem:[%s7534_s30 + $0xc] sm:$0xf]  ;;  %v7331_v20 = vld [vmem:[#allocation2 + $0x18] sm:$0xff]  }
  0xeb   : > { %975 = vst [vmem:[#allocation2 + $0xc0] sm:$0xf] %v974_v35  ;;  %976 = vst.msk [vmem:[#allocation2 + $0xc4] sm:$0xf] %vm865_vm7, %v814_v12  ;;  %v2088_v14 = vrot.slane %v8307_v13, 5  ;;  %v388_v53 = vsel %vm7510_vm3, 0, %v387_v60  ;;  %v3128_v10 = vor.u32 %v3127_v57, %v8297_v16 }
  0xec   : > { %979 = vst [vmem:[#allocation2 + $0xc8] sm:$0x1] %v978_v0  ;;  %9465 = vst [vmem:[#allocation4_spill] sm:$0xff] %v8297_v16  ;;  %v2092_v62 = vrot.slane %v8233_v18, 5  ;;  %v8315_v42 = vld [vmem:[#allocation2 + $0x14] sm:$0x1] }
  0xed   : > { %6930 = vmatmul.mubr.msk.bf16.gmra.mrb[24].mxu0 %vm1526_vm12, %v6345_v55  ;;  %v2095_v5 = vrot.slane %v8315_v42, 5  ;;  %389 = vst [vmem:[#allocation2 + $0xcc] sm:$0x1] %v388_v53  ;;  %v7382_v44 = vld [vmem:[#allocation2 + $0x54] sm:$0xf]  ;;  %v1013_v35 = vshrl.u32 %v6133_v63, 16 }
  0xee   : > { %6933 = vmatprep.mubr.msk.bf16.mxu0 %vm1526_vm12, %v6346_v58  ;;  %v8321_v55 = vld [vmem:[#allocation2 + $0x58] sm:$0xf]  ;;  %v1016_v0 = vshll.u32 %v6133_v63, 16  ;;  %v7384_v18 = vld [vmem:[#allocation2 + $0x60] sm:$0xf]  ;;  %v1021_v33 = vshrl.u32 %v6134_v48, 16 }
  0xef   : > { %6774 = vmatmul.mubr.msk.bf16.gmra.mrb[4].mxu1 %vm1526_vm12, %v6171_v54  ;;  %v6175_v36 = vcombine.low %v7382_v44, %v8321_v55  ;;  %v8324_v58 = vld [vmem:[#allocation2 + $0x64] sm:$0xf]  ;;  %v1024_v39 = vshll.u32 %v6134_v48, 16  ;;  %v2032_v47 = vld [vmem:[#allocation2] sm:$0xe]  ;;  %v1015_v60 = vrot.slane %v1013_v35, 7  ;;  %v6178_v48 = vcombine.low %v8027_v15, %v8035_v24 }
  0xf0   : > { %6777 = vmatprep.mubr.msk.bf16.mxu1 %vm1526_vm12, %v6172_v31  ;;  %v6176_v46 = vcombine.low %v7384_v18, %v8324_v58  ;;  %v2099_v63 = vrot.slane %v8236_v9, 5  ;;  %v2106_v9 = vrot.slane %v8263_v6, 5  ;;  %v2036_v44 = vld [vmem:[#allocation2 + $0x30] sm:$0xe]  ;;  %v6200_v24 = vrot.slane %v2032_v47, 9 }
  0xf1   : > { %v1019_v53 = vrot.slane %v1015_v60, 4  ;;  %v7333_v35 = vld [vmem:[#allocation2 + $0x30] sm:$0xff]   ;;  %v4407_v16 = vld [vmem:[#allocation2 + $0x2c] sm:$0x1] }
  0xf2   : > { %v2893_v38 = vld [vmem:[#allocation2 + $0xc4] sm:$0xf]  ;;  %v3588_v19 = vld [vmem:[#allocation2 + $0xc0] sm:$0xe] }
  0xf3   : > { %v2894_v29 = vld [vmem:[#allocation2 + $0xc8] sm:$0x1]  ;;  %v6330_v51 = vrot.slane %v3588_v19, 9  ;;  %v3744_v23 = vrot.slane %v2893_v38, 5  ;;  %v8330_v38 = vrot.slane %v3128_v10, 4  ;;  %v2094_v10 = vrot.slane %v2092_v62, 4 }
  0xf4   : > { %v3747_v8 = vrot.slane %v2894_v29, 5  ;;  %v8332_v29 = vld [vmem:[#allocation2 + $0x70] sm:$0xf]  ;;  %v7387_v19 = vld [vmem:[#allocation2 + $0x6c] sm:$0xf] }
  0xf5   : > { %v3745_v30 = vsel %vm7927_vm2, %v6330_v51, %v3744_v23  ;;  %v3746_v54 = vrot.slane %v3744_v23, 4  ;;  %9467 = vst [vmem:[#allocation6_spill] sm:$0xff] %v8330_v38  ;;  %v6177_v57 = vcombine.low %v7387_v19, %v8332_v29  ;;  %v4933_v51 = vsel %vm1575_vm0, %v7997_v21, 0  ;;  %v2034_v23 = vld [vmem:[#allocation2 + $0x18] sm:$0xe] }
  0xf6   : > { %v2035_v21 = vld [vmem:[#allocation2 + $0x24] sm:$0xe]  ;;  %v8366_v47 = vsel %vm7927_vm2, %v2094_v10, %v2095_v5  ;;  %v2108_v19 = vrot.slane %v2106_v9, 4 }
  0xf7   : > { %6778 = vmatmul.mubr.msk.bf16.gmra.mrb[8].mxu1 %vm1526_vm12, %v6173_v25  ;;  %v3748_v31 = vsel %vm7927_vm2, %v3746_v54, %v3747_v8  ;;  %v8327_v25 = vrot.slane %v3131_v61, 5  ;;  %v8338_v8 = vrot.slane %v1021_v33, 7  ;;  %v2085_v54 = vrot.slane %v8216_v56, 5 }
  0xf8   : > { %6781 = vmatprep.mubr.msk.bf16.mxu1 %vm1526_vm12, %v6174_v40  ;;  %v6347_v12 = vcombine.low %v3745_v30, %v3748_v31  ;;  %v2033_v40 = vld [vmem:[#allocation2 + $0xc] sm:$0xe]  ;;  %v7332_v30 = vld [vmem:[#allocation2 + $0x24] sm:$0xff]   ;;  %v1018_v61 = vor.u32 %v1016_v0, %v1015_v60  ;;  %v6180_v56 = vcombine.low %v8085_v28, %v8093_v32  ;;  %v6202_v33 = vrot.slane %v2034_v23, 9  ;;  %v7389_v23 = vld [vmem:[#allocation2 + $0x2c] sm:$0x1] }
  0xf9   : > { %9466 = vst [vmem:[#allocation5_spill] sm:$0xff] %v8327_v25  ;;  %v6201_v42 = vrot.slane %v2033_v40, 9  ;;  %v1026_v31 = vor.u32 %v1024_v39, %v8338_v8  ;;  %v2101_v39 = vrot.slane %v2099_v63, 4  ;;  %v7388_v40 = vld [vmem:[#allocation2 + $0x20] sm:$0x1]  ;;  %v6203_v27 = vrot.slane %v2035_v21, 9 }
  0xfa   : > { %6934 = vmatmul.mubr.msk.bf16.gmra.mrb[28].mxu0 %vm1526_vm12, %v6347_v12  ;;  %v1033_v12 = vld [vmem:[#allocation2 + $0xcc] sm:$0xf]  ;;  %v2102_v6 = vrot.slane %v7388_v40, 5  ;;  %v6204_v60 = vrot.slane %v2036_v44, 9  ;;  %v8381_v21 = vsel %vm7927_vm2, %v6200_v24, %v2085_v54  ;;  %v8393_v44 = vsel %vm1575_vm0, %v8259_v59, 0  ;;  %v7334_v24 = vld [vmem:[#allocation2 + $0x3c] sm:$0xff]  }
  0xfb   : > { %6939 = vmatprep.mubr.msk.bf16.mxu0 %vm1526_vm12, %v7331_v20  ;;  %v6179_v20 = vcombine.low %v8047_v26, %v8054_v1  ;;  %v1027_v0 = vsel %vm7553_vm8, %v1019_v53, %v1026_v31  ;;  %v1034_v18 = vsel %vm7565_vm9, %v1018_v61, %v1033_v12  ;;  %v2109_v61 = vrot.slane %v7389_v23, 5  ;;  %v7390_v31 = vld [vmem:[#allocation2 + $0x38] sm:$0x1]  ;;  %v7393_v40 = vld [vmem:[#allocation2 + $0x5c] sm:$0x1] }
  0xfc   : > { %1035 = vst [vmem:[#allocation2 + $0xcc] sm:$0xf] %v1034_v18  ;;  %1036 = vst.msk [vmem:[#allocation2 + $0xd0] sm:$0xf] %vm865_vm7, %v1027_v0  ;;  %v8397_v12 = vsel %vm7927_vm2, %v6202_v33, %v2099_v63  ;;  %v8410_v59 = vsel %vm7927_vm2, %v6203_v27, %v2106_v9  ;;  %v4402_v63 = vld [vmem:[#allocation2 + $0x18] sm:$0xf] }
  0xfd   : > { %v7335_v0 = vld [vmem:[#allocation2 + $0x48] sm:$0xff]   ;;  %v8418_v18 = vsel %vm7927_vm2, %v2108_v19, %v2109_v61  ;;  %v2127_v33 = vrot.slane %v8299_v43, 5  ;;  %v4454_v19 = vshll.u32 %v4402_v63, 16  ;;  %v2137_v13 = vrot.slane %v7393_v40, 5  ;;  %v7395_v32 = vld [vmem:[#allocation2 + $0x74] sm:$0x1] }
  0xff   : > { %6782 = vmatmul.mubr.msk.bf16.gmra.mrb[12].mxu1 %vm1526_vm12, %v6175_v36  ;;  %v2113_v36 = vrot.slane %v8278_v37, 5  ;;  %v8362_v37 = vsel %vm7927_vm2, %v6201_v42, %v2092_v62  ;;  %v2116_v62 = vrot.slane %v7390_v31, 5  ;;  %v2037_v42 = vld [vmem:[#allocation2 + $0x3c] sm:$0xe]  ;;  %v4456_v40 = vrot.slane %v4454_v19, 5 }
 0x100   : > { %6785 = vmatprep.mubr.msk.bf16.mxu1 %vm1526_vm12, %v6176_v46  ;;  %v2087_v46 = vrot.slane %v2085_v54, 4  ;;  %v8401_v54 = vsel %vm7927_vm2, %v2101_v39, %v2102_v6  ;;  %v8425_v39 = vld [vmem:[#allocation2 + $0x54] sm:$0xe] }
 0x101   : > { %v2115_v53 = vrot.slane %v2113_v36, 4 }
 0x102   : > { %6940 = vmatmul.mubr.msk.bf16.vlgmr.msra.gmra.mrb[0].mxu0 %vm1526_vm12, %v7332_v30  ;;  %v2120_v30 = vrot.slane %v8294_v50, 5  ;;  %v2038_v50 = vld [vmem:[#allocation2 + $0x48] sm:$0xe] }
 0x103   : > { %6972 = vmatpush3.bf16.msra.mxu0 %v4933_v51  ;;  %6943 = vmatprep.mubr.msk.bf16.mxu0 %vm1526_vm12, %v7333_v35  ;;  %v8389_v51 = vsel %vm7927_vm2, %v2087_v46, %v2088_v14  ;;  %v8414_v14 = vsel %vm7927_vm2, %v6204_v60, %v2113_v36  ;;  %v4403_v35 = vld [vmem:[#allocation2 + $0x1c] sm:$0xf]  ;;  %v7391_v46 = vld [vmem:[#allocation2 + $0x44] sm:$0x1]  ;;  %v6206_v27 = vrot.slane %v2038_v50, 9  ;;  %v4451_v60 = vshrl.u32 %v4402_v63, 16 }
 0x104   : > { %7306 = vmatprep.subr.msk.bf16.mxu0 %vm1575_vm0, %v8371_v34  ;;  %v2123_v9 = vrot.slane %v7391_v46, 5  ;;  %v2122_v6 = vrot.slane %v2120_v30, 4  ;;  %v4460_v23 = vshll.u32 %v4403_v35, 16  ;;  %v4464_v61 = vshrl.u32 %v4403_v35, 16  ;;  %v4405_v46 = vld [vmem:[#allocation2 + $0x24] sm:$0xf] }
 0x105   : > { %v2129_v50 = vrot.slane %v2127_v33, 4  ;;  %v6207_v63 = vrot.slane %v8425_v39, 9  ;;  %v2134_v35 = vrot.slane %v8321_v55, 5  ;;  %v2148_v39 = vrot.slane %v8332_v29, 5  ;;  %v2041_v55 = vld [vmem:[#allocation2 + $0x6c] sm:$0xe] }
 0x106   : > { %v8445_v43 = vsel %vm7927_vm2, %v2122_v6, %v2123_v9  ;;  %v4466_v9 = vrot.slane %v4464_v61, 4  ;;  %v4478_v6 = vshll.u32 %v4405_v46, 16  ;;  %v7336_v36 = vld [vmem:[#allocation2 + $0x54] sm:$0xff]   ;;  %v6209_v10 = vrot.slane %v2041_v55, 9 }
 0x107   : > { %6786 = vmatmul.mubr.msk.bf16.gmra.mrb[16].mxu1 %vm1526_vm12, %v6177_v57  ;;  %v6205_v57 = vrot.slane %v2037_v42, 9  ;;  %v2136_v1 = vrot.slane %v2134_v35, 4  ;;  %v2150_v28 = vrot.slane %v2148_v39, 4 }
 0x108   : > { %6789 = vmatprep.mubr.msk.bf16.mxu1 %vm1526_vm12, %v6178_v48  ;;  %v8422_v48 = vsel %vm7927_vm2, %v2115_v53, %v2116_v62  ;;  %v7392_v62 = vld [vmem:[#allocation2 + $0x50] sm:$0x1]  ;;  %v4406_v53 = vld [vmem:[#allocation2 + $0x28] sm:$0xf] }
 0x109   : > { %v8437_v31 = vsel %vm7927_vm2, %v6205_v57, %v2120_v30  ;;  %v2130_v42 = vrot.slane %v7392_v62, 5  ;;  %v8449_v30 = vsel %vm7927_vm2, %v6206_v27, %v2127_v33  ;;  %v2040_v57 = vld [vmem:[#allocation2 + $0x60] sm:$0xe]  ;;  %v8457_v62 = vrot.slane %v4460_v23, 5  ;;  %v4404_v33 = vld [vmem:[#allocation2 + $0x20] sm:$0x1] }
 0x10a   : > { %6944 = vmatmul.mubr.msk.bf16.gmra.mrb[4].mxu0 %vm1526_vm12, %v7334_v24  ;;  %v2141_v24 = vrot.slane %v8324_v58, 5  ;;  %v4475_v58 = vshrl.u32 %v4405_v46, 16  ;;  %v4484_v29 = vshll.u32 %v4406_v53, 16  ;;  %v4488_v27 = vshrl.u32 %v4406_v53, 16  ;;  %v7337_v23 = vld [vmem:[#allocation2 + $0x60] sm:$0xff]  }
 0x10b   : > { %6947 = vmatprep.mubr.msk.bf16.mxu0 %vm1526_vm12, %v7335_v0  ;;  %v4453_v0 = vrot.slane %v4451_v60, 4  ;;  %v8465_v26 = vsel %vm7927_vm2, %v2129_v50, %v2130_v42  ;;  %v7394_v60 = vld [vmem:[#allocation2 + $0x68] sm:$0x1]  ;;  %v4467_v53 = vor.u32 %v4466_v9, %v8457_v62  ;;  %v4470_v15 = vshll.u32 %v4404_v33, 16  ;;  %v4408_v9 = vld [vmem:[#allocation2 + $0x30] sm:$0xf] }
 0x10c   : > { %v2144_v19 = vrot.slane %v7394_v60, 5  ;;  %v2143_v61 = vrot.slane %v2141_v24, 4  ;;  %v4477_v42 = vrot.slane %v4475_v58, 4  ;;  %v4480_v50 = vrot.slane %v4478_v6, 5 }
 0x10d   : > { %v4457_v5 = vor.u32 %v4456_v40, %v4453_v0  ;;  %v8470_v3 = vrot.slane %v4484_v29, 5  ;;  %v8477_v60 = vsel %vm7927_vm2, %v6207_v63, %v2134_v35  ;;  %v8481_v0 = vsel %vm7927_vm2, %v2136_v1, %v2137_v13  ;;  %v8500_v35 = vld [vmem:[#allocation2 + $0x34] sm:$0xf]  ;;  %v7396_v1 = vld [vmem:[#allocation2 + $0x7c] sm:$0xf] }
 0x10e   : > { %v8494_v33 = vsel %vm7927_vm2, %v6209_v10, %v2148_v39  ;;  %v4494_v13 = vshll.u32 %v4407_v16, 16  ;;  %9468 = vst [vmem:[#allocation7_spill] sm:$0xff] %v8500_v35  ;;  %v4468_v6 = vrot.slane %v4467_v53, 4  ;;  %v4472_v29 = vrot.slane %v4470_v15, 5  ;;  %v7338_v39 = vld [vmem:[#allocation2 + $0x6c] sm:$0xff]  }
 0x10f   : > { %6790 = vmatmul.mubr.msk.bf16.gmra.mrb[20].mxu1 %vm1526_vm12, %v6179_v20  ;;  %v6208_v20 = vrot.slane %v2040_v57, 9  ;;  %v4490_v57 = vrot.slane %v4488_v27, 4  ;;  %v4458_v58 = vrot.slane %v4457_v5, 4  ;;  %v2042_v27 = vld [vmem:[#allocation2 + $0x78] sm:$0xe]  ;;  %v9470_v10 = vcombine.low %v8178_v45, %v8169_v52 }
 0x110   : > { %6793 = vmatprep.mubr.msk.bf16.mxu1 %vm1526_vm12, %v6180_v56  ;;  %v2151_v56 = vrot.slane %v7395_v32, 5  ;;  %v4508_v15 = vshll.u32 %v8500_v35, 16  ;;  %v7339_v32 = vld [vmem:[#allocation2 + $0x78] sm:$0xff]   ;;  %v6210_v53 = vrot.slane %v2042_v27, 9  ;;  %v2043_v52 = vld [vmem:[#allocation2 + $0x84] sm:$0xe] }
 0x111   : > { %v8485_v40 = vsel %vm7927_vm2, %v6208_v20, %v2141_v24  ;;  %v9469_v24 = vcombine.low %v8139_v11, %v8131_v41  ;;  %v2155_v20 = vrot.slane %v7396_v1, 5  ;;  %v4491_v41 = vor.u32 %v4490_v57, %v8470_v3  ;;  %v8525_v1 = vld [vmem:[#allocation2 + $0x40] sm:$0xf] }
 0x112   : > { %6948 = vmatmul.mubr.msk.bf16.gmra.mrb[8].mxu0 %vm1526_vm12, %v7336_v36  ;;  %v8490_v36 = vsel %vm7927_vm2, %v2143_v61, %v2144_v19  ;;  %v8498_v63 = vsel %vm7927_vm2, %v2150_v28, %v2151_v56  ;;  %v4481_v19 = vor.u32 %v4480_v50, %v4477_v42  ;;  %v4499_v11 = vshrl.u32 %v4408_v9, 16  ;;  %v4411_v28 = vld [vmem:[#allocation2 + $0x3c] sm:$0xf]  ;;  %9471 = vst [vmem:[#allocation8_spill] sm:$0xff] %v8525_v1 }
 0x113   : > { %6951 = vmatprep.mubr.msk.bf16.mxu0 %vm1526_vm12, %v7337_v23  ;;  %v4502_v23 = vshll.u32 %v4408_v9, 16  ;;  %v4512_v61 = vshrl.u32 %v8500_v35, 16  ;;  %v4496_v56 = vrot.slane %v4494_v13, 5  ;;  %v4463_v42 = vsel %vm7624_vm13, %v4458_v58, %v8457_v62  ;;  %v7397_v9 = vld [vmem:[#allocation2 + $0x80] sm:$0x1] }
 0x114   : > { %v4473_v50 = vsel %vm7624_vm13, %v4468_v6, %v4472_v29  ;;  %v2157_v57 = vrot.slane %v2155_v20, 4  ;;  %v4492_v5 = vrot.slane %v4491_v41, 4  ;;  %v4501_v16 = vrot.slane %v4499_v11, 4  ;;  %v8528_v13 = vld [vmem:[#allocation2 + $0x38] sm:$0x1] }
 0x115   : > { %v4523_v55 = vshrl.u32 %v4411_v28, 16  ;;  %9472 = vst [vmem:[#allocation9_spill] sm:$0xff] %v8528_v13  ;;  %v4504_v27 = vrot.slane %v4502_v23, 5  ;;  %v8530_v45 = vrot.slane %v4508_v15, 5  ;;  %v4514_v62 = vrot.slane %v4512_v61, 4 }
 0x116   : > { %v4526_v58 = vshll.u32 %v4411_v28, 16  ;;  %v8535_v6 = vsel %vm1575_vm0, %v8371_v34, 0  ;;  %v8539_v29 = vsel %vm7927_vm2, %v6210_v53, %v2155_v20  ;;  %v9473_v41 = vcombine.low %v8184_v49, %v8190_v22  ;;  %v7398_v15 = vld [vmem:[#allocation2 + $0x88] sm:$0xf]  ;;  %v8582_v35 = vld [vmem:[#allocation2 + $0x58] sm:$0xf] }
 0x117   : > { %6794 = vmatmul.mubr.msk.bf16.gmra.mrb[24].mxu1 %vm1526_vm12, %v9469_v24  ;;  %v2158_v24 = vrot.slane %v7397_v9, 5  ;;  %v8547_v11 = vcombine.low %v4463_v42, %v4473_v50  ;;  %v6211_v34 = vrot.slane %v2043_v52, 9  ;;  %v2162_v61 = vrot.slane %v7398_v15, 5  ;;  %v7340_v28 = vld [vmem:[#allocation2 + $0x84] sm:$0xff]   ;;  %v7341_v15 = vld [vmem:[#allocation2 + $0x90] sm:$0xff]   ;;  %9476 = vst [vmem:[#allocation11_spill] sm:$0xff] %v8582_v35 }
 0x118   : > { %6797 = vmatprep.mubr.msk.bf16.mxu1 %vm1526_vm12, %v9470_v10  ;;  %v4482_v10 = vrot.slane %v4481_v19, 4  ;;  %v4532_v19 = vshll.u32 %v8525_v1, 16  ;;  %v9474_v20 = vcombine.low %v8381_v21, %v8389_v51  ;;  %v4518_v53 = vshll.u32 %v8528_v13, 16  ;;  %v4414_v50 = vld [vmem:[#allocation2 + $0x48] sm:$0xf] }
 0x119   : > { %v8551_v23 = vsel %vm7927_vm2, %v2157_v57, %v2158_v24  ;;  %v4525_v42 = vrot.slane %v4523_v55, 4  ;;  %v4505_v52 = vor.u32 %v4504_v27, %v4501_v16  ;;  %v4515_v57 = vor.u32 %v4514_v62, %v8530_v45  ;;  %v8564_v9 = vld [vmem:[#allocation2 + $0x44] sm:$0x1]  ;;  %v2044_v51 = vld [vmem:[#allocation2 + $0x90] sm:$0xe] }
 0x11a   : > { %6952 = vmatmul.mubr.msk.bf16.gmra.mrb[12].mxu0 %vm1526_vm12, %v7338_v39  ;;  %v4536_v39 = vshrl.u32 %v8525_v1, 16  ;;  %v4487_v49 = vsel %vm7624_vm13, %v4482_v10, %v8470_v3  ;;  %9475 = vst [vmem:[#allocation10_spill] sm:$0xff] %v8564_v9  ;;  %v4528_v21 = vrot.slane %v4526_v58, 5  ;;  %v7399_v24 = vld [vmem:[#allocation2 + $0x94] sm:$0xf]  ;;  %v8572_v55 = vsel %vm7927_vm2, %v6211_v34, %v2162_v61 }
 0x11b   : > { %6955 = vmatprep.mubr.msk.bf16.mxu0 %vm1526_vm12, %v7339_v32  ;;  %v4497_v32 = vsel %vm7624_vm13, %v4492_v5, %v4496_v56  ;;  %v7400_v10 = vld [vmem:[#allocation2 + $0x8c] sm:$0x1]  ;;  %v8568_v5 = vrot.slane %v4532_v19, 5  ;;  %v2164_v16 = vrot.slane %v2162_v61, 4  ;;  %v4547_v62 = vshrl.u32 %v4414_v50, 16 }
 0x11c   : > { %v4538_v56 = vrot.slane %v4536_v39, 4  ;;  %v8574_v27 = vld [vmem:[#allocation2 + $0x4c] sm:$0xf]  ;;  %v4550_v58 = vshll.u32 %v4414_v50, 16  ;;  %v8576_v46 = vcombine.low %v4487_v49, %v4497_v32  ;;  %v4542_v3 = vshll.u32 %v8564_v9, 16 }
 0x11d   : > { %v6212_v1 = vrot.slane %v2044_v51, 9  ;;  %v4506_v19 = vrot.slane %v4505_v52, 4  ;;  %v4516_v39 = vrot.slane %v4515_v57, 4  ;;  %v4529_v13 = vor.u32 %v4528_v21, %v4525_v42  ;;  %v7401_v49 = vld [vmem:[#allocation2 + $0x98] sm:$0x1] }
 0x11e   : > { %v4539_v61 = vor.u32 %v4538_v56, %v8568_v5  ;;  %v2172_v32 = vrot.slane %v7401_v49, 5  ;;  %v4560_v50 = vshrl.u32 %v8574_v27, 16  ;;  %v9477_v51 = vcombine.low %v8362_v37, %v8366_v47  ;;  %v2045_v49 = vld [vmem:[#allocation2 + $0x9c] sm:$0xe]  ;;  %v8625_v9 = vld [vmem:[#allocation2 + $0x5c] sm:$0x1] }
 0x11f   : > { %6798 = vmatmul.mubr.msk.bf16.gmra.mrb[28].mxu1 %vm1526_vm12, %v9473_v41  ;;  %v2169_v41 = vrot.slane %v7399_v24, 5  ;;  %v8578_v24 = vrot.slane %v4518_v53, 5  ;;  %v4556_v53 = vshll.u32 %v8574_v27, 16  ;;  %v4552_v42 = vrot.slane %v4550_v58, 5  ;;  %v7343_v58 = vld [vmem:[#allocation2 + $0xa8] sm:$0xff]   ;;  %9479 = vst [vmem:[#allocation12_spill] sm:$0xff] %v8625_v9 }
 0x120   : > { %6803 = vmatprep.mubr.msk.bf16.mxu1 %vm1526_vm12, %v9474_v20  ;;  %v2165_v20 = vrot.slane %v7400_v10, 5  ;;  %v4417_v10 = vld [vmem:[#allocation2 + $0x54] sm:$0xf]  ;;  %v9478_v21 = vcombine.low %v8397_v12, %v8401_v54  ;;  %v4544_v56 = vrot.slane %v4542_v3, 5  ;;  %v4580_v37 = vshll.u32 %v8582_v35, 16 }
 0x121   : > { %v2171_v34 = vrot.slane %v2169_v41, 4  ;;  %v4571_v52 = vshrl.u32 %v4417_v10, 16  ;;  %v4574_v57 = vshll.u32 %v4417_v10, 16  ;;  %v4584_v47 = vshrl.u32 %v8582_v35, 16  ;;  %v4420_v3 = vld [vmem:[#allocation2 + $0x60] sm:$0xf] }
 0x122   : > { %6956 = vmatmul.mubr.msk.bf16.gmra.mrb[16].mxu0 %vm1526_vm12, %v7340_v28  ;;  %v4549_v28 = vrot.slane %v4547_v62, 4  ;;  %v7342_v62 = vld [vmem:[#allocation2 + $0x9c] sm:$0xff]   ;;  %v4521_v12 = vsel %vm7624_vm13, %v4516_v39, %v8578_v24  ;;  %v4530_v54 = vrot.slane %v4529_v13, 4  ;;  %v4540_v10 = vrot.slane %v4539_v61, 4 }
 0x123   : > { %6959 = vmatprep.mubr.msk.bf16.mxu0 %vm1526_vm12, %v7341_v15  ;;  %v8599_v15 = vsel %vm7927_vm2, %v2164_v16, %v2165_v20  ;;  %v8611_v20 = vsel %vm7927_vm2, %v6212_v1, %v2169_v41  ;;  %v7402_v16 = vld [vmem:[%s9432_s2 + $0x8] sm:$0x3]  ;;  %v8621_v13 = vsel %vm7927_vm2, %v2171_v34, %v2172_v32  ;;  %v8623_v1 = vld [vmem:[#allocation2 + $0x50] sm:$0x1]  ;;  %v4573_v24 = vrot.slane %v4571_v52, 4 }
 0x124   : > { %v4553_v41 = vor.u32 %v4552_v42, %v4549_v28  ;;  %v4576_v39 = vrot.slane %v4574_v57, 5  ;;  %v8627_v38 = vrot.slane %v4580_v37, 5  ;;  %v4586_v61 = vrot.slane %v4584_v47, 4  ;;  %v8640_v47 = vld [vmem:[#allocation2 + $0x64] sm:$0xf] }
 0x125   : > { %v4598_v25 = vshll.u32 %v4420_v3, 16  ;;  %v4535_v34 = vsel %vm7624_vm13, %v4530_v54, %v8568_v5  ;;  %v6213_v32 = vrot.slane %v2045_v49, 9  ;;  %v4545_v42 = vsel %vm7624_vm13, %v4540_v10, %v4544_v56  ;;  %9480 = vst [vmem:[#allocation13_spill] sm:$0xff] %v8640_v47 }
 0x126   : > { %v4566_v37 = vshll.u32 %v8623_v1, 16  ;;  %v4577_v54 = vor.u32 %v4576_v39, %v4573_v24  ;;  %v4590_v56 = vshll.u32 %v8625_v9, 16  ;;  %v9482_v10 = vcombine.low %v8414_v14, %v8422_v48  ;;  %v2047_v24 = vld [vmem:[#allocation2 + $0xb4] sm:$0xe]  ;;  %v7345_v14 = vld [vmem:[#allocation2 + $0xc0] sm:$0xff]  }
 0x127   : > { %6804 = vmatmul.mubr.msk.bf16.vlgmr.msra.gmra.mrb[0].mxu1 %vm1526_vm12, %v9477_v51  ;;  %v7403_v51 = vld [vmem:[#allocation2 + $0xa0] sm:$0xf]  ;;  %v4554_v49 = vrot.slane %v4553_v41, 4  ;;  %v4604_v39 = vshll.u32 %v8640_v47, 16  ;;  %v8776_v9 = vld [vmem:[#allocation2 + $0x98] sm:$0x1] }
 0x128   : > { %6836 = vmatpush3.bf16.msra.mxu1 %v8393_v44  ;;  %6807 = vmatprep.mubr.msk.bf16.mxu1 %vm1526_vm12, %v9478_v21  ;;  %v4511_v44 = vsel %vm7624_vm13, %v4506_v19, %v8530_v45  ;;  %v2176_v45 = vrot.slane %v7403_v51, 5  ;;  %v8617_v19 = vrot.slane %v4556_v53, 5  ;;  %v4562_v21 = vrot.slane %v4560_v50, 4  ;;  %v7404_v50 = vld [vmem:[#allocation2 + $0xa4] sm:$0x1] }
 0x129   : > { %7302 = vmatprep.subr.msk.bf16.mxu1 %vm1575_vm0, %v7402_v16  ;;  %v4595_v16 = vshrl.u32 %v4420_v3, 16  ;;  %v2179_v28 = vrot.slane %v7404_v50, 5  ;;  %v8646_v5 = vcombine.low %v4511_v44, %v4521_v12  ;;  %v2046_v3 = vld [vmem:[#allocation2 + $0xa8] sm:$0xe]  ;;  %v4587_v51 = vor.u32 %v4586_v61, %v8627_v38 }
 0x12a   : > { %6960 = vmatmul.mubr.msk.bf16.gmra.mrb[20].mxu0 %vm1526_vm12, %v7342_v62  ;;  %v2178_v52 = vrot.slane %v2176_v45, 4  ;;  %v4563_v57 = vor.u32 %v4562_v21, %v8617_v19  ;;  %v9481_v62 = vcombine.low %v8410_v59, %v8418_v18  ;;  %v4600_v18 = vrot.slane %v4598_v25, 5  ;;  %v7344_v21 = vld [vmem:[#allocation2 + $0xb4] sm:$0xff]  }
 0x12b   : > { %6963 = vmatprep.mubr.msk.bf16.mxu0 %vm1526_vm12, %v7343_v58  ;;  %v4597_v59 = vrot.slane %v4595_v16, 4  ;;  %v8656_v44 = vcombine.low %v4535_v34, %v4545_v42  ;;  %v8660_v12 = vsel %vm7927_vm2, %v6213_v32, %v2176_v45  ;;  %v4608_v50 = vshrl.u32 %v8640_v47, 16  ;;  %v4423_v16 = vld [vmem:[#allocation2 + $0x6c] sm:$0xf]  ;;  %v8669_v32 = vld [vmem:[#allocation2 + $0x70] sm:$0xf] }
 0x12c   : > { %v8666_v48 = vsel %vm7927_vm2, %v2178_v52, %v2179_v28  ;;  %v4564_v41 = vrot.slane %v4563_v57, 4  ;;  %v4568_v61 = vrot.slane %v4566_v37, 5  ;;  %v6214_v25 = vrot.slane %v2046_v3, 9  ;;  %9483 = vst [vmem:[#allocation14_spill] sm:$0xff] %v8669_v32  ;;  %v7406_v47 = vld [vmem:[#allocation2 + $0xb0] sm:$0x1] }
 0x12d   : > { %v4578_v34 = vrot.slane %v4577_v54, 4  ;;  %v4592_v42 = vrot.slane %v4590_v56, 5  ;;  %v2190_v45 = vrot.slane %v8190_v22, 5  ;;  %v4559_v58 = vsel %vm7624_vm13, %v4554_v49, %v8617_v19  ;;  %v8674_v52 = vld [vmem:[#allocation2 + $0x68] sm:$0x1] }
 0x12e   : > { %v4588_v53 = vrot.slane %v4587_v51, 4  ;;  %v2186_v28 = vrot.slane %v7406_v47, 5  ;;  %9484 = vst [vmem:[#allocation15_spill] sm:$0xff] %v8674_v52  ;;  %v4601_v57 = vor.u32 %v4600_v18, %v4597_v59  ;;  %v8677_v37 = vrot.slane %v4604_v39, 5  ;;  %v8679_v56 = vld [vmem:[#allocation2 + $0x74] sm:$0x1] }
 0x12f   : > { %6808 = vmatmul.mubr.msk.bf16.gmra.mrb[4].mxu1 %vm1526_vm12, %v9481_v62  ;;  %v7405_v62 = vld [vmem:[#allocation2 + $0xac] sm:$0xf]  ;;  %v4610_v54 = vrot.slane %v4608_v50, 4  ;;  %9485 = vst [vmem:[#allocation16_spill] sm:$0xff] %v8679_v56  ;;  %v4619_v22 = vshrl.u32 %v4423_v16, 16  ;;  %v4622_v3 = vshll.u32 %v4423_v16, 16  ;;  %v4569_v19 = vsel %vm7624_vm13, %v4564_v41, %v4568_v61 }
 0x130   : > { %6811 = vmatprep.mubr.msk.bf16.mxu1 %vm1526_vm12, %v9482_v10  ;;  %v2183_v10 = vrot.slane %v7405_v62, 5  ;;  %v6215_v49 = vrot.slane %v2047_v24, 9  ;;  %v4628_v47 = vshll.u32 %v8669_v32, 16  ;;  %v4632_v51 = vshrl.u32 %v8669_v32, 16  ;;  %v4426_v59 = vld [vmem:[#allocation2 + $0x78] sm:$0xf] }
 0x131   : > { %v9486_v18 = vcombine.low %v8437_v31, %v8445_v43  ;;  %v2192_v50 = vrot.slane %v2190_v45, 4  ;;  %v9487_v24 = vcombine.low %v8449_v30, %v8465_v26  ;;  %v4593_v41 = vsel %vm7624_vm13, %v4588_v53, %v4592_v42  ;;  %v7346_v62 = vld [vmem:[#allocation2 + $0xcc] sm:$0xff]   ;;  %v8712_v53 = vld [vmem:[#allocation2 + $0x7c] sm:$0xf] }
 0x132   : > { %6964 = vmatmul.mubr.msk.bf16.gmra.mrb[24].mxu0 %vm1526_vm12, %v7344_v21  ;;  %v4583_v21 = vsel %vm7624_vm13, %v4578_v34, %v8627_v38  ;;  %v2185_v39 = vrot.slane %v2183_v10, 4  ;;  %v8699_v61 = vrot.slane %v4601_v57, 4  ;;  %v4614_v43 = vshll.u32 %v8674_v52, 16  ;;  %9488 = vst [vmem:[#allocation17_spill] sm:$0xff] %v8712_v53 }
 0x133   : > { %6967 = vmatprep.mubr.msk.bf16.mxu0 %vm1526_vm12, %v7345_v14  ;;  %v7407_v14 = vld [vmem:[#allocation2 + $0xbc] sm:$0x1]  ;;  %v4638_v31 = vshll.u32 %v8679_v56, 16  ;;  %v4611_v38 = vor.u32 %v4610_v54, %v8677_v37  ;;  %v4621_v34 = vrot.slane %v4619_v22, 4  ;;  %v8706_v30 = vsel %vm7927_vm2, %v6214_v25, %v2183_v10  ;;  %v8726_v25 = vld [vmem:[#allocation2 + $0x80] sm:$0x1] }
 0x134   : > { %v2193_v16 = vrot.slane %v7407_v14, 5  ;;  %v4643_v14 = vshrl.u32 %v4426_v59, 16  ;;  %v8708_v26 = vrot.slane %v4628_v47, 5  ;;  %v4646_v42 = vshll.u32 %v4426_v59, 16  ;;  %9489 = vst [vmem:[#allocation18_spill] sm:$0xff] %v8726_v25 }
 0x135   : > { %v8714_v57 = vcombine.low %v4559_v58, %v4569_v19  ;;  %v8716_v56 = vcombine.low %v4583_v21, %v4593_v41  ;;  %v8720_v54 = vsel %vm7927_vm2, %v2185_v39, %v2186_v28  ;;  %v8724_v22 = vsel %vm7927_vm2, %v6215_v49, %v2190_v45  ;;  %v4429_v10 = vld [vmem:[#allocation2 + $0x84] sm:$0xf]  ;;  %v8738_v28 = vld [vmem:[#allocation2 + $0x88] sm:$0xf]  ;;  %v8742_v39 = vld [vmem:[#allocation2 + $0x94] sm:$0xf] }
 0x136   : > { %v4607_v58 = vsel %vm7624_vm13, %v8699_v61, %v8677_v37  ;;  %v4616_v19 = vrot.slane %v4614_v43, 5  ;;  %v8736_v47 = vrot.slane %v4638_v31, 5  ;;  %9490 = vst [vmem:[#allocation19_spill] sm:$0xff] %v8738_v28  ;;  %v4612_v45 = vrot.slane %v4611_v38, 4  ;;  %9491 = vst [vmem:[#allocation20_spill] sm:$0xff] %v8742_v39 }
 0x137   : > { %6812 = vmatmul.mubr.msk.bf16.gmra.mrb[8].mxu1 %vm1526_vm12, %v9486_v18  ;;  %v4624_v18 = vrot.slane %v4622_v3, 5  ;;  %v8730_v3 = vsel %vm7927_vm2, %v2192_v50, %v2193_v16  ;;  %v4645_v59 = vrot.slane %v4643_v14, 4  ;;  %v4652_v21 = vshll.u32 %v8712_v53, 16  ;;  %v4435_v61 = vld [vmem:[#allocation2 + $0x9c] sm:$0xf] }
 0x138   : > { %6815 = vmatprep.mubr.msk.bf16.mxu1 %vm1526_vm12, %v9487_v24  ;;  %v8710_v24 = vrot.slane %v4632_v51, 4  ;;  %v4432_v51 = vld [vmem:[#allocation2 + $0x90] sm:$0xf]  ;;  %v4648_v50 = vrot.slane %v4646_v42, 5  ;;  %v4656_v16 = vshrl.u32 %v8712_v53, 16  ;;  %v4662_v41 = vshll.u32 %v8726_v25, 16 }
 0x139   : > { %v4625_v49 = vor.u32 %v4624_v18, %v4621_v34  ;;  %v9492_v43 = vcombine.low %v8477_v60, %v8481_v0  ;;  %v4667_v31 = vshrl.u32 %v4429_v10, 16  ;;  %v4676_v38 = vshll.u32 %v8738_v28, 16  ;;  %v8756_v34 = vld [vmem:[#allocation2 + $0xa0] sm:$0xf] }
 0x13a   : > { %6968 = vmatmul.mubr.msk.bf16.gmra.mrb[28].mxu0 %vm1526_vm12, %v7346_v62  ;;  %v4635_v37 = vor.u32 %v8710_v24, %v8708_v26  ;;  %v4670_v62 = vshll.u32 %v4429_v10, 16  ;;  %9493 = vst [vmem:[#allocation21_spill] sm:$0xff] %v8756_v34  ;;  %v9494_v18 = vcombine.low %v8485_v40, %v8490_v36  ;;  %v4691_v14 = vshrl.u32 %v4432_v51, 16 }
 0x13b   : > { %6973 = vmatprep.mubr.msk.bf16.mxu0 %vm1526_vm12, %v8547_v11  ;;  %v4680_v11 = vshrl.u32 %v8738_v28, 16  ;;  %v4694_v24 = vshll.u32 %v4432_v51, 16  ;;  %v4700_v42 = vshll.u32 %v8742_v39, 16  ;;  %v4704_v60 = vshrl.u32 %v8742_v39, 16 }
 0x13c   : > { %v4617_v0 = vsel %vm7624_vm13, %v4612_v45, %v4616_v19  ;;  %v8766_v10 = vrot.slane %v4625_v49, 4  ;;  %v4718_v28 = vshll.u32 %v4435_v61, 16  ;;  %v8768_v25 = vrot.slane %v4652_v21, 5 }
 0x13d   : > { %v4658_v53 = vrot.slane %v4656_v16, 4  ;;  %v4724_v40 = vshll.u32 %v8756_v34, 16  ;;  %v4728_v36 = vshrl.u32 %v8756_v34, 16  ;;  %v4669_v51 = vrot.slane %v4667_v31, 4 }
 0x13e   : > { %v4672_v32 = vrot.slane %v4670_v62, 5  ;;  %v8774_v52 = vrot.slane %v4676_v38, 5  ;;  %v4682_v39 = vrot.slane %v4680_v11, 4  ;;  %v4693_v19 = vrot.slane %v4691_v14, 4  ;;  %v4438_v14 = vld [vmem:[#allocation2 + $0xa8] sm:$0xf] }
 0x13f   : > { %6816 = vmatmul.mubr.msk.bf16.gmra.mrb[12].mxu1 %vm1526_vm12, %v9492_v43  ;;  %v4715_v43 = vshrl.u32 %v4435_v61, 16  ;;  %v4696_v45 = vrot.slane %v4694_v24, 5  ;;  %v8778_v49 = vrot.slane %v4700_v42, 5  ;;  %v4706_v21 = vrot.slane %v4704_v60, 4  ;;  %v8810_v42 = vld [vmem:[#allocation2 + $0xac] sm:$0xf] }
 0x140   : > { %6819 = vmatprep.mubr.msk.bf16.mxu1 %vm1526_vm12, %v9494_v18  ;;  %v8772_v18 = vld [vmem:[#allocation2 + $0x8c] sm:$0x1]  ;;  %v8782_v16 = vcombine.low %v4607_v58, %v4617_v0  ;;  %v4649_v61 = vor.u32 %v4648_v50, %v4645_v59  ;;  %v4720_v35 = vrot.slane %v4718_v28, 5  ;;  %v4659_v31 = vor.u32 %v4658_v53, %v8768_v25  ;;  %v8799_v59 = vld [vmem:[#allocation2 + $0xa4] sm:$0x1] }
 0x141   : > { %v4717_v34 = vrot.slane %v4715_v43, 4  ;;  %v4686_v62 = vshll.u32 %v8772_v18, 16  ;;  %v8789_v38 = vrot.slane %v4724_v40, 5  ;;  %v4730_v11 = vrot.slane %v4728_v36, 4  ;;  %v443_v50 = vld [vmem:[#allocation2 + $0xd4] sm:$0x1] }
 0x142   : > { %6974 = vmatmul.mubr.msk.bf16.vlgmr.msra.gmra.mrb[0].mxu0 %vm1526_vm12, %v8576_v46  ;;  %v9495_v46 = vcombine.low %v8494_v33, %v8498_v63  ;;  %v8795_v58 = vrot.slane %v4635_v37, 4  ;;  %v4673_v28 = vor.u32 %v4672_v32, %v4669_v51  ;;  %v9496_v53 = vcombine.low %v8539_v29, %v8551_v23 }
 0x143   : > { %7006 = vmatpush3.bf16.msra.mxu0 %v8535_v6  ;;  %6977 = vmatprep.mubr.msk.bf16.mxu0 %vm1526_vm12, %v8646_v5  ;;  %v4683_v6 = vor.u32 %v4682_v39, %v8774_v52  ;;  %v4710_v5 = vshll.u32 %v8776_v9, 16  ;;  %v4631_v33 = vsel %vm7624_vm13, %v8766_v10, %v8708_v26  ;;  %v4664_v63 = vrot.slane %v4662_v41, 5  ;;  %v4441_v41 = vld [vmem:[#allocation2 + $0xb4] sm:$0xf] }
 0x144   : > { %v4697_v37 = vor.u32 %v4696_v45, %v4693_v19  ;;  %v4707_v32 = vor.u32 %v4706_v21, %v8778_v49  ;;  %v4650_v39 = vrot.slane %v4649_v61, 4  ;;  %v4721_v24 = vor.u32 %v4720_v35, %v4717_v34 }
 0x145   : > { %v4739_v60 = vshrl.u32 %v4438_v14, 16  ;;  %v4742_v0 = vshll.u32 %v4438_v14, 16  ;;  %v4660_v43 = vrot.slane %v4659_v31, 4  ;;  %v4688_v29 = vrot.slane %v4686_v62, 5  ;;  %v8824_v31 = vld [vmem:[#allocation2 + $0xb0] sm:$0x1] }
 0x146   : > { %v4731_v23 = vor.u32 %v4730_v11, %v8789_v38  ;;  %v4734_v40 = vshll.u32 %v8799_v59, 16  ;;  %v4674_v36 = vrot.slane %v4673_v28, 4  ;;  %v4684_v51 = vrot.slane %v4683_v6, 4 }
 0x147   : > { %6820 = vmatmul.mubr.msk.bf16.gmra.mrb[16].mxu1 %vm1526_vm12, %v9495_v46  ;;  %v4712_v26 = vrot.slane %v4710_v5, 5  ;;  %v444_v10 = vsel %vm7518_vm5, 0, %v443_v50  ;;  %v4698_v19 = vrot.slane %v4697_v37, 4  ;;  %v4708_v45 = vrot.slane %v4707_v32, 4  ;;  %v8828_v46 = vld [vmem:[#allocation2 + $0xb8] sm:$0xf] }
 0x148   : > { %6823 = vmatprep.mubr.msk.bf16.mxu1 %vm1526_vm12, %v9496_v53  ;;  %v4748_v35 = vshll.u32 %v8810_v42, 16  ;;  %v4752_v34 = vshrl.u32 %v8810_v42, 16  ;;  %445 = vst [vmem:[#allocation2 + $0xd4] sm:$0x1] %v444_v10  ;;  %v4641_v21 = vsel %vm7624_vm13, %v8795_v58, %v8736_v47  ;;  %v4722_v61 = vrot.slane %v4721_v24, 4 }
 0x149   : > { %v4741_v7 = vrot.slane %v4739_v60, 4  ;;  %v4744_v62 = vrot.slane %v4742_v0, 5  ;;  %v4732_v11 = vrot.slane %v4731_v23, 4  ;;  %v4736_v14 = vrot.slane %v4734_v40, 5  ;;  %v8892_v10 = vld [vmem:[#allocation2 + $0xc4] sm:$0xf] }
 0x14a   : > { %6978 = vmatmul.mubr.msk.bf16.gmra.mrb[4].mxu0 %vm1526_vm12, %v8656_v44  ;;  %v4763_v28 = vshrl.u32 %v4441_v41, 16  ;;  %v4766_v6 = vshll.u32 %v4441_v41, 16  ;;  %v9497_v44 = vcombine.low %v8572_v55, %v8599_v15  ;;  %v4655_v47 = vsel %vm7624_vm13, %v4650_v39, %v8768_v25 }
 0x14b   : > { %6981 = vmatprep.mubr.msk.bf16.mxu0 %vm1526_vm12, %v8714_v57  ;;  %v4665_v58 = vsel %vm7624_vm13, %v4660_v43, %v4664_v63  ;;  %v4679_v57 = vsel %vm7624_vm13, %v4674_v36, %v8774_v52  ;;  %v4689_v5 = vsel %vm7624_vm13, %v4684_v51, %v4688_v29  ;;  %v9498_v53 = vcombine.low %v8611_v20, %v8621_v13  ;;  %v8873_v43 = vld [vmem:[#allocation2 + $0xbc] sm:$0x1]  ;;  %v4444_v51 = vld [vmem:[#allocation2 + $0xc0] sm:$0xf] }
 0x14c   : > { %v4703_v55 = vsel %vm7624_vm13, %v4698_v19, %v8778_v49  ;;  %v4713_v15 = vsel %vm7624_vm13, %v4708_v45, %v4712_v26  ;;  %v8853_v25 = vrot.slane %v4748_v35, 5  ;;  %v4754_v63 = vrot.slane %v4752_v34, 4  ;;  %v5133_v19 = vld [vmem:[#allocation2 + $0x54] sm:$0xe] }
 0x14d   : > { %v4727_v52 = vsel %vm7624_vm13, %v4722_v61, %v8789_v38  ;;  %v4745_v37 = vor.u32 %v4744_v62, %v4741_v7  ;;  %v4758_v32 = vshll.u32 %v8824_v31, 16  ;;  %v4772_v20 = vshll.u32 %v8828_v46, 16  ;;  %v5134_v7 = vld [vmem:[#allocation2 + $0x60] sm:$0xe] }
 0x14e   : > { %v4737_v13 = vsel %vm7624_vm13, %v4732_v11, %v4736_v14  ;;  %v8862_v50 = vrot.slane %v4763_v28, 4  ;;  %v8864_v49 = vrot.slane %v4766_v6, 5  ;;  %v4776_v39 = vshrl.u32 %v8828_v46, 16 }
 0x14f   : > { %6824 = vmatmul.mubr.msk.bf16.gmra.mrb[20].mxu1 %vm1526_vm12, %v9497_v44  ;;  %v6230_v24 = vcombine.low %v8660_v12, %v8666_v48  ;;  %v6231_v38 = vcombine.low %v8706_v30, %v8720_v54  ;;  %v6232_v60 = vcombine.low %v8724_v22, %v8730_v3  ;;  %v6405_v0 = vcombine.low %v4631_v33, %v4641_v21  ;;  %v1037_v29 = vld [vmem:[#allocation2 + $0xd4] sm:$0x1]  ;;  %v5132_v48 = vld [vmem:[#allocation2 + $0x48] sm:$0xe]  ;;  %v9500_v44 = vld [vmem:[#allocation11_spill] sm:$0xff] }
 0x150   : > { %6827 = vmatprep.mubr.msk.bf16.mxu1 %vm1526_vm12, %v9498_v53  ;;  %v6406_v23 = vcombine.low %v4655_v47, %v4665_v58  ;;  %v8875_v40 = vcombine.low %v4679_v57, %v4689_v5  ;;  %v4755_v36 = vor.u32 %v4754_v63, %v8853_v25  ;;  %v9499_v26 = vrot.slane %v8338_v8, 4  ;;  %v9501_v58 = vld [vmem:[#allocation12_spill] sm:$0xff]  ;;  %v5135_v57 = vld [vmem:[#allocation2 + $0x6c] sm:$0xe] }
 0x151   : > { %v8884_v30 = vcombine.low %v4703_v55, %v4713_v15  ;;  %v8886_v54 = vcombine.low %v4727_v52, %v4737_v13  ;;  %v8888_v33 = vrot.slane %v4745_v37, 4  ;;  %v8890_v41 = vrot.slane %v4758_v32, 5  ;;  %v9502_v53 = vld [vmem:[#allocation13_spill] sm:$0xff]  ;;  %v9503_v15 = vld [vmem:[#allocation15_spill] sm:$0xff] }
 0x152   : > { %v1038_v12 = vsel %vm7510_vm3, %v9499_v26, %v1037_v29  ;;  %6982 = vmatmul.mubr.msk.bf16.gmra.mrb[8].mxu0 %vm1526_vm12, %v8716_v56  ;;  %v4769_v4 = vor.u32 %v8864_v49, %v8862_v50  ;;  %v8898_v8 = vrot.slane %v4772_v20, 5  ;;  %v4778_v56 = vrot.slane %v4776_v39, 4  ;;  %v8917_v52 = vld [vmem:[#allocation2 + $0xc8] sm:$0x1]  ;;  %v7347_v50 = vld [vmem:[#allocation2 + $0xc] sm:$0xff]  }
 0x153   : > { %1039 = vst [vmem:[#allocation2 + $0xd4] sm:$0x1] %v1038_v12  ;;  %6985 = vmatprep.mubr.msk.bf16.mxu0 %vm1526_vm12, %v8782_v16  ;;  %v4782_v45 = vshll.u32 %v8873_v43, 16  ;;  %v4787_v35 = vshrl.u32 %v4444_v51, 16  ;;  %v6434_v34 = vrot.slane %v5132_v48, 9  ;;  %v5222_v21 = vrot.slane %v8574_v27, 5 }
 0x154   : > { %v5225_v61 = vrot.slane %v8623_v1, 5  ;;  %v8905_v16 = vrot.slane %v4755_v36, 4  ;;  %v4790_v62 = vshll.u32 %v4444_v51, 16  ;;  %v4796_v11 = vshll.u32 %v8892_v10, 16  ;;  %v9504_v51 = vld [vmem:[#allocation14_spill] sm:$0xff]  ;;  %v9505_v12 = vld [vmem:[#allocation16_spill] sm:$0xff] }
 0x155   : > { %v6435_v14 = vrot.slane %v5133_v19, 9  ;;  %v8910_v28 = vsel %vm7927_vm2, %v6434_v34, %v5222_v21  ;;  %v5224_v6 = vrot.slane %v5222_v21, 4  ;;  %v5229_v47 = vrot.slane %v9500_v44, 5  ;;  %v4447_v21 = vld [vmem:[#allocation2 + $0xcc] sm:$0xf] }
 0x156   : > { %v5232_v27 = vrot.slane %v9501_v58, 5  ;;  %v4779_v1 = vor.u32 %v4778_v56, %v8898_v8  ;;  %v6436_v5 = vrot.slane %v5134_v7, 9  ;;  %v5236_v55 = vrot.slane %v9502_v53, 5 }
 0x157   : > { %6828 = vmatmul.mubr.msk.bf16.gmra.mrb[24].mxu1 %vm1526_vm12, %v6230_v24  ;;  %v5239_v63 = vrot.slane %v9503_v15, 5  ;;  %v4800_v37 = vshrl.u32 %v8892_v10, 16  ;;  %v8922_v32 = vsel %vm7927_vm2, %v5224_v6, %v5225_v61  ;;  %v8926_v20 = vsel %vm7927_vm2, %v6435_v14, %v5229_v47  ;;  %v8970_v6 = vld [vmem:[#allocation2 + $0xd0] sm:$0xf] }
 0x158   : > { %6831 = vmatprep.mubr.msk.bf16.mxu1 %vm1526_vm12, %v6231_v38  ;;  %v5231_v13 = vrot.slane %v5229_v47, 4  ;;  %v6451_v49 = vcombine.low %v8910_v28, %v8922_v32  ;;  %v8932_v39 = vsel %vm7927_vm2, %v6436_v5, %v5236_v55  ;;  %v5238_v24 = vrot.slane %v5236_v55, 4  ;;  %v5136_v47 = vld [vmem:[#allocation2 + $0x78] sm:$0xe]  ;;  %v7349_v55 = vld [vmem:[#allocation2 + $0x24] sm:$0xff]  }
 0x159   : > { %v6437_v38 = vrot.slane %v5135_v57, 9  ;;  %v4789_v29 = vrot.slane %v4787_v35, 4  ;;  %v5243_v26 = vrot.slane %v9504_v51, 5  ;;  %v5246_v48 = vrot.slane %v9505_v12, 5  ;;  %v2874_v35 = vld [vmem:[#allocation2 + $0x78] sm:$0xf] }
 0x15a   : > { %6986 = vmatmul.mubr.msk.bf16.gmra.mrb[12].mxu0 %vm1526_vm12, %v6405_v0  ;;  %v8937_v36 = vsel %vm7927_vm2, %v5231_v13, %v5232_v27  ;;  %v4792_v19 = vrot.slane %v4790_v62, 5  ;;  %v4806_v56 = vshll.u32 %v8917_v52, 16  ;;  %v8947_v0 = vsel %vm7927_vm2, %v5238_v24, %v5239_v63  ;;  %v5137_v57 = vld [vmem:[#allocation2 + $0x84] sm:$0xe]  ;;  %v7348_v5 = vld [vmem:[#allocation2 + $0x18] sm:$0xff]   ;;  %v9506_v63 = vld [vmem:[#allocation5_spill] sm:$0xff] }
 0x15b   : > { %6989 = vmatprep.mubr.msk.bf16.mxu0 %vm1526_vm12, %v6406_v23  ;;  %v6452_v34 = vcombine.low %v8926_v20, %v8937_v36  ;;  %v4751_v23 = vsel %vm7624_vm13, %v8888_v33, %v8853_v25  ;;  %v6453_v61 = vcombine.low %v8932_v39, %v8947_v0  ;;  %v8961_v7 = vsel %vm7927_vm2, %v6437_v38, %v5243_v26  ;;  %v9508_v24 = vld [vmem:[#allocation17_spill] sm:$0xff] }
 0x15c   : > { %v5245_v62 = vrot.slane %v5243_v26, 4  ;;  %v8964_v14 = vrot.slane %v4769_v4, 4  ;;  %v8966_v22 = vrot.slane %v4782_v45, 5  ;;  %v8968_v3 = vrot.slane %v4796_v11, 5  ;;  %v9509_v26 = vld [vmem:[#allocation18_spill] sm:$0xff] }
 0x15d   : > { %v4761_v25 = vsel %vm7624_vm13, %v8905_v16, %v8890_v41  ;;  %v8976_v33 = vrot.slane %v4779_v1, 4  ;;  %v3112_v4 = vshrl.u32 %v2874_v35, 16  ;;  %v4793_v45 = vor.u32 %v4792_v19, %v4789_v29 }
 0x15e   : > { %v8980_v44 = vsel %vm7927_vm2, %v5245_v62, %v5246_v48  ;;  %v8982_v58 = vrot.slane %v4806_v56, 5  ;;  %v4811_v11 = vshrl.u32 %v4447_v21, 16  ;;  %v4814_v53 = vshll.u32 %v4447_v21, 16  ;;  %v9510_v21 = vld [vmem:[#allocation19_spill] sm:$0xff] }
 0x15f   : > { %6832 = vmatmul.mubr.msk.bf16.gmra.mrb[28].mxu1 %vm1526_vm12, %v6232_v60  ;;  %v4802_v60 = vrot.slane %v4800_v37, 4  ;;  %v6454_v27 = vcombine.low %v8961_v7, %v8980_v44  ;;  %v4820_v41 = vshll.u32 %v8970_v6, 16  ;;  %v3114_v16 = vrot.slane %v3112_v4, 4  ;;  %v9507_v37 = vld [vmem:[#allocation6_spill] sm:$0xff]  ;;  %v7420_v7 = vld [vmem:[#allocation2 + $0xac] sm:$0xf] }
 0x160   : > { %6837 = vmatprep.mubr.msk.bf16.mxu1 %vm1526_vm12, %v7347_v50  ;;  %v3115_v1 = vshll.u32 %v2874_v35, 16  ;;  %v3134_v13 = vsel %vm7624_vm13, %v9507_v37, %v9506_v63  ;;  %v6438_v50 = vrot.slane %v5136_v47, 9  ;;  %v5250_v38 = vrot.slane %v9508_v24, 5  ;;  %v9024_v37 = vld [vmem:[#allocation2 + $0xd4] sm:$0x1] }
 0x161   : > { %v4803_v15 = vor.u32 %v4802_v60, %v8968_v3  ;;  %v4824_v29 = vshrl.u32 %v8970_v6, 16  ;;  %v5253_v12 = vrot.slane %v9509_v26, 5  ;;  %v6439_v48 = vrot.slane %v5137_v57, 9 }
 0x162   : > { %6990 = vmatmul.mubr.msk.bf16.gmra.mrb[16].mxu0 %vm1526_vm12, %v8875_v40  ;;  %v3117_v51 = vrot.slane %v3115_v1, 5  ;;  %v4794_v19 = vrot.slane %v4793_v45, 4  ;;  %v9001_v56 = vsel %vm7927_vm2, %v6438_v50, %v5250_v38  ;;  %v5252_v35 = vrot.slane %v5250_v38, 4  ;;  %v9511_v1 = vld [vmem:[#allocation3_spill] sm:$0xff]  ;;  %v9512_v50 = vld [vmem:[#allocation4_spill] sm:$0xff] }
 0x163   : > { %6993 = vmatprep.mubr.msk.bf16.mxu0 %vm1526_vm12, %v8884_v30  ;;  %v5257_v62 = vrot.slane %v9510_v21, 5  ;;  %v4813_v40 = vrot.slane %v4811_v11, 4  ;;  %v4816_v60 = vrot.slane %v4814_v53, 5  ;;  %v5260_v47 = vrot.slane %v8772_v18, 5  ;;  %v7351_v38 = vld [vmem:[#allocation2 + $0x3c] sm:$0xff]  }
 0x164   : > { %v3118_v4 = vor.u32 %v3117_v51, %v3114_v16  ;;  %v9008_v30 = vrot.slane %v4820_v41, 5  ;;  %v9012_v45 = vsel %vm7927_vm2, %v5252_v35, %v5253_v12  ;;  %v4804_v11 = vrot.slane %v4803_v15, 4  ;;  %v5138_v51 = vld [vmem:[#allocation2 + $0x90] sm:$0xe]  ;;  %v5128_v35 = vld [vmem:[#allocation2 + $0x18] sm:$0xe] }
 0x165   : > { %v9016_v57 = vsel %vm7927_vm2, %v6439_v48, %v5257_v62  ;;  %v4826_v53 = vrot.slane %v4824_v29, 4  ;;  %v6455_v18 = vcombine.low %v9001_v56, %v9012_v45  ;;  %v6410_v63 = vcombine.low %v4751_v23, %v4761_v25  ;;  %v9513_v21 = vld [vmem:[#allocation20_spill] sm:$0xff] }
 0x166   : > { %v3119_v16 = vrot.slane %v3118_v4, 4  ;;  %v4775_v23 = vsel %vm7624_vm13, %v8964_v14, %v8898_v8  ;;  %v4785_v25 = vsel %vm7624_vm13, %v8976_v33, %v8966_v22  ;;  %v4799_v26 = vsel %vm7624_vm13, %v4794_v19, %v8968_v3  ;;  %v5139_v33 = vld [vmem:[#allocation2 + $0x9c] sm:$0xe] }
 0x167   : > { %6838 = vmatmul.mubr.msk.bf16.vlgmr.msra.gmra.mrb[0].mxu1 %vm1526_vm12, %v7348_v5  ;;  %v5259_v5 = vrot.slane %v5257_v62, 4  ;;  %v4809_v12 = vsel %vm7624_vm13, %v4804_v11, %v8982_v58  ;;  %v4817_v8 = vor.u32 %v4816_v60, %v4813_v40  ;;  %v4827_v14 = vor.u32 %v4826_v53, %v9008_v30  ;;  %v9514_v11 = vld [vmem:[#allocation21_spill] sm:$0xff] }
 0x168   : > { %7040 = vmatpush3.bf16.msra.mxu1 %v9511_v1  ;;  %6841 = vmatprep.mubr.msk.bf16.mxu1 %vm1526_vm12, %v7349_v55  ;;  %v7350_v55 = vld [vmem:[#allocation2 + $0x30] sm:$0xff]   ;;  %v3124_v24 = vsel %vm7624_vm13, %v3119_v16, %v9512_v50  ;;  %v4830_v22 = vshll.u32 %v9024_v37, 16  ;;  %v6440_v48 = vrot.slane %v5138_v51, 9  ;;  %v6411_v3 = vcombine.low %v4775_v23, %v4785_v25  ;;  %v7352_v16 = vld [vmem:[#allocation2 + $0x48] sm:$0xff]   ;;  %v7409_v50 = vld [vmem:[#allocation2 + $0x20] sm:$0x1] }
 0x169   : > { %v9022_v41 = vsel %vm7927_vm2, %v5259_v5, %v5260_v47  ;;  %v9039_v29 = vcombine.low %v3124_v24, %v3134_v13  ;;  %v7408_v13 = vld [vmem:[#allocation2 + $0x1c] sm:$0xf]  ;;  %v6412_v19 = vcombine.low %v4799_v26, %v4809_v12  ;;  %v5264_v58 = vrot.slane %v9513_v21, 5  ;;  %v7353_v23 = vld [vmem:[#allocation2 + $0x54] sm:$0xff]   ;;  %v5140_v21 = vld [vmem:[#allocation2 + $0xa8] sm:$0xe] }
 0x16a   : > { %v6456_v15 = vcombine.low %v9016_v57, %v9022_v41  ;;  %6994 = vmatmul.mubr.msk.bf16.gmra.mrb[20].mxu0 %vm1526_vm12, %v8886_v54  ;;  %v5194_v54 = vrot.slane %v7408_v13, 5  ;;  %v4818_v62 = vrot.slane %v4817_v8, 4  ;;  %v4828_v40 = vrot.slane %v4827_v14, 4  ;;  %v5129_v8 = vld [vmem:[#allocation2 + $0x24] sm:$0xe] }
 0x16b   : > { %6997 = vmatprep.mubr.msk.bf16.mxu0 %vm1526_vm12, %v6410_v63  ;;  %v5267_v60 = vrot.slane %v8776_v9, 5  ;;  %v6441_v4 = vrot.slane %v5139_v33, 9  ;;  %v4832_v47 = vrot.slane %v4830_v22, 5  ;;  %v9058_v1 = vsel %vm7927_vm2, %v6440_v48, %v5264_v58  ;;  %v7410_v14 = vld [vmem:[#allocation2 + $0x28] sm:$0xf] }
 0x16c   : > { %v5266_v5 = vrot.slane %v5264_v58, 4  ;;  %v5271_v53 = vrot.slane %v9514_v11, 5  ;;  %v6430_v63 = vrot.slane %v5128_v35, 9  ;;  %v5197_v24 = vrot.slane %v7409_v50, 5  ;;  %v5130_v48 = vld [vmem:[#allocation2 + $0x30] sm:$0xe] }
 0x16d   : > { %v4833_v12 = vsel %vm7624_vm13, %v4828_v40, %v4832_v47  ;;  %v5201_v22 = vrot.slane %v7410_v14, 5  ;;  %v7354_v40 = vld [vmem:[#allocation2 + $0x60] sm:$0xff]   ;;  %v5141_v50 = vld [vmem:[#allocation2 + $0xb4] sm:$0xe]  ;;  %v3217_v44 = vshll.u32 %v7420_v7, 16 }
 0x16e   : > { %v9064_v9 = vsel %vm7927_vm2, %v5266_v5, %v5267_v60  ;;  %v9071_v51 = vsel %vm7927_vm2, %v6441_v4, %v5271_v53  ;;  %v5273_v26 = vrot.slane %v5271_v53, 4  ;;  %v5195_v33 = vsel %vm7927_vm2, %v6430_v63, %v5194_v54  ;;  %v7411_v4 = vld [vmem:[#allocation2 + $0x2c] sm:$0x1]  ;;  %v7422_v41 = vld [vmem:[#allocation2 + $0xb0] sm:$0x1] }
 0x16f   : > { %6842 = vmatmul.mubr.msk.bf16.gmra.mrb[4].mxu1 %vm1526_vm12, %v7350_v55  ;;  %v5196_v55 = vrot.slane %v5194_v54, 4  ;;  %v6457_v25 = vcombine.low %v9058_v1, %v9064_v9  ;;  %v5203_v60 = vrot.slane %v5201_v22, 4  ;;  %v5204_v47 = vrot.slane %v7411_v4, 5  ;;  %v9516_v53 = vld [vmem:[#allocation9_spill] sm:$0xff]  ;;  %v9518_v4 = vld [vmem:[#allocation10_spill] sm:$0xff] }
 0x170   : > { %6845 = vmatprep.mubr.msk.bf16.mxu1 %vm1526_vm12, %v7351_v38  ;;  %v5274_v38 = vrot.slane %v8799_v59, 5  ;;  %v4823_v59 = vsel %vm7624_vm13, %v4818_v62, %v9008_v30  ;;  %v6431_v62 = vrot.slane %v5129_v8, 9  ;;  %v6432_v5 = vrot.slane %v5130_v48, 9 }
 0x171   : > { %v5198_v13 = vsel %vm7927_vm2, %v5196_v55, %v5197_v24  ;;  %v6413_v58 = vcombine.low %v4823_v59, %v4833_v12  ;;  %v6442_v63 = vrot.slane %v5140_v21, 9  ;;  %v5278_v55 = vrot.slane %v8810_v42, 5  ;;  %v7355_v24 = vld [vmem:[#allocation2 + $0x6c] sm:$0xff]   ;;  %v9517_v42 = vld [vmem:[#allocation8_spill] sm:$0xff] }
 0x172   : > { %6998 = vmatmul.mubr.msk.bf16.gmra.mrb[24].mxu0 %vm1526_vm12, %v6411_v3  ;;  %v9515_v3 = vld [vmem:[#allocation7_spill] sm:$0xff]  ;;  %v9087_v30 = vsel %vm7927_vm2, %v5273_v26, %v5274_v38  ;;  %v6447_v54 = vcombine.low %v5195_v33, %v5198_v13  ;;  %v5281_v26 = vrot.slane %v8824_v31, 5  ;;  %v5202_v59 = vsel %vm7927_vm2, %v6431_v62, %v5201_v22 }
 0x173   : > { %7001 = vmatprep.mubr.msk.bf16.mxu0 %vm1526_vm12, %v6412_v19  ;;  %v5208_v19 = vrot.slane %v9515_v3, 5  ;;  %v6458_v35 = vcombine.low %v9071_v51, %v9087_v30  ;;  %v9097_v38 = vsel %vm7927_vm2, %v6442_v63, %v5278_v55  ;;  %v5205_v12 = vsel %vm7927_vm2, %v5203_v60, %v5204_v47  ;;  %v5131_v31 = vld [vmem:[#allocation2 + $0x3c] sm:$0xe] }
 0x174   : > { %v5215_v8 = vrot.slane %v9517_v42, 5  ;;  %v6443_v14 = vrot.slane %v5141_v50, 9  ;;  %v5285_v22 = vrot.slane %v8828_v46, 5  ;;  %v5288_v21 = vrot.slane %v8873_v43, 5  ;;  %v7356_v46 = vld [vmem:[#allocation2 + $0x78] sm:$0xff]  }
 0x175   : > { %v5210_v11 = vrot.slane %v5208_v19, 4  ;;  %v5209_v33 = vsel %vm7927_vm2, %v6432_v5, %v5208_v19  ;;  %v5218_v47 = vrot.slane %v9518_v4, 5  ;;  %v2871_v5 = vld [vmem:[#allocation2 + $0x6c] sm:$0xf] }
 0x176   : > { %v9122_v19 = vsel %vm7927_vm2, %v6443_v14, %v5285_v22  ;;  %v5287_v62 = vrot.slane %v5285_v22, 4  ;;  %v5217_v60 = vrot.slane %v5215_v8, 4  ;;  %v3091_v63 = vshll.u32 %v2871_v5, 16  ;;  %v7358_v22 = vld [vmem:[#allocation2 + $0x90] sm:$0xff]  }
 0x177   : > { %6846 = vmatmul.mubr.msk.bf16.gmra.mrb[8].mxu1 %vm1526_vm12, %v7352_v16  ;;  %v5211_v16 = vrot.slane %v9516_v53, 5  ;;  %v7357_v53 = vld [vmem:[#allocation2 + $0x84] sm:$0xff]  }
 0x178   : > { %6849 = vmatprep.mubr.msk.bf16.mxu1 %vm1526_vm12, %v7353_v23  ;;  %v5280_v23 = vrot.slane %v5278_v55, 4  ;;  %v5219_v50 = vsel %vm7927_vm2, %v5217_v60, %v5218_v47  ;;  %v3093_v14 = vrot.slane %v3091_v63, 5  ;;  %v7413_v47 = vld [vmem:[#allocation2 + $0x74] sm:$0x1] }
 0x179   : > { %v5212_v13 = vsel %vm7927_vm2, %v5210_v11, %v5211_v16  ;;  %v9127_v11 = vsel %vm7927_vm2, %v5287_v62, %v5288_v21  ;;  %v3088_v16 = vshrl.u32 %v2871_v5, 16  ;;  %v5302_v21 = vrot.slane %v9024_v37, 5  ;;  %v2877_v62 = vld [vmem:[#allocation2 + $0x84] sm:$0xf] }
 0x17a   : > { %7002 = vmatmul.mubr.msk.bf16.gmra.mrb[28].mxu0 %vm1526_vm12, %v6413_v58  ;;  %v9113_v48 = vsel %vm7927_vm2, %v5280_v23, %v5281_v26  ;;  %v6448_v58 = vcombine.low %v5202_v59, %v5205_v12  ;;  %v6460_v43 = vcombine.low %v9122_v19, %v9127_v11  ;;  %v5143_v59 = vld [vmem:[#allocation2 + $0xcc] sm:$0xe]  ;;  %v3136_v37 = vshrl.u32 %v2877_v62, 16 }
 0x17b   : > { %7007 = vmatprep.mubr.msk.bf16.mxu0 %vm1526_vm12, %v6447_v54  ;;  %v6459_v3 = vcombine.low %v9097_v38, %v9113_v48  ;;  %v6433_v54 = vrot.slane %v5131_v31, 9  ;;  %v3090_v42 = vrot.slane %v3088_v16, 4  ;;  %v3139_v5 = vshll.u32 %v2877_v62, 16  ;;  %v7416_v62 = vld [vmem:[#allocation2 + $0x94] sm:$0xf] }
 0x17c   : > { %v7425_v48 = vld [vmem:[#allocation2 + $0xc8] sm:$0x1] }
 0x17d   : > { %v5216_v55 = vsel %vm7927_vm2, %v6433_v54, %v5215_v8  ;;  %v5299_v8 = vrot.slane %v8970_v6, 5  ;;  %v3107_v6 = vshll.u32 %v7413_v47, 16 }
 0x17e   : > { %v6450_v12 = vcombine.low %v5216_v55, %v5219_v50 }
 0x17f   : > { %6850 = vmatmul.mubr.msk.bf16.gmra.mrb[12].mxu1 %vm1526_vm12, %v7354_v40  ;;  %v6449_v40 = vcombine.low %v5209_v33, %v5212_v13  ;;  %v6445_v33 = vrot.slane %v5143_v59, 9  ;;  %v5301_v60 = vrot.slane %v5299_v8, 4  ;;  %v3109_v50 = vrot.slane %v3107_v6, 5  ;;  %v7362_v6 = vld [vmem:[#allocation2 + $0xc0] sm:$0xff]  }
 0x180   : > { %6853 = vmatprep.mubr.msk.bf16.mxu1 %vm1526_vm12, %v7355_v24  ;;  %v7412_v24 = vld [vmem:[#allocation2 + $0x70] sm:$0xf]  ;;  %v3141_v59 = vrot.slane %v3139_v5, 5 }
 0x181   : > { %v3097_v23 = vshll.u32 %v7412_v24, 16  ;;  %v3101_v26 = vshrl.u32 %v7412_v24, 16  ;;  %v9144_v54 = vsel %vm7927_vm2, %v6445_v33, %v5299_v8  ;;  %v7360_v24 = vld [vmem:[#allocation2 + $0xa8] sm:$0xff]  }
 0x182   : > { %7008 = vmatmul.mubr.msk.bf16.vlgmr.msra.gmra.mrb[0].mxu0 %vm1526_vm12, %v6448_v58  ;;  %v7359_v58 = vld [vmem:[#allocation2 + $0x9c] sm:$0xff]  }
 0x183   : > { %7011 = vmatprep.mubr.msk.bf16.mxu0 %vm1526_vm12, %v6449_v40  ;;  %v3099_v13 = vrot.slane %v3097_v23, 5  ;;  %v3103_v31 = vrot.slane %v3101_v26, 4  ;;  %v3094_v40 = vor.u32 %v3093_v14, %v3090_v42  ;;  %v7361_v23 = vld [vmem:[#allocation2 + $0xb4] sm:$0xff]   ;;  %v3138_v26 = vrot.slane %v3136_v37, 4 }
 0x185   : > { %v3104_v4 = vor.u32 %v3103_v31, %v3099_v13  ;;  %v3095_v32 = vrot.slane %v3094_v40, 4  ;;  %v2883_v31 = vld [vmem:[#allocation2 + $0x9c] sm:$0xf]  ;;  %v3169_v40 = vshll.u32 %v7416_v62, 16  ;;  %v3142_v39 = vor.u32 %v3141_v59, %v3138_v26  ;;  %v7418_v26 = vld [vmem:[#allocation2 + $0x98] sm:$0x1] }
 0x186   : > { %v3184_v20 = vshrl.u32 %v2883_v31, 16  ;;  %v3187_v36 = vshll.u32 %v2883_v31, 16  ;;  %v3179_v59 = vshll.u32 %v7418_v26, 16 }
 0x187   : > { %6854 = vmatmul.mubr.msk.bf16.gmra.mrb[16].mxu1 %vm1526_vm12, %v7356_v46  ;;  %v9153_v46 = vsel %vm7927_vm2, %v5301_v60, %v5302_v21  ;;  %v3105_v55 = vrot.slane %v3104_v4, 4  ;;  %v7415_v21 = vld [vmem:[#allocation2 + $0x8c] sm:$0x1]  ;;  %v3173_v60 = vshrl.u32 %v7416_v62, 16 }
 0x188   : > { %6857 = vmatprep.mubr.msk.bf16.mxu1 %vm1526_vm12, %v7357_v53  ;;  %v7414_v53 = vld [vmem:[#allocation2 + $0x88] sm:$0xf]  ;;  %v6462_v28 = vcombine.low %v9144_v54, %v9153_v46 }
 0x189   : > { %v3145_v16 = vshll.u32 %v7414_v53, 16  ;;  %v3149_v63 = vshrl.u32 %v7414_v53, 16  ;;  %v3110_v8 = vsel %vm7624_vm13, %v3105_v55, %v3109_v50  ;;  %v9175_v53 = vrot.slane %v3169_v40, 5  ;;  %v2886_v50 = vld [vmem:[#allocation2 + $0xa8] sm:$0xf] }
 0x18a   : > { %7012 = vmatmul.mubr.msk.bf16.gmra.mrb[4].mxu0 %vm1526_vm12, %v6450_v12  ;;  %v3181_v40 = vrot.slane %v3179_v59, 5  ;;  %v5292_v59 = vrot.slane %v8892_v10, 5  ;;  %v5295_v10 = vrot.slane %v8917_v52, 5 }
 0x18b   : > { %7015 = vmatprep.mubr.msk.bf16.mxu0 %vm1526_vm12, %v6451_v49  ;;  %v2880_v49 = vld [vmem:[#allocation2 + $0x90] sm:$0xf]  ;;  %v9158_v12 = vrot.slane %v3145_v16, 5  ;;  %v3151_v42 = vrot.slane %v3149_v63, 4  ;;  %v3175_v16 = vrot.slane %v3173_v60, 4  ;;  %v3186_v63 = vrot.slane %v3184_v20, 4 }
 0x18c   : > { %v3160_v14 = vshrl.u32 %v2880_v49, 16  ;;  %v3163_v33 = vshll.u32 %v2880_v49, 16 }
 0x18d   : > { %v3152_v0 = vor.u32 %v3151_v42, %v9158_v12  ;;  %v3176_v42 = vor.u32 %v3175_v16, %v9175_v53 }
 0x18e   : > { %v3165_v47 = vrot.slane %v3163_v33, 5 }
 0x18f   : > { %6858 = vmatmul.mubr.msk.bf16.gmra.mrb[20].mxu1 %vm1526_vm12, %v7358_v22  ;;  %v3100_v22 = vsel %vm7624_vm13, %v3095_v32, %v3099_v13  ;;  %v3189_v32 = vrot.slane %v3187_v36, 5  ;;  %v3153_v31 = vrot.slane %v3152_v0, 4  ;;  %v7421_v36 = vld [vmem:[#allocation2 + $0xb8] sm:$0xf] }
 0x190   : > { %6861 = vmatprep.mubr.msk.bf16.mxu1 %vm1526_vm12, %v7359_v58  ;;  %v3155_v58 = vshll.u32 %v7415_v21, 16  ;;  %v6291_v37 = vcombine.low %v3100_v22, %v3110_v8  ;;  %v3208_v22 = vshrl.u32 %v2886_v50, 16  ;;  %v3211_v8 = vshll.u32 %v2886_v50, 16  ;;  %v2889_v21 = vld [vmem:[#allocation2 + $0xb4] sm:$0xf] }
 0x191   : > { %v3232_v60 = vshrl.u32 %v2889_v21, 16  ;;  %v3235_v20 = vshll.u32 %v2889_v21, 16  ;;  %v2892_v50 = vld [vmem:[#allocation2 + $0xc0] sm:$0xf] }
 0x192   : > { %7016 = vmatmul.mubr.msk.bf16.gmra.mrb[8].mxu0 %vm1526_vm12, %v6452_v34  ;;  %v7417_v34 = vld [vmem:[#allocation2 + $0xa0] sm:$0xf]  ;;  %v3157_v5 = vrot.slane %v3155_v58, 5  ;;  %v3190_v58 = vor.u32 %v3189_v32, %v3186_v63  ;;  %v3210_v0 = vrot.slane %v3208_v22, 4  ;;  %v3256_v1 = vshrl.u32 %v2892_v50, 16 }
 0x193   : > { %7019 = vmatprep.mubr.msk.bf16.mxu0 %vm1526_vm12, %v6453_v61  ;;  %v3193_v4 = vshll.u32 %v7417_v34, 16  ;;  %v3197_v13 = vshrl.u32 %v7417_v34, 16  ;;  %v3162_v61 = vrot.slane %v3160_v14, 4  ;;  %v7419_v14 = vld [vmem:[#allocation2 + $0xa4] sm:$0x1]  ;;  %v3241_v34 = vshll.u32 %v7421_v36, 16 }
 0x194   : > { %v3203_v33 = vshll.u32 %v7419_v14, 16  ;;  %v3158_v45 = vsel %vm7624_vm13, %v3153_v31, %v3157_v5  ;;  %v3237_v5 = vrot.slane %v3235_v20, 5  ;;  %v3259_v9 = vshll.u32 %v2892_v50, 16 }
 0x195   : > { %v9177_v49 = vrot.slane %v3193_v4, 5  ;;  %v3199_v55 = vrot.slane %v3197_v13, 4  ;;  %v3245_v4 = vshrl.u32 %v7421_v36, 16  ;;  %v3177_v13 = vrot.slane %v3176_v42, 4 }
 0x196   : > { %v3243_v32 = vrot.slane %v3241_v34, 5 }
 0x197   : > { %6862 = vmatmul.mubr.msk.bf16.gmra.mrb[24].mxu1 %vm1526_vm12, %v7360_v24  ;;  %v3143_v24 = vrot.slane %v3142_v39, 4  ;;  %v3200_v62 = vor.u32 %v3199_v55, %v9177_v49  ;;  %v3205_v39 = vrot.slane %v3203_v33, 5  ;;  %v3247_v55 = vrot.slane %v3245_v4, 4  ;;  %v5142_v33 = vld [vmem:[#allocation2 + $0xc0] sm:$0xe] }
 0x198   : > { %6865 = vmatprep.mubr.msk.bf16.mxu1 %vm1526_vm12, %v7361_v23  ;;  %v3166_v23 = vor.u32 %v3165_v47, %v3162_v61  ;;  %v3213_v61 = vrot.slane %v3211_v8, 5  ;;  %v3191_v47 = vrot.slane %v3190_v58, 4  ;;  %v3182_v31 = vsel %vm7624_vm13, %v3177_v13, %v3181_v40  ;;  %v7424_v8 = vld [vmem:[#allocation2 + $0xbc] sm:$0x1] }
 0x199   : > { %v3148_v56 = vsel %vm7624_vm13, %v3143_v24, %v9158_v12  ;;  %v3234_v12 = vrot.slane %v3232_v60, 4  ;;  %v3251_v21 = vshll.u32 %v7424_v8, 16 }
 0x19a   : > { %7020 = vmatmul.mubr.msk.bf16.gmra.mrb[12].mxu0 %vm1526_vm12, %v6454_v27  ;;  %v3221_v27 = vshrl.u32 %v7420_v7, 16  ;;  %v6293_v63 = vcombine.low %v3148_v56, %v3158_v45  ;;  %v3214_v57 = vor.u32 %v3213_v61, %v3210_v0  ;;  %v5294_v56 = vrot.slane %v5292_v59, 4 }
 0x19b   : > { %7023 = vmatprep.mubr.msk.bf16.mxu0 %vm1526_vm12, %v6455_v18  ;;  %v3167_v18 = vrot.slane %v3166_v23, 4  ;;  %v3196_v23 = vsel %vm7624_vm13, %v3191_v47, %v9177_v49  ;;  %v3238_v22 = vor.u32 %v3237_v5, %v3234_v12  ;;  %v3258_v45 = vrot.slane %v3256_v1, 4 }
 0x19c   : > { %v3223_v16 = vrot.slane %v3221_v27, 4  ;;  %v6444_v27 = vrot.slane %v5142_v33, 9  ;;  %v3253_v34 = vrot.slane %v3251_v21, 5  ;;  %v5296_v51 = vsel %vm7927_vm2, %v5294_v56, %v5295_v10 }
 0x19d   : > { %v3172_v24 = vsel %vm7624_vm13, %v3167_v18, %v9175_v53  ;;  %v3261_v18 = vrot.slane %v3259_v9, 5  ;;  %v3239_v20 = vrot.slane %v3238_v22, 4 }
 0x19e   : > { %v6294_v58 = vcombine.low %v3172_v24, %v3182_v31  ;;  %v5293_v4 = vsel %vm7927_vm2, %v6444_v27, %v5292_v59 }
 0x19f   : > { %6866 = vmatmul.mubr.msk.bf16.gmra.mrb[28].mxu1 %vm1526_vm12, %v7362_v6  ;;  %v3201_v6 = vrot.slane %v3200_v62, 4  ;;  %v3215_v62 = vrot.slane %v3214_v57, 4  ;;  %v3244_v13 = vsel %vm7624_vm13, %v3239_v20, %v3243_v32  ;;  %v6461_v0 = vcombine.low %v5293_v4, %v5296_v51 }
 0x1a0   : > { %6887 = vmatprep.mubr.msk.bf16.mxu1 %vm1526_vm12, %v6291_v37  ;;  %v3219_v37 = vrot.slane %v3217_v44, 5 }
 0x1a1   : > { %v3206_v53 = vsel %vm7624_vm13, %v3201_v6, %v3205_v39 }
 0x1a2   : > { %7024 = vmatmul.mubr.msk.bf16.gmra.mrb[16].mxu0 %vm1526_vm12, %v6456_v15  ;;  %v3227_v15 = vshll.u32 %v7422_v41, 16  ;;  %v3224_v26 = vor.u32 %v3223_v16, %v3219_v37  ;;  %v6295_v49 = vcombine.low %v3196_v23, %v3206_v53  ;;  %v3220_v52 = vsel %vm7624_vm13, %v3215_v62, %v3219_v37 }
 0x1a3   : > { %7027 = vmatprep.mubr.msk.bf16.mxu0 %vm1526_vm12, %v6457_v25  ;;  %v7423_v25 = vld [vmem:[#allocation2 + $0xc4] sm:$0xf] }
 0x1a4   : > { %v3265_v42 = vshll.u32 %v7423_v25, 16  ;;  %v3269_v14 = vshrl.u32 %v7423_v25, 16  ;;  %v3229_v7 = vrot.slane %v3227_v15, 5  ;;  %v3225_v44 = vrot.slane %v3224_v26, 4 }
 0x1a6   : > { %v3267_v40 = vrot.slane %v3265_v42, 5  ;;  %v3271_v60 = vrot.slane %v3269_v14, 4  ;;  %v3230_v30 = vsel %vm7624_vm13, %v3225_v44, %v3229_v7 }
 0x1a7   : > { %6888 = vmatmul.mubr.msk.bf16.vlgmr.msra.gmra.mrb[16].mxu1 %vm1526_vm12, %v9039_v29  ;;  %v3248_v29 = vor.u32 %v3247_v55, %v3243_v32  ;;  %v6296_v61 = vcombine.low %v3220_v52, %v3230_v30 }
 0x1a8   : > { %6891 = vmatprep.mubr.msk.bf16.mxu1 %vm1526_vm12, %v6293_v63  ;;  %v3272_v38 = vor.u32 %v3271_v60, %v3267_v40 }
 0x1a9   : > { %v3249_v36 = vrot.slane %v3248_v29, 4 }
 0x1aa   : > { %7028 = vmatmul.mubr.msk.bf16.gmra.mrb[20].mxu0 %vm1526_vm12, %v6458_v35  ;;  %v3262_v35 = vor.u32 %v3261_v18, %v3258_v45  ;;  %v3273_v6 = vrot.slane %v3272_v38, 4 }
 0x1ab   : > { %7031 = vmatprep.mubr.msk.bf16.mxu0 %vm1526_vm12, %v6459_v3  ;;  %v3275_v3 = vshll.u32 %v7425_v48, 16  ;;  %v3254_v39 = vsel %vm7624_vm13, %v3249_v36, %v3253_v34 }
 0x1ac   : > { %v6297_v47 = vcombine.low %v3244_v13, %v3254_v39  ;;  %v3263_v17 = vrot.slane %v3262_v35, 4 }
 0x1ad   : > { %v3277_v37 = vrot.slane %v3275_v3, 5 }
 0x1ae   : > { %v3268_v16 = vsel %vm7624_vm13, %v3263_v17, %v3267_v40 }
 0x1af   : > { %6892 = vmatmul.mubr.msk.bf16.gmra.mrb[20].mxu1 %vm1526_vm12, %v6294_v58  ;;  %v3278_v63 = vsel %vm7624_vm13, %v3273_v6, %v3277_v37 }
 0x1b0   : > { %6895 = vmatprep.mubr.msk.bf16.mxu1 %vm1526_vm12, %v6295_v49  ;;  %v6298_v12 = vcombine.low %v3268_v16, %v3278_v63 }
 0x1b2   : > { %7032 = vmatmul.mubr.msk.bf16.gmra.mrb[24].mxu0 %vm1526_vm12, %v6460_v43 }
 0x1b3   : > { %7035 = vmatprep.mubr.msk.bf16.mxu0 %vm1526_vm12, %v6461_v0 }
 0x1b7   : > { %6896 = vmatmul.mubr.msk.bf16.gmra.mrb[24].mxu1 %vm1526_vm12, %v6296_v61 }
 0x1b8   : > { %6899 = vmatprep.mubr.msk.bf16.mxu1 %vm1526_vm12, %v6297_v47 }
 0x1ba   : > { %7036 = vmatmul.mubr.msk.bf16.gmra.mrb[28].mxu0 %vm1526_vm12, %v6462_v28 }
 0x1bf   : > { %6900 = vmatmul.mubr.msk.bf16.gmra.mrb[28].mxu1 %vm1526_vm12, %v6298_v12 }
 0x23a   : > { %v6839_v19 = vpop.f32.mrb[0].mxu1 }
 0x23b   : > { %v2688_v11 = vpop.f32.mrb[1].mxu1 }
 0x23c   : > { %v6840_v43 = vpop.f32.mrb[2].mxu1 }
 0x23d   : > { %v2691_v5 = vpop.f32.mrb[3].mxu1 }
 0x242   : > { %v6843_v32 = vpop.f32.mrb[4].mxu1 }
 0x243   : > { %v2704_v55 = vpop.f32.mrb[5].mxu1 }
 0x244   : > { %v6844_v50 = vpop.f32.mrb[6].mxu1 }
 0x245   : > { %v2707_v24 = vpop.f32.mrb[7].mxu1 }
 0x24a   : > { %v9257_v31 = vpop.f32.mrb[8].mxu1 }
 0x24b   : > { %v9259_v2 = vpop.f32.mrb[9].mxu1 }
 0x24c   : > { %v9261_v57 = vpop.f32.mrb[10].mxu1 }
 0x24d   : > { %v9263_v54 = vpop.f32.mrb[11].mxu1 }
 0x252   : > { %v9265_v46 = vpop.f32.mrb[12].mxu1 }
 0x253   : > { %v9267_v28 = vpop.f32.mrb[13].mxu1 }
 0x254   : > { %v9269_v41 = vpop.f32.mrb[14].mxu1 }
 0x255   : > { %v9271_v15 = vpop.f32.mrb[15].mxu1  ;;  %v7009_v23 = vpop.f32.mrb[0].mxu0 }
 0x256   : > { %v7041_v53 = vadd.f32 %v7009_v23, %v6839_v19  ;;  %v5439_v26 = vpop.f32.mrb[1].mxu0 }
 0x257   : > { %v7042_v59 = vadd.f32 %v5439_v26, %v2688_v11  ;;  %v7010_v1 = vpop.f32.mrb[2].mxu0 }
 0x258   : > { %v6550_v9 = vpack.c.bf16 %v7041_v53, %v7041_v53  ;;  %v7043_v25 = vadd.f32 %v7010_v1, %v6840_v43  ;;  %v5442_v42 = vpop.f32.mrb[3].mxu0  ;;  %v5831_v29 = vmul.f32 %v7041_v53, %v7041_v53  ;;  %v5761_v27 = vsel %vm1526_vm12, %v7041_v53, 0.0 }
 0x259   : > { %v6548_v14 = vpack.c.bf16 %v7042_v59, %v7042_v59  ;;  %v5829_v33 = vmul.f32 %v7042_v59, %v7042_v59  ;;  %v7044_v22 = vadd.f32 %v5442_v42, %v2691_v5  ;;  %v5758_v21 = vsel %vm1526_vm12, %v7042_v59, 0.0 }
 0x25a   : > { %5728 = vst.msk [vmem:[%s9277_s6 + $0x8] sm:$0xf] %vm865_vm7, %v6550_v9  ;;  %v6551_v8 = vpack.c.bf16 %v7043_v25, %v7043_v25  ;;  %v5832_v7 = vmul.f32 %v7043_v25, %v7043_v25  ;;  %v5864_v36 = vsel %vm1526_vm12, %v5831_v29, 0.0  ;;  %v5763_v4 = vsel %vm1526_vm12, %v7043_v25, 0.0 }
 0x25b   : > { %5726 = vst.msk [vmem:[%s9277_s6] sm:$0xf] %vm865_vm7, %v6548_v14  ;;  %v6549_v58 = vpack.c.bf16 %v7044_v22, %v7044_v22  ;;  %v5759_v49 = vsel %vm1526_vm12, %v7044_v22, 0.0  ;;  %v5830_v62 = vmul.f32 %v7044_v22, %v7044_v22  ;;  %v5861_v56 = vsel %vm1526_vm12, %v5829_v33, 0.0 }
 0x25c   : > { %5729 = vst.msk [vmem:[%s9277_s6 + $0xc] sm:$0xf] %vm865_vm7, %v6551_v8  ;;  %v5760_v44 = vadd.f32 %v5759_v49, %v5758_v21  ;;  %v5866_v51 = vsel %vm1526_vm12, %v5832_v7, 0.0 }
 0x25d   : > { %5727 = vst.msk [vmem:[%s9277_s6 + $0x4] sm:$0xf] %vm865_vm7, %v6549_v58  ;;  %v5862_v10 = vsel %vm1526_vm12, %v5830_v62, 0.0  ;;  %v7013_v45 = vpop.f32.mrb[4].mxu0 }
 0x25e   : > { %v5762_v18 = vadd.f32 %v5761_v27, %v5760_v44  ;;  %v5863_v40 = vadd.f32 %v5862_v10, %v5861_v56  ;;  %v7045_v60 = vadd.f32 %v7013_v45, %v6843_v32  ;;  %v5455_v20 = vpop.f32.mrb[5].mxu0 }
 0x25f   : > { %v7046_v34 = vadd.f32 %v5455_v20, %v2704_v55  ;;  %v7014_v52 = vpop.f32.mrb[6].mxu0 }
 0x260   : > { %v5865_v30 = vadd.f32 %v5864_v36, %v5863_v40  ;;  %v6554_v35 = vpack.c.bf16 %v7045_v60, %v7045_v60  ;;  %v5458_v38 = vpop.f32.mrb[7].mxu0  ;;  %v5764_v3 = vadd.f32 %v5763_v4, %v5762_v18  ;;  %v7047_v61 = vadd.f32 %v7014_v52, %v6844_v50 }
 0x261   : > { %v6552_v48 = vpack.c.bf16 %v7046_v34, %v7046_v34  ;;  %v5765_v13 = vsel %vm1526_vm12, %v7046_v34, 0.0  ;;  %v5833_v39 = vmul.f32 %v7046_v34, %v7046_v34  ;;  %v7048_v47 = vadd.f32 %v5458_v38, %v2707_v24 }
 0x262   : > { %5732 = vst.msk [vmem:[%s9277_s6 + $0x18] sm:$0xf] %vm865_vm7, %v6554_v35  ;;  %v5867_v0 = vadd.f32 %v5866_v51, %v5865_v30  ;;  %v5766_v17 = vadd.f32 %v5765_v13, %v5764_v3  ;;  %v5835_v37 = vmul.f32 %v7045_v60, %v7045_v60  ;;  %v6555_v63 = vpack.c.bf16 %v7047_v61, %v7047_v61 }
 0x263   : > { %5730 = vst.msk [vmem:[%s9277_s6 + $0x10] sm:$0xf] %vm865_vm7, %v6552_v48  ;;  %v5868_v6 = vsel %vm1526_vm12, %v5833_v39, 0.0  ;;  %v6553_v12 = vpack.c.bf16 %v7048_v47, %v7048_v47  ;;  %v5767_v19 = vsel %vm1526_vm12, %v7048_v47, 0.0  ;;  %v5834_v11 = vmul.f32 %v7048_v47, %v7048_v47 }
 0x264   : > { %v5869_v16 = vadd.f32 %v5868_v6, %v5867_v0  ;;  %5733 = vst.msk [vmem:[%s9277_s6 + $0x1c] sm:$0xf] %vm865_vm7, %v6555_v63  ;;  %v5768_v5 = vadd.f32 %v5767_v19, %v5766_v17  ;;  %v5769_v50 = vsel %vm1526_vm12, %v7045_v60, 0.0  ;;  %v5836_v24 = vmul.f32 %v7047_v61, %v7047_v61 }
 0x265   : > { %v7017_v43 = vpop.f32.mrb[8].mxu0  ;;  %5731 = vst.msk [vmem:[%s9277_s6 + $0x14] sm:$0xf] %vm865_vm7, %v6553_v12  ;;  %v5870_v23 = vsel %vm1526_vm12, %v5834_v11, 0.0  ;;  %v5872_v59 = vsel %vm1526_vm12, %v5835_v37, 0.0 }
 0x266   : > { %v7049_v32 = vadd.f32 %v7017_v43, %v9257_v31  ;;  %v5471_v55 = vpop.f32.mrb[9].mxu0  ;;  %v5770_v1 = vadd.f32 %v5769_v50, %v5768_v5  ;;  %v5871_v9 = vadd.f32 %v5870_v23, %v5869_v16  ;;  %v5771_v31 = vsel %vm1526_vm12, %v7047_v61, 0.0 }
 0x267   : > { %v7050_v53 = vadd.f32 %v5471_v55, %v9259_v2  ;;  %v7018_v26 = vpop.f32.mrb[10].mxu0  ;;  %v5874_v58 = vsel %vm1526_vm12, %v5836_v24, 0.0 }
 0x268   : > { %v6558_v25 = vpack.c.bf16 %v7049_v32, %v7049_v32  ;;  %v5474_v42 = vpop.f32.mrb[11].mxu0  ;;  %v5873_v29 = vadd.f32 %v5872_v59, %v5871_v9  ;;  %v5772_v8 = vadd.f32 %v5771_v31, %v5770_v1  ;;  %v7051_v2 = vadd.f32 %v7018_v26, %v9261_v57 }
 0x269   : > { %v6556_v14 = vpack.c.bf16 %v7050_v53, %v7050_v53  ;;  %v5773_v33 = vsel %vm1526_vm12, %v7050_v53, 0.0  ;;  %v5837_v22 = vmul.f32 %v7050_v53, %v7050_v53  ;;  %v7052_v21 = vadd.f32 %v5474_v42, %v9263_v54 }
 0x26a   : > { %5736 = vst.msk [vmem:[%s9277_s6 + $0x28] sm:$0xf] %vm865_vm7, %v6558_v25  ;;  %v5839_v62 = vmul.f32 %v7049_v32, %v7049_v32  ;;  %v5774_v7 = vadd.f32 %v5773_v33, %v5772_v8  ;;  %v5875_v44 = vadd.f32 %v5874_v58, %v5873_v29  ;;  %v6559_v27 = vpack.c.bf16 %v7051_v2, %v7051_v2 }
 0x26b   : > { %5734 = vst.msk [vmem:[%s9277_s6 + $0x20] sm:$0xf] %vm865_vm7, %v6556_v14  ;;  %v5876_v49 = vsel %vm1526_vm12, %v5837_v22, 0.0  ;;  %v6557_v56 = vpack.c.bf16 %v7052_v21, %v7052_v21  ;;  %v5775_v10 = vsel %vm1526_vm12, %v7052_v21, 0.0  ;;  %v5838_v45 = vmul.f32 %v7052_v21, %v7052_v21 }
 0x26c   : > { %v5877_v40 = vadd.f32 %v5876_v49, %v5875_v44  ;;  %5737 = vst.msk [vmem:[%s9277_s6 + $0x2c] sm:$0xf] %vm865_vm7, %v6559_v27  ;;  %v5776_v57 = vadd.f32 %v5775_v10, %v5774_v7  ;;  %v5777_v20 = vsel %vm1526_vm12, %v7049_v32, 0.0  ;;  %v5840_v36 = vmul.f32 %v7051_v2, %v7051_v2 }
 0x26d   : > { %v7021_v18 = vpop.f32.mrb[12].mxu0  ;;  %5735 = vst.msk [vmem:[%s9277_s6 + $0x24] sm:$0xf] %vm865_vm7, %v6557_v56  ;;  %v5878_v34 = vsel %vm1526_vm12, %v5838_v45, 0.0  ;;  %v5880_v51 = vsel %vm1526_vm12, %v5839_v62, 0.0 }
 0x26e   : > { %v7053_v54 = vadd.f32 %v7021_v18, %v9265_v46  ;;  %v5487_v60 = vpop.f32.mrb[13].mxu0  ;;  %v5778_v30 = vadd.f32 %v5777_v20, %v5776_v57  ;;  %v5879_v35 = vadd.f32 %v5878_v34, %v5877_v40  ;;  %v5779_v46 = vsel %vm1526_vm12, %v7051_v2, 0.0 }
 0x26f   : > { %v7054_v52 = vadd.f32 %v5487_v60, %v9267_v28  ;;  %v7022_v4 = vpop.f32.mrb[14].mxu0  ;;  %v5882_v17 = vsel %vm1526_vm12, %v5840_v36, 0.0 }
 0x270   : > { %v6562_v38 = vpack.c.bf16 %v7053_v54, %v7053_v54  ;;  %v5490_v48 = vpop.f32.mrb[15].mxu0  ;;  %v5881_v0 = vadd.f32 %v5880_v51, %v5879_v35  ;;  %v5780_v61 = vadd.f32 %v5779_v46, %v5778_v30  ;;  %v7055_v28 = vadd.f32 %v7022_v4, %v9269_v41 }
 0x271   : > { %v6560_v3 = vpack.c.bf16 %v7054_v52, %v7054_v52  ;;  %v5781_v13 = vsel %vm1526_vm12, %v7054_v52, 0.0  ;;  %v5841_v39 = vmul.f32 %v7054_v52, %v7054_v52  ;;  %v7056_v47 = vadd.f32 %v5490_v48, %v9271_v15 }
 0x272   : > { %5740 = vst.msk [vmem:[%s9277_s6 + $0x38] sm:$0xf] %vm865_vm7, %v6562_v38  ;;  %v5782_v37 = vadd.f32 %v5781_v13, %v5780_v61  ;;  %v5883_v16 = vadd.f32 %v5882_v17, %v5881_v0  ;;  %v6563_v63 = vpack.c.bf16 %v7055_v28, %v7055_v28  ;;  %v5843_v12 = vmul.f32 %v7053_v54, %v7053_v54 }
 0x273   : > { %5738 = vst.msk [vmem:[%s9277_s6 + $0x30] sm:$0xf] %vm865_vm7, %v6560_v3  ;;  %v5884_v6 = vsel %vm1526_vm12, %v5841_v39, 0.0  ;;  %v6561_v19 = vpack.c.bf16 %v7056_v47, %v7056_v47  ;;  %v5783_v11 = vsel %vm1526_vm12, %v7056_v47, 0.0  ;;  %v5842_v43 = vmul.f32 %v7056_v47, %v7056_v47 }
 0x274   : > { %v5885_v32 = vadd.f32 %v5884_v6, %v5883_v16  ;;  %5741 = vst.msk [vmem:[%s9277_s6 + $0x3c] sm:$0xf] %vm865_vm7, %v6563_v63  ;;  %v5844_v41 = vmul.f32 %v7055_v28, %v7055_v28  ;;  %v5784_v15 = vadd.f32 %v5783_v11, %v5782_v37  ;;  %v5785_v50 = vsel %vm1526_vm12, %v7053_v54, 0.0 }
 0x275   : > { %v7025_v5 = vpop.f32.mrb[16].mxu0  ;;  %5739 = vst.msk [vmem:[%s9277_s6 + $0x34] sm:$0xf] %vm865_vm7, %v6561_v19  ;;  %v5886_v24 = vsel %vm1526_vm12, %v5842_v43, 0.0  ;;  %v5888_v42 = vsel %vm1526_vm12, %v5843_v12, 0.0  ;;  %v5787_v33 = vsel %vm1526_vm12, %v7055_v28, 0.0 }
 0x276   : > { %v5503_v55 = vpop.f32.mrb[17].mxu0  ;;  %v5786_v26 = vadd.f32 %v5785_v50, %v5784_v15  ;;  %v5887_v59 = vadd.f32 %v5886_v24, %v5885_v32  ;;  %v5890_v22 = vsel %vm1526_vm12, %v5844_v41, 0.0 }
 0x277   : > { %v7026_v53 = vpop.f32.mrb[18].mxu0 }
 0x278   : > { %v5506_v25 = vpop.f32.mrb[19].mxu0  ;;  %v5889_v29 = vadd.f32 %v5888_v42, %v5887_v59  ;;  %v5788_v58 = vadd.f32 %v5787_v33, %v5786_v26 }
 0x27a   : > { %v6889_v23 = vpop.f32.mrb[16].mxu1  ;;  %v5891_v7 = vadd.f32 %v5890_v22, %v5889_v29 }
 0x27b   : > { %v3478_v1 = vpop.f32.mrb[17].mxu1  ;;  %v7057_v9 = vadd.f32 %v7025_v5, %v6889_v23 }
 0x27c   : > { %v6890_v31 = vpop.f32.mrb[18].mxu1  ;;  %v7058_v14 = vadd.f32 %v5503_v55, %v3478_v1 }
 0x27d   : > { %v6566_v8 = vpack.c.bf16 %v7057_v9, %v7057_v9  ;;  %v3481_v2 = vpop.f32.mrb[19].mxu1  ;;  %v7059_v44 = vadd.f32 %v7026_v53, %v6890_v31  ;;  %v7029_v45 = vpop.f32.mrb[20].mxu0  ;;  %v5847_v18 = vmul.f32 %v7057_v9, %v7057_v9  ;;  %v5793_v38 = vsel %vm1526_vm12, %v7057_v9, 0.0 }
 0x27e   : > { %v6564_v21 = vpack.c.bf16 %v7058_v14, %v7058_v14  ;;  %v5789_v49 = vsel %vm1526_vm12, %v7058_v14, 0.0  ;;  %v5845_v62 = vmul.f32 %v7058_v14, %v7058_v14  ;;  %v7060_v27 = vadd.f32 %v5506_v25, %v3481_v2  ;;  %v5519_v54 = vpop.f32.mrb[21].mxu0 }
 0x27f   : > { %5744 = vst.msk [vmem:[%s9277_s6 + $0x48] sm:$0xf] %vm865_vm7, %v6566_v8  ;;  %v5790_v56 = vadd.f32 %v5789_v49, %v5788_v58  ;;  %v6567_v57 = vpack.c.bf16 %v7059_v44, %v7059_v44  ;;  %v7030_v52 = vpop.f32.mrb[22].mxu0  ;;  %v5848_v48 = vmul.f32 %v7059_v44, %v7059_v44  ;;  %v5896_v39 = vsel %vm1526_vm12, %v5847_v18, 0.0 }
 0x280   : > { %5742 = vst.msk [vmem:[%s9277_s6 + $0x40] sm:$0xf] %vm865_vm7, %v6564_v21  ;;  %v5892_v10 = vsel %vm1526_vm12, %v5845_v62, 0.0  ;;  %v6565_v60 = vpack.c.bf16 %v7060_v27, %v7060_v27  ;;  %v5791_v20 = vsel %vm1526_vm12, %v7060_v27, 0.0  ;;  %v5846_v36 = vmul.f32 %v7060_v27, %v7060_v27  ;;  %v5522_v35 = vpop.f32.mrb[23].mxu0 }
 0x281   : > { %v5893_v40 = vadd.f32 %v5892_v10, %v5891_v7  ;;  %5745 = vst.msk [vmem:[%s9277_s6 + $0x4c] sm:$0xf] %vm865_vm7, %v6567_v57  ;;  %v5792_v4 = vadd.f32 %v5791_v20, %v5790_v56  ;;  %v5795_v17 = vsel %vm1526_vm12, %v7059_v44, 0.0  ;;  %v5898_v43 = vsel %vm1526_vm12, %v5848_v48, 0.0 }
 0x282   : > { %v6893_v34 = vpop.f32.mrb[20].mxu1  ;;  %5743 = vst.msk [vmem:[%s9277_s6 + $0x44] sm:$0xf] %vm865_vm7, %v6565_v60  ;;  %v5894_v46 = vsel %vm1526_vm12, %v5846_v36, 0.0 }
 0x283   : > { %v3494_v51 = vpop.f32.mrb[21].mxu1  ;;  %v7061_v30 = vadd.f32 %v7029_v45, %v6893_v34  ;;  %v5794_v0 = vadd.f32 %v5793_v38, %v5792_v4  ;;  %v5895_v61 = vadd.f32 %v5894_v46, %v5893_v40 }
 0x284   : > { %v6894_v3 = vpop.f32.mrb[22].mxu1  ;;  %v7062_v13 = vadd.f32 %v5519_v54, %v3494_v51 }
 0x285   : > { %v6570_v28 = vpack.c.bf16 %v7061_v30, %v7061_v30  ;;  %v3497_v47 = vpop.f32.mrb[23].mxu1  ;;  %v5897_v63 = vadd.f32 %v5896_v39, %v5895_v61  ;;  %v5796_v12 = vadd.f32 %v5795_v17, %v5794_v0  ;;  %v7063_v19 = vadd.f32 %v7030_v52, %v6894_v3  ;;  %v7033_v32 = vpop.f32.mrb[24].mxu0 }
 0x286   : > { %v6568_v6 = vpack.c.bf16 %v7062_v13, %v7062_v13  ;;  %v5797_v37 = vsel %vm1526_vm12, %v7062_v13, 0.0  ;;  %v5849_v16 = vmul.f32 %v7062_v13, %v7062_v13  ;;  %v7064_v11 = vadd.f32 %v5522_v35, %v3497_v47  ;;  %v5535_v24 = vpop.f32.mrb[25].mxu0 }
 0x287   : > { %5748 = vst.msk [vmem:[%s9277_s6 + $0x58] sm:$0xf] %vm865_vm7, %v6570_v28  ;;  %v5851_v41 = vmul.f32 %v7061_v30, %v7061_v30  ;;  %v5798_v15 = vadd.f32 %v5797_v37, %v5796_v12  ;;  %v5899_v55 = vadd.f32 %v5898_v43, %v5897_v63  ;;  %v6571_v50 = vpack.c.bf16 %v7063_v19, %v7063_v19  ;;  %v7034_v1 = vpop.f32.mrb[26].mxu0 }
 0x288   : > { %5746 = vst.msk [vmem:[%s9277_s6 + $0x50] sm:$0xf] %vm865_vm7, %v6568_v6  ;;  %v5900_v5 = vsel %vm1526_vm12, %v5849_v16, 0.0  ;;  %v6569_v23 = vpack.c.bf16 %v7064_v11, %v7064_v11  ;;  %v5799_v53 = vsel %vm1526_vm12, %v7064_v11, 0.0  ;;  %v5850_v26 = vmul.f32 %v7064_v11, %v7064_v11  ;;  %v5538_v14 = vpop.f32.mrb[27].mxu0 }
 0x289   : > { %v5901_v9 = vadd.f32 %v5900_v5, %v5899_v55  ;;  %5749 = vst.msk [vmem:[%s9277_s6 + $0x5c] sm:$0xf] %vm865_vm7, %v6571_v50  ;;  %v5800_v25 = vadd.f32 %v5799_v53, %v5798_v15  ;;  %v5801_v33 = vsel %vm1526_vm12, %v7061_v30, 0.0  ;;  %v5852_v22 = vmul.f32 %v7063_v19, %v7063_v19 }
 0x28a   : > { %v6897_v59 = vpop.f32.mrb[24].mxu1  ;;  %5747 = vst.msk [vmem:[%s9277_s6 + $0x54] sm:$0xf] %vm865_vm7, %v6569_v23  ;;  %v5902_v29 = vsel %vm1526_vm12, %v5850_v26, 0.0  ;;  %v5904_v21 = vsel %vm1526_vm12, %v5851_v41, 0.0  ;;  %v5803_v44 = vsel %vm1526_vm12, %v7063_v19, 0.0 }
 0x28b   : > { %v3510_v42 = vpop.f32.mrb[25].mxu1  ;;  %v7065_v31 = vadd.f32 %v7033_v32, %v6897_v59  ;;  %v5802_v58 = vadd.f32 %v5801_v33, %v5800_v25  ;;  %v5903_v49 = vadd.f32 %v5902_v29, %v5901_v9  ;;  %v5906_v54 = vsel %vm1526_vm12, %v5852_v22, 0.0 }
 0x28c   : > { %v6898_v8 = vpop.f32.mrb[26].mxu1  ;;  %v7066_v2 = vadd.f32 %v5535_v24, %v3510_v42 }
 0x28d   : > { %v6574_v62 = vpack.c.bf16 %v7065_v31, %v7065_v31  ;;  %v3513_v7 = vpop.f32.mrb[27].mxu1  ;;  %v5905_v45 = vadd.f32 %v5904_v21, %v5903_v49  ;;  %v5804_v18 = vadd.f32 %v5803_v44, %v5802_v58  ;;  %v7067_v40 = vadd.f32 %v7034_v1, %v6898_v8  ;;  %v7037_v20 = vpop.f32.mrb[28].mxu0 }
 0x28e   : > { %v6572_v27 = vpack.c.bf16 %v7066_v2, %v7066_v2  ;;  %v5805_v56 = vsel %vm1526_vm12, %v7066_v2, 0.0  ;;  %v5853_v10 = vmul.f32 %v7066_v2, %v7066_v2  ;;  %v7068_v57 = vadd.f32 %v5538_v14, %v3513_v7  ;;  %v5551_v51 = vpop.f32.mrb[29].mxu0 }
 0x28f   : > { %5752 = vst.msk [vmem:[%s9277_s6 + $0x68] sm:$0xf] %vm865_vm7, %v6574_v62  ;;  %v5855_v36 = vmul.f32 %v7065_v31, %v7065_v31  ;;  %v5806_v34 = vadd.f32 %v5805_v56, %v5804_v18  ;;  %v5907_v52 = vadd.f32 %v5906_v54, %v5905_v45  ;;  %v6575_v4 = vpack.c.bf16 %v7067_v40, %v7067_v40  ;;  %v7038_v46 = vpop.f32.mrb[30].mxu0 }
 0x290   : > { %5750 = vst.msk [vmem:[%s9277_s6 + $0x60] sm:$0xf] %vm865_vm7, %v6572_v27  ;;  %v5908_v60 = vsel %vm1526_vm12, %v5853_v10, 0.0  ;;  %v6573_v30 = vpack.c.bf16 %v7068_v57, %v7068_v57  ;;  %v5807_v35 = vsel %vm1526_vm12, %v7068_v57, 0.0  ;;  %v5854_v38 = vmul.f32 %v7068_v57, %v7068_v57  ;;  %v5554_v61 = vpop.f32.mrb[31].mxu0 }
 0x291   : > { %v5909_v3 = vadd.f32 %v5908_v60, %v5907_v52  ;;  %5753 = vst.msk [vmem:[%s9277_s6 + $0x6c] sm:$0xf] %vm865_vm7, %v6575_v4  ;;  %v5808_v13 = vadd.f32 %v5807_v35, %v5806_v34  ;;  %v5809_v28 = vsel %vm1526_vm12, %v7065_v31, 0.0  ;;  %v5856_v47 = vmul.f32 %v7067_v40, %v7067_v40 }
 0x292   : > { %v6901_v48 = vpop.f32.mrb[28].mxu1  ;;  %5751 = vst.msk [vmem:[%s9277_s6 + $0x64] sm:$0xf] %vm865_vm7, %v6573_v30  ;;  %v5910_v17 = vsel %vm1526_vm12, %v5854_v38, 0.0  ;;  %v5912_v16 = vsel %vm1526_vm12, %v5855_v36, 0.0  ;;  %v5811_v43 = vsel %vm1526_vm12, %v7067_v40, 0.0 }
 0x293   : > { %v3526_v39 = vpop.f32.mrb[29].mxu1  ;;  %v7069_v0 = vadd.f32 %v7037_v20, %v6901_v48  ;;  %v5810_v63 = vadd.f32 %v5809_v28, %v5808_v13  ;;  %v5911_v12 = vadd.f32 %v5910_v17, %v5909_v3  ;;  %v5914_v23 = vsel %vm1526_vm12, %v5856_v47, 0.0 }
 0x294   : > { %v6902_v6 = vpop.f32.mrb[30].mxu1  ;;  %v7070_v37 = vadd.f32 %v5551_v51, %v3526_v39 }
 0x295   : > { %v6578_v19 = vpack.c.bf16 %v7069_v0, %v7069_v0  ;;  %v3529_v11 = vpop.f32.mrb[31].mxu1  ;;  %v5913_v15 = vadd.f32 %v5912_v16, %v5911_v12  ;;  %v5812_v55 = vadd.f32 %v5811_v43, %v5810_v63  ;;  %v7071_v50 = vadd.f32 %v7038_v46, %v6902_v6 }
 0x296   : > { %v6576_v5 = vpack.c.bf16 %v7070_v37, %v7070_v37  ;;  %v5813_v32 = vsel %vm1526_vm12, %v7070_v37, 0.0  ;;  %v5857_v41 = vmul.f32 %v7070_v37, %v7070_v37  ;;  %v7072_v24 = vadd.f32 %v5554_v61, %v3529_v11 }
 0x297   : > { %5756 = vst.msk [vmem:[%s9277_s6 + $0x78] sm:$0xf] %vm865_vm7, %v6578_v19  ;;  %v5814_v26 = vadd.f32 %v5813_v32, %v5812_v55  ;;  %v5915_v59 = vadd.f32 %v5914_v23, %v5913_v15  ;;  %v6579_v1 = vpack.c.bf16 %v7071_v50, %v7071_v50  ;;  %v5859_v9 = vmul.f32 %v7069_v0, %v7069_v0 }
 0x298   : > { %5754 = vst.msk [vmem:[%s9277_s6 + $0x70] sm:$0xf] %vm865_vm7, %v6576_v5  ;;  %v5916_v53 = vsel %vm1526_vm12, %v5857_v41, 0.0  ;;  %v6577_v25 = vpack.c.bf16 %v7072_v24, %v7072_v24  ;;  %v5815_v42 = vsel %vm1526_vm12, %v7072_v24, 0.0  ;;  %v5858_v31 = vmul.f32 %v7072_v24, %v7072_v24 }
 0x299   : > { %v5917_v14 = vadd.f32 %v5916_v53, %v5915_v59  ;;  %5757 = vst.msk [vmem:[%s9277_s6 + $0x7c] sm:$0xf] %vm865_vm7, %v6579_v1  ;;  %v5816_v33 = vadd.f32 %v5815_v42, %v5814_v26  ;;  %v5817_v22 = vsel %vm1526_vm12, %v7069_v0, 0.0  ;;  %v5860_v29 = vmul.f32 %v7071_v50, %v7071_v50 }
 0x29a   : > { %5755 = vst.msk [vmem:[%s9277_s6 + $0x74] sm:$0xf] %vm865_vm7, %v6577_v25  ;;  %v5918_v8 = vsel %vm1526_vm12, %v5858_v31, 0.0  ;;  %v5920_v58 = vsel %vm1526_vm12, %v5859_v9, 0.0  ;;  %v5819_v49 = vsel %vm1526_vm12, %v7071_v50, 0.0 }
 0x29b   : > { %v5818_v2 = vadd.f32 %v5817_v22, %v5816_v33  ;;  %v5919_v21 = vadd.f32 %v5918_v8, %v5917_v14  ;;  %v5922_v44 = vsel %vm1526_vm12, %v5860_v29, 0.0 }
 0x29d   : > { %v5820_v62 = vadd.f32 %v5819_v49, %v5818_v2  ;;  %v5921_v7 = vadd.f32 %v5920_v58, %v5919_v21 }
 0x29f   : > { %v5821_v27 = vrot.slane %v5820_v62, 4  ;;  %v5923_v56 = vadd.f32 %v5922_v44, %v5921_v7 }
 0x2a1   : > { %v5822_v10 = vadd.f32 %v5821_v27, %v5820_v62  ;;  %v5924_v45 = vrot.slane %v5923_v56, 4 }
 0x2a3   : > { %v5823_v18 = vrot.slane %v5822_v10, 2  ;;  %v5925_v40 = vadd.f32 %v5924_v45, %v5923_v56 }
 0x2a5   : > { %v5824_v57 = vadd.f32 %v5823_v18, %v5822_v10  ;;  %v5926_v54 = vrot.slane %v5925_v40, 2 }
 0x2a7   : > { %v5825_v60 = vrot.slane %v5824_v57, 1  ;;  %v5927_v20 = vadd.f32 %v5926_v54, %v5925_v40 }
 0x2a9   : > { %v5826_v36 = vadd.f32 %v5825_v60, %v5824_v57  ;;  %v5928_v34 = vrot.slane %v5927_v20, 1 }
 0x2ab   : > { %5828 = vst.msk [vmem:[%s299_s10] sm:$0x1] %vm333_vm1, %v5826_v36  ;;  %v5929_v52 = vadd.f32 %v5928_v34, %v5927_v20 }
 0x2ad   : > { %5930 = vst.msk [vmem:[%s299_s10 + $0x1] sm:$0x1] %vm333_vm1, %v5929_v52 }
 0x2ae PF: > { %s15_s17 = sadd.s32 1, %s7448_s17   ;;  %s9519_s15 = smov %s7444_s16 }
 0x2af   : > { %p12_p5 = scmp.ge.s32.totalorder %s15_s17, 4   ;;  %s9520_s16 = smov %s9522_s18 }
 0x2b1   :  { %14 = sbr.rel (!%p12_p5) target bundleno = 2 (0x2), region = 89 }

// kernel: encoder_forward.4
= control target key start
LH: loop header
LB: loop body
LE: loop exit
PB: predicated region body
PF: predicated region fallthrough
CT: control target
= control target key end

     0   :  { %s7766_s21 = smov 0   ;;  %s7768_s22 = smov 0   ;;  %s9839_s0 = inlined_call_operand.vmem [shape: bf16[2,16,16,4], index: 0, kind: input, shape index: {}]   ;;  %s9840_s1 = inlined_call_operand.vmem [shape: bf16[2,2,16,4], index: 1, kind: input, shape index: {}]   ;;  %s9841_s2 = inlined_call_operand.vmem [shape: bf16[9,4,8], index: 2, kind: input, shape index: {}]   ;;  %s9842_s3 = inlined_call_operand.vmem [shape: f32[1,4], index: 3, kind: input, shape index: {}]   ;;  %s9843_s4 = inlined_call_operand.vmem [shape: f32[1,4], index: 4, kind: input, shape index: {}]   ;;  %s9844_s5 = inlined_call_operand.vmem [shape: bf16[2,16,16,8], index: 5, kind: output, shape index: {0}]   ;;  %s9845_s6 = inlined_call_operand.vmem [shape: f32[2,1,2,8], index: 6, kind: output, shape index: {1}]  }
   0x1   :  { %s7770_s23 = smov 0  }
   0x2 LB: > { %s29_s24 = sadd.s32 1, %s7725_s22  ;;  %p6291_p0 = scmp.ge.s32.totalorder %s7729_s23, 1  ;;  %s7729_s23 = sphi %s7770_s23, %s17_s23   ;;  %s7725_s22 = sphi %s7768_s22, %s9942_s22   ;;  %s7721_s21 = sphi %s7766_s21, %s9941_s21  }
   0x3   : > { %p31_p1 = scmp.ge.s32.totalorder %s29_s24, 2  ;;  %p257_p2 = scmp.lt.s32.totalorder %s7729_s23, 3 }
   0x5   : > { %s9944_s24 = smov (%p31_p1, %s29_s24), 0  ;;  %p258_p3 = pnand %p6291_p0, %p257_p2 }
   0x7   : > { %261 = sbr.rel (%p258_p3) target bundleno = 714 (0x2ca), region = 40 }
   0xe   : > { %v6335_v0 = vld [vmem:[%s9841_s2 + $0x2] sm:$0x3]  ;;  %vm1771_vm0 = vcmask 1041408   ;;  %v6482_v1 = vld [vmem:[%s9841_s2 + $0x8] sm:$0x3]  ;;  %p315_p4 = scmp.lt.s32.totalorder %s7721_s21, 1 }
   0xf   : > { %7576 = vmatprep.subr.msk.bf16.mxu1 %vm1771_vm0, %v6335_v0  ;;  %7580 = vmatprep.subr.msk.bf16.mxu0 %vm1771_vm0, %v6482_v1  ;;  %v1773_v2 = vsel %vm1771_vm0, %v6335_v0, 0  ;;  %v7794_v3 = vsel %vm1771_vm0, %v6482_v1, 0  ;;  %vm529_vm1 = vcmask 24576   ;;  %vm530_vm2 = vsmask.f32 256 }
  0x10   : > { %9865 = vst [vmem:[#allocation3_spill] sm:$0xff] %v7794_v3  ;;  %7013 = vmatpush3.bf16.msra.mxu1 %v1773_v2  ;;  %7149 = vmatpush3.bf16.msra.mxu0 %v7794_v3  ;;  %s9946_s21 = smov (!%p315_p4, %s7721_s21), 1  ;;  %vm7800_vm3 = vmand %vm529_vm1, %vm530_vm2  ;;  %v532_v5 = vld [vmem:[#allocation2] sm:$0x1]  ;;  %vm586_vm4 = vsmask.f32 7938 }
  0x11   : > { %v533_v6 = vsel %vm7800_vm3, 0, %v532_v5  ;;  %vm7807_vm5 = vmand %vm529_vm1, %vm586_vm4  ;;  %v588_v8 = vld [vmem:[#allocation2 + $0x8] sm:$0x1]  ;;  %s6713_s29 = sshll.u32 %s9946_s21, 7  ;;  %s6714_s30 = sshll.u32 %s9946_s21, 4  ;;  %vm1061_vm7 = vcmask 27648  }
  0x12   : > { %534 = vst [vmem:[#allocation2] sm:$0x1] %v533_v6  ;;  %v589_v9 = vsel %vm7807_vm5, 0, %v588_v8  ;;  %s7820_s9 = scalar_lea.vmem %s9839_s0, %s6713_s29  ;;  %s7825_s12 = scalar_lea.vmem %s9840_s1, %s6714_s30  ;;  %vm738_vm6 = vsmask.f32 4368  ;;  %vm7862_vm9 = vmand %vm1061_vm7, %vm586_vm4  ;;  %vm1722_vm12 = vcmask 31744  }
  0x13   : > { %590 = vst [vmem:[#allocation2 + $0x8] sm:$0x1] %v589_v9  ;;  %v1176_v10 = vld [vmem:[%s7825_s12] sm:$0xf]  ;;  %v1177_v11 = vld [vmem:[%s7825_s12 + $0x4] sm:$0xf]  ;;  %vm7846_vm8 = vmor %vm530_vm2, %vm738_vm6  ;;  %s9688_s10 = scalar_lea.vmem %s9844_s5, %s6713_s29 }
  0x14   : > { %v7832_v12 = vld [vmem:[%s9842_s3] ss:$0 sm:$0xff]  ;;  %v1179_v13 = vshrl.u32 %v1176_v10, 16  ;;  %v1182_v14 = vshll.u32 %v1176_v10, 16  ;;  %v1187_v15 = vshrl.u32 %v1177_v11, 16  ;;  %v1190_v16 = vshll.u32 %v1177_v11, 16 }
  0x15   : > { %v6781_v17 = vld [vmem:[%s7820_s9] sm:$0xff]   ;;  %v6844_v19 = vld [vmem:[%s7820_s9 + $0x8] sm:$0xff]   ;;  %v591_v23 = vld [vmem:[#allocation2 + $0x14] sm:$0x1]  ;;  %vm1285_vm10 = vsmask.f32 3328 }
  0x16   : > { %v7838_v18 = vld [vmem:[%s9843_s4] ss:$0 sm:$0xff]  ;;  %v6782_v20 = vunpack.c.l.bf16 %v6781_v17  ;;  %v6783_v21 = vunpack.c.h.bf16 %v6781_v17  ;;  %v535_v22 = vld [vmem:[#allocation2 + $0xc] sm:$0x1]  ;;  %v6786_v25 = vunpack.c.l.bf16 %v6844_v19  ;;  %v6787_v26 = vunpack.c.h.bf16 %v6844_v19  ;;  %v7858_v32 = vld [vmem:[%s9841_s2 + $0xa] sm:$0x3] }
  0x17   : > { %v1268_v24 = vld [vmem:[%s9841_s2] sm:$0x3]  ;;  %v1181_v28 = vrot.slane %v1179_v13, 7  ;;  %v1189_v29 = vrot.slane %v1187_v15, 7  ;;  %v536_v30 = vsel %vm7800_vm3, 0, %v535_v22  ;;  %v592_v31 = vsel %vm7807_vm5, 0, %v591_v23  ;;  %7582 = vmatprep.subr.msk.bf16.mxu0 %vm1771_vm0, %v7858_v32 }
  0x18   : > { %7577 = vmatprep.subr.msk.bf16.mxu1 %vm1771_vm0, %v1268_v24  ;;  %v426_v34 = vmul.f32 %v6782_v20, %v7832_v12  ;;  %v427_v35 = vmul.f32 %v6783_v21, %v7832_v12  ;;  %537 = vst [vmem:[#allocation2 + $0xc] sm:$0x1] %v536_v30  ;;  %593 = vst [vmem:[#allocation2 + $0x14] sm:$0x1] %v592_v31  ;;  %v428_v36 = vmul.f32 %v6786_v25, %v7832_v12  ;;  %v538_v37 = vld [vmem:[#allocation2 + $0x18] sm:$0x1] }
  0x19   : > { %v1184_v38 = vor.u32 %v1182_v14, %v1181_v28  ;;  %v1185_v39 = vrot.slane %v1181_v28, 4  ;;  %v1192_v40 = vor.u32 %v1190_v16, %v1189_v29  ;;  %v1194_v41 = vrot.slane %v1189_v29, 4  ;;  %v1198_v42 = vld [vmem:[#allocation2] sm:$0xf]  ;;  %v6845_v49 = vld [vmem:[%s7820_s9 + $0x10] sm:$0xff]   ;;  %v7898_v14 = vld [vmem:[%s7820_s9 + $0x18] sm:$0xff]  }
  0x1a   : > { %v1202_v43 = vld [vmem:[#allocation2 + $0x8] sm:$0x1]  ;;  %v465_v44 = vadd.f32 %v7838_v18, %v426_v34  ;;  %v466_v45 = vadd.f32 %v7838_v18, %v427_v35  ;;  %v429_v46 = vmul.f32 %v6787_v26, %v7832_v12  ;;  %v467_v47 = vadd.f32 %v7838_v18, %v428_v36  ;;  %v594_v48 = vld [vmem:[#allocation2 + $0x20] sm:$0x1]  ;;  %v541_v54 = vld [vmem:[#allocation2 + $0x24] sm:$0x1] }
  0x1b   : > { %v1193_v50 = vsel %vm7846_vm8, %v1185_v39, %v1192_v40  ;;  %v1199_v51 = vsel %vm7862_vm9, %v1184_v38, %v1198_v42  ;;  %v1203_v52 = vsel %vm7800_vm3, %v1194_v41, %v1202_v43  ;;  %v539_v53 = vsel %vm7800_vm3, 0, %v538_v37  ;;  %v597_v59 = vld [vmem:[#allocation2 + $0x2c] sm:$0x1]  ;;  %v7901_v15 = vld [vmem:[%s7820_s9 + $0x20] sm:$0xff]   ;;  %s6298_s29 = sshll.u32 %s9946_s21, 1 }
  0x1c   : > { %1200 = vst [vmem:[#allocation2] sm:$0xf] %v1199_v51  ;;  %1201 = vst.msk [vmem:[#allocation2 + $0x4] sm:$0xf] %vm1061_vm7, %v1193_v50  ;;  %v497_v55 = vmax.f32 %v465_v44, 0.0  ;;  %v498_v56 = vmax.f32 %v466_v45, 0.0  ;;  %v468_v57 = vadd.f32 %v7838_v18, %v429_v46  ;;  %v6790_v61 = vunpack.c.l.bf16 %v6845_v49  ;;  %s353_s14 = scalar_lea.vmem %s9845_s6, %s6298_s29 }
  0x1d   : > { %1204 = vst [vmem:[#allocation2 + $0x8] sm:$0x1] %v1203_v52  ;;  %v499_v58 = vmax.f32 %v467_v47, 0.0  ;;  %540 = vst [vmem:[#allocation2 + $0x18] sm:$0x1] %v539_v53  ;;  %v595_v60 = vsel %vm7807_vm5, 0, %v594_v48  ;;  %v6791_v62 = vunpack.c.h.bf16 %v6845_v49  ;;  %v6794_v30 = vunpack.c.l.bf16 %v7898_v14 }
  0x1e   : > { %vm1286_vm11 = vsmask.f32 7440  ;;  %v6716_v63 = vpack.c.bf16 %v497_v55, %v497_v55  ;;  %v6717_v0 = vpack.c.bf16 %v498_v56, %v498_v56  ;;  %v500_v1 = vmax.f32 %v468_v57, 0.0  ;;  %596 = vst [vmem:[#allocation2 + $0x20] sm:$0x1] %v595_v60 }
  0x1f   : > { %v6718_v2 = vpack.c.bf16 %v499_v58, %v499_v58  ;;  %v430_v5 = vmul.f32 %v6790_v61, %v7832_v12  ;;  %v431_v6 = vmul.f32 %v6791_v62, %v7832_v12  ;;  %v542_v8 = vsel %vm7800_vm3, 0, %v541_v54  ;;  %v1063_v39 = vld [vmem:[#allocation2 + $0xc] sm:$0xf]  ;;  %v1068_v48 = vld [vmem:[#allocation2 + $0x14] sm:$0x1]  ;;  %vm7913_vm13 = vmor %vm1285_vm10, %vm1286_vm11 }
  0x20   : > { %v598_v9 = vsel %vm7807_vm5, 0, %v597_v59  ;;  %v741_v10 = vshrl.u32 %v6716_v63, 16  ;;  %v749_v11 = vshrl.u32 %v6717_v0, 16  ;;  %v7895_v13 = vsel %vm1771_vm0, %v1268_v24, 0  ;;  %543 = vst [vmem:[#allocation2 + $0x24] sm:$0x1] %v542_v8 }
  0x21   : > { %599 = vst [vmem:[#allocation2 + $0x2c] sm:$0x1] %v598_v9  ;;  %v744_v16 = vshll.u32 %v6716_v63, 16  ;;  %v752_v17 = vshll.u32 %v6717_v0, 16  ;;  %v6719_v19 = vpack.c.bf16 %v500_v1, %v500_v1  ;;  %v758_v20 = vshrl.u32 %v6718_v2, 16 }
  0x22   : > { %v743_v21 = vrot.slane %v741_v10, 7  ;;  %v751_v22 = vrot.slane %v749_v11, 7  ;;  %v761_v23 = vshll.u32 %v6718_v2, 16  ;;  %v469_v25 = vadd.f32 %v7838_v18, %v430_v5  ;;  %v7926_v10 = vld [vmem:[%s7820_s9 + $0x28] sm:$0xff]  }
  0x23   : > { %v1236_v26 = vld [vmem:[#allocation2] sm:$0xf]  ;;  %v1237_v28 = vld [vmem:[#allocation2 + $0x4] sm:$0xf]  ;;  %v470_v24 = vadd.f32 %v7838_v18, %v431_v6  ;;  %v6795_v31 = vunpack.c.h.bf16 %v7898_v14  ;;  %v6798_v34 = vunpack.c.l.bf16 %v7901_v15  ;;  %v6799_v43 = vunpack.c.h.bf16 %v7901_v15 }
  0x24   : > { %v1269_v29 = vld [vmem:[#allocation2 + $0x8] sm:$0x1]  ;;  %v1289_v35 = vshrl.u32 %v1236_v26, 16  ;;  %v1292_v36 = vshll.u32 %v1236_v26, 16  ;;  %v1298_v37 = vshll.u32 %v1237_v28, 16  ;;  %v1302_v38 = vshrl.u32 %v1237_v28, 16 }
  0x25   : > { %v1308_v40 = vshll.u32 %v1269_v29, 16  ;;  %v746_v41 = vor.u32 %v744_v16, %v743_v21  ;;  %v747_v42 = vrot.slane %v743_v21, 4  ;;  %v754_v50 = vor.u32 %v752_v17, %v751_v22  ;;  %v1071_v61 = vld [vmem:[#allocation2 + $0x18] sm:$0xf]  ;;  %v1075_v17 = vld [vmem:[#allocation2 + $0x20] sm:$0x1] }
  0x26   : > { %v1291_v44 = vrot.slane %v1289_v35, 4  ;;  %v1294_v45 = vrot.slane %v1292_v36, 5  ;;  %v1300_v46 = vrot.slane %v1298_v37, 5  ;;  %v1304_v47 = vrot.slane %v1302_v38, 4 }
  0x27   : > { %v1310_v49 = vrot.slane %v1308_v40, 5  ;;  %v756_v51 = vrot.slane %v751_v22, 4  ;;  %v1064_v52 = vsel %vm7862_vm9, %v746_v41, %v1063_v39  ;;  %v760_v55 = vrot.slane %v758_v20, 7 }
  0x28   : > { %v1295_v53 = vor.u32 %v1294_v45, %v1291_v44  ;;  %v1305_v54 = vor.u32 %v1304_v47, %v1300_v46  ;;  %1065 = vst [vmem:[#allocation2 + $0xc] sm:$0xf] %v1064_v52  ;;  %v766_v56 = vshrl.u32 %v6719_v19, 16  ;;  %v755_v58 = vsel %vm7846_vm8, %v747_v42, %v754_v50 }
  0x29   : > { %v1069_v59 = vsel %vm7800_vm3, %v756_v51, %v1068_v48  ;;  %v769_v60 = vshll.u32 %v6719_v19, 16  ;;  %v501_v62 = vmax.f32 %v469_v25, 0.0  ;;  %1067 = vst.msk [vmem:[#allocation2 + $0x10] sm:$0xf] %vm1061_vm7, %v755_v58  ;;  %v763_v1 = vor.u32 %v761_v23, %v760_v55 }
  0x2a   : > { %v1296_v63 = vrot.slane %v1295_v53, 4  ;;  %v1306_v0 = vrot.slane %v1305_v54, 4  ;;  %1070 = vst [vmem:[#allocation2 + $0x14] sm:$0x1] %v1069_v59  ;;  %v764_v2 = vrot.slane %v760_v55, 4  ;;  %v768_v5 = vrot.slane %v766_v56, 7 }
  0x2b   : > { %v502_v6 = vmax.f32 %v470_v24, 0.0  ;;  %v7922_v8 = vpack.c.bf16 %v501_v62, %v501_v62  ;;  %v432_v9 = vmul.f32 %v6794_v30, %v7832_v12  ;;  %v1072_v16 = vsel %vm7862_vm9, %v763_v1, %v1071_v61 }
  0x2c   : > { %v1301_v11 = vsel %vm7913_vm13, %v1296_v63, %v1300_v46  ;;  %v1311_v14 = vsel %vm7913_vm13, %v1306_v0, %v1310_v49  ;;  %v433_v19 = vmul.f32 %v6795_v31, %v7832_v12  ;;  %v771_v21 = vor.u32 %v769_v60, %v768_v5  ;;  %1073 = vst [vmem:[#allocation2 + $0x18] sm:$0xf] %v1072_v16 }
  0x2d   : > { %v6336_v20 = vcombine.low %v1301_v11, %v1311_v14  ;;  %v773_v22 = vrot.slane %v768_v5, 4  ;;  %v7935_v23 = vpack.c.bf16 %v502_v6, %v502_v6  ;;  %v7939_v25 = vsel %vm1771_vm0, %v7858_v32, 0 }
  0x2e   : > { %v775_v26 = vshrl.u32 %v7922_v8, 16  ;;  %v778_v28 = vshll.u32 %v7922_v8, 16  ;;  %v6802_v29 = vunpack.c.l.bf16 %v7926_v10  ;;  %v772_v31 = vsel %vm7846_vm8, %v764_v2, %v771_v21 }
  0x2f   : > { %7014 = vmatprep.mubr.msk.bf16.mxu1 %vm1722_vm12, %v6336_v20  ;;  %v1238_v24 = vld [vmem:[#allocation2 + $0xc] sm:$0xf]  ;;  %v1076_v35 = vsel %vm7800_vm3, %v773_v22, %v1075_v17  ;;  %v783_v36 = vshrl.u32 %v7935_v23, 16  ;;  %v786_v32 = vshll.u32 %v7935_v23, 16  ;;  %1074 = vst.msk [vmem:[#allocation2 + $0x1c] sm:$0xf] %vm1061_vm7, %v772_v31  ;;  %v7955_v45 = vadd.f32 %v7838_v18, %v432_v9 }
  0x30   : > { %v3043_v30 = vld [vmem:[#allocation2 + $0xc] sm:$0xf]  ;;  %v1313_v37 = vshrl.u32 %v1238_v24, 16  ;;  %v1316_v38 = vshll.u32 %v1238_v24, 16  ;;  %1077 = vst [vmem:[#allocation2 + $0x20] sm:$0x1] %v1076_v35  ;;  %v7958_v46 = vadd.f32 %v7838_v18, %v433_v19  ;;  %v7963_v47 = vmul.f32 %v6798_v34, %v7832_v12 }
  0x31   : > { %v3092_v39 = vshrl.u32 %v3043_v30, 16  ;;  %v3095_v40 = vshll.u32 %v3043_v30, 16  ;;  %v1239_v41 = vld [vmem:[#allocation2 + $0x10] sm:$0xf]  ;;  %v1270_v42 = vld [vmem:[#allocation2 + $0x14] sm:$0x1]  ;;  %v7968_v48 = vmul.f32 %v6799_v43, %v7832_v12  ;;  %v6803_v56 = vunpack.c.h.bf16 %v7926_v10 }
  0x32   : > { %v7952_v44 = vld [vmem:[#allocation2 + $0x10] sm:$0xf]  ;;  %v1315_v49 = vrot.slane %v1313_v37, 4  ;;  %v1318_v50 = vrot.slane %v1316_v38, 5  ;;  %v1322_v51 = vshll.u32 %v1239_v41, 16  ;;  %v1326_v52 = vshrl.u32 %v1239_v41, 16 }
  0x33   : > { %v7970_v53 = vld [vmem:[#allocation2 + $0x14] sm:$0x1]  ;;  %v1332_v54 = vshll.u32 %v1270_v42, 16  ;;  %v3094_v55 = vrot.slane %v3092_v39, 4  ;;  %v7974_v58 = vmul.f32 %v6802_v29, %v7832_v12  ;;  %v3097_v61 = vrot.slane %v3095_v40, 5 }
  0x34   : > { %v1319_v34 = vor.u32 %v1318_v50, %v1315_v49  ;;  %v1324_v59 = vrot.slane %v1322_v51, 5  ;;  %v1328_v60 = vrot.slane %v1326_v52, 4  ;;  %v3101_v43 = vshll.u32 %v7952_v44, 16  ;;  %v3046_v0 = vld [vmem:[#allocation2 + $0x18] sm:$0xf] }
  0x35   : > { %v1334_v15 = vrot.slane %v1332_v54, 5  ;;  %v3105_v62 = vshrl.u32 %v7952_v44, 16  ;;  %v3111_v63 = vshll.u32 %v7970_v53, 16  ;;  %v3098_v5 = vor.u32 %v3097_v61, %v3094_v55  ;;  %v1240_v41 = vld [vmem:[#allocation2 + $0x18] sm:$0xf] }
  0x36   : > { %v1320_v1 = vrot.slane %v1319_v34, 4  ;;  %v1329_v2 = vor.u32 %v1328_v60, %v1324_v59  ;;  %v3835_v6 = vrot.slane %v7952_v44, 5  ;;  %v3103_v9 = vrot.slane %v3101_v43, 5  ;;  %v7981_v17 = vld [vmem:[#allocation2 + $0x1c] sm:$0xf] }
  0x37   : > { %v3107_v11 = vrot.slane %v3105_v62, 4  ;;  %v3113_v14 = vrot.slane %v3111_v63, 5  ;;  %v3838_v16 = vrot.slane %v7970_v53, 5  ;;  %v3099_v21 = vrot.slane %v3098_v5, 4  ;;  %v7985_v22 = vld [vmem:[#allocation2 + $0x20] sm:$0x1] }
  0x38   : > { %v1325_v19 = vsel %vm7913_vm13, %v1320_v1, %v1324_v59  ;;  %v1330_v20 = vrot.slane %v1329_v2, 4  ;;  %v3116_v29 = vshrl.u32 %v3046_v0, 16  ;;  %v3119_v30 = vshll.u32 %v3046_v0, 16  ;;  %v1241_v42 = vld [vmem:[#allocation2 + $0x1c] sm:$0xf] }
  0x39   : > { %v3108_v24 = vor.u32 %v3107_v11, %v3103_v9  ;;  %v3125_v31 = vshll.u32 %v7981_v17, 16  ;;  %v3129_v35 = vshrl.u32 %v7981_v17, 16  ;;  %v3104_v38 = vsel %vm7913_vm13, %v3099_v21, %v3103_v9  ;;  %v1271_v54 = vld [vmem:[#allocation2 + $0x20] sm:$0x1] }
  0x3a   : > { %v1335_v37 = vsel %vm7913_vm13, %v1330_v20, %v1334_v15  ;;  %v3118_v39 = vrot.slane %v3116_v29, 4  ;;  %v3135_v40 = vshll.u32 %v7985_v22, 16  ;;  %v3121_v51 = vrot.slane %v3119_v30, 5 }
  0x3b   : > { %v6337_v49 = vcombine.low %v1325_v19, %v1335_v37  ;;  %v3109_v50 = vrot.slane %v3108_v24, 4  ;;  %v3127_v52 = vrot.slane %v3125_v31, 5  ;;  %v3131_v55 = vrot.slane %v3129_v35, 4  ;;  %v1078_v35 = vld [vmem:[#allocation2 + $0x24] sm:$0xf] }
  0x3c   : > { %v3137_v34 = vrot.slane %v3135_v40, 5  ;;  %v3842_v59 = vrot.slane %v7981_v17, 5  ;;  %v3845_v60 = vrot.slane %v7985_v22, 5  ;;  %v3122_v15 = vor.u32 %v3121_v51, %v3118_v39 }
  0x3d   : > { %7015 = vmatmul.mubr.msk.bf16.vlgmr.msra.gmra.mrb[0].mxu1 %vm1722_vm12, %v6337_v49  ;;  %v3114_v61 = vsel %vm7913_vm13, %v3109_v50, %v3113_v14  ;;  %v1337_v43 = vshrl.u32 %v1240_v41, 16  ;;  %v1340_v62 = vshll.u32 %v1240_v41, 16  ;;  %v3132_v0 = vor.u32 %v3131_v55, %v3127_v52  ;;  %v544_v41 = vld [vmem:[#allocation2 + $0x30] sm:$0x1] }
  0x3e   : > { %v6483_v63 = vcombine.low %v3104_v38, %v3114_v61  ;;  %7047 = vmatpush3.bf16.msra.mxu1 %v7895_v13  ;;  %v8002_v1 = vrot.slane %v3842_v59, 4  ;;  %v1346_v2 = vshll.u32 %v1241_v42, 16  ;;  %v3123_v5 = vrot.slane %v3122_v15, 4 }
  0x3f   : > { %v1339_v9 = vrot.slane %v1337_v43, 4  ;;  %v1342_v11 = vrot.slane %v1340_v62, 5  ;;  %v1350_v19 = vshrl.u32 %v1241_v42, 16  ;;  %v3133_v20 = vrot.slane %v3132_v0, 4  ;;  %v600_v42 = vld [vmem:[#allocation2 + $0x38] sm:$0x1] }
  0x40   : > { %7150 = vmatprep.mubr.msk.bf16.mxu0 %vm1722_vm12, %v6483_v63  ;;  %v1348_v14 = vrot.slane %v1346_v2, 5  ;;  %v1356_v21 = vshll.u32 %v1271_v54, 16  ;;  %v777_v29 = vrot.slane %v775_v26, 7  ;;  %v3128_v13 = vsel %vm7913_vm13, %v3123_v5, %v3127_v52  ;;  %v1082_v52 = vld [vmem:[#allocation2 + $0x2c] sm:$0x1] }
  0x41   : > { %v1343_v24 = vor.u32 %v1342_v11, %v1339_v9  ;;  %v1352_v30 = vrot.slane %v1350_v19, 4  ;;  %v785_v31 = vrot.slane %v783_v36, 7  ;;  %v3138_v37 = vsel %vm7913_vm13, %v3133_v20, %v3137_v34  ;;  %v547_v54 = vld [vmem:[#allocation2 + $0x3c] sm:$0x1]  ;;  %v603_v63 = vld [vmem:[#allocation2 + $0x44] sm:$0x1] }
  0x42   : > { %v1358_v38 = vrot.slane %v1356_v21, 5  ;;  %v780_v39 = vor.u32 %v778_v28, %v777_v29  ;;  %v781_v40 = vrot.slane %v777_v29, 4  ;;  %v6484_v26 = vcombine.low %v3128_v13, %v3138_v37  ;;  %v8024_v28 = vld [vmem:[%s9841_s2 + $0xc] sm:$0x3]  ;;  %v550_v9 = vld [vmem:[#allocation2 + $0x48] sm:$0x1] }
  0x43   : > { %v1344_v49 = vrot.slane %v1343_v24, 4  ;;  %v1353_v50 = vor.u32 %v1352_v30, %v1348_v14  ;;  %v788_v51 = vor.u32 %v786_v32, %v785_v31  ;;  %v790_v36 = vrot.slane %v785_v31, 4  ;;  %v606_v21 = vld [vmem:[#allocation2 + $0x50] sm:$0x1] }
  0x44   : > { %v1079_v55 = vsel %vm7862_vm9, %v780_v39, %v1078_v35  ;;  %v503_v34 = vmax.f32 %v7955_v45, 0.0  ;;  %v504_v8 = vmax.f32 %v7958_v46, 0.0  ;;  %7151 = vmatmul.mubr.msk.bf16.vlgmr.msra.gmra.mrb[0].mxu0 %vm1722_vm12, %v6484_v26  ;;  %v545_v45 = vsel %vm7800_vm3, 0, %v544_v41  ;;  %v8060_v37 = vld [vmem:[%s7820_s9 + $0x30] sm:$0xff]  }
  0x45   : > { %v1349_v23 = vsel %vm7913_vm13, %v1344_v49, %v1348_v14  ;;  %v1354_v32 = vrot.slane %v1353_v50, 4  ;;  %v789_v61 = vsel %vm7846_vm8, %v781_v40, %v788_v51  ;;  %1080 = vst [vmem:[#allocation2 + $0x24] sm:$0xf] %v1079_v55  ;;  %7183 = vmatpush3.bf16.msra.mxu0 %v7939_v25  ;;  %v1083_v46 = vsel %vm7800_vm3, %v790_v36, %v1082_v52 }
  0x46   : > { %1081 = vst.msk [vmem:[#allocation2 + $0x28] sm:$0xf] %vm1061_vm7, %v789_v61  ;;  %546 = vst [vmem:[#allocation2 + $0x30] sm:$0x1] %v545_v45  ;;  %v601_v15 = vsel %vm7807_vm5, 0, %v600_v42  ;;  %v6722_v43 = vpack.c.bf16 %v503_v34, %v503_v34  ;;  %v6723_v62 = vpack.c.bf16 %v504_v8, %v504_v8  ;;  %v473_v25 = vadd.f32 %v7838_v18, %v7963_v47 }
  0x47   : > { %v1359_v0 = vsel %vm7913_vm13, %v1354_v32, %v1358_v38  ;;  %1084 = vst [vmem:[#allocation2 + $0x2c] sm:$0x1] %v1083_v46  ;;  %602 = vst [vmem:[#allocation2 + $0x38] sm:$0x1] %v601_v15  ;;  %v474_v2 = vadd.f32 %v7838_v18, %v7968_v48  ;;  %v548_v5 = vsel %vm7800_vm3, 0, %v547_v54  ;;  %7583 = vmatprep.subr.msk.bf16.mxu0 %vm1771_vm0, %v8024_v28  ;;  %v604_v48 = vsel %vm7807_vm5, 0, %v603_v63 }
  0x48   : > { %v6338_v11 = vcombine.low %v1349_v23, %v1359_v0  ;;  %v792_v19 = vshrl.u32 %v6722_v43, 16  ;;  %v795_v20 = vshll.u32 %v6722_v43, 16  ;;  %v800_v14 = vshrl.u32 %v6723_v62, 16  ;;  %549 = vst [vmem:[#allocation2 + $0x3c] sm:$0x1] %v548_v5 }
  0x49   : > { %v803_v29 = vshll.u32 %v6723_v62, 16  ;;  %v505_v13 = vmax.f32 %v473_v25, 0.0  ;;  %v506_v47 = vmax.f32 %v474_v2, 0.0  ;;  %605 = vst [vmem:[#allocation2 + $0x44] sm:$0x1] %v604_v48  ;;  %v437_v31 = vmul.f32 %v6803_v56, %v7832_v12 }
  0x4a   : > { %7018 = vmatprep.mubr.msk.bf16.mxu1 %vm1722_vm12, %v6338_v11  ;;  %v794_v24 = vrot.slane %v792_v19, 7  ;;  %v802_v30 = vrot.slane %v800_v14, 7  ;;  %v8057_v35 = vadd.f32 %v7838_v18, %v7974_v58  ;;  %v551_v40 = vsel %vm7800_vm3, 0, %v550_v9 }
  0x4b   : > { %v8062_v38 = vpack.c.bf16 %v505_v13, %v505_v13  ;;  %v8064_v39 = vpack.c.bf16 %v506_v47, %v506_v47  ;;  %v607_v41 = vsel %vm7807_vm5, 0, %v606_v21  ;;  %552 = vst [vmem:[#allocation2 + $0x48] sm:$0x1] %v551_v40  ;;  %v8071_v36 = vadd.f32 %v7838_v18, %v437_v31 }
  0x4c   : > { %v1242_v42 = vld [vmem:[#allocation2 + $0x24] sm:$0xf]  ;;  %v797_v10 = vor.u32 %v795_v20, %v794_v24  ;;  %v798_v56 = vrot.slane %v794_v24, 4  ;;  %v805_v49 = vor.u32 %v803_v29, %v802_v30  ;;  %v807_v50 = vrot.slane %v802_v30, 4  ;;  %608 = vst [vmem:[#allocation2 + $0x50] sm:$0x1] %v607_v41 }
  0x4d   : > { %v3049_v26 = vld [vmem:[#allocation2 + $0x24] sm:$0xf]  ;;  %v1243_v58 = vld [vmem:[#allocation2 + $0x28] sm:$0xf]  ;;  %v1361_v51 = vshrl.u32 %v1242_v42, 16  ;;  %v1364_v52 = vshll.u32 %v1242_v42, 16  ;;  %v6806_v55 = vunpack.c.l.bf16 %v8060_v37  ;;  %v6807_v45 = vunpack.c.h.bf16 %v8060_v37 }
  0x4e   : > { %v3050_v54 = vld [vmem:[#allocation2 + $0x28] sm:$0xf]  ;;  %v1272_v34 = vld [vmem:[#allocation2 + $0x2c] sm:$0x1]  ;;  %v1370_v8 = vshll.u32 %v1243_v58, 16  ;;  %v1374_v23 = vshrl.u32 %v1243_v58, 16  ;;  %v806_v61 = vsel %vm7846_vm8, %v798_v56, %v805_v49 }
  0x4f   : > { %v3051_v32 = vld [vmem:[#allocation2 + $0x2c] sm:$0x1]  ;;  %v1363_v46 = vrot.slane %v1361_v51, 4  ;;  %v1366_v15 = vrot.slane %v1364_v52, 5  ;;  %v1380_v43 = vshll.u32 %v1272_v34, 16  ;;  %v3140_v62 = vshrl.u32 %v3049_v26, 16 }
  0x50   : > { %v1085_v63 = vld [vmem:[#allocation2 + $0x30] sm:$0xf]  ;;  %1088 = vst.msk [vmem:[#allocation2 + $0x34] sm:$0xf] %vm1061_vm7, %v806_v61  ;;  %v1372_v0 = vrot.slane %v1370_v8, 5  ;;  %v1376_v25 = vrot.slane %v1374_v23, 4  ;;  %v438_v23 = vmul.f32 %v6806_v55, %v7832_v12 }
  0x51   : > { %v3143_v2 = vshll.u32 %v3049_v26, 16  ;;  %v3149_v5 = vshll.u32 %v3050_v54, 16  ;;  %v1089_v9 = vld [vmem:[#allocation2 + $0x38] sm:$0x1]  ;;  %v1367_v11 = vor.u32 %v1366_v15, %v1363_v46  ;;  %v1382_v19 = vrot.slane %v1380_v43, 5 }
  0x52   : > { %v3142_v20 = vrot.slane %v3140_v62, 4  ;;  %v3153_v14 = vshrl.u32 %v3050_v54, 16  ;;  %v1377_v21 = vor.u32 %v1376_v25, %v1372_v0  ;;  %v3159_v47 = vshll.u32 %v3051_v32, 16  ;;  %v1092_v8 = vld [vmem:[#allocation2 + $0x3c] sm:$0xf] }
  0x53   : > { %v3145_v29 = vrot.slane %v3143_v2, 5  ;;  %v3151_v13 = vrot.slane %v3149_v5, 5  ;;  %v1368_v48 = vrot.slane %v1367_v11, 4  ;;  %v1086_v30 = vsel %vm7862_vm9, %v797_v10, %v1085_v63 }
  0x54   : > { %v3155_v24 = vrot.slane %v3153_v14, 4  ;;  %v1090_v31 = vsel %vm7800_vm3, %v807_v50, %v1089_v9  ;;  %v1378_v40 = vrot.slane %v1377_v21, 4  ;;  %v3161_v42 = vrot.slane %v3159_v47, 5  ;;  %1087 = vst [vmem:[#allocation2 + $0x30] sm:$0xf] %v1086_v30 }
  0x55   : > { %v3146_v41 = vor.u32 %v3145_v29, %v3142_v20  ;;  %1091 = vst [vmem:[#allocation2 + $0x38] sm:$0x1] %v1090_v31  ;;  %v809_v26 = vshrl.u32 %v8062_v38, 16  ;;  %v1373_v56 = vsel %vm7913_vm13, %v1368_v48, %v1372_v0  ;;  %v812_v58 = vshll.u32 %v8062_v38, 16 }
  0x56   : > { %v3156_v49 = vor.u32 %v3155_v24, %v3151_v13  ;;  %v817_v51 = vshrl.u32 %v8064_v39, 16  ;;  %v1383_v10 = vsel %vm7913_vm13, %v1378_v40, %v1382_v19  ;;  %v439_v47 = vmul.f32 %v6807_v45, %v7832_v12  ;;  %v1096_v45 = vld [vmem:[#allocation2 + $0x44] sm:$0x1] }
  0x57   : > { %v3147_v52 = vrot.slane %v3146_v41, 4  ;;  %v8089_v50 = vld [vmem:[#allocation2 + $0x34] sm:$0xf]  ;;  %v811_v34 = vrot.slane %v809_v26, 7  ;;  %v6339_v32 = vcombine.low %v1373_v56, %v1383_v10  ;;  %v8107_v48 = vadd.f32 %v7838_v18, %v438_v23 }
  0x58   : > { %v1245_v54 = vld [vmem:[#allocation2 + $0x34] sm:$0xf]  ;;  %v3157_v61 = vrot.slane %v3156_v49, 4  ;;  %v3173_v46 = vshll.u32 %v8089_v50, 16  ;;  %v3177_v15 = vshrl.u32 %v8089_v50, 16  ;;  %v819_v19 = vrot.slane %v817_v51, 7 }
  0x59   : > { %v3152_v38 = vsel %vm7913_vm13, %v3147_v52, %v3151_v13  ;;  %v1394_v43 = vshll.u32 %v1245_v54, 16  ;;  %v1398_v62 = vshrl.u32 %v1245_v54, 16  ;;  %v814_v63 = vor.u32 %v812_v58, %v811_v34  ;;  %7019 = vmatmul.mubr.msk.bf16.gmra.mrb[4].mxu1 %vm1722_vm12, %v6339_v32 }
  0x5a   : > { %v3162_v0 = vsel %vm7913_vm13, %v3157_v61, %v3161_v42  ;;  %v3175_v25 = vrot.slane %v3173_v46, 5  ;;  %v3179_v2 = vrot.slane %v3177_v15, 4  ;;  %v815_v55 = vrot.slane %v811_v34, 4 }
  0x5b   : > { %v6485_v5 = vcombine.low %v3152_v38, %v3162_v0  ;;  %v1396_v9 = vrot.slane %v1394_v43, 5  ;;  %v1400_v11 = vrot.slane %v1398_v62, 4  ;;  %v3052_v20 = vld [vmem:[#allocation2 + $0x30] sm:$0xf]  ;;  %v1093_v13 = vsel %vm7862_vm9, %v814_v63, %v1092_v8 }
  0x5c   : > { %v8099_v14 = vld [vmem:[#allocation2 + $0x38] sm:$0x1]  ;;  %v3180_v21 = vor.u32 %v3179_v2, %v3175_v25  ;;  %v1244_v29 = vld [vmem:[#allocation2 + $0x30] sm:$0xf]  ;;  %v3164_v24 = vshrl.u32 %v3052_v20, 16  ;;  %v3167_v30 = vshll.u32 %v3052_v20, 16 }
  0x5d   : > { %7154 = vmatprep.mubr.msk.bf16.mxu0 %vm1722_vm12, %v6485_v5  ;;  %v3183_v31 = vshll.u32 %v8099_v14, 16  ;;  %v1273_v40 = vld [vmem:[#allocation2 + $0x38] sm:$0x1]  ;;  %v1385_v41 = vshrl.u32 %v1244_v29, 16  ;;  %1094 = vst [vmem:[#allocation2 + $0x3c] sm:$0xf] %v1093_v13  ;;  %v1401_v56 = vor.u32 %v1400_v11, %v1396_v9 }
  0x5e   : > { %v3181_v42 = vrot.slane %v3180_v21, 4  ;;  %v1388_v26 = vshll.u32 %v1244_v29, 16  ;;  %v1404_v49 = vshll.u32 %v1273_v40, 16  ;;  %v3166_v58 = vrot.slane %v3164_v24, 4  ;;  %v553_v24 = vld [vmem:[#allocation2 + $0x54] sm:$0x1] }
  0x5f   : > { %v3169_v51 = vrot.slane %v3167_v30, 5  ;;  %v3185_v37 = vrot.slane %v3183_v31, 5  ;;  %v1387_v12 = vrot.slane %v1385_v41, 4  ;;  %v1402_v52 = vrot.slane %v1401_v56, 4 }
  0x60   : > { %v1390_v10 = vrot.slane %v1388_v26, 5  ;;  %v1406_v54 = vrot.slane %v1404_v49, 5  ;;  %v820_v34 = vshll.u32 %v8064_v39, 16  ;;  %v824_v32 = vrot.slane %v819_v19, 4  ;;  %v609_v49 = vld [vmem:[#allocation2 + $0x5c] sm:$0x1] }
  0x61   : > { %v3170_v8 = vor.u32 %v3169_v51, %v3166_v58  ;;  %v3186_v23 = vsel %vm7913_vm13, %v3181_v42, %v3185_v37  ;;  %v507_v61 = vmax.f32 %v8057_v35, 0.0  ;;  %v508_v43 = vmax.f32 %v8071_v36, 0.0  ;;  %v1099_v37 = vld [vmem:[#allocation2 + $0x48] sm:$0xf] }
  0x62   : > { %v1391_v46 = vor.u32 %v1390_v10, %v1387_v12  ;;  %v1407_v15 = vsel %vm7913_vm13, %v1402_v52, %v1406_v54  ;;  %v822_v38 = vor.u32 %v820_v34, %v819_v19  ;;  %v1097_v63 = vsel %vm7800_vm3, %v824_v32, %v1096_v45  ;;  %v1103_v32 = vld [vmem:[#allocation2 + $0x50] sm:$0x1] }
  0x63   : > { %v3171_v62 = vrot.slane %v3170_v8, 4  ;;  %v6726_v0 = vpack.c.bf16 %v507_v61, %v507_v61  ;;  %v478_v39 = vadd.f32 %v7838_v18, %v439_v47  ;;  %1098 = vst [vmem:[#allocation2 + $0x44] sm:$0x1] %v1097_v63  ;;  %v6727_v20 = vpack.c.bf16 %v508_v43, %v508_v43 }
  0x64   : > { %v1392_v2 = vrot.slane %v1391_v46, 4  ;;  %v823_v5 = vsel %vm7846_vm8, %v815_v55, %v822_v38  ;;  %v1246_v35 = vld [vmem:[#allocation2 + $0x3c] sm:$0xf]  ;;  %v509_v21 = vmax.f32 %v8107_v48, 0.0  ;;  %v610_v61 = vsel %vm7807_vm5, 0, %v609_v49 }
  0x65   : > { %v3055_v11 = vld [vmem:[#allocation2 + $0x3c] sm:$0xf]  ;;  %v3176_v36 = vsel %vm7913_vm13, %v3171_v62, %v3175_v25  ;;  %1095 = vst.msk [vmem:[#allocation2 + $0x40] sm:$0xf] %vm1061_vm7, %v823_v5  ;;  %v1409_v19 = vshrl.u32 %v1246_v35, 16  ;;  %v1412_v29 = vshll.u32 %v1246_v35, 16 }
  0x66   : > { %v3188_v13 = vshrl.u32 %v3055_v11, 16  ;;  %v6486_v18 = vcombine.low %v3176_v36, %v3186_v23  ;;  %v1397_v47 = vsel %vm7913_vm13, %v1392_v2, %v1396_v9  ;;  %v3191_v55 = vshll.u32 %v3055_v11, 16  ;;  %611 = vst [vmem:[#allocation2 + $0x5c] sm:$0x1] %v610_v61 }
  0x67   : > { %v826_v30 = vshrl.u32 %v6726_v0, 16  ;;  %v6340_v31 = vcombine.low %v1397_v47, %v1407_v15  ;;  %v1411_v40 = vrot.slane %v1409_v19, 4  ;;  %v1414_v41 = vrot.slane %v1412_v29, 5  ;;  %v8150_v47 = vld [vmem:[%s7820_s9 + $0x38] sm:$0xff]  }
  0x68   : > { %v3190_v42 = vrot.slane %v3188_v13, 4  ;;  %7155 = vmatmul.mubr.msk.bf16.gmra.mrb[4].mxu0 %vm1722_vm12, %v6486_v18  ;;  %v3193_v48 = vrot.slane %v3191_v55, 5  ;;  %v829_v26 = vshll.u32 %v6726_v0, 16  ;;  %v834_v56 = vshrl.u32 %v6727_v20, 16 }
  0x69   : > { %v828_v25 = vrot.slane %v826_v30, 7  ;;  %7022 = vmatprep.mubr.msk.bf16.mxu1 %vm1722_vm12, %v6340_v31  ;;  %v1415_v58 = vor.u32 %v1414_v41, %v1411_v40  ;;  %v837_v51 = vshll.u32 %v6727_v20, 16  ;;  %v510_v12 = vmax.f32 %v478_v39, 0.0  ;;  %v556_v41 = vld [vmem:[#allocation2 + $0x60] sm:$0x1] }
  0x6a   : > { %v554_v9 = vsel %vm7800_vm3, 0, %v553_v24  ;;  %v3194_v45 = vor.u32 %v3193_v48, %v3190_v42  ;;  %v836_v54 = vrot.slane %v834_v56, 7  ;;  %v1274_v34 = vld [vmem:[#allocation2 + $0x44] sm:$0x1]  ;;  %v6728_v46 = vpack.c.bf16 %v509_v21, %v509_v21 }
  0x6b   : > { %v831_v10 = vor.u32 %v829_v26, %v828_v25  ;;  %v832_v52 = vrot.slane %v828_v25, 4  ;;  %555 = vst [vmem:[#allocation2 + $0x54] sm:$0x1] %v554_v9  ;;  %v1416_v8 = vrot.slane %v1415_v58, 4  ;;  %v8133_v23 = vld [vmem:[#allocation2 + $0x44] sm:$0x1]  ;;  %v8137_v15 = vpack.c.bf16 %v510_v12, %v510_v12 }
  0x6c   : > { %v1247_v38 = vld [vmem:[#allocation2 + $0x40] sm:$0xf]  ;;  %v1428_v43 = vshll.u32 %v1274_v34, 16  ;;  %v3195_v63 = vrot.slane %v3194_v45, 4  ;;  %v839_v0 = vor.u32 %v837_v51, %v836_v54  ;;  %v3207_v21 = vshll.u32 %v8133_v23, 16 }
  0x6d   : > { %v8139_v62 = vld [vmem:[#allocation2 + $0x40] sm:$0xf]  ;;  %v1100_v39 = vsel %vm7862_vm9, %v831_v10, %v1099_v37  ;;  %v1418_v2 = vshll.u32 %v1247_v38, 16  ;;  %v1422_v5 = vshrl.u32 %v1247_v38, 16  ;;  %v841_v19 = vrot.slane %v836_v54, 4 }
  0x6e   : > { %v3197_v35 = vshll.u32 %v8139_v62, 16  ;;  %v3201_v11 = vshrl.u32 %v8139_v62, 16  ;;  %1101 = vst [vmem:[#allocation2 + $0x48] sm:$0xf] %v1100_v39  ;;  %v1430_v20 = vrot.slane %v1428_v43, 5  ;;  %v840_v36 = vsel %vm7846_vm8, %v832_v52, %v839_v0 }
  0x6f   : > { %v1420_v29 = vrot.slane %v1418_v2, 5  ;;  %v1424_v13 = vrot.slane %v1422_v5, 4  ;;  %1102 = vst.msk [vmem:[#allocation2 + $0x4c] sm:$0xf] %vm1061_vm7, %v840_v36  ;;  %v3209_v55 = vrot.slane %v3207_v21, 5  ;;  %v1104_v30 = vsel %vm7800_vm3, %v841_v19, %v1103_v32 }
  0x70   : > { %v3199_v24 = vrot.slane %v3197_v35, 5  ;;  %v3203_v18 = vrot.slane %v3201_v11, 4  ;;  %v843_v31 = vshrl.u32 %v6728_v46, 16  ;;  %v846_v40 = vshll.u32 %v6728_v46, 16  ;;  %1105 = vst [vmem:[#allocation2 + $0x50] sm:$0x1] %v1104_v30 }
  0x71   : > { %v1421_v42 = vsel %vm7913_vm13, %v1416_v8, %v1420_v29  ;;  %v1425_v48 = vor.u32 %v1424_v13, %v1420_v29  ;;  %v851_v49 = vshrl.u32 %v8137_v15, 16  ;;  %v854_v58 = vshll.u32 %v8137_v15, 16  ;;  %v8167_v32 = vld [vmem:[%s9842_s3] ss:$0 sm:$0xff] }
  0x72   : > { %v3200_v25 = vsel %vm7913_vm13, %v3195_v63, %v3199_v24  ;;  %v3204_v26 = vor.u32 %v3203_v18, %v3199_v24  ;;  %v845_v56 = vrot.slane %v843_v31, 7  ;;  %v6810_v51 = vunpack.c.l.bf16 %v8150_v47  ;;  %v1106_v63 = vld [vmem:[#allocation2 + $0x54] sm:$0xf] }
  0x73   : > { %v1426_v37 = vrot.slane %v1425_v48, 4  ;;  %v6811_v9 = vunpack.c.h.bf16 %v8150_v47  ;;  %v557_v45 = vsel %vm7800_vm3, 0, %v556_v41  ;;  %v853_v8 = vrot.slane %v851_v49, 7 }
  0x74   : > { %v3205_v12 = vrot.slane %v3204_v26, 4  ;;  %v848_v54 = vor.u32 %v846_v40, %v845_v56  ;;  %v849_v34 = vrot.slane %v845_v56, 4  ;;  %v440_v61 = vmul.f32 %v8167_v32, %v6810_v51  ;;  %558 = vst [vmem:[#allocation2 + $0x60] sm:$0x1] %v557_v45 }
  0x75   : > { %v3058_v10 = vld [vmem:[#allocation2 + $0x48] sm:$0xf]  ;;  %v1431_v46 = vsel %vm7913_vm13, %v1426_v37, %v1430_v20  ;;  %v856_v47 = vor.u32 %v854_v58, %v853_v8  ;;  %vm2276_vm14 = vcmask 1042432   ;;  %vm2277_vm15 = vcmask 1046532  }
  0x76   : > { %v1248_v52 = vld [vmem:[#allocation2 + $0x48] sm:$0xf]  ;;  %v3210_v15 = vsel %vm7913_vm13, %v3205_v12, %v3209_v55  ;;  %v3212_v38 = vshrl.u32 %v3058_v10, 16  ;;  %v3215_v43 = vshll.u32 %v3058_v10, 16  ;;  %v6341_v0 = vcombine.low %v1421_v42, %v1431_v46  ;;  %v8174_v2 = vld [vmem:[#allocation2 + $0x4c] sm:$0xf]  ;;  %vm8247_vm1 = vmor %vm2276_vm14, %vm2277_vm15 }
  0x77   : > { %v6487_v39 = vcombine.low %v3200_v25, %v3210_v15  ;;  %v1249_v5 = vld [vmem:[#allocation2 + $0x4c] sm:$0xf]  ;;  %v1433_v35 = vshrl.u32 %v1248_v52, 16  ;;  %v1436_v11 = vshll.u32 %v1248_v52, 16  ;;  %v3221_v19 = vshll.u32 %v8174_v2, 16  ;;  %v6851_v12 = vld [vmem:[%s7820_s9 + $0x40] sm:$0xff]  }
  0x78   : > { %v3214_v21 = vrot.slane %v3212_v38, 4  ;;  %v3217_v36 = vrot.slane %v3215_v43, 5  ;;  %v3225_v29 = vshrl.u32 %v8174_v2, 16  ;;  %7023 = vmatmul.mubr.msk.bf16.gmra.mrb[8].mxu1 %vm1722_vm12, %v6341_v0  ;;  %v8180_v20 = vld [vmem:[#allocation2 + $0x50] sm:$0x1]  ;;  %v1107_v55 = vsel %vm7862_vm9, %v848_v54, %v1106_v63 }
  0x79   : > { %7158 = vmatprep.mubr.msk.bf16.mxu0 %vm1722_vm12, %v6487_v39  ;;  %v1275_v13 = vld [vmem:[#allocation2 + $0x50] sm:$0x1]  ;;  %v1435_v24 = vrot.slane %v1433_v35, 4  ;;  %v1438_v18 = vrot.slane %v1436_v11, 5  ;;  %v3223_v31 = vrot.slane %v3221_v19, 5  ;;  %v3231_v41 = vshll.u32 %v8180_v20, 16 }
  0x7a   : > { %v3218_v30 = vor.u32 %v3217_v36, %v3214_v21  ;;  %v3227_v40 = vrot.slane %v3225_v29, 4  ;;  %1108 = vst [vmem:[#allocation2 + $0x54] sm:$0xf] %v1107_v55  ;;  %v1442_v48 = vshll.u32 %v1249_v5, 16  ;;  %v1446_v25 = vshrl.u32 %v1249_v5, 16 }
  0x7b   : > { %v1439_v42 = vor.u32 %v1438_v18, %v1435_v24  ;;  %v1452_v26 = vshll.u32 %v1275_v13, 16  ;;  %v3233_v51 = vrot.slane %v3231_v41, 5  ;;  %v857_v58 = vsel %vm7846_vm8, %v849_v34, %v856_v47  ;;  %v612_v37 = vld [vmem:[#allocation2 + $0x68] sm:$0x1]  ;;  %v1110_v46 = vld [vmem:[#allocation2 + $0x5c] sm:$0x1] }
  0x7c   : > { %v3219_v56 = vrot.slane %v3218_v30, 4  ;;  %v3228_v49 = vor.u32 %v3227_v40, %v3223_v31  ;;  %v1444_v10 = vrot.slane %v1442_v48, 5  ;;  %v1448_v52 = vrot.slane %v1446_v25, 4  ;;  %1109 = vst.msk [vmem:[#allocation2 + $0x58] sm:$0xf] %vm1061_vm7, %v857_v58 }
  0x7d   : > { %v1440_v45 = vrot.slane %v1439_v42, 4  ;;  %v1454_v54 = vrot.slane %v1452_v26, 5  ;;  %v858_v43 = vrot.slane %v853_v8, 4  ;;  %v441_v63 = vmul.f32 %v8167_v32, %v6811_v9  ;;  %v8197_v39 = vld [vmem:[%s9843_s4] ss:$0 sm:$0xff] }
  0x7e   : > { %v3224_v15 = vsel %vm7913_vm13, %v3219_v56, %v3223_v31  ;;  %v3229_v38 = vrot.slane %v3228_v49, 4  ;;  %v1449_v34 = vor.u32 %v1448_v52, %v1444_v10  ;;  %v479_v5 = vadd.f32 %v8197_v39, %v440_v61  ;;  %v6416_v48 = vld [vmem:[%s9841_s2 + $0x4] sm:$0x3] }
  0x7f   : > { %v1445_v0 = vsel %vm7913_vm13, %v1440_v45, %v1444_v10  ;;  %v613_v35 = vsel %vm7807_vm5, 0, %v612_v37  ;;  %v1111_v9 = vsel %vm7800_vm3, %v858_v43, %v1110_v46  ;;  %v480_v8 = vadd.f32 %v8197_v39, %v441_v63  ;;  %7578 = vmatprep.subr.msk.bf16.mxu1 %vm1771_vm0, %v6416_v48 }
  0x80   : > { %v3234_v11 = vsel %vm7913_vm13, %v3229_v38, %v3233_v51  ;;  %614 = vst [vmem:[#allocation2 + $0x68] sm:$0x1] %v613_v35  ;;  %v6814_v21 = vunpack.c.l.bf16 %v6851_v12  ;;  %v1450_v19 = vrot.slane %v1449_v34, 4  ;;  %1112 = vst [vmem:[#allocation2 + $0x5c] sm:$0x1] %v1111_v9  ;;  %v511_v24 = vmax.f32 %v479_v5, 0.0 }
  0x81   : > { %v6488_v36 = vcombine.low %v3224_v15, %v3234_v11  ;;  %v1250_v29 = vld [vmem:[#allocation2 + $0x54] sm:$0xf]  ;;  %v6815_v61 = vunpack.c.h.bf16 %v6851_v12  ;;  %v512_v40 = vmax.f32 %v480_v8, 0.0  ;;  %vm5955_vm2 = vcmask 64512  }
  0x82   : > { %v3061_v13 = vld [vmem:[#allocation2 + $0x54] sm:$0xf]  ;;  %v1457_v18 = vshrl.u32 %v1250_v29, 16  ;;  %v1460_v47 = vshll.u32 %v1250_v29, 16  ;;  %v1455_v31 = vsel %vm7913_vm13, %v1450_v19, %v1454_v54  ;;  %v6730_v41 = vpack.c.bf16 %v511_v24, %v511_v24 }
  0x83   : > { %v3236_v55 = vshrl.u32 %v3061_v13, 16  ;;  %v3239_v30 = vshll.u32 %v3061_v13, 16  ;;  %7159 = vmatmul.mubr.msk.bf16.gmra.mrb[8].mxu0 %vm1722_vm12, %v6488_v36  ;;  %v442_v42 = vmul.f32 %v8167_v32, %v6814_v21  ;;  %v6342_v25 = vcombine.low %v1445_v0, %v1455_v31  ;;  %v1251_v26 = vld [vmem:[#allocation2 + $0x58] sm:$0xf] }
  0x84   : > { %v1459_v56 = vrot.slane %v1457_v18, 4  ;;  %v1462_v49 = vrot.slane %v1460_v47, 5  ;;  %v8214_v51 = vld [vmem:[#allocation2 + $0x58] sm:$0xf]  ;;  %v443_v58 = vmul.f32 %v8167_v32, %v6815_v61  ;;  %v1466_v37 = vshll.u32 %v1251_v26, 16 }
  0x85   : > { %v1470_v12 = vshrl.u32 %v1251_v26, 16  ;;  %v3238_v45 = vrot.slane %v3236_v55, 4  ;;  %v3241_v10 = vrot.slane %v3239_v30, 5  ;;  %7026 = vmatprep.mubr.msk.bf16.mxu1 %vm1722_vm12, %v6342_v25  ;;  %v3245_v54 = vshll.u32 %v8214_v51, 16 }
  0x86   : > { %v1463_v52 = vor.u32 %v1462_v49, %v1459_v56  ;;  %v3249_v46 = vshrl.u32 %v8214_v51, 16  ;;  %v6731_v15 = vpack.c.bf16 %v512_v40, %v512_v40  ;;  %v1468_v38 = vrot.slane %v1466_v37, 5  ;;  %v1113_v40 = vld [vmem:[#allocation2 + $0x60] sm:$0xf]  ;;  %v615_v49 = vld [vmem:[#allocation2 + $0x74] sm:$0x1] }
  0x87   : > { %v1472_v43 = vrot.slane %v1470_v12, 4  ;;  %v3242_v63 = vor.u32 %v3241_v10, %v3238_v45  ;;  %v860_v0 = vshrl.u32 %v6730_v41, 16  ;;  %v1276_v34 = vld [vmem:[#allocation2 + $0x5c] sm:$0x1]  ;;  %v3247_v11 = vrot.slane %v3245_v54, 5 }
  0x88   : > { %v1464_v5 = vrot.slane %v1463_v52, 4  ;;  %v8221_v35 = vld [vmem:[#allocation2 + $0x5c] sm:$0x1]  ;;  %v481_v9 = vadd.f32 %v8197_v39, %v442_v42  ;;  %v482_v8 = vadd.f32 %v8197_v39, %v443_v58  ;;  %v1476_v36 = vshll.u32 %v1276_v34, 16  ;;  %v559_v42 = vld [vmem:[#allocation2 + $0x6c] sm:$0x1] }
  0x89   : > { %v1473_v21 = vor.u32 %v1472_v43, %v1468_v38  ;;  %v3243_v19 = vrot.slane %v3242_v63, 4  ;;  %v3251_v29 = vrot.slane %v3249_v46, 4  ;;  %v3255_v24 = vshll.u32 %v8221_v35, 16 }
  0x8a   : > { %v1469_v13 = vsel %vm7913_vm13, %v1464_v5, %v1468_v38  ;;  %v862_v61 = vrot.slane %v860_v0, 7  ;;  %v863_v18 = vshll.u32 %v6730_v41, 16  ;;  %v1478_v55 = vrot.slane %v1476_v36, 5  ;;  %v1117_v38 = vld [vmem:[#allocation2 + $0x68] sm:$0x1] }
  0x8b   : > { %v1474_v47 = vrot.slane %v1473_v21, 4  ;;  %v3248_v30 = vsel %vm7913_vm13, %v3243_v19, %v3247_v11  ;;  %v3252_v31 = vor.u32 %v3251_v29, %v3247_v11  ;;  %v3257_v48 = vrot.slane %v3255_v24, 5  ;;  %v6852_v19 = vld [vmem:[%s7820_s9 + $0x48] sm:$0xff]  }
  0x8c   : > { %v865_v25 = vor.u32 %v863_v18, %v862_v61  ;;  %v866_v26 = vrot.slane %v862_v61, 4  ;;  %v868_v56 = vshrl.u32 %v6731_v15, 16  ;;  %v871_v12 = vshll.u32 %v6731_v15, 16 }
  0x8d   : > { %v1479_v58 = vsel %vm7913_vm13, %v1474_v47, %v1478_v55  ;;  %v3253_v37 = vrot.slane %v3252_v31, 4  ;;  %v513_v45 = vmax.f32 %v481_v9, 0.0  ;;  %v514_v54 = vmax.f32 %v482_v8, 0.0  ;;  %v3769_v9 = vld [vmem:[#allocation2 + $0xc] sm:$0xe] }
  0x8e   : > { %v6343_v41 = vcombine.low %v1469_v13, %v1479_v58  ;;  %v870_v10 = vrot.slane %v868_v56, 7  ;;  %v1114_v52 = vsel %vm7862_vm9, %v865_v25, %v1113_v40  ;;  %v560_v43 = vsel %vm7800_vm3, 0, %v559_v42  ;;  %v3770_v8 = vld [vmem:[#allocation2 + $0x18] sm:$0xe] }
  0x8f   : > { %v3258_v46 = vsel %vm7913_vm13, %v3253_v37, %v3257_v48  ;;  %1115 = vst [vmem:[#allocation2 + $0x60] sm:$0xf] %v1114_v52  ;;  %v616_v63 = vsel %vm7807_vm5, 0, %v615_v49  ;;  %v6732_v15 = vpack.c.bf16 %v513_v45, %v513_v45  ;;  %561 = vst [vmem:[#allocation2 + $0x6c] sm:$0x1] %v560_v43  ;;  %v6733_v11 = vpack.c.bf16 %v514_v54, %v514_v54 }
  0x90   : > { %7027 = vmatmul.mubr.msk.bf16.gmra.mrb[12].mxu1 %vm1722_vm12, %v6343_v41  ;;  %v6489_v0 = vcombine.low %v3248_v30, %v3258_v46  ;;  %v873_v34 = vor.u32 %v871_v12, %v870_v10  ;;  %v875_v5 = vrot.slane %v870_v10, 4  ;;  %617 = vst [vmem:[#allocation2 + $0x74] sm:$0x1] %v616_v63  ;;  %v9876_v18 = vmov 0 }
  0x91   : > { %v877_v21 = vshrl.u32 %v6732_v15, 16  ;;  %v880_v36 = vshll.u32 %v6732_v15, 16  ;;  %v885_v24 = vshrl.u32 %v6733_v11, 16  ;;  %v888_v61 = vshll.u32 %v6733_v11, 16 }
  0x92   : > { %7162 = vmatprep.mubr.msk.bf16.mxu0 %vm1722_vm12, %v6489_v0  ;;  %v874_v29 = vsel %vm7846_vm8, %v866_v26, %v873_v34  ;;  %v1118_v13 = vsel %vm7800_vm3, %v875_v5, %v1117_v38  ;;  %v9877_v18 = vsel %vm8247_vm1, 4294967295, %v9876_v18  ;;  %v6515_v55 = vrot.slane %v3769_v9, 9 }
  0x93   : > { %9878 = vst [vmem:[#allocation4_spill] sm:$0xff] %v9877_v18  ;;  %1116 = vst.msk [vmem:[#allocation2 + $0x64] sm:$0xf] %vm1061_vm7, %v874_v29  ;;  %v879_v47 = vrot.slane %v877_v21, 7  ;;  %v3837_v30 = vrot.slane %v3835_v6, 4  ;;  %v6516_v31 = vrot.slane %v3770_v8, 9  ;;  %v8259_v42 = vsel %vm8247_vm1, %v8002_v1, %v3845_v60 }
  0x94   : > { %1119 = vst [vmem:[#allocation2 + $0x68] sm:$0x1] %v1118_v13  ;;  %v887_v40 = vrot.slane %v885_v24, 7  ;;  %v8263_v48 = vsel %vm1771_vm0, %v8024_v28, 0  ;;  %v6818_v25 = vunpack.c.l.bf16 %v6852_v19  ;;  %v8269_v49 = vsel %vm8247_vm1, %v6515_v55, %v3835_v6  ;;  %v8286_v6 = vld [vmem:[%s7820_s9 + $0x50] sm:$0xff]  }
  0x95   : > { %v882_v26 = vor.u32 %v880_v36, %v879_v47  ;;  %v883_v56 = vrot.slane %v879_v47, 4  ;;  %v8275_v22 = vsel %vm8247_vm1, %v3837_v30, %v3838_v16  ;;  %v8283_v44 = vsel %vm8247_vm1, %v6516_v31, %v3842_v59  ;;  %v562_v24 = vld [vmem:[#allocation2 + $0x78] sm:$0x1] }
  0x96   : > { %v3064_v60 = vld [vmem:[#allocation2 + $0x60] sm:$0xf]  ;;  %v890_v58 = vor.u32 %v888_v61, %v887_v40  ;;  %v892_v28 = vrot.slane %v887_v40, 4  ;;  %v6532_v37 = vcombine.low %v8269_v49, %v8275_v22  ;;  %v1120_v41 = vld [vmem:[#allocation2 + $0x6c] sm:$0xf]  ;;  %v6533_v17 = vcombine.low %v8283_v44, %v8259_v42 }
  0x97   : > { %v1252_v1 = vld [vmem:[#allocation2 + $0x60] sm:$0xf]  ;;  %v3260_v53 = vshrl.u32 %v3064_v60, 16  ;;  %v3263_v12 = vshll.u32 %v3064_v60, 16  ;;  %v1121_v52 = vsel %vm7862_vm9, %v882_v26, %v1120_v41  ;;  %v1124_v54 = vld [vmem:[#allocation2 + $0x74] sm:$0x1]  ;;  %v6819_v46 = vunpack.c.h.bf16 %v6852_v19 }
  0x98   : > { %v1481_v45 = vshrl.u32 %v1252_v1, 16  ;;  %v1484_v16 = vshll.u32 %v1252_v1, 16  ;;  %v891_v10 = vsel %vm7846_vm8, %v883_v56, %v890_v58  ;;  %1122 = vst [vmem:[#allocation2 + $0x6c] sm:$0xf] %v1121_v52  ;;  %v1125_v5 = vsel %vm7800_vm3, %v892_v28, %v1124_v54  ;;  %v618_v61 = vld [vmem:[#allocation2 + $0x80] sm:$0x1] }
  0x99   : > { %v3262_v59 = vrot.slane %v3260_v53, 4  ;;  %v3265_v38 = vrot.slane %v3263_v12, 5  ;;  %1123 = vst.msk [vmem:[#allocation2 + $0x70] sm:$0xf] %vm1061_vm7, %v891_v10  ;;  %v444_v11 = vmul.f32 %v8167_v32, %v6818_v25  ;;  %v445_v9 = vmul.f32 %v8167_v32, %v6819_v46  ;;  %1126 = vst [vmem:[#allocation2 + $0x74] sm:$0x1] %v1125_v5 }
  0x9a   : > { %v1483_v43 = vrot.slane %v1481_v45, 4  ;;  %v1486_v63 = vrot.slane %v1484_v16, 5  ;;  %v8295_v15 = vld [vmem:[#allocation2 + $0x64] sm:$0xf]  ;;  %v6822_v8 = vunpack.c.l.bf16 %v8286_v6  ;;  %v563_v46 = vsel %vm7800_vm3, 0, %v562_v24 }
  0x9b   : > { %v8297_v0 = vld [vmem:[#allocation2 + $0x68] sm:$0x1]  ;;  %v1253_v34 = vld [vmem:[#allocation2 + $0x64] sm:$0xf]  ;;  %v3266_v21 = vor.u32 %v3265_v38, %v3262_v59  ;;  %v3269_v36 = vshll.u32 %v8295_v15, 16  ;;  %v3273_v19 = vshrl.u32 %v8295_v15, 16  ;;  %v483_v45 = vadd.f32 %v8197_v39, %v444_v11 }
  0x9c   : > { %v3279_v29 = vshll.u32 %v8297_v0, 16  ;;  %v1277_v13 = vld [vmem:[#allocation2 + $0x68] sm:$0x1]  ;;  %v1487_v47 = vor.u32 %v1486_v63, %v1483_v43  ;;  %v1490_v55 = vshll.u32 %v1253_v34, 16  ;;  %v1494_v30 = vshrl.u32 %v1253_v34, 16 }
  0x9d   : > { %v1500_v31 = vshll.u32 %v1277_v13, 16  ;;  %v3267_v40 = vrot.slane %v3266_v21, 4  ;;  %v3271_v25 = vrot.slane %v3269_v36, 5  ;;  %v3275_v26 = vrot.slane %v3273_v19, 4  ;;  %564 = vst [vmem:[#allocation2 + $0x78] sm:$0x1] %v563_v46 }
  0x9e   : > { %v3281_v56 = vrot.slane %v3279_v29, 5  ;;  %v1488_v60 = vrot.slane %v1487_v47, 4  ;;  %v1492_v1 = vrot.slane %v1490_v55, 5  ;;  %v1496_v58 = vrot.slane %v1494_v30, 4  ;;  %v3771_v22 = vld [vmem:[#allocation2 + $0x24] sm:$0xe] }
  0x9f   : > { %v1502_v28 = vrot.slane %v1500_v31, 5  ;;  %v3272_v53 = vsel %vm7913_vm13, %v3267_v40, %v3271_v25  ;;  %v3276_v12 = vor.u32 %v3275_v26, %v3271_v25  ;;  %v484_v16 = vadd.f32 %v8197_v39, %v445_v9  ;;  %v1254_v52 = vld [vmem:[#allocation2 + $0x6c] sm:$0xf] }
  0xa0   : > { %v1493_v41 = vsel %vm7913_vm13, %v1488_v60, %v1492_v1  ;;  %v1497_v10 = vor.u32 %v1496_v58, %v1492_v1  ;;  %v1255_v54 = vld [vmem:[#allocation2 + $0x70] sm:$0xf]  ;;  %v619_v59 = vsel %vm7807_vm5, 0, %v618_v61  ;;  %v1505_v43 = vshrl.u32 %v1254_v52, 16  ;;  %v1278_v11 = vld [vmem:[#allocation2 + $0x74] sm:$0x1] }
  0xa1   : > { %v3277_v38 = vrot.slane %v3276_v12, 4  ;;  %v1508_v63 = vshll.u32 %v1254_v52, 16  ;;  %v1514_v34 = vshll.u32 %v1255_v54, 16  ;;  %620 = vst [vmem:[#allocation2 + $0x80] sm:$0x1] %v619_v59  ;;  %v1518_v9 = vshrl.u32 %v1255_v54, 16 }
  0xa2   : > { %v1498_v5 = vrot.slane %v1497_v10, 4  ;;  %v515_v21 = vmax.f32 %v483_v45, 0.0  ;;  %v516_v36 = vmax.f32 %v484_v16, 0.0  ;;  %v1507_v29 = vrot.slane %v1505_v43, 4  ;;  %v565_v60 = vld [vmem:[#allocation2 + $0x84] sm:$0x1] }
  0xa3   : > { %v3282_v19 = vsel %vm7913_vm13, %v3277_v38, %v3281_v56  ;;  %v1510_v13 = vrot.slane %v1508_v63, 5  ;;  %v1516_v24 = vrot.slane %v1514_v34, 5  ;;  %v1520_v55 = vrot.slane %v1518_v9, 4  ;;  %v7667_v27 = vld [vmem:[#allocation2 + $0x6c] sm:$0xf] }
  0xa4   : > { %v6490_v47 = vcombine.low %v3272_v53, %v3282_v19  ;;  %v1503_v61 = vsel %vm7913_vm13, %v1498_v5, %v1502_v28  ;;  %v1524_v30 = vshll.u32 %v1278_v11, 16  ;;  %v6734_v25 = vpack.c.bf16 %v515_v21, %v515_v21  ;;  %v1127_v38 = vld [vmem:[#allocation2 + $0x78] sm:$0xf] }
  0xa5   : > { %v6344_v31 = vcombine.low %v1493_v41, %v1503_v61  ;;  %v1511_v40 = vor.u32 %v1510_v13, %v1507_v29  ;;  %v6735_v26 = vpack.c.bf16 %v516_v36, %v516_v36  ;;  %v1521_v1 = vor.u32 %v1520_v55, %v1516_v24  ;;  %v621_v41 = vld [vmem:[#allocation2 + $0x8c] sm:$0x1] }
  0xa6   : > { %7163 = vmatmul.mubr.msk.bf16.gmra.mrb[12].mxu0 %vm1722_vm12, %v6490_v47  ;;  %v1526_v58 = vrot.slane %v1524_v30, 5  ;;  %v6823_v56 = vunpack.c.h.bf16 %v8286_v6  ;;  %v446_v12 = vmul.f32 %v8167_v32, %v6822_v8  ;;  %v894_v28 = vshrl.u32 %v6734_v25, 16  ;;  %v3772_v47 = vld [vmem:[#allocation2 + $0x30] sm:$0xe]  ;;  %v7644_v30 = vld [vmem:[#allocation2 + $0x28] sm:$0xf] }
  0xa7   : > { %7030 = vmatprep.mubr.msk.bf16.mxu1 %vm1722_vm12, %v6344_v31  ;;  %v1512_v53 = vrot.slane %v1511_v40, 4  ;;  %7184 = vmatprep.mubr.msk.bf16.mxu0 %vm1722_vm12, %v6532_v37  ;;  %v897_v45 = vshll.u32 %v6734_v25, 16  ;;  %v902_v16 = vshrl.u32 %v6735_v26, 16  ;;  %v1522_v10 = vrot.slane %v1521_v1, 4  ;;  %v7645_v40 = vld [vmem:[#allocation2 + $0x2c] sm:$0x1] }
  0xa8   : > { %v905_v52 = vshll.u32 %v6735_v26, 16  ;;  %v447_v54 = vmul.f32 %v8167_v32, %v6823_v56  ;;  %v485_v6 = vadd.f32 %v8197_v39, %v446_v12  ;;  %v896_v46 = vrot.slane %v894_v28, 7  ;;  %v1131_v36 = vld [vmem:[#allocation2 + $0x80] sm:$0x1]  ;;  %v6597_v26 = vld [vmem:[%s9841_s2 + $0xe] sm:$0x3] }
  0xa9   : > { %v1517_v8 = vsel %vm7913_vm13, %v1512_v53, %v1516_v24  ;;  %v904_v59 = vrot.slane %v902_v16, 7  ;;  %v566_v49 = vsel %vm7800_vm3, 0, %v565_v60  ;;  %v1527_v37 = vsel %vm7913_vm13, %v1522_v10, %v1526_v58  ;;  %v6854_v12 = vld [vmem:[%s7820_s9 + $0x58] sm:$0xff]   ;;  %v568_v10 = vld [vmem:[#allocation2 + $0x90] sm:$0x1] }
  0xaa   : > { %v486_v43 = vadd.f32 %v8197_v39, %v447_v54  ;;  %v517_v63 = vmax.f32 %v485_v6, 0.0  ;;  %567 = vst [vmem:[#allocation2 + $0x84] sm:$0x1] %v566_v49  ;;  %v622_v34 = vsel %vm7807_vm5, 0, %v621_v41  ;;  %v6345_v5 = vcombine.low %v1517_v8, %v1527_v37  ;;  %v6855_v37 = vld [vmem:[%s7820_s9 + $0x60] sm:$0xff]  }
  0xab   : > { %v899_v11 = vor.u32 %v897_v45, %v896_v46  ;;  %v900_v9 = vrot.slane %v896_v46, 4  ;;  %v907_v21 = vor.u32 %v905_v52, %v904_v59  ;;  %623 = vst [vmem:[#allocation2 + $0x8c] sm:$0x1] %v622_v34  ;;  %v909_v19 = vrot.slane %v904_v59, 4 }
  0xac   : > { %v518_v29 = vmax.f32 %v486_v43, 0.0  ;;  %v6736_v13 = vpack.c.bf16 %v517_v63, %v517_v63  ;;  %v6517_v24 = vrot.slane %v3771_v22, 9  ;;  %7031 = vmatmul.mubr.msk.bf16.gmra.mrb[16].mxu1 %vm1722_vm12, %v6345_v5  ;;  %v3849_v31 = vrot.slane %v7644_v30, 5  ;;  %v624_v22 = vld [vmem:[#allocation2 + $0x98] sm:$0x1] }
  0xad   : > { %v908_v61 = vsel %vm7846_vm8, %v900_v9, %v907_v21  ;;  %v1128_v55 = vsel %vm7862_vm9, %v899_v11, %v1127_v38  ;;  %v3852_v25 = vrot.slane %v7645_v40, 5  ;;  %v1132_v60 = vsel %vm7800_vm3, %v909_v19, %v1131_v36 }
  0xae   : > { %7185 = vmatmul.mubr.msk.bf16.vlgmr.msra.gmra.mrb[0].mxu0 %vm1722_vm12, %v6533_v17  ;;  %1129 = vst [vmem:[#allocation2 + $0x78] sm:$0xf] %v1128_v55  ;;  %1130 = vst.msk [vmem:[#allocation2 + $0x7c] sm:$0xf] %vm1061_vm7, %v908_v61  ;;  %v6737_v1 = vpack.c.bf16 %v518_v29, %v518_v29  ;;  %v911_v58 = vshrl.u32 %v6736_v13, 16  ;;  %v914_v56 = vshll.u32 %v6736_v13, 16  ;;  %v3850_v53 = vsel %vm8247_vm1, %v6517_v24, %v3849_v31 }
  0xaf   : > { %7217 = vmatpush3.bf16.msra.mxu0 %v8263_v48  ;;  %1133 = vst [vmem:[#allocation2 + $0x80] sm:$0x1] %v1132_v60  ;;  %v3851_v28 = vrot.slane %v3849_v31, 4  ;;  %v6518_v42 = vrot.slane %v3772_v47, 9  ;;  %v3856_v44 = vrot.slane %v8089_v50, 5  ;;  %v3859_v41 = vrot.slane %v8099_v14, 5 }
  0xb0   : > { %v913_v17 = vrot.slane %v911_v58, 7  ;;  %v919_v45 = vshrl.u32 %v6737_v1, 16  ;;  %v922_v16 = vshll.u32 %v6737_v1, 16  ;;  %7584 = vmatprep.subr.msk.bf16.mxu0 %vm1771_vm0, %v6597_v26  ;;  %v6826_v8 = vunpack.c.l.bf16 %v6854_v12  ;;  %v571_v58 = vld [vmem:[#allocation2 + $0x9c] sm:$0x1] }
  0xb1   : > { %v1134_v52 = vld [vmem:[#allocation2 + $0x84] sm:$0xf]  ;;  %v3853_v48 = vsel %vm8247_vm1, %v3851_v28, %v3852_v25  ;;  %v3857_v54 = vsel %vm8247_vm1, %v6518_v42, %v3856_v44  ;;  %v3858_v6 = vrot.slane %v3856_v44, 4  ;;  %v6827_v38 = vunpack.c.h.bf16 %v6854_v12  ;;  %v8394_v44 = vld [vmem:[#allocation2 + $0x3c] sm:$0xe] }
  0xb2   : > { %v916_v46 = vor.u32 %v914_v56, %v913_v17  ;;  %v917_v50 = vrot.slane %v913_v17, 4  ;;  %v921_v59 = vrot.slane %v919_v45, 7  ;;  %v6534_v49 = vcombine.low %v3850_v53, %v3853_v48  ;;  %v1138_v9 = vld [vmem:[#allocation2 + $0x8c] sm:$0x1]  ;;  %v627_v56 = vld [vmem:[#allocation2 + $0xa4] sm:$0x1] }
  0xb3   : > { %v3860_v14 = vsel %vm8247_vm1, %v3858_v6, %v3859_v41  ;;  %v448_v43 = vmul.f32 %v8167_v32, %v6826_v8  ;;  %v569_v63 = vsel %vm7800_vm3, 0, %v568_v10  ;;  %v449_v29 = vmul.f32 %v8167_v32, %v6827_v38 }
  0xb4   : > { %v924_v34 = vor.u32 %v922_v16, %v921_v59  ;;  %v926_v5 = vrot.slane %v921_v59, 4  ;;  %v1135_v11 = vsel %vm7862_vm9, %v916_v46, %v1134_v52  ;;  %7188 = vmatprep.mubr.msk.bf16.mxu0 %vm1722_vm12, %v6534_v49  ;;  %v6535_v21 = vcombine.low %v3857_v54, %v3860_v14  ;;  %570 = vst [vmem:[#allocation2 + $0x90] sm:$0x1] %v569_v63 }
  0xb5   : > { %v8375_v36 = vld [vmem:[#allocation2 + $0x78] sm:$0xf]  ;;  %v8377_v19 = vld [vmem:[#allocation2 + $0x7c] sm:$0xf]  ;;  %1136 = vst [vmem:[#allocation2 + $0x84] sm:$0xf] %v1135_v11  ;;  %v487_v13 = vadd.f32 %v8197_v39, %v448_v43  ;;  %v6830_v47 = vunpack.c.l.bf16 %v6855_v37  ;;  %v488_v1 = vadd.f32 %v8197_v39, %v449_v29  ;;  %v6831_v41 = vunpack.c.h.bf16 %v6855_v37 }
  0xb6   : > { %v625_v24 = vsel %vm7807_vm5, 0, %v624_v22  ;;  %v1279_v61 = vld [vmem:[#allocation2 + $0x80] sm:$0x1]  ;;  %v1529_v55 = vshrl.u32 %v8375_v36, 16  ;;  %v1532_v30 = vshll.u32 %v8375_v36, 16  ;;  %v1538_v31 = vshll.u32 %v8377_v19, 16  ;;  %7189 = vmatmul.mubr.msk.bf16.gmra.mrb[4].mxu0 %vm1722_vm12, %v6535_v21 }
  0xb7   : > { %v1542_v40 = vshrl.u32 %v8377_v19, 16  ;;  %626 = vst [vmem:[#allocation2 + $0x98] sm:$0x1] %v625_v24  ;;  %v1548_v25 = vshll.u32 %v1279_v61, 16  ;;  %v925_v26 = vsel %vm7846_vm8, %v917_v50, %v924_v34  ;;  %v1139_v60 = vsel %vm7800_vm3, %v926_v5, %v1138_v9 }
  0xb8   : > { %v1531_v12 = vrot.slane %v1529_v55, 4  ;;  %v1534_v53 = vrot.slane %v1532_v30, 5  ;;  %v1540_v28 = vrot.slane %v1538_v31, 5  ;;  %1137 = vst.msk [vmem:[#allocation2 + $0x88] sm:$0xf] %vm1061_vm7, %v925_v26  ;;  %v519_v45 = vmax.f32 %v487_v13, 0.0 }
  0xb9   : > { %v1544_v42 = vrot.slane %v1542_v40, 4  ;;  %1140 = vst [vmem:[#allocation2 + $0x8c] sm:$0x1] %v1139_v60  ;;  %v1550_v17 = vrot.slane %v1548_v25, 5  ;;  %v520_v16 = vmax.f32 %v488_v1, 0.0  ;;  %v450_v48 = vmul.f32 %v8167_v32, %v6830_v47 }
  0xba   : > { %v1535_v10 = vor.u32 %v1534_v53, %v1531_v12  ;;  %v572_v54 = vsel %vm7800_vm3, 0, %v571_v58  ;;  %v6738_v6 = vpack.c.bf16 %v519_v45, %v519_v45  ;;  %v451_v46 = vmul.f32 %v8167_v32, %v6831_v41 }
  0xbb   : > { %v1545_v52 = vor.u32 %v1544_v42, %v1540_v28  ;;  %v6739_v8 = vpack.c.bf16 %v520_v16, %v520_v16  ;;  %573 = vst [vmem:[#allocation2 + $0x9c] sm:$0x1] %v572_v54  ;;  %v628_v50 = vsel %vm7807_vm5, 0, %v627_v56  ;;  %v489_v37 = vadd.f32 %v8197_v39, %v450_v48  ;;  %v1141_v1 = vld [vmem:[#allocation2 + $0x90] sm:$0xf] }
  0xbc   : > { %v1536_v59 = vrot.slane %v1535_v10, 4  ;;  %v8402_v22 = vld [vmem:[#allocation2 + $0x84] sm:$0xf]  ;;  %629 = vst [vmem:[#allocation2 + $0xa4] sm:$0x1] %v628_v50  ;;  %v6519_v14 = vrot.slane %v8394_v44, 9  ;;  %v490_v55 = vadd.f32 %v8197_v39, %v451_v46 }
  0xbd   : > { %v1546_v49 = vrot.slane %v1545_v52, 4  ;;  %v1553_v38 = vshrl.u32 %v8402_v22, 16  ;;  %v1556_v43 = vshll.u32 %v8402_v22, 16  ;;  %v928_v63 = vshrl.u32 %v6738_v6, 16 }
  0xbe   : > { %v931_v34 = vshll.u32 %v6738_v6, 16  ;;  %v1541_v5 = vsel %vm7913_vm13, %v1536_v59, %v1540_v28  ;;  %v936_v9 = vshrl.u32 %v6739_v8, 16  ;;  %v939_v21 = vshll.u32 %v6739_v8, 16  ;;  %v1145_v44 = vld [vmem:[#allocation2 + $0x98] sm:$0x1] }
  0xbf   : > { %v1551_v11 = vsel %vm7913_vm13, %v1546_v49, %v1550_v17  ;;  %v8412_v13 = vld [vmem:[#allocation2 + $0x88] sm:$0xf]  ;;  %v1555_v47 = vrot.slane %v1553_v38, 4  ;;  %v1558_v61 = vrot.slane %v1556_v43, 5  ;;  %v930_v25 = vrot.slane %v928_v63, 7 }
  0xc0   : > { %v6346_v29 = vcombine.low %v1541_v5, %v1551_v11  ;;  %v1280_v24 = vld [vmem:[#allocation2 + $0x8c] sm:$0x1]  ;;  %v1562_v30 = vshll.u32 %v8412_v13, 16  ;;  %v1566_v31 = vshrl.u32 %v8412_v13, 16  ;;  %v938_v60 = vrot.slane %v936_v9, 7 }
  0xc1   : > { %v1572_v40 = vshll.u32 %v1280_v24, 16  ;;  %v1559_v26 = vor.u32 %v1558_v61, %v1555_v47  ;;  %v521_v58 = vmax.f32 %v489_v37, 0.0  ;;  %v522_v56 = vmax.f32 %v490_v55, 0.0  ;;  %v3774_v59 = vld [vmem:[#allocation2 + $0x48] sm:$0xe] }
  0xc2   : > { %7034 = vmatprep.mubr.msk.bf16.mxu1 %vm1722_vm12, %v6346_v29  ;;  %v1564_v12 = vrot.slane %v1562_v30, 5  ;;  %v1568_v53 = vrot.slane %v1566_v31, 4  ;;  %v933_v42 = vor.u32 %v931_v34, %v930_v25  ;;  %v934_v45 = vrot.slane %v930_v25, 4  ;;  %v1148_v34 = vld [vmem:[#allocation2 + $0x9c] sm:$0xf]  ;;  %v6856_v47 = vld [vmem:[%s7820_s9 + $0x68] sm:$0xff]  }
  0xc3   : > { %v1574_v28 = vrot.slane %v1572_v40, 5  ;;  %v1560_v17 = vrot.slane %v1559_v26, 4  ;;  %v941_v16 = vor.u32 %v939_v21, %v938_v60  ;;  %v943_v41 = vrot.slane %v938_v60, 4  ;;  %v1152_v55 = vld [vmem:[#allocation2 + $0xa4] sm:$0x1] }
  0xc4   : > { %v1569_v10 = vor.u32 %v1568_v53, %v1564_v12  ;;  %v1142_v52 = vsel %vm7862_vm9, %v933_v42, %v1141_v1  ;;  %v6740_v48 = vpack.c.bf16 %v521_v58, %v521_v58  ;;  %v6741_v54 = vpack.c.bf16 %v522_v56, %v522_v56  ;;  %v574_v42 = vld [vmem:[#allocation2 + $0xa8] sm:$0x1] }
  0xc5   : > { %v1565_v6 = vsel %vm7913_vm13, %v1560_v17, %v1564_v12  ;;  %v942_v8 = vsel %vm7846_vm8, %v934_v45, %v941_v16  ;;  %1143 = vst [vmem:[#allocation2 + $0x90] sm:$0xf] %v1142_v52  ;;  %v1146_v46 = vsel %vm7800_vm3, %v943_v41, %v1145_v44  ;;  %v3863_v50 = vrot.slane %v8139_v62, 5 }
  0xc6   : > { %v1570_v49 = vrot.slane %v1569_v10, 4  ;;  %1144 = vst.msk [vmem:[#allocation2 + $0x94] sm:$0xf] %vm1061_vm7, %v942_v8  ;;  %1147 = vst [vmem:[#allocation2 + $0x98] sm:$0x1] %v1146_v46  ;;  %v945_v37 = vshrl.u32 %v6740_v48, 16  ;;  %v6834_v56 = vunpack.c.l.bf16 %v6856_v47 }
  0xc7   : > { %v948_v38 = vshll.u32 %v6740_v48, 16  ;;  %v953_v43 = vshrl.u32 %v6741_v54, 16  ;;  %v956_v63 = vshll.u32 %v6741_v54, 16  ;;  %v3864_v5 = vsel %vm8247_vm1, %v6519_v14, %v3863_v50  ;;  %v630_v8 = vld [vmem:[#allocation2 + $0xb0] sm:$0x1] }
  0xc8   : > { %v3865_v11 = vrot.slane %v3863_v50, 4  ;;  %v3866_v9 = vrot.slane %v8133_v23, 5  ;;  %v1575_v62 = vsel %vm7913_vm13, %v1570_v49, %v1574_v28  ;;  %v947_v21 = vrot.slane %v945_v37, 7  ;;  %v6857_v46 = vld [vmem:[%s7820_s9 + $0x70] sm:$0xff]  }
  0xc9   : > { %v955_v29 = vrot.slane %v953_v43, 7  ;;  %v6520_v24 = vrot.slane %v3774_v59, 9  ;;  %v6347_v61 = vcombine.low %v1565_v6, %v1575_v62  ;;  %v3870_v31 = vrot.slane %v8174_v2, 5 }
  0xca   : > { %v3867_v30 = vsel %vm8247_vm1, %v3865_v11, %v3866_v9  ;;  %v3873_v40 = vrot.slane %v8180_v20, 5  ;;  %v950_v14 = vor.u32 %v948_v38, %v947_v21  ;;  %v951_v25 = vrot.slane %v947_v21, 4  ;;  %v577_v38 = vld [vmem:[#allocation2 + $0xb4] sm:$0x1]  ;;  %v633_v11 = vld [vmem:[#allocation2 + $0xbc] sm:$0x1] }
  0xcb   : > { %v958_v26 = vor.u32 %v956_v63, %v955_v29  ;;  %v960_v23 = vrot.slane %v955_v29, 4  ;;  %7035 = vmatmul.mubr.msk.bf16.gmra.mrb[20].mxu1 %vm1722_vm12, %v6347_v61  ;;  %v6536_v60 = vcombine.low %v3864_v5, %v3867_v30  ;;  %v3871_v1 = vsel %vm8247_vm1, %v6520_v24, %v3870_v31  ;;  %v8469_v29 = vld [vmem:[#allocation2 + $0x54] sm:$0xe] }
  0xcc   : > { %v3872_v58 = vrot.slane %v3870_v31, 4  ;;  %v8441_v12 = vld [vmem:[#allocation2 + $0x90] sm:$0xf]  ;;  %v1149_v2 = vsel %vm7862_vm9, %v950_v14, %v1148_v34  ;;  %v6835_v28 = vunpack.c.h.bf16 %v6856_v47  ;;  %v452_v10 = vmul.f32 %v8167_v32, %v6834_v56 }
  0xcd   : > { %v959_v53 = vsel %vm7846_vm8, %v951_v25, %v958_v26  ;;  %v1153_v20 = vsel %vm7800_vm3, %v960_v23, %v1152_v55  ;;  %v8449_v44 = vld [vmem:[#allocation2 + $0x94] sm:$0xf]  ;;  %v1281_v17 = vld [vmem:[#allocation2 + $0x98] sm:$0x1]  ;;  %v1577_v45 = vshrl.u32 %v8441_v12, 16  ;;  %v1580_v16 = vshll.u32 %v8441_v12, 16  ;;  %7192 = vmatprep.mubr.msk.bf16.mxu0 %vm1722_vm12, %v6536_v60 }
  0xce   : > { %1150 = vst [vmem:[#allocation2 + $0x9c] sm:$0xf] %v1149_v2  ;;  %1151 = vst.msk [vmem:[#allocation2 + $0xa0] sm:$0xf] %vm1061_vm7, %v959_v53  ;;  %v3874_v41 = vsel %vm8247_vm1, %v3872_v58, %v3873_v40  ;;  %v1586_v52 = vshll.u32 %v8449_v44, 16  ;;  %v1590_v48 = vshrl.u32 %v8449_v44, 16  ;;  %v453_v49 = vmul.f32 %v8167_v32, %v6835_v28 }
  0xcf   : > { %1154 = vst [vmem:[#allocation2 + $0xa4] sm:$0x1] %v1153_v20  ;;  %v1596_v54 = vshll.u32 %v1281_v17, 16  ;;  %v6537_v6 = vcombine.low %v3871_v1, %v3874_v41  ;;  %v1579_v50 = vrot.slane %v1577_v45, 4  ;;  %v1582_v59 = vrot.slane %v1580_v16, 5 }
  0xd0   : > { %v491_v37 = vadd.f32 %v8197_v39, %v452_v10  ;;  %v1588_v43 = vrot.slane %v1586_v52, 5  ;;  %v1592_v63 = vrot.slane %v1590_v48, 4  ;;  %v575_v5 = vsel %vm7800_vm3, 0, %v574_v42  ;;  %v8482_v60 = vld [vmem:[%s9842_s3] ss:$0 sm:$0xff] }
  0xd1   : > { %v1598_v34 = vrot.slane %v1596_v54, 5  ;;  %7193 = vmatmul.mubr.msk.bf16.gmra.mrb[8].mxu0 %vm1722_vm12, %v6537_v6  ;;  %v1583_v9 = vor.u32 %v1582_v59, %v1579_v50  ;;  %v492_v62 = vadd.f32 %v8197_v39, %v453_v49  ;;  %576 = vst [vmem:[#allocation2 + $0xa8] sm:$0x1] %v575_v5  ;;  %v631_v32 = vsel %vm7807_vm5, 0, %v630_v8 }
  0xd2   : > { %v523_v21 = vmax.f32 %v491_v37, 0.0  ;;  %v1593_v24 = vor.u32 %v1592_v63, %v1588_v43  ;;  %632 = vst [vmem:[#allocation2 + $0xb0] sm:$0x1] %v631_v32  ;;  %v6838_v47 = vunpack.c.l.bf16 %v6857_v46  ;;  %v6839_v61 = vunpack.c.h.bf16 %v6857_v46 }
  0xd3   : > { %v578_v55 = vsel %vm7800_vm3, 0, %v577_v38  ;;  %v1584_v30 = vrot.slane %v1583_v9, 4  ;;  %v524_v31 = vmax.f32 %v492_v62, 0.0  ;;  %v634_v14 = vsel %vm7807_vm5, 0, %v633_v11 }
  0xd4   : > { %v6742_v40 = vpack.c.bf16 %v523_v21, %v523_v21  ;;  %579 = vst [vmem:[#allocation2 + $0xb4] sm:$0x1] %v578_v55  ;;  %v1594_v25 = vrot.slane %v1593_v24, 4  ;;  %v454_v1 = vmul.f32 %v8482_v60, %v6838_v47  ;;  %v455_v58 = vmul.f32 %v8482_v60, %v6839_v61  ;;  %635 = vst [vmem:[#allocation2 + $0xbc] sm:$0x1] %v634_v14 }
  0xd5   : > { %v8475_v26 = vld [vmem:[#allocation2 + $0x9c] sm:$0xf]  ;;  %v8477_v23 = vld [vmem:[#allocation2 + $0xa0] sm:$0xf]  ;;  %v6521_v56 = vrot.slane %v8469_v29, 9  ;;  %v1589_v53 = vsel %vm7913_vm13, %v1584_v30, %v1588_v43  ;;  %v6743_v41 = vpack.c.bf16 %v524_v31, %v524_v31  ;;  %v3877_v5 = vrot.slane %v8214_v51, 5 }
  0xd6   : > { %v1282_v2 = vld [vmem:[#allocation2 + $0xa4] sm:$0x1]  ;;  %v1601_v20 = vshrl.u32 %v8475_v26, 16  ;;  %v1604_v28 = vshll.u32 %v8475_v26, 16  ;;  %v1610_v42 = vshll.u32 %v8477_v23, 16  ;;  %v1599_v17 = vsel %vm7913_vm13, %v1594_v25, %v1598_v34 }
  0xd7   : > { %v1614_v45 = vshrl.u32 %v8477_v23, 16  ;;  %v1620_v16 = vshll.u32 %v1282_v2, 16  ;;  %v6348_v10 = vcombine.low %v1589_v53, %v1599_v17  ;;  %v962_v46 = vshrl.u32 %v6742_v40, 16  ;;  %v2241_v3 = vld [vmem:[#allocation2 + $0x9c] sm:$0xe] }
  0xd8   : > { %v1603_v52 = vrot.slane %v1601_v20, 4  ;;  %v1606_v48 = vrot.slane %v1604_v28, 5  ;;  %v1612_v54 = vrot.slane %v1610_v42, 5  ;;  %v965_v50 = vshll.u32 %v6742_v40, 16  ;;  %v1155_v62 = vld [vmem:[#allocation2 + $0xa8] sm:$0xf] }
  0xd9   : > { %v1616_v6 = vrot.slane %v1614_v45, 4  ;;  %v1622_v8 = vrot.slane %v1620_v16, 5  ;;  %7038 = vmatprep.mubr.msk.bf16.mxu1 %vm1722_vm12, %v6348_v10  ;;  %v970_v49 = vshrl.u32 %v6743_v41, 16  ;;  %v973_v37 = vshll.u32 %v6743_v41, 16  ;;  %v1159_v61 = vld [vmem:[#allocation2 + $0xb0] sm:$0x1] }
  0xda   : > { %v1607_v59 = vor.u32 %v1606_v48, %v1603_v52  ;;  %v493_v38 = vadd.f32 %v8197_v39, %v454_v1  ;;  %v964_v63 = vrot.slane %v962_v46, 7  ;;  %v494_v34 = vadd.f32 %v8197_v39, %v455_v58  ;;  %v3776_v1 = vld [vmem:[#allocation2 + $0x60] sm:$0xe]  ;;  %v3777_v10 = vld [vmem:[#allocation2 + $0x6c] sm:$0xe] }
  0xdb   : > { %v1617_v43 = vor.u32 %v1616_v6, %v1612_v54  ;;  %v972_v9 = vrot.slane %v970_v49, 7  ;;  %v3880_v32 = vrot.slane %v8221_v35, 5  ;;  %v3878_v35 = vsel %vm8247_vm1, %v6521_v56, %v3877_v5  ;;  %v1162_v48 = vld [vmem:[#allocation2 + $0xb4] sm:$0xf] }
  0xdc   : > { %v1608_v11 = vrot.slane %v1607_v59, 4  ;;  %v525_v21 = vmax.f32 %v493_v38, 0.0  ;;  %v967_v24 = vor.u32 %v965_v50, %v964_v63  ;;  %v968_v47 = vrot.slane %v964_v63, 4  ;;  %v1166_v59 = vld [vmem:[#allocation2 + $0xbc] sm:$0x1] }
  0xdd   : > { %v1618_v29 = vrot.slane %v1617_v43, 4  ;;  %v526_v55 = vmax.f32 %v494_v34, 0.0  ;;  %v975_v31 = vor.u32 %v973_v37, %v972_v9  ;;  %v977_v40 = vrot.slane %v972_v9, 4  ;;  %v3069_v38 = vld [vmem:[#allocation2 + $0x74] sm:$0x1] }
  0xde   : > { %v1613_v30 = vsel %vm7913_vm13, %v1608_v11, %v1612_v54  ;;  %v6744_v14 = vpack.c.bf16 %v525_v21, %v525_v21  ;;  %v1156_v51 = vsel %vm7862_vm9, %v967_v24, %v1155_v62  ;;  %v3879_v45 = vrot.slane %v3877_v5, 4 }
  0xdf   : > { %v1623_v39 = vsel %vm7913_vm13, %v1618_v29, %v1622_v8  ;;  %v6745_v25 = vpack.c.bf16 %v526_v55, %v526_v55  ;;  %v976_v53 = vsel %vm7846_vm8, %v968_v47, %v975_v31  ;;  %1157 = vst [vmem:[#allocation2 + $0xa8] sm:$0xf] %v1156_v51  ;;  %v1160_v2 = vsel %vm7800_vm3, %v977_v40, %v1159_v61  ;;  %v3068_v8 = vld [vmem:[#allocation2 + $0x70] sm:$0xf] }
  0xe0   : > { %v6349_v58 = vcombine.low %v1613_v30, %v1623_v39  ;;  %v979_v20 = vshrl.u32 %v6744_v14, 16  ;;  %1158 = vst.msk [vmem:[#allocation2 + $0xac] sm:$0xf] %vm1061_vm7, %v976_v53  ;;  %1161 = vst [vmem:[#allocation2 + $0xb0] sm:$0x1] %v1160_v2  ;;  %v982_v28 = vshll.u32 %v6744_v14, 16  ;;  %v3881_v54 = vsel %vm8247_vm1, %v3879_v45, %v3880_v32 }
  0xe1   : > { %v987_v42 = vshrl.u32 %v6745_v25, 16  ;;  %v990_v17 = vshll.u32 %v6745_v25, 16  ;;  %v6522_v16 = vrot.slane %v3776_v1, 9  ;;  %v3884_v41 = vrot.slane %v8295_v15, 5  ;;  %v3778_v1 = vld [vmem:[#allocation2 + $0x78] sm:$0xe] }
  0xe2   : > { %7039 = vmatmul.mubr.msk.bf16.gmra.mrb[24].mxu1 %vm1722_vm12, %v6349_v58  ;;  %v981_v56 = vrot.slane %v979_v20, 7  ;;  %v3887_v6 = vrot.slane %v8297_v0, 5  ;;  %v6538_v49 = vcombine.low %v3878_v35, %v3881_v54  ;;  %v6523_v34 = vrot.slane %v3777_v10, 9  ;;  %v8544_v35 = vld [vmem:[#allocation2 + $0x7c] sm:$0xf] }
  0xe3   : > { %v989_v52 = vrot.slane %v987_v42, 7  ;;  %v3885_v37 = vsel %vm8247_vm1, %v6522_v16, %v3884_v41  ;;  %v3886_v15 = vrot.slane %v3884_v41, 4  ;;  %v3891_v11 = vrot.slane %v3068_v8, 5  ;;  %v8548_v20 = vld [vmem:[#allocation2 + $0x80] sm:$0x1] }
  0xe4   : > { %v984_v46 = vor.u32 %v982_v28, %v981_v56  ;;  %v985_v50 = vrot.slane %v981_v56, 4  ;;  %7196 = vmatprep.mubr.msk.bf16.mxu0 %vm1722_vm12, %v6538_v49  ;;  %v3894_v32 = vrot.slane %v3069_v38, 5  ;;  %v6524_v56 = vrot.slane %v3778_v1, 9  ;;  %v3779_v54 = vld [vmem:[#allocation2 + $0x84] sm:$0xe] }
  0xe5   : > { %v992_v43 = vor.u32 %v990_v17, %v989_v52  ;;  %v994_v63 = vrot.slane %v989_v52, 4  ;;  %v3888_v21 = vsel %vm8247_vm1, %v3886_v15, %v3887_v6  ;;  %v3892_v30 = vsel %vm8247_vm1, %v6523_v34, %v3891_v11 }
  0xe6   : > { %v1163_v5 = vsel %vm7862_vm9, %v984_v46, %v1162_v48  ;;  %v8523_v0 = vld [vmem:[#allocation2 + $0xa8] sm:$0xf]  ;;  %v6539_v55 = vcombine.low %v3885_v37, %v3888_v21  ;;  %v3893_v39 = vrot.slane %v3891_v11, 4  ;;  %v3898_v10 = vrot.slane %v8544_v35, 5 }
  0xe7   : > { %v993_v9 = vsel %vm7846_vm8, %v985_v50, %v992_v43  ;;  %1164 = vst [vmem:[#allocation2 + $0xb4] sm:$0xf] %v1163_v5  ;;  %v1167_v62 = vsel %vm7800_vm3, %v994_v63, %v1166_v59  ;;  %v8531_v29 = vld [vmem:[#allocation2 + $0xac] sm:$0xf]  ;;  %v8533_v24 = vld [vmem:[#allocation2 + $0xb0] sm:$0x1] }
  0xe8   : > { %v1625_v47 = vshrl.u32 %v8523_v0, 16  ;;  %v1628_v61 = vshll.u32 %v8523_v0, 16  ;;  %1165 = vst.msk [vmem:[#allocation2 + $0xb8] sm:$0xf] %vm1061_vm7, %v993_v9  ;;  %1168 = vst [vmem:[#allocation2 + $0xbc] sm:$0x1] %v1167_v62  ;;  %7197 = vmatmul.mubr.msk.bf16.gmra.mrb[12].mxu0 %vm1722_vm12, %v6539_v55  ;;  %v3895_v2 = vsel %vm8247_vm1, %v3893_v39, %v3894_v32  ;;  %v3899_v11 = vsel %vm8247_vm1, %v6524_v56, %v3898_v10 }
  0xe9   : > { %v1634_v31 = vshll.u32 %v8531_v29, 16  ;;  %v1638_v40 = vshrl.u32 %v8531_v29, 16  ;;  %v1644_v14 = vshll.u32 %v8533_v24, 16  ;;  %v6540_v42 = vcombine.low %v3892_v30, %v3895_v2  ;;  %v3074_v48 = vld [vmem:[#allocation2 + $0x88] sm:$0xf] }
  0xea   : > { %v1627_v51 = vrot.slane %v1625_v47, 4  ;;  %v1630_v25 = vrot.slane %v1628_v61, 5  ;;  %v3901_v52 = vrot.slane %v8548_v20, 5  ;;  %v3075_v59 = vld [vmem:[#allocation2 + $0x8c] sm:$0x1]  ;;  %v3900_v30 = vrot.slane %v3898_v10, 4 }
  0xeb   : > { %v1636_v58 = vrot.slane %v1634_v31, 5  ;;  %v1640_v53 = vrot.slane %v1638_v40, 4  ;;  %v1646_v45 = vrot.slane %v1644_v14, 5  ;;  %7200 = vmatprep.mubr.msk.bf16.mxu0 %vm1722_vm12, %v6540_v42  ;;  %v3780_v63 = vld [vmem:[#allocation2 + $0x90] sm:$0xe]  ;;  %v6525_v31 = vrot.slane %v3779_v54, 9 }
  0xec   : > { %v1631_v28 = vor.u32 %v1630_v25, %v1627_v51  ;;  %v3077_v9 = vld [vmem:[#allocation2 + $0x94] sm:$0xf]  ;;  %v3078_v62 = vld [vmem:[#allocation2 + $0x98] sm:$0x1]  ;;  %v3905_v40 = vrot.slane %v3074_v48, 5  ;;  %v3908_v51 = vrot.slane %v3075_v59, 5  ;;  %v3902_v1 = vsel %vm8247_vm1, %v3900_v30, %v3901_v52 }
  0xed   : > { %v1641_v17 = vor.u32 %v1640_v53, %v1636_v58  ;;  %v6526_v25 = vrot.slane %v3780_v63, 9  ;;  %v3912_v2 = vrot.slane %v3077_v9, 5  ;;  %v3915_v56 = vrot.slane %v3078_v62, 5  ;;  %v7647_v10 = vld [vmem:[#allocation2] sm:$0xf]  ;;  %v6858_v63 = vld [vmem:[%s7820_s9 + $0x78] sm:$0xff]  }
  0xee   : > { %v1632_v16 = vrot.slane %v1631_v28, 4  ;;  %v8550_v41 = vld [vmem:[#allocation2 + $0xb4] sm:$0xf]  ;;  %v3907_v53 = vrot.slane %v3905_v40, 4  ;;  %v3080_v28 = vld [vmem:[#allocation2 + $0xa0] sm:$0xf] }
  0xef   : > { %v1642_v6 = vrot.slane %v1641_v17, 4  ;;  %v8555_v8 = vld [vmem:[#allocation2 + $0xb8] sm:$0xf]  ;;  %v8557_v46 = vld [vmem:[#allocation2 + $0xbc] sm:$0x1]  ;;  %v1649_v50 = vshrl.u32 %v8550_v41, 16 }
  0xf0   : > { %v1637_v49 = vsel %vm7913_vm13, %v1632_v16, %v1636_v58  ;;  %v1652_v37 = vshll.u32 %v8550_v41, 16  ;;  %v1658_v38 = vshll.u32 %v8555_v8, 16  ;;  %v1662_v43 = vshrl.u32 %v8555_v8, 16  ;;  %v3781_v16 = vld [vmem:[#allocation2 + $0x9c] sm:$0xe] }
  0xf1   : > { %v1647_v15 = vsel %vm7913_vm13, %v1642_v6, %v1646_v45  ;;  %v1651_v34 = vrot.slane %v1649_v50, 4  ;;  %v1668_v5 = vshll.u32 %v8557_v46, 16  ;;  %v3906_v58 = vsel %vm8247_vm1, %v6525_v31, %v3905_v40  ;;  %v8575_v48 = vld [vmem:[#allocation2 + $0x4] sm:$0xf]  ;;  %v3083_v59 = vld [vmem:[#allocation2 + $0xac] sm:$0xf] }
  0xf2   : > { %v6350_v21 = vcombine.low %v1637_v49, %v1647_v15  ;;  %v1654_v32 = vrot.slane %v1652_v37, 5  ;;  %v1660_v47 = vrot.slane %v1658_v38, 5  ;;  %v1664_v61 = vrot.slane %v1662_v43, 4  ;;  %v3081_v50 = vld [vmem:[#allocation2 + $0xa4] sm:$0x1] }
  0xf3   : > { %v1670_v55 = vrot.slane %v1668_v5, 5  ;;  %v6541_v45 = vcombine.low %v3899_v11, %v3902_v1  ;;  %v6368_v54 = vcombine.low %v7647_v10, %v8575_v48  ;;  %v3909_v52 = vsel %vm8247_vm1, %v3907_v53, %v3908_v51  ;;  %v3084_v9 = vld [vmem:[#allocation2 + $0xb0] sm:$0x1]  ;;  %v3782_v62 = vld [vmem:[#allocation2 + $0xa8] sm:$0xe] }
  0xf4   : > { %7042 = vmatprep.mubr.msk.bf16.mxu1 %vm1722_vm12, %v6350_v21  ;;  %v1655_v14 = vor.u32 %v1654_v32, %v1651_v34  ;;  %v1665_v39 = vor.u32 %v1664_v61, %v1660_v47  ;;  %v3914_v6 = vrot.slane %v3912_v2, 4  ;;  %v6542_v38 = vcombine.low %v3906_v58, %v3909_v52  ;;  %v3783_v61 = vld [vmem:[#allocation2 + $0xb4] sm:$0xe]  ;;  %v3087_v31 = vld [vmem:[#allocation2 + $0xbc] sm:$0x1] }
  0xf5   : > { %7201 = vmatmul.mubr.msk.bf16.gmra.mrb[16].mxu0 %vm1722_vm12, %v6541_v45  ;;  %v3913_v43 = vsel %vm8247_vm1, %v6526_v25, %v3912_v2  ;;  %v6527_v5 = vrot.slane %v3781_v16, 9  ;;  %v3919_v11 = vrot.slane %v3080_v28, 5  ;;  %v3922_v21 = vrot.slane %v3081_v50, 5  ;;  %v580_v40 = vld [vmem:[#allocation2 + $0xc0] sm:$0x1] }
  0xf6   : > { %v1656_v42 = vrot.slane %v1655_v14, 4  ;;  %v1666_v17 = vrot.slane %v1665_v39, 4  ;;  %v3916_v34 = vsel %vm8247_vm1, %v3914_v6, %v3915_v56  ;;  %7204 = vmatprep.mubr.msk.bf16.mxu0 %vm1722_vm12, %v6542_v38  ;;  %v3926_v32 = vrot.slane %v3083_v59, 5  ;;  %v636_v28 = vld [vmem:[#allocation2 + $0xc8] sm:$0x1] }
  0xf7   : > { %v3921_v30 = vrot.slane %v3919_v11, 4  ;;  %v6543_v14 = vcombine.low %v3913_v43, %v3916_v34  ;;  %v6528_v39 = vrot.slane %v3782_v62, 9  ;;  %v3929_v25 = vrot.slane %v3084_v9, 5  ;;  %v7649_v16 = vld [vmem:[#allocation2 + $0xc] sm:$0xf] }
  0xf8   : > { %v1661_v49 = vsel %vm7913_vm13, %v1656_v42, %v1660_v47  ;;  %v1671_v37 = vsel %vm7913_vm13, %v1666_v17, %v1670_v55  ;;  %v3086_v47 = vld [vmem:[#allocation2 + $0xb8] sm:$0xf]  ;;  %v3920_v55 = vsel %vm8247_vm1, %v6527_v5, %v3919_v11  ;;  %v3928_v51 = vrot.slane %v3926_v32, 4  ;;  %v8599_v10 = vld [vmem:[#allocation2 + $0x10] sm:$0xf] }
  0xf9   : > { %v6351_v15 = vcombine.low %v1661_v49, %v1671_v37  ;;  %v3923_v1 = vsel %vm8247_vm1, %v3921_v30, %v3922_v21  ;;  %v6529_v58 = vrot.slane %v3783_v61, 9  ;;  %v3933_v53 = vrot.slane %v3086_v47, 5  ;;  %v7651_v50 = vld [vmem:[#allocation2 + $0x18] sm:$0xf]  ;;  %v8603_v59 = vld [vmem:[#allocation2 + $0x1c] sm:$0xf] }
  0xfa   : > { %v6842_v2 = vunpack.c.l.bf16 %v6858_v63  ;;  %v6544_v42 = vcombine.low %v3920_v55, %v3923_v1  ;;  %v3936_v17 = vrot.slane %v3087_v31, 5  ;;  %v6843_v45 = vunpack.c.h.bf16 %v6858_v63  ;;  %v7653_v43 = vld [vmem:[%s9841_s2 + $0x4] sm:$0x3]  ;;  %v8629_v21 = vld [vmem:[%s9841_s2 + $0x6] sm:$0x3] }
  0xfb   : > { %7043 = vmatmul.mubr.msk.bf16.gmra.mrb[28].mxu1 %vm1722_vm12, %v6351_v15  ;;  %v581_v56 = vsel %vm7800_vm3, 0, %v580_v40  ;;  %v3935_v52 = vrot.slane %v3933_v53, 4  ;;  %v6370_v49 = vcombine.low %v7651_v50, %v8603_v59  ;;  %v637_v38 = vsel %vm7807_vm5, 0, %v636_v28  ;;  %v7655_v40 = vld [vmem:[#allocation2 + $0x24] sm:$0xf] }
  0xfc   : > { %7048 = vmatprep.mubr.msk.bf16.mxu1 %vm1722_vm12, %v6368_v54  ;;  %v6369_v54 = vcombine.low %v7649_v16, %v8599_v10  ;;  %v456_v6 = vmul.f32 %v8482_v60, %v6842_v2  ;;  %582 = vst [vmem:[#allocation2 + $0xc0] sm:$0x1] %v581_v56  ;;  %v457_v37 = vmul.f32 %v8482_v60, %v6843_v45  ;;  %v2490_v63 = vsel %vm1771_vm0, %v7653_v43, 0  ;;  %v7654_v60 = vld [vmem:[%s9843_s4] ss:$0 sm:$0xff] }
  0xfd   : > { %7205 = vmatmul.mubr.msk.bf16.gmra.mrb[20].mxu0 %vm1722_vm12, %v6543_v14  ;;  %v3927_v15 = vsel %vm8247_vm1, %v6528_v39, %v3926_v32  ;;  %v3930_v34 = vsel %vm8247_vm1, %v3928_v51, %v3929_v25  ;;  %638 = vst [vmem:[#allocation2 + $0xc8] sm:$0x1] %v637_v38  ;;  %v3934_v11 = vsel %vm8247_vm1, %v6529_v58, %v3933_v53  ;;  %v8635_v14 = vld [vmem:[#allocation2 + $0x28] sm:$0xf]  ;;  %v8638_v1 = vld [vmem:[#allocation2 + $0x34] sm:$0xf] }
  0xfe   : > { %7208 = vmatprep.mubr.msk.bf16.mxu0 %vm1722_vm12, %v6544_v42  ;;  %v495_v5 = vadd.f32 %v7654_v60, %v456_v6  ;;  %v3937_v9 = vsel %vm8247_vm1, %v3935_v52, %v3936_v17  ;;  %v496_v62 = vadd.f32 %v7654_v60, %v457_v37  ;;  %v6545_v47 = vcombine.low %v3927_v15, %v3930_v34  ;;  %v7658_v58 = vld [vmem:[#allocation2 + $0x30] sm:$0xf]  ;;  %v7659_v38 = vld [vmem:[#allocation2 + $0x3c] sm:$0xf]  ;;  %v8651_v43 = vld [vmem:[#allocation2 + $0x40] sm:$0xf] }
  0xff   : > { %v6546_v55 = vcombine.low %v3934_v11, %v3937_v9  ;;  %v6371_v39 = vcombine.low %v7655_v40, %v8635_v14  ;;  %v6372_v53 = vcombine.low %v7658_v58, %v8638_v1  ;;  %v7661_v15 = vld [vmem:[#allocation2 + $0x48] sm:$0xf]  ;;  %v8655_v34 = vld [vmem:[#allocation2 + $0x4c] sm:$0xf] }
 0x100   : > { %v527_v32 = vmax.f32 %v495_v5, 0.0  ;;  %v528_v61 = vmax.f32 %v496_v62, 0.0  ;;  %v6374_v60 = vcombine.low %v7661_v15, %v8655_v34  ;;  %v583_v5 = vld [vmem:[#allocation2 + $0xcc] sm:$0x1]  ;;  %v6333_v11 = vld [vmem:[%s7825_s12 + $0x8] sm:$0xf] }
 0x101   : > { %v6334_v9 = vld [vmem:[%s7825_s12 + $0xc] sm:$0xf]  ;;  %v584_v62 = vsel %vm7800_vm3, 0, %v583_v5 }
 0x102   : > { %v6746_v30 = vpack.c.bf16 %v527_v32, %v527_v32  ;;  %v6747_v31 = vpack.c.bf16 %v528_v61, %v528_v61  ;;  %585 = vst [vmem:[#allocation2 + $0xcc] sm:$0x1] %v584_v62  ;;  %v1209_v32 = vshrl.u32 %v6333_v11, 16  ;;  %v1212_v61 = vshll.u32 %v6333_v11, 16 }
 0x103   : > { %7049 = vmatmul.mubr.msk.bf16.vlgmr.msra.gmra.mrb[0].mxu1 %vm1722_vm12, %v6369_v54  ;;  %v1169_v45 = vld [vmem:[#allocation2 + $0xc0] sm:$0xf]  ;;  %v2288_v62 = vrot.slane %v8599_v10, 5  ;;  %v2230_v10 = vld [vmem:[#allocation2 + $0x18] sm:$0xe] }
 0x104   : > { %7081 = vmatpush3.bf16.msra.mxu1 %v2490_v63  ;;  %7052 = vmatprep.mubr.msk.bf16.mxu1 %vm1722_vm12, %v6370_v49  ;;  %v996_v51 = vshrl.u32 %v6746_v30, 16  ;;  %v999_v25 = vshll.u32 %v6746_v30, 16  ;;  %v1004_v2 = vshrl.u32 %v6747_v31, 16  ;;  %v1007_v28 = vshll.u32 %v6747_v31, 16  ;;  %v1173_v54 = vld [vmem:[#allocation2 + $0xc8] sm:$0x1] }
 0x105   : > { %7579 = vmatprep.subr.msk.bf16.mxu1 %vm1771_vm0, %v8629_v21  ;;  %7209 = vmatmul.mubr.msk.bf16.gmra.mrb[24].mxu0 %vm1722_vm12, %v6545_v47  ;;  %v6373_v63 = vcombine.low %v7659_v38, %v8651_v43  ;;  %v3317_v30 = vshll.u32 %v8544_v35, 16 }
 0x106   : > { %7212 = vmatprep.mubr.msk.bf16.mxu0 %vm1722_vm12, %v6546_v55  ;;  %v998_v42 = vrot.slane %v996_v51, 7  ;;  %v1006_v17 = vrot.slane %v1004_v2, 7  ;;  %v1217_v55 = vshrl.u32 %v6334_v9, 16  ;;  %v7663_v51 = vld [vmem:[#allocation2 + $0x54] sm:$0xf] }
 0x107   : > { %v8677_v38 = vrot.slane %v3317_v30, 5  ;;  %v3327_v30 = vshll.u32 %v8548_v20, 16  ;;  %v6378_v20 = vcombine.low %v8375_v36, %v8377_v19  ;;  %v2309_v36 = vrot.slane %v8638_v1, 5  ;;  %v2233_v19 = vld [vmem:[#allocation2 + $0x3c] sm:$0xe] }
 0x108   : > { %v1001_v56 = vor.u32 %v999_v25, %v998_v42  ;;  %v1002_v16 = vrot.slane %v998_v42, 4  ;;  %v1009_v52 = vor.u32 %v1007_v28, %v1006_v17  ;;  %v1011_v6 = vrot.slane %v1006_v17, 4  ;;  %v8665_v25 = vld [vmem:[#allocation2 + $0x58] sm:$0xf]  ;;  %v7665_v17 = vld [vmem:[#allocation2 + $0x60] sm:$0xf] }
 0x109   : > { %v6375_v58 = vcombine.low %v7663_v51, %v8665_v25  ;;  %v1211_v28 = vrot.slane %v1209_v32, 7  ;;  %v3321_v42 = vshrl.u32 %v8544_v35, 16  ;;  %9879 = vst [vmem:[#allocation5_spill] sm:$0xff] %v8677_v38  ;;  %v1229_v15 = vld [vmem:[#allocation2 + $0xcc] sm:$0xf]  ;;  %v2281_v32 = vrot.slane %v8575_v48, 5 }
 0x10a   : > { %v1170_v50 = vsel %vm7862_vm9, %v1001_v56, %v1169_v45  ;;  %v1010_v49 = vsel %vm7846_vm8, %v1002_v16, %v1009_v52  ;;  %v1174_v37 = vsel %vm7800_vm3, %v1011_v6, %v1173_v54  ;;  %v8669_v45 = vld [vmem:[#allocation2 + $0x64] sm:$0xf]  ;;  %v8672_v16 = vrot.slane %v1217_v55, 7 }
 0x10b   : > { %7053 = vmatmul.mubr.msk.bf16.gmra.mrb[4].mxu1 %vm1722_vm12, %v6371_v39  ;;  %1171 = vst [vmem:[#allocation2 + $0xc0] sm:$0xf] %v1170_v50  ;;  %1172 = vst.msk [vmem:[#allocation2 + $0xc4] sm:$0xf] %vm1061_vm7, %v1010_v49  ;;  %v6376_v56 = vcombine.low %v7665_v17, %v8669_v45  ;;  %v1220_v54 = vshll.u32 %v6334_v9, 16  ;;  %v1214_v50 = vor.u32 %v1212_v61, %v1211_v28  ;;  %v1215_v49 = vrot.slane %v1211_v28, 4 }
 0x10c   : > { %7056 = vmatprep.mubr.msk.bf16.mxu1 %vm1722_vm12, %v6372_v53  ;;  %1175 = vst [vmem:[#allocation2 + $0xc8] sm:$0x1] %v1174_v37  ;;  %v2229_v61 = vld [vmem:[#allocation2 + $0xc] sm:$0xe]  ;;  %v2295_v55 = vrot.slane %v8603_v59, 5  ;;  %v7611_v59 = vld [vmem:[#allocation2 + $0x24] sm:$0xff]  }
 0x10d   : > { %v1222_v37 = vor.u32 %v1220_v54, %v8672_v16  ;;  %v1230_v9 = vsel %vm7862_vm9, %v1214_v50, %v1229_v15  ;;  %v2231_v48 = vld [vmem:[#allocation2 + $0x24] sm:$0xe]  ;;  %v7612_v28 = vld [vmem:[#allocation2 + $0x30] sm:$0xff]   ;;  %v2283_v17 = vrot.slane %v2281_v32, 4  ;;  %v2290_v54 = vrot.slane %v2288_v62, 4 }
 0x10e   : > { %1231 = vst [vmem:[#allocation2 + $0xcc] sm:$0xf] %v1230_v9  ;;  %v7671_v50 = vld [vmem:[#allocation2 + $0x20] sm:$0x1]  ;;  %v7672_v15 = vld [vmem:[#allocation2 + $0x2c] sm:$0x1] }
 0x10f   : > { %v1223_v11 = vsel %vm7846_vm8, %v1215_v49, %v1222_v37  ;;  %v2298_v49 = vrot.slane %v7671_v50, 5  ;;  %v2232_v37 = vld [vmem:[#allocation2 + $0x30] sm:$0xe] }
 0x110   : > { %1232 = vst.msk [vmem:[#allocation2 + $0xd0] sm:$0xf] %vm1061_vm7, %v1223_v11  ;;  %v7673_v11 = vld [vmem:[%s9841_s2 + $0xe] sm:$0x3] }
 0x111   : > { %v5129_v9 = vsel %vm1771_vm0, %v7673_v11, 0 }
 0x112   : > { %v3784_v47 = vld [vmem:[#allocation2 + $0xc0] sm:$0xe]  ;;  %v3089_v31 = vld [vmem:[#allocation2 + $0xc4] sm:$0xf] }
 0x113   : > { %7057 = vmatmul.mubr.msk.bf16.gmra.mrb[8].mxu1 %vm1722_vm12, %v6373_v63  ;;  %v3090_v40 = vld [vmem:[#allocation2 + $0xc8] sm:$0x1]  ;;  %v6530_v39 = vrot.slane %v3784_v47, 9  ;;  %v3940_v53 = vrot.slane %v3089_v31, 5  ;;  %v7610_v63 = vld [vmem:[#allocation2 + $0x18] sm:$0xff]  }
 0x114   : > { %7060 = vmatprep.mubr.msk.bf16.mxu1 %vm1722_vm12, %v6374_v60  ;;  %v3943_v2 = vrot.slane %v3090_v40, 5  ;;  %v3323_v60 = vrot.slane %v3321_v42, 4  ;;  %v2228_v47 = vld [vmem:[#allocation2] sm:$0xe]  ;;  %v8693_v31 = vld [vmem:[#allocation2 + $0x70] sm:$0xf] }
 0x115   : > { %v3941_v52 = vsel %vm8247_vm1, %v6530_v39, %v3940_v53  ;;  %v3942_v6 = vrot.slane %v3940_v53, 4  ;;  %v6377_v33 = vcombine.low %v7667_v27, %v8693_v31  ;;  %v2302_v40 = vrot.slane %v8635_v14, 5  ;;  %v7669_v39 = vld [vmem:[#allocation2 + $0x8] sm:$0x1] }
 0x116   : > { %v2284_v51 = vrot.slane %v7669_v39, 5  ;;  %v6400_v42 = vrot.slane %v2228_v47, 9  ;;  %v6403_v14 = vrot.slane %v2231_v48, 9  ;;  %v6379_v47 = vcombine.low %v8402_v22, %v8412_v13  ;;  %v8735_v22 = vld [vmem:[%s9841_s2 + $0x10] sm:$0x3] }
 0x117   : > { %v3944_v35 = vsel %vm8247_vm1, %v3942_v6, %v3943_v2  ;;  %v3324_v2 = vor.u32 %v3323_v60, %v8677_v38  ;;  %v2297_v6 = vrot.slane %v2295_v55, 4  ;;  %v2305_v60 = vrot.slane %v7672_v15, 5  ;;  %v7674_v48 = vld [vmem:[#allocation2 + $0x38] sm:$0x1]  ;;  %v4601_v15 = vld [vmem:[#allocation2 + $0x24] sm:$0xf] }
 0x118   : > { %v6547_v5 = vcombine.low %v3941_v52, %v3944_v35  ;;  %v6402_v52 = vrot.slane %v2230_v10, 9  ;;  %v8701_v35 = vrot.slane %v3327_v30, 5  ;;  %v8718_v1 = vsel %vm8247_vm1, %v6400_v42, %v2281_v32  ;;  %v2235_v42 = vld [vmem:[#allocation2 + $0x54] sm:$0xe] }
 0x119   : > { %v8722_v30 = vsel %vm8247_vm1, %v2283_v17, %v2284_v51  ;;  %v2311_v10 = vrot.slane %v2309_v36, 4  ;;  %v6405_v39 = vrot.slane %v2233_v19, 9  ;;  %v6381_v51 = vcombine.low %v8475_v26, %v8477_v23  ;;  %v7676_v19 = vld [vmem:[#allocation2 + $0x50] sm:$0x1]  ;;  %v7678_v23 = vld [vmem:[#allocation2 + $0x68] sm:$0x1] }
 0x11a   : > { %7213 = vmatmul.mubr.msk.bf16.gmra.mrb[28].mxu0 %vm1722_vm12, %v6547_v5  ;;  %9880 = vst [vmem:[#allocation6_spill] sm:$0xff] %v8701_v35  ;;  %v8705_v5 = vrot.slane %v3324_v2, 4  ;;  %v8740_v13 = vsel %vm8247_vm1, %v6402_v52, %v2295_v55  ;;  %v2312_v55 = vrot.slane %v7674_v48, 5  ;;  %v2323_v2 = vrot.slane %v8655_v34, 5 }
 0x11b   : > { %7061 = vmatmul.mubr.msk.bf16.gmra.mrb[12].mxu1 %vm1722_vm12, %v6375_v58  ;;  %7218 = vmatprep.mubr.msk.bf16.mxu0 %vm1722_vm12, %v7610_v63  ;;  %v7670_v58 = vld [vmem:[#allocation2 + $0x14] sm:$0x1]  ;;  %v2304_v63 = vrot.slane %v2302_v40, 4  ;;  %v2330_v17 = vrot.slane %v8665_v25, 5  ;;  %v2326_v11 = vrot.slane %v7676_v19, 5 }
 0x11c   : > { %7064 = vmatprep.mubr.msk.bf16.mxu1 %vm1722_vm12, %v6376_v56  ;;  %v2291_v53 = vrot.slane %v7670_v58, 5  ;;  %v6401_v56 = vrot.slane %v2229_v61, 9  ;;  %9881 = vst [vmem:[#allocation7_spill] sm:$0xff] %v8705_v5  ;;  %v6380_v61 = vcombine.low %v8441_v12, %v8449_v44  ;;  %v8744_v12 = vsel %vm8247_vm1, %v2297_v6, %v2298_v49  ;;  %v7675_v49 = vld [vmem:[#allocation2 + $0x44] sm:$0x1] }
 0x11d   : > { %v8748_v44 = vsel %vm8247_vm1, %v6403_v14, %v2302_v40  ;;  %v8753_v32 = vsel %vm8247_vm1, %v2304_v63, %v2305_v60  ;;  %v6382_v58 = vcombine.low %v8523_v0, %v8531_v29  ;;  %v2316_v40 = vrot.slane %v8651_v43, 5  ;;  %v7613_v43 = vld [vmem:[#allocation2 + $0x3c] sm:$0xff]   ;;  %v8856_v0 = vld [vmem:[#allocation2 + $0x34] sm:$0xf] }
 0x11e   : > { %v8726_v27 = vsel %vm8247_vm1, %v6401_v56, %v2288_v62  ;;  %v6404_v62 = vrot.slane %v2232_v37, 9  ;;  %v7614_v56 = vld [vmem:[#allocation2 + $0x48] sm:$0xff]   ;;  %v8785_v25 = vsel %vm8247_vm1, %v2311_v10, %v2312_v55  ;;  %v2319_v14 = vrot.slane %v7675_v49, 5  ;;  %v4599_v63 = vld [vmem:[#allocation2 + $0x1c] sm:$0xf]  ;;  %9882 = vst [vmem:[#allocation8_spill] sm:$0xff] %v8856_v0 }
 0x11f   : > { %v8789_v50 = vsel %vm8247_vm1, %v6405_v39, %v2316_v40  ;;  %v2318_v60 = vrot.slane %v2316_v40, 4  ;;  %v7677_v10 = vld [vmem:[#allocation2 + $0x5c] sm:$0x1]  ;;  %v4656_v39 = vshll.u32 %v4599_v63, 16  ;;  %v4660_v49 = vshrl.u32 %v4599_v63, 16 }
 0x120   : > { %v8780_v6 = vsel %vm8247_vm1, %v6404_v62, %v2309_v36  ;;  %v2325_v36 = vrot.slane %v2323_v2, 4  ;;  %v2332_v62 = vrot.slane %v2330_v17, 4  ;;  %v2333_v48 = vrot.slane %v7677_v10, 5  ;;  %v2236_v63 = vld [vmem:[#allocation2 + $0x60] sm:$0xe] }
 0x121   : > { %v2237_v10 = vld [vmem:[#allocation2 + $0x6c] sm:$0xe]  ;;  %v7687_v5 = vld [vmem:[#allocation2 + $0xa0] sm:$0xf] }
 0x122   : > { %7219 = vmatmul.mubr.msk.bf16.vlgmr.msra.gmra.mrb[0].mxu0 %vm1722_vm12, %v7611_v59  ;;  %v4662_v59 = vrot.slane %v4660_v49, 4  ;;  %v6409_v34 = vrot.slane %v2237_v10, 9  ;;  %v2238_v10 = vld [vmem:[#allocation2 + $0x78] sm:$0xe]  ;;  %v2372_v35 = vrot.slane %v7687_v5, 5 }
 0x123   : > { %7065 = vmatmul.mubr.msk.bf16.gmra.mrb[16].mxu1 %vm1722_vm12, %v6377_v33  ;;  %v8730_v33 = vsel %vm8247_vm1, %v2290_v54, %v2291_v53  ;;  %7251 = vmatpush3.bf16.msra.mxu0 %v5129_v9  ;;  %v2234_v53 = vld [vmem:[#allocation2 + $0x48] sm:$0xe]  ;;  %v6407_v9 = vrot.slane %v2235_v42, 9  ;;  %v4674_v54 = vshll.u32 %v4601_v15, 16 }
 0x124   : > { %7068 = vmatprep.mubr.msk.bf16.mxu1 %vm1722_vm12, %v6378_v20  ;;  %7222 = vmatprep.mubr.msk.bf16.mxu0 %vm1722_vm12, %v7612_v28  ;;  %v8769_v28 = vsel %vm1771_vm0, %v8629_v21, 0  ;;  %v4598_v21 = vld [vmem:[#allocation2 + $0x18] sm:$0xf]  ;;  %v6406_v37 = vrot.slane %v2234_v53, 9  ;;  %v4671_v53 = vshrl.u32 %v4601_v15, 16  ;;  %v2337_v15 = vrot.slane %v8669_v45, 5 }
 0x125   : > { %7585 = vmatprep.subr.msk.bf16.mxu0 %vm1771_vm0, %v8735_v22  ;;  %v4647_v55 = vshrl.u32 %v4598_v21, 16  ;;  %v4650_v52 = vshll.u32 %v4598_v21, 16  ;;  %v8802_v21 = vsel %vm8247_vm1, %v2318_v60, %v2319_v14  ;;  %v2344_v14 = vrot.slane %v8693_v31, 5  ;;  %v4603_v20 = vld [vmem:[#allocation2 + $0x2c] sm:$0x1] }
 0x126   : > { %v8798_v40 = vsel %vm8247_vm1, %v6406_v37, %v2323_v2  ;;  %v7615_v2 = vld [vmem:[#allocation2 + $0x54] sm:$0xff]   ;;  %v7616_v37 = vld [vmem:[#allocation2 + $0x60] sm:$0xff]   ;;  %v6408_v45 = vrot.slane %v2236_v63, 9  ;;  %v2339_v26 = vrot.slane %v2337_v15, 4  ;;  %v4690_v63 = vshll.u32 %v4603_v20, 16 }
 0x127   : > { %v4649_v60 = vrot.slane %v4647_v55, 4  ;;  %v7679_v55 = vld [vmem:[#allocation2 + $0x74] sm:$0x1]  ;;  %v2239_v20 = vld [vmem:[#allocation2 + $0x84] sm:$0xe] }
 0x128   : > { %v4692_v31 = vrot.slane %v4690_v63, 5 }
 0x12a   : > { %7223 = vmatmul.mubr.msk.bf16.gmra.mrb[4].mxu0 %vm1722_vm12, %v7613_v43  ;;  %v8806_v43 = vsel %vm8247_vm1, %v2325_v36, %v2326_v11  ;;  %v4600_v36 = vld [vmem:[#allocation2 + $0x20] sm:$0x1]  ;;  %v8818_v11 = vrot.slane %v4656_v39, 5  ;;  %v2347_v39 = vrot.slane %v7679_v55, 5 }
 0x12b   : > { %7069 = vmatmul.mubr.msk.bf16.gmra.mrb[20].mxu1 %vm1722_vm12, %v6379_v47  ;;  %v4602_v47 = vld [vmem:[#allocation2 + $0x28] sm:$0xf]  ;;  %7226 = vmatprep.mubr.msk.bf16.mxu0 %vm1722_vm12, %v7614_v56  ;;  %v8810_v56 = vsel %vm8247_vm1, %v6407_v9, %v2330_v17  ;;  %v4673_v17 = vrot.slane %v4671_v53, 4  ;;  %v4676_v9 = vrot.slane %v4674_v54, 5  ;;  %v4666_v53 = vshll.u32 %v4600_v36, 16 }
 0x12c   : > { %7072 = vmatprep.mubr.msk.bf16.mxu1 %vm1722_vm12, %v6380_v61  ;;  %v4680_v42 = vshll.u32 %v4602_v47, 16  ;;  %v4684_v19 = vshrl.u32 %v4602_v47, 16  ;;  %v8815_v47 = vsel %vm8247_vm1, %v2332_v62, %v2333_v48  ;;  %v4652_v61 = vrot.slane %v4650_v52, 5 }
 0x12d   : > { %v2346_v52 = vrot.slane %v2344_v14, 4 }
 0x12e   : > { %v8824_v62 = vrot.slane %v4680_v42, 5  ;;  %v4686_v48 = vrot.slane %v4684_v19, 4  ;;  %v4653_v49 = vor.u32 %v4652_v61, %v4649_v60  ;;  %v4604_v42 = vld [vmem:[#allocation2 + $0x30] sm:$0xf]  ;;  %v4677_v19 = vor.u32 %v4676_v9, %v4673_v17  ;;  %v7680_v60 = vld [vmem:[#allocation2 + $0x7c] sm:$0xf] }
 0x12f   : > { %v8845_v61 = vsel %vm8247_vm1, %v6409_v34, %v2344_v14  ;;  %v2351_v36 = vrot.slane %v7680_v60, 5  ;;  %v7681_v17 = vld [vmem:[#allocation2 + $0x88] sm:$0xf]  ;;  %v4698_v55 = vshll.u32 %v4604_v42, 16  ;;  %v4668_v34 = vrot.slane %v4666_v53, 5 }
 0x130   : > { %v2358_v9 = vrot.slane %v7681_v17, 5  ;;  %v6410_v14 = vrot.slane %v2238_v10, 9  ;;  %v4678_v54 = vrot.slane %v4677_v19, 4  ;;  %v9883_v17 = vcombine.low %v8550_v41, %v8555_v8 }
 0x131   : > { %v9884_v10 = vcombine.low %v8718_v1, %v8722_v30  ;;  %v4700_v63 = vrot.slane %v4698_v55, 5 }
 0x132   : > { %7227 = vmatmul.mubr.msk.bf16.gmra.mrb[8].mxu0 %vm1722_vm12, %v7615_v2  ;;  %v4687_v2 = vor.u32 %v4686_v48, %v8824_v62  ;;  %v7617_v48 = vld [vmem:[#allocation2 + $0x6c] sm:$0xff]   ;;  %v8885_v55 = vsel %vm8247_vm1, %v6410_v14, %v2351_v36 }
 0x133   : > { %7073 = vmatmul.mubr.msk.bf16.gmra.mrb[24].mxu1 %vm1722_vm12, %v6381_v51  ;;  %v2340_v51 = vrot.slane %v7678_v23, 5  ;;  %7230 = vmatprep.mubr.msk.bf16.mxu0 %vm1722_vm12, %v7616_v37  ;;  %v8841_v23 = vsel %vm8247_vm1, %v6408_v45, %v2337_v15  ;;  %v4695_v37 = vshrl.u32 %v4604_v42, 16  ;;  %v8854_v15 = vsel %vm8247_vm1, %v2346_v52, %v2347_v39  ;;  %v7618_v42 = vld [vmem:[#allocation2 + $0x78] sm:$0xff]  }
 0x134   : > { %7076 = vmatprep.mubr.msk.bf16.mxu1 %vm1722_vm12, %v6382_v58  ;;  %v4663_v58 = vor.u32 %v4662_v59, %v8818_v11  ;;  %v4654_v45 = vrot.slane %v4653_v49, 4  ;;  %v4688_v38 = vrot.slane %v4687_v2, 4  ;;  %v2353_v52 = vrot.slane %v2351_v36, 4  ;;  %v7683_v49 = vld [vmem:[#allocation2 + $0x8c] sm:$0x1] }
 0x135   : > { %v8850_v59 = vsel %vm8247_vm1, %v2339_v26, %v2340_v51  ;;  %v7682_v26 = vld [vmem:[#allocation2 + $0x80] sm:$0x1]  ;;  %v6411_v39 = vrot.slane %v2239_v20, 9  ;;  %v2361_v53 = vrot.slane %v7683_v49, 5  ;;  %v4697_v19 = vrot.slane %v4695_v37, 4 }
 0x136   : > { %v4664_v60 = vrot.slane %v4663_v58, 4  ;;  %v2354_v51 = vrot.slane %v7682_v26, 5  ;;  %v2360_v58 = vrot.slane %v2358_v9, 4  ;;  %v4704_v26 = vshll.u32 %v8856_v0, 16  ;;  %v4607_v49 = vld [vmem:[#allocation2 + $0x3c] sm:$0xf] }
 0x137   : > { %v4708_v20 = vshrl.u32 %v8856_v0, 16  ;;  %v4659_v1 = vsel %vm7913_vm13, %v4654_v45, %v8818_v11  ;;  %v8881_v37 = vsel %vm1771_vm0, %v8735_v22, 0  ;;  %v4693_v11 = vsel %vm7913_vm13, %v4688_v38, %v4692_v31  ;;  %v8903_v36 = vld [vmem:[#allocation2 + $0x38] sm:$0x1]  ;;  %v8911_v38 = vld [vmem:[#allocation2 + $0x4c] sm:$0xf] }
 0x138   : > { %v4669_v30 = vsel %vm7913_vm13, %v4664_v60, %v4668_v34  ;;  %v8897_v45 = vsel %vm8247_vm1, %v2353_v52, %v2354_v51  ;;  %v8901_v22 = vsel %vm8247_vm1, %v6411_v39, %v2358_v9  ;;  %9886 = vst [vmem:[#allocation10_spill] sm:$0xff] %v8903_v36  ;;  %v4610_v34 = vld [vmem:[#allocation2 + $0x48] sm:$0xf]  ;;  %v8907_v14 = vsel %vm8247_vm1, %v2360_v58, %v2361_v53  ;;  %v8913_v51 = vld [vmem:[#allocation2 + $0x44] sm:$0x1] }
 0x139   : > { %v4701_v60 = vor.u32 %v4700_v63, %v4697_v19  ;;  %v4710_v31 = vrot.slane %v4708_v20, 4  ;;  %9887 = vst [vmem:[#allocation11_spill] sm:$0xff] %v8913_v51  ;;  %v7619_v39 = vld [vmem:[#allocation2 + $0x84] sm:$0xff]   ;;  %v8917_v41 = vcombine.low %v4659_v1, %v4669_v30  ;;  %v4714_v58 = vshll.u32 %v8903_v36, 16  ;;  %v8943_v36 = vld [vmem:[#allocation2 + $0x58] sm:$0xf] }
 0x13a   : > { %7231 = vmatmul.mubr.msk.bf16.gmra.mrb[12].mxu0 %vm1722_vm12, %v7617_v48  ;;  %v4683_v48 = vsel %vm7913_vm13, %v4678_v54, %v8824_v62  ;;  %v8909_v62 = vrot.slane %v4704_v26, 5  ;;  %v4719_v54 = vshrl.u32 %v4607_v49, 16  ;;  %v4743_v19 = vshrl.u32 %v4610_v34, 16  ;;  %v7620_v26 = vld [vmem:[#allocation2 + $0x90] sm:$0xff]   ;;  %9890 = vst [vmem:[#allocation12_spill] sm:$0xff] %v8943_v36 }
 0x13b   : > { %7077 = vmatmul.mubr.msk.bf16.gmra.mrb[28].mxu1 %vm1722_vm12, %v9883_v17  ;;  %7234 = vmatprep.mubr.msk.bf16.mxu0 %vm1722_vm12, %v7618_v42  ;;  %v4722_v42 = vshll.u32 %v4607_v49, 16  ;;  %v9888_v63 = vcombine.low %v8726_v27, %v8730_v33  ;;  %v8926_v20 = vcombine.low %v4683_v48, %v4693_v11  ;;  %v2240_v49 = vld [vmem:[#allocation2 + $0x90] sm:$0xe]  ;;  %v4746_v2 = vshll.u32 %v4610_v34, 16  ;;  %v4613_v34 = vld [vmem:[#allocation2 + $0x54] sm:$0xf] }
 0x13c   : > { %7082 = vmatprep.mubr.msk.bf16.mxu1 %vm1722_vm12, %v9884_v10  ;;  %v8887_v10 = vld [vmem:[#allocation2 + $0x40] sm:$0xf]  ;;  %v4752_v17 = vshll.u32 %v8911_v38, 16  ;;  %v4756_v1 = vshrl.u32 %v8911_v38, 16  ;;  %v9889_v30 = vcombine.low %v8740_v13, %v8744_v12  ;;  %v8937_v33 = vrot.slane %v4701_v60, 4 }
 0x13d   : > { %9885 = vst [vmem:[#allocation9_spill] sm:$0xff] %v8887_v10  ;;  %v4728_v9 = vshll.u32 %v8887_v10, 16  ;;  %v4732_v52 = vshrl.u32 %v8887_v10, 16  ;;  %v4721_v48 = vrot.slane %v4719_v54, 4  ;;  %v4738_v11 = vshll.u32 %v8913_v51, 16 }
 0x13e   : > { %v4724_v53 = vrot.slane %v4722_v42, 5  ;;  %v7684_v13 = vld [vmem:[%s9841_s2 + $0x8] sm:$0x3]  ;;  %v8950_v12 = vrot.slane %v4714_v58, 5  ;;  %v6412_v60 = vrot.slane %v2240_v49, 9  ;;  %v4748_v42 = vrot.slane %v4746_v2, 5 }
 0x13f   : > { %v8941_v10 = vrot.slane %v4728_v9, 5  ;;  %v7685_v54 = vld [vmem:[#allocation2 + $0x94] sm:$0xf]  ;;  %v8953_v9 = vrot.slane %v4752_v17, 5  ;;  %v4767_v27 = vshrl.u32 %v4613_v34, 16  ;;  %v8955_v51 = vrot.slane %v4738_v11, 5 }
 0x140   : > { %v8957_v0 = vld [vmem:[#allocation2 + $0x50] sm:$0x1]  ;;  %v4780_v58 = vshrl.u32 %v8943_v36, 16  ;;  %v4725_v17 = vor.u32 %v4724_v53, %v4721_v48  ;;  %v7621_v49 = vld [vmem:[#allocation2 + $0x9c] sm:$0xff]  }
 0x141   : > { %9891 = vst [vmem:[#allocation13_spill] sm:$0xff] %v8957_v0 }
 0x142   : > { %7235 = vmatmul.mubr.msk.bf16.gmra.mrb[16].mxu0 %vm1722_vm12, %v7619_v39  ;;  %v4776_v39 = vshll.u32 %v8943_v36, 16  ;;  %v9892_v36 = vcombine.low %v8748_v44, %v8753_v32  ;;  %v4782_v44 = vrot.slane %v4780_v58, 4  ;;  %v2242_v32 = vld [vmem:[#allocation2 + $0xa8] sm:$0xe] }
 0x143   : > { %7083 = vmatmul.mubr.msk.bf16.vlgmr.msra.gmra.mrb[0].mxu1 %vm1722_vm12, %v9888_v63  ;;  %v4711_v63 = vor.u32 %v4710_v31, %v8909_v62  ;;  %v4745_v31 = vrot.slane %v4743_v19, 4  ;;  %7238 = vmatprep.mubr.msk.bf16.mxu0 %vm1722_vm12, %v7620_v26  ;;  %v8978_v19 = vld [vmem:[#allocation2 + $0x5c] sm:$0x1] }
 0x144   : > { %7115 = vmatpush3.bf16.msra.mxu1 %v8769_v28  ;;  %7086 = vmatprep.mubr.msk.bf16.mxu1 %vm1722_vm12, %v9889_v30  ;;  %v4734_v28 = vrot.slane %v4732_v52, 4  ;;  %v2365_v30 = vrot.slane %v7685_v54, 5  ;;  %v4758_v52 = vrot.slane %v4756_v1, 4  ;;  %9893 = vst [vmem:[#allocation14_spill] sm:$0xff] %v8978_v19  ;;  %v4786_v58 = vshll.u32 %v8978_v19, 16 }
 0x145   : > { %7581 = vmatprep.subr.msk.bf16.mxu1 %vm1771_vm0, %v7684_v13  ;;  %v4770_v13 = vshll.u32 %v4613_v34, 16  ;;  %v8965_v26 = vrot.slane %v4711_v63, 4  ;;  %v7686_v34 = vld [vmem:[#allocation2 + $0x98] sm:$0x1]  ;;  %v7622_v63 = vld [vmem:[#allocation2 + $0xa8] sm:$0xff]   ;;  %v4749_v53 = vor.u32 %v4748_v42, %v4745_v31  ;;  %v4726_v42 = vrot.slane %v4725_v17, 4 }
 0x146   : > { %v4735_v2 = vor.u32 %v4734_v28, %v8941_v10  ;;  %v8970_v1 = vsel %vm8247_vm1, %v6412_v60, %v2365_v30  ;;  %v2367_v11 = vrot.slane %v2365_v30, 4  ;;  %v2368_v54 = vrot.slane %v7686_v34, 5 }
 0x147   : > { %v4759_v48 = vor.u32 %v4758_v52, %v8953_v9  ;;  %v4762_v28 = vshll.u32 %v8957_v0, 16  ;;  %v4769_v60 = vrot.slane %v4767_v27, 4  ;;  %v9894_v30 = vcombine.low %v8780_v6, %v8785_v25 }
 0x148   : > { %v4772_v5 = vrot.slane %v4770_v13, 5  ;;  %v8984_v34 = vrot.slane %v4776_v39, 5  ;;  %v4717_v31 = vsel %vm7913_vm13, %v8965_v26, %v8950_v12  ;;  %v4736_v52 = vrot.slane %v4735_v2, 4  ;;  %v7688_v13 = vld [vmem:[#allocation2 + $0xa4] sm:$0x1] }
 0x149   : > { %v6413_v27 = vrot.slane %v2241_v3, 9  ;;  %v8994_v6 = vsel %vm8247_vm1, %v2367_v11, %v2368_v54  ;;  %v2374_v25 = vrot.slane %v2372_v35, 4  ;;  %v2375_v39 = vrot.slane %v7688_v13, 5  ;;  %v4616_v26 = vld [vmem:[#allocation2 + $0x60] sm:$0xf] }
 0x14a   : > { %7239 = vmatmul.mubr.msk.bf16.gmra.mrb[20].mxu0 %vm1722_vm12, %v7621_v49  ;;  %v4764_v0 = vrot.slane %v4762_v28, 5  ;;  %v6414_v12 = vrot.slane %v2242_v32, 9  ;;  %v4773_v17 = vor.u32 %v4772_v5, %v4769_v60  ;;  %v4783_v3 = vor.u32 %v4782_v44, %v8984_v34  ;;  %v2243_v11 = vld [vmem:[#allocation2 + $0xb4] sm:$0xe]  ;;  %v9011_v28 = vld [vmem:[#allocation2 + $0x64] sm:$0xf] }
 0x14b   : > { %7087 = vmatmul.mubr.msk.bf16.gmra.mrb[4].mxu1 %vm1722_vm12, %v9892_v36  ;;  %v2379_v36 = vrot.slane %v8531_v29, 5  ;;  %7242 = vmatprep.mubr.msk.bf16.mxu0 %vm1722_vm12, %v7622_v63  ;;  %v4750_v29 = vrot.slane %v4749_v53, 4  ;;  %v2382_v49 = vrot.slane %v8533_v24, 5  ;;  %v4731_v54 = vsel %vm7913_vm13, %v4726_v42, %v8941_v10  ;;  %9895 = vst [vmem:[#allocation15_spill] sm:$0xff] %v9011_v28  ;;  %v7623_v60 = vld [vmem:[#allocation2 + $0xb4] sm:$0xff]  }
 0x14c   : > { %7090 = vmatprep.mubr.msk.bf16.mxu1 %vm1722_vm12, %v9894_v30  ;;  %v4760_v30 = vrot.slane %v4759_v48, 4  ;;  %v4741_v63 = vsel %vm7913_vm13, %v4736_v52, %v8955_v51  ;;  %v9008_v53 = vsel %vm8247_vm1, %v6413_v27, %v2372_v35  ;;  %v2386_v48 = vrot.slane %v8555_v8, 5  ;;  %v9019_v10 = vld [vmem:[#allocation2 + $0x68] sm:$0x1]  ;;  %v7624_v35 = vld [vmem:[#allocation2 + $0xc0] sm:$0xff]  }
 0x14d   : > { %v2381_v2 = vrot.slane %v2379_v36, 4  ;;  %v9015_v24 = vsel %vm8247_vm1, %v2374_v25, %v2375_v39  ;;  %v9017_v5 = vrot.slane %v4786_v58, 5  ;;  %9896 = vst [vmem:[#allocation16_spill] sm:$0xff] %v9019_v10  ;;  %v4791_v44 = vshrl.u32 %v4616_v26, 16  ;;  %v4619_v25 = vld [vmem:[#allocation2 + $0x6c] sm:$0xf] }
 0x14e   : > { %v4794_v32 = vshll.u32 %v4616_v26, 16  ;;  %v9897_v51 = vcombine.low %v8789_v50, %v8802_v21  ;;  %v4755_v8 = vsel %vm7913_vm13, %v4750_v29, %v8953_v9  ;;  %v4765_v42 = vsel %vm7913_vm13, %v4760_v30, %v4764_v0 }
 0x14f   : > { %v9032_v52 = vsel %vm8247_vm1, %v6414_v12, %v2379_v36  ;;  %v6415_v27 = vrot.slane %v2243_v11, 9  ;;  %v9898_v13 = vcombine.low %v8798_v40, %v8806_v43  ;;  %v9038_v50 = vrot.slane %v4773_v17, 4 }
 0x150   : > { %v9040_v21 = vrot.slane %v4783_v3, 4  ;;  %v9044_v9 = vsel %vm8247_vm1, %v2381_v2, %v2382_v49  ;;  %v2389_v0 = vrot.slane %v8557_v46, 5  ;;  %v2388_v39 = vrot.slane %v2386_v48, 4  ;;  %v4628_v3 = vld [vmem:[#allocation2 + $0x90] sm:$0xf] }
 0x151   : > { %9899 = vst [vmem:[#allocation17_spill] sm:$0xff] %v9044_v9  ;;  %v4800_v36 = vshll.u32 %v9011_v28, 16  ;;  %v4804_v58 = vshrl.u32 %v9011_v28, 16  ;;  %v4810_v29 = vshll.u32 %v9019_v10, 16  ;;  %v9900_v40 = vsel %vm7913_vm13, %v8937_v33, %v8909_v62  ;;  %v9071_v62 = vld [vmem:[#allocation2 + $0x70] sm:$0xf] }
 0x152   : > { %7243 = vmatmul.mubr.msk.bf16.gmra.mrb[24].mxu0 %vm1722_vm12, %v7623_v60  ;;  %v9056_v43 = vcombine.low %v9900_v40, %v4717_v31  ;;  %v9058_v30 = vrot.slane %v4791_v44, 4  ;;  %v9060_v12 = vrot.slane %v4794_v32, 5  ;;  %v4815_v46 = vshrl.u32 %v4619_v25, 16  ;;  %9901 = vst [vmem:[#allocation18_spill] sm:$0xff] %v9071_v62  ;;  %v9073_v33 = vld [vmem:[#allocation2 + $0x74] sm:$0x1] }
 0x153   : > { %7091 = vmatmul.mubr.msk.bf16.gmra.mrb[8].mxu1 %vm1722_vm12, %v9897_v51  ;;  %7246 = vmatprep.mubr.msk.bf16.mxu0 %vm1722_vm12, %v7624_v35  ;;  %v9063_v26 = vcombine.low %v4731_v54, %v4741_v63  ;;  %v9069_v2 = vcombine.low %v4755_v8, %v4765_v42  ;;  %9902 = vst [vmem:[#allocation19_spill] sm:$0xff] %v9073_v33  ;;  %v4622_v63 = vld [vmem:[#allocation2 + $0x78] sm:$0xf]  ;;  %v9089_v60 = vld [vmem:[#allocation2 + $0x7c] sm:$0xf]  ;;  %v9095_v51 = vrot.slane %v4800_v36, 5 }
 0x154   : > { %7094 = vmatprep.mubr.msk.bf16.mxu1 %vm1722_vm12, %v9898_v13  ;;  %v9087_v54 = vsel %vm8247_vm1, %v6415_v27, %v2386_v48  ;;  %9903 = vst [vmem:[#allocation20_spill] sm:$0xff] %v9089_v60  ;;  %v4625_v44 = vld [vmem:[#allocation2 + $0x84] sm:$0xf]  ;;  %v9093_v32 = vsel %vm8247_vm1, %v2388_v39, %v2389_v0  ;;  %v4806_v35 = vrot.slane %v4804_v58, 4  ;;  %v9097_v8 = vrot.slane %v4810_v29, 5  ;;  %v7625_v13 = vld [vmem:[#allocation2 + $0xcc] sm:$0xff]  }
 0x155   : > { %v9099_v42 = vld [vmem:[#allocation2 + $0x88] sm:$0xf]  ;;  %v4797_v48 = vor.u32 %v9060_v12, %v9058_v30  ;;  %v9103_v27 = vrot.slane %v4815_v46, 4  ;;  %v4818_v40 = vshll.u32 %v4619_v25, 16  ;;  %v4824_v11 = vshll.u32 %v9071_v62, 16 }
 0x156   : > { %9904 = vst [vmem:[#allocation21_spill] sm:$0xff] %v9099_v42  ;;  %v9905_v0 = vcombine.low %v8810_v56, %v8815_v47  ;;  %v4828_v39 = vshrl.u32 %v9071_v62, 16  ;;  %v4834_v36 = vshll.u32 %v9073_v33, 16  ;;  %v4839_v58 = vshrl.u32 %v4622_v63, 16  ;;  %v9112_v31 = vld [vmem:[#allocation2 + $0x94] sm:$0xf] }
 0x157   : > { %v4842_v29 = vshll.u32 %v4622_v63, 16  ;;  %9906 = vst [vmem:[#allocation22_spill] sm:$0xff] %v9112_v31  ;;  %v9907_v30 = vcombine.low %v8841_v23, %v8850_v59  ;;  %v4848_v25 = vshll.u32 %v9089_v60, 16  ;;  %v4852_v12 = vshrl.u32 %v9089_v60, 16  ;;  %v9130_v10 = vld [vmem:[#allocation2 + $0x80] sm:$0x1] }
 0x158   : > { %v4863_v56 = vshrl.u32 %v4625_v44, 16  ;;  %v4866_v47 = vshll.u32 %v4625_v44, 16  ;;  %v4872_v46 = vshll.u32 %v9099_v42, 16  ;;  %v4887_v49 = vshrl.u32 %v4628_v3, 16  ;;  %v9134_v28 = vld [vmem:[#allocation2 + $0x8c] sm:$0x1] }
 0x159   : > { %v4890_v17 = vshll.u32 %v4628_v3, 16  ;;  %v4807_v63 = vor.u32 %v4806_v35, %v9095_v51  ;;  %v4820_v33 = vrot.slane %v4818_v40, 5  ;;  %v4896_v23 = vshll.u32 %v9112_v31, 16 }
 0x15a   : > { %7247 = vmatmul.mubr.msk.bf16.gmra.mrb[28].mxu0 %vm1722_vm12, %v7625_v13  ;;  %v4900_v59 = vshrl.u32 %v9112_v31, 16  ;;  %v4830_v44 = vrot.slane %v4828_v39, 4  ;;  %v4841_v60 = vrot.slane %v4839_v58, 4  ;;  %v4844_v62 = vrot.slane %v4842_v29, 5 }
 0x15b   : > { %7095 = vmatmul.mubr.msk.bf16.gmra.mrb[12].mxu1 %vm1722_vm12, %v9905_v0  ;;  %v4876_v0 = vshrl.u32 %v9099_v42, 16  ;;  %7252 = vmatprep.mubr.msk.bf16.mxu0 %vm1722_vm12, %v8917_v41  ;;  %v4631_v42 = vld [vmem:[#allocation2 + $0x9c] sm:$0xf]  ;;  %v9132_v3 = vrot.slane %v4848_v25, 5  ;;  %v4854_v13 = vrot.slane %v4852_v12, 4  ;;  %v4865_v35 = vrot.slane %v4863_v56, 4 }
 0x15c   : > { %7098 = vmatprep.mubr.msk.bf16.mxu1 %vm1722_vm12, %v9907_v30  ;;  %v9128_v30 = vrot.slane %v4824_v11, 5  ;;  %v4868_v40 = vrot.slane %v4866_v47, 5  ;;  %v9136_v19 = vrot.slane %v4872_v46, 5  ;;  %v4889_v18 = vrot.slane %v4887_v49, 4  ;;  %v9138_v11 = vld [vmem:[#allocation2 + $0x98] sm:$0x1] }
 0x15d   : > { %v4878_v31 = vrot.slane %v4876_v0, 4  ;;  %v4892_v41 = vrot.slane %v4890_v17, 5  ;;  %v9140_v39 = vrot.slane %v4896_v23, 5  ;;  %v4902_v58 = vrot.slane %v4900_v59, 4  ;;  %v639_v0 = vld [vmem:[#allocation2 + $0xd4] sm:$0x1] }
 0x15e   : > { %v4911_v29 = vshrl.u32 %v4631_v42, 16  ;;  %v4914_v9 = vshll.u32 %v4631_v42, 16  ;;  %v9908_v25 = vcombine.low %v8845_v61, %v8854_v15  ;;  %v9146_v12 = vrot.slane %v4797_v48, 4  ;;  %v9160_v48 = vld [vmem:[#allocation2 + $0xa0] sm:$0xf] }
 0x15f   : > { %v9148_v56 = vrot.slane %v4807_v63, 4  ;;  %v4821_v47 = vor.u32 %v4820_v33, %v9103_v27  ;;  %v9151_v49 = vrot.slane %v4834_v36, 5  ;;  %v9909_v17 = vcombine.low %v8885_v55, %v8897_v45 }
 0x160   : > { %v4831_v42 = vor.u32 %v4830_v44, %v9128_v30  ;;  %v4845_v46 = vor.u32 %v4844_v62, %v4841_v60  ;;  %v4855_v61 = vor.u32 %v4854_v13, %v9132_v3  ;;  %v4858_v15 = vshll.u32 %v9130_v10, 16 }
 0x161   : > { %v4869_v63 = vor.u32 %v4868_v40, %v4865_v35  ;;  %v4879_v33 = vor.u32 %v4878_v31, %v9136_v19  ;;  %v4882_v27 = vshll.u32 %v9134_v28, 16  ;;  %v4906_v36 = vshll.u32 %v9138_v11, 16 }
 0x162   : > { %7253 = vmatmul.mubr.msk.bf16.vlgmr.msra.gmra.mrb[0].mxu0 %vm1722_vm12, %v8926_v20  ;;  %v4893_v55 = vor.u32 %v4892_v41, %v4889_v18  ;;  %v4903_v45 = vor.u32 %v4902_v58, %v9140_v39  ;;  %v4913_v62 = vrot.slane %v4911_v29, 4  ;;  %v4916_v60 = vrot.slane %v4914_v9, 5  ;;  %v4634_v41 = vld [vmem:[#allocation2 + $0xa8] sm:$0xf] }
 0x163   : > { %7099 = vmatmul.mubr.msk.bf16.gmra.mrb[16].mxu1 %vm1722_vm12, %v9908_v25  ;;  %7285 = vmatpush3.bf16.msra.mxu0 %v8881_v37  ;;  %v4822_v23 = vrot.slane %v4821_v47, 4  ;;  %v4920_v31 = vshll.u32 %v9160_v48, 16  ;;  %v4924_v59 = vshrl.u32 %v9160_v48, 16  ;;  %v640_v44 = vsel %vm7807_vm5, 0, %v639_v0  ;;  %v9179_v47 = vld [vmem:[#allocation2 + $0xa4] sm:$0x1] }
 0x164   : > { %7102 = vmatprep.mubr.msk.bf16.mxu1 %vm1722_vm12, %v9909_v17  ;;  %7256 = vmatprep.mubr.msk.bf16.mxu0 %vm1722_vm12, %v9056_v43  ;;  %v4803_v18 = vsel %vm7913_vm13, %v9146_v12, %v9095_v51  ;;  %v4832_v20 = vrot.slane %v4831_v42, 4  ;;  %v4846_v9 = vrot.slane %v4845_v46, 4  ;;  %v4860_v13 = vrot.slane %v4858_v15, 5  ;;  %641 = vst [vmem:[#allocation2 + $0xd4] sm:$0x1] %v640_v44 }
 0x165   : > { %v4856_v37 = vrot.slane %v4855_v61, 4  ;;  %v4870_v35 = vrot.slane %v4869_v63, 4  ;;  %v4880_v43 = vrot.slane %v4879_v33, 4  ;;  %v4884_v40 = vrot.slane %v4882_v27, 5  ;;  %v9194_v61 = vld [vmem:[#allocation2 + $0xac] sm:$0xf] }
 0x166   : > { %v4894_v58 = vrot.slane %v4893_v55, 4  ;;  %v4904_v29 = vrot.slane %v4903_v45, 4  ;;  %v4908_v25 = vrot.slane %v4906_v36, 5  ;;  %v4917_v7 = vor.u32 %v4916_v60, %v4913_v62  ;;  %v5328_v62 = vld [vmem:[#allocation2 + $0x48] sm:$0xe] }
 0x167   : > { %v9910_v17 = vcombine.low %v8901_v22, %v8907_v14  ;;  %v4813_v51 = vsel %vm7913_vm13, %v9148_v56, %v9097_v8  ;;  %v4827_v12 = vsel %vm7913_vm13, %v4822_v23, %v9128_v30  ;;  %v9192_v42 = vrot.slane %v4920_v31, 5  ;;  %v9241_v60 = vld [vmem:[#allocation2 + $0xb0] sm:$0x1] }
 0x168   : > { %v4926_v46 = vrot.slane %v4924_v59, 4  ;;  %v9911_v15 = vcombine.low %v8970_v1, %v8994_v6  ;;  %v4837_v22 = vsel %vm7913_vm13, %v4832_v20, %v9151_v49  ;;  %v4851_v14 = vsel %vm7913_vm13, %v4846_v9, %v9132_v3  ;;  %v5329_v20 = vld [vmem:[#allocation2 + $0x54] sm:$0xe] }
 0x169   : > { %v4935_v8 = vshrl.u32 %v4634_v41, 16  ;;  %v4938_v30 = vshll.u32 %v4634_v41, 16  ;;  %v4861_v56 = vsel %vm7913_vm13, %v4856_v37, %v4860_v13  ;;  %v4875_v0 = vsel %vm7913_vm13, %v4870_v35, %v9136_v19 }
 0x16a   : > { %v4885_v1 = vsel %vm7913_vm13, %v4880_v43, %v4884_v40  ;;  %v4930_v6 = vshll.u32 %v9179_v47, 16  ;;  %7257 = vmatmul.mubr.msk.bf16.gmra.mrb[4].mxu0 %vm1722_vm12, %v9063_v26  ;;  %v4899_v3 = vsel %vm7913_vm13, %v4894_v58, %v9140_v39  ;;  %v4909_v49 = vsel %vm7913_vm13, %v4904_v29, %v4908_v25  ;;  %v9269_v40 = vld [vmem:[#allocation2 + $0xb8] sm:$0xf]  ;;  %v9916_v58 = vld [vmem:[#allocation13_spill] sm:$0xff] }
 0x16b   : > { %7103 = vmatmul.mubr.msk.bf16.gmra.mrb[20].mxu1 %vm1722_vm12, %v9910_v17  ;;  %v9221_v63 = vrot.slane %v4917_v7, 4  ;;  %v4944_v33 = vshll.u32 %v9194_v61, 16  ;;  %7260 = vmatprep.mubr.msk.bf16.mxu0 %vm1722_vm12, %v9069_v2  ;;  %v9912_v19 = vsel %vm7913_vm13, %v9040_v21, %v9017_v5  ;;  %v9913_v26 = vsel %vm7913_vm13, %v9038_v50, %v8984_v34  ;;  %v1233_v45 = vld [vmem:[#allocation2 + $0xd4] sm:$0x1]  ;;  %v9917_v25 = vld [vmem:[#allocation17_spill] sm:$0xff] }
 0x16c   : > { %7106 = vmatprep.mubr.msk.bf16.mxu1 %vm1722_vm12, %v9911_v15  ;;  %v6603_v39 = vcombine.low %v9913_v26, %v9912_v19  ;;  %v6432_v27 = vcombine.low %v9087_v54, %v9093_v32  ;;  %v6604_v36 = vcombine.low %v4803_v18, %v4813_v51  ;;  %v4927_v55 = vor.u32 %v4926_v46, %v9192_v42  ;;  %v4637_v18 = vld [vmem:[#allocation2 + $0xb4] sm:$0xf]  ;;  %v5330_v46 = vld [vmem:[#allocation2 + $0x60] sm:$0xe]  ;;  %v9922_v19 = vld [vmem:[#allocation15_spill] sm:$0xff] }
 0x16d   : > { %v9239_v2 = vcombine.low %v4827_v12, %v4837_v22  ;;  %v4937_v23 = vrot.slane %v4935_v8, 4  ;;  %v4940_v5 = vrot.slane %v4938_v30, 5  ;;  %v9914_v21 = vrot.slane %v8672_v16, 4 }
 0x16e   : > { %v9247_v50 = vcombine.low %v4851_v14, %v4861_v56  ;;  %v9249_v31 = vcombine.low %v4875_v0, %v4885_v1  ;;  %v9251_v59 = vcombine.low %v4899_v3, %v4909_v49  ;;  %v4948_v44 = vshrl.u32 %v9194_v61, 16  ;;  %v5331_v56 = vld [vmem:[#allocation2 + $0x6c] sm:$0xe] }
 0x16f   : > { %v1234_v34 = vsel %vm7800_vm3, %v9914_v21, %v1233_v45  ;;  %v4923_v9 = vsel %vm7913_vm13, %v9221_v63, %v9192_v42  ;;  %v9258_v16 = vrot.slane %v4930_v6, 5  ;;  %v9260_v4 = vrot.slane %v4944_v33, 5 }
 0x170   : > { %1235 = vst [vmem:[#allocation2 + $0xd4] sm:$0x1] %v1234_v34  ;;  %v6634_v13 = vrot.slane %v5328_v62, 9  ;;  %v9915_v37 = vcombine.low %v9008_v53, %v9015_v24  ;;  %v9266_v35 = vrot.slane %v4927_v55, 4  ;;  %v4954_v43 = vshll.u32 %v9241_v60, 16  ;;  %v9919_v24 = vld [vmem:[#allocation12_spill] sm:$0xff] }
 0x171   : > { %v5418_v41 = vrot.slane %v8911_v38, 5  ;;  %v5421_v29 = vrot.slane %v9916_v58, 5  ;;  %v9918_v7 = vcombine.low %v9032_v52, %v9917_v25  ;;  %v4941_v17 = vor.u32 %v4940_v5, %v4937_v23  ;;  %v9921_v38 = vld [vmem:[#allocation14_spill] sm:$0xff]  ;;  %v4640_v55 = vld [vmem:[#allocation2 + $0xc0] sm:$0xf]  ;;  %v9929_v34 = vld [vmem:[#allocation21_spill] sm:$0xff] }
 0x172   : > { %v4959_v51 = vshrl.u32 %v4637_v18, 16  ;;  %v6635_v53 = vrot.slane %v5329_v20, 9  ;;  %v5425_v12 = vrot.slane %v9919_v24, 5  ;;  %v4950_v15 = vrot.slane %v4948_v44, 4  ;;  %7261 = vmatmul.mubr.msk.bf16.gmra.mrb[8].mxu0 %vm1722_vm12, %v6603_v39  ;;  %v7626_v39 = vld [vmem:[#allocation2 + $0xc] sm:$0xff]   ;;  %v9923_v62 = vld [vmem:[#allocation16_spill] sm:$0xff] }
 0x173   : > { %7107 = vmatmul.mubr.msk.bf16.gmra.mrb[24].mxu1 %vm1722_vm12, %v9915_v37  ;;  %v9280_v14 = vsel %vm8247_vm1, %v6634_v13, %v5418_v41  ;;  %v5420_v8 = vrot.slane %v5418_v41, 4  ;;  %v5428_v30 = vrot.slane %v9921_v38, 5  ;;  %v4962_v52 = vshll.u32 %v4637_v18, 16  ;;  %7264 = vmatprep.mubr.msk.bf16.mxu0 %vm1722_vm12, %v6604_v36  ;;  %v9317_v37 = vld [vmem:[#allocation2 + $0xc4] sm:$0xf]  ;;  %v9924_v41 = vld [vmem:[#allocation18_spill] sm:$0xff] }
 0x174   : > { %7110 = vmatprep.mubr.msk.bf16.mxu1 %vm1722_vm12, %v9918_v7  ;;  %v4968_v0 = vshll.u32 %v9269_v40, 16  ;;  %v9287_v1 = vsel %vm8247_vm1, %v6635_v53, %v5425_v12  ;;  %v5427_v6 = vrot.slane %v5425_v12, 4  ;;  %v4933_v3 = vsel %vm7913_vm13, %v9266_v35, %v9258_v16  ;;  %v9328_v53 = vld [vmem:[#allocation2 + $0xbc] sm:$0x1]  ;;  %v3070_v12 = vld [vmem:[#allocation2 + $0x78] sm:$0xf] }
 0x175   : > { %v9296_v49 = vsel %vm8247_vm1, %v5420_v8, %v5421_v29  ;;  %v6636_v33 = vrot.slane %v5330_v46, 9  ;;  %v5432_v26 = vrot.slane %v9922_v19, 5  ;;  %v5435_v23 = vrot.slane %v9923_v62, 5  ;;  %v9925_v29 = vld [vmem:[#allocation19_spill] sm:$0xff]  ;;  %v7628_v62 = vld [vmem:[#allocation2 + $0x24] sm:$0xff]  }
 0x176   : > { %v9303_v36 = vsel %vm8247_vm1, %v5427_v6, %v5428_v30  ;;  %v6637_v5 = vrot.slane %v5331_v56, 9  ;;  %v9306_v21 = vrot.slane %v4954_v43, 5  ;;  %v9314_v20 = vrot.slane %v4959_v51, 4  ;;  %v5332_v30 = vld [vmem:[#allocation2 + $0x78] sm:$0xe] }
 0x177   : > { %v9312_v44 = vsel %vm8247_vm1, %v6636_v33, %v5432_v26  ;;  %v5434_v18 = vrot.slane %v5432_v26, 4  ;;  %v4972_v13 = vshrl.u32 %v9269_v40, 16  ;;  %v5439_v58 = vrot.slane %v9924_v41, 5  ;;  %v9927_v41 = vld [vmem:[#allocation7_spill] sm:$0xff]  ;;  %v9438_v63 = vld [vmem:[#allocation2 + $0xd4] sm:$0x1] }
 0x178   : > { %v5442_v25 = vrot.slane %v9925_v29, 5  ;;  %v9325_v43 = vrot.slane %v4941_v17, 4  ;;  %v4951_v7 = vor.u32 %v4950_v15, %v9260_v4  ;;  %v4983_v51 = vshrl.u32 %v4640_v55, 16 }
 0x179   : > { %v9332_v24 = vsel %vm8247_vm1, %v5434_v18, %v5435_v23  ;;  %v4986_v46 = vshll.u32 %v4640_v55, 16  ;;  %v9339_v32 = vsel %vm8247_vm1, %v6637_v5, %v5439_v58  ;;  %v9341_v17 = vrot.slane %v4962_v52, 5  ;;  %v7627_v52 = vld [vmem:[#allocation2 + $0x18] sm:$0xff]   ;;  %v9360_v23 = vld [vmem:[#allocation2 + $0xc8] sm:$0x1] }
 0x17a   : > { %v9343_v15 = vrot.slane %v4968_v0, 5  ;;  %v4992_v8 = vshll.u32 %v9317_v37, 16  ;;  %v4996_v38 = vshrl.u32 %v9317_v37, 16  ;;  %7265 = vmatmul.mubr.msk.bf16.gmra.mrb[12].mxu0 %vm1722_vm12, %v9239_v2  ;;  %v4974_v56 = vrot.slane %v4972_v13, 4  ;;  %v5333_v2 = vld [vmem:[#allocation2 + $0x84] sm:$0xe] }
 0x17b   : > { %7111 = vmatmul.mubr.msk.bf16.gmra.mrb[28].mxu1 %vm1722_vm12, %v6432_v27  ;;  %v5441_v27 = vrot.slane %v5439_v58, 4  ;;  %v4978_v6 = vshll.u32 %v9328_v53, 16  ;;  %v3308_v19 = vshrl.u32 %v3070_v12, 16  ;;  %7268 = vmatprep.mubr.msk.bf16.mxu0 %vm1722_vm12, %v9247_v50  ;;  %v9356_v0 = vrot.slane %v4951_v7, 4  ;;  %v9926_v13 = vld [vmem:[#allocation6_spill] sm:$0xff] }
 0x17c   : > { %7116 = vmatprep.mubr.msk.bf16.mxu1 %vm1722_vm12, %v7626_v39  ;;  %v4985_v26 = vrot.slane %v4983_v51, 4  ;;  %v3311_v55 = vshll.u32 %v3070_v12, 16  ;;  %v4988_v5 = vrot.slane %v4986_v46, 5  ;;  %v3330_v58 = vsel %vm7913_vm13, %v9927_v41, %v9926_v13  ;;  %v9928_v51 = vld [vmem:[#allocation20_spill] sm:$0xff]  ;;  %v4643_v39 = vld [vmem:[#allocation2 + $0xcc] sm:$0xf] }
 0x17d   : > { %v9352_v33 = vsel %vm8247_vm1, %v5441_v27, %v5442_v25  ;;  %v3310_v18 = vrot.slane %v3308_v19, 4  ;;  %v6638_v29 = vrot.slane %v5332_v30, 9  ;;  %v9366_v50 = vrot.slane %v4992_v8, 5  ;;  %v9377_v30 = vld [vmem:[#allocation2 + $0xd0] sm:$0xf]  ;;  %v9930_v13 = vld [vmem:[#allocation3_spill] sm:$0xff] }
 0x17e   : > { %v4998_v25 = vrot.slane %v4996_v38, 4  ;;  %v3313_v7 = vrot.slane %v3311_v55, 5  ;;  %v5446_v27 = vrot.slane %v9928_v51, 5  ;;  %v5449_v12 = vrot.slane %v9130_v10, 5 }
 0x17f   : > { %v6639_v54 = vrot.slane %v5333_v2, 9  ;;  %v5453_v45 = vrot.slane %v9929_v34, 5  ;;  %v5456_v46 = vrot.slane %v9134_v28, 5  ;;  %v4965_v19 = vor.u32 %v9341_v17, %v9314_v20 }
 0x180   : > { %v4975_v8 = vor.u32 %v4974_v56, %v9343_v15  ;;  %v5002_v38 = vshll.u32 %v9360_v23, 16  ;;  %v3314_v55 = vor.u32 %v3313_v7, %v3310_v18  ;;  %v9383_v10 = vsel %vm8247_vm1, %v6638_v29, %v5446_v27 }
 0x181   : > { %v5448_v28 = vrot.slane %v5446_v27, 4  ;;  %v9387_v34 = vsel %vm8247_vm1, %v6639_v54, %v5453_v45  ;;  %v5455_v20 = vrot.slane %v5453_v45, 4  ;;  %v4989_v17 = vor.u32 %v4988_v5, %v4985_v26  ;;  %v7629_v45 = vld [vmem:[#allocation2 + $0x30] sm:$0xff]  }
 0x182   : > { %v5007_v56 = vshrl.u32 %v4643_v39, 16  ;;  %v3315_v2 = vrot.slane %v3314_v55, 4  ;;  %7269 = vmatmul.mubr.msk.bf16.gmra.mrb[16].mxu0 %vm1722_vm12, %v9249_v31  ;;  %v4999_v18 = vor.u32 %v4998_v25, %v9366_v50  ;;  %v5020_v26 = vshrl.u32 %v9377_v30, 16  ;;  %v7630_v25 = vld [vmem:[#allocation2 + $0x3c] sm:$0xff]  }
 0x183   : > { %7117 = vmatmul.mubr.msk.bf16.vlgmr.msra.gmra.mrb[0].mxu1 %vm1722_vm12, %v7627_v52  ;;  %v5010_v52 = vshll.u32 %v4643_v39, 16  ;;  %v9395_v41 = vsel %vm8247_vm1, %v5448_v28, %v5449_v12  ;;  %v9399_v54 = vsel %vm8247_vm1, %v5455_v20, %v5456_v46  ;;  %7272 = vmatprep.mubr.msk.bf16.mxu0 %vm1722_vm12, %v9251_v59  ;;  %v9931_v39 = vld [vmem:[#allocation5_spill] sm:$0xff]  ;;  %v4947_v7 = vsel %vm7913_vm13, %v9325_v43, %v9260_v4  ;;  %v5334_v12 = vld [vmem:[#allocation2 + $0x90] sm:$0xe] }
 0x184   : > { %7319 = vmatpush3.bf16.msra.mxu1 %v9930_v13  ;;  %7120 = vmatprep.mubr.msk.bf16.mxu1 %vm1722_vm12, %v7628_v62  ;;  %v5016_v62 = vshll.u32 %v9377_v30, 16  ;;  %v3320_v31 = vsel %vm7913_vm13, %v3315_v2, %v9931_v39  ;;  %v6655_v5 = vcombine.low %v9383_v10, %v9395_v41  ;;  %v6656_v29 = vcombine.low %v9387_v34, %v9399_v54  ;;  %v7631_v2 = vld [vmem:[#allocation2 + $0x48] sm:$0xff]   ;;  %v7689_v39 = vld [vmem:[#allocation2 + $0x1c] sm:$0xf]  ;;  %v7703_v10 = vld [vmem:[#allocation2 + $0xb0] sm:$0x1] }
 0x185   : > { %v4957_v59 = vsel %vm7913_vm13, %v9356_v0, %v9306_v21  ;;  %v4966_v51 = vrot.slane %v4965_v19, 4  ;;  %v9419_v27 = vcombine.low %v3320_v31, %v3330_v58  ;;  %v6609_v4 = vcombine.low %v4923_v9, %v4933_v3  ;;  %v5335_v19 = vld [vmem:[#allocation2 + $0x9c] sm:$0xe]  ;;  %v9932_v3 = vld [vmem:[#allocation22_spill] sm:$0xff] }
 0x186   : > { %v4976_v43 = vrot.slane %v4975_v8, 4  ;;  %v4980_v46 = vrot.slane %v4978_v6, 5  ;;  %v5004_v55 = vrot.slane %v5002_v38, 5  ;;  %v4990_v13 = vrot.slane %v4989_v17, 4 }
 0x187   : > { %v5000_v21 = vrot.slane %v4999_v18, 4  ;;  %v5009_v0 = vrot.slane %v5007_v56, 4  ;;  %v5012_v58 = vrot.slane %v5010_v52, 5  ;;  %v6610_v28 = vcombine.low %v4947_v7, %v4957_v59 }
 0x188   : > { %v9432_v20 = vrot.slane %v5016_v62, 5  ;;  %v5022_v16 = vrot.slane %v5020_v26, 4  ;;  %v6640_v35 = vrot.slane %v5334_v12, 9  ;;  %v4971_v42 = vsel %vm7913_vm13, %v4966_v51, %v9343_v15  ;;  %v5324_v62 = vld [vmem:[#allocation2 + $0x18] sm:$0xe] }
 0x189   : > { %v4981_v9 = vsel %vm7913_vm13, %v4976_v43, %v4980_v46  ;;  %v5460_v6 = vrot.slane %v9932_v3, 5  ;;  %v5463_v8 = vrot.slane %v9138_v11, 5  ;;  %v6641_v38 = vrot.slane %v5335_v19, 9 }
 0x18a   : > { %7273 = vmatmul.mubr.msk.bf16.gmra.mrb[20].mxu0 %vm1722_vm12, %v6609_v4  ;;  %v4995_v17 = vsel %vm7913_vm13, %v4990_v13, %v9366_v50  ;;  %v5005_v56 = vsel %vm7913_vm13, %v5000_v21, %v5004_v55  ;;  %v5013_v15 = vor.u32 %v5012_v58, %v5009_v0  ;;  %v5467_v52 = vrot.slane %v9160_v48, 5  ;;  %v7632_v50 = vld [vmem:[#allocation2 + $0x54] sm:$0xff]   ;;  %v7690_v58 = vld [vmem:[#allocation2 + $0x20] sm:$0x1] }
 0x18b   : > { %7121 = vmatmul.mubr.msk.bf16.gmra.mrb[4].mxu1 %vm1722_vm12, %v7629_v45  ;;  %7276 = vmatprep.mubr.msk.bf16.mxu0 %vm1722_vm12, %v6610_v28  ;;  %v5023_v18 = vor.u32 %v5022_v16, %v9432_v20  ;;  %v5026_v11 = vshll.u32 %v9438_v63, 16  ;;  %v9456_v45 = vsel %vm8247_vm1, %v6640_v35, %v5460_v6  ;;  %v5462_v26 = vrot.slane %v5460_v6, 4  ;;  %v5336_v28 = vld [vmem:[#allocation2 + $0xa8] sm:$0xe]  ;;  %v5325_v16 = vld [vmem:[#allocation2 + $0x24] sm:$0xe] }
 0x18c   : > { %7124 = vmatprep.mubr.msk.bf16.mxu1 %vm1722_vm12, %v7630_v25  ;;  %v5390_v31 = vrot.slane %v7689_v39, 5  ;;  %v9460_v25 = vsel %vm8247_vm1, %v6641_v38, %v5467_v52  ;;  %v5469_v48 = vrot.slane %v5467_v52, 4  ;;  %v5470_v7 = vrot.slane %v9179_v47, 5  ;;  %v7633_v35 = vld [vmem:[#allocation2 + $0x60] sm:$0xff]   ;;  %v7691_v6 = vld [vmem:[#allocation2 + $0x28] sm:$0xf] }
 0x18d   : > { %v6611_v59 = vcombine.low %v4971_v42, %v4981_v9  ;;  %v9465_v51 = vsel %vm8247_vm1, %v5462_v26, %v5463_v8  ;;  %v6612_v12 = vcombine.low %v4995_v17, %v5005_v56  ;;  %v6630_v4 = vrot.slane %v5324_v62, 9  ;;  %v5337_v38 = vld [vmem:[#allocation2 + $0xb4] sm:$0xe]  ;;  %v7634_v17 = vld [vmem:[#allocation2 + $0x6c] sm:$0xff]   ;;  %v9933_v52 = vld [vmem:[#allocation8_spill] sm:$0xff] }
 0x18e   : > { %v6657_v43 = vcombine.low %v9456_v45, %v9465_v51  ;;  %v9471_v46 = vsel %vm8247_vm1, %v5469_v48, %v5470_v7  ;;  %v5014_v55 = vrot.slane %v5013_v15, 4  ;;  %v5024_v13 = vrot.slane %v5023_v18, 4  ;;  %v5326_v15 = vld [vmem:[#allocation2 + $0x30] sm:$0xe]  ;;  %v7692_v62 = vld [vmem:[#allocation2 + $0x2c] sm:$0x1] }
 0x18f   : > { %v5028_v21 = vrot.slane %v5026_v11, 5  ;;  %v6658_v47 = vcombine.low %v9460_v25, %v9471_v46  ;;  %v5392_v0 = vrot.slane %v5390_v31, 4  ;;  %v5393_v19 = vrot.slane %v7690_v58, 5  ;;  %v7706_v51 = vld [vmem:[#allocation2 + $0xc8] sm:$0x1] }
 0x190   : > { %v5019_v42 = vsel %vm7913_vm13, %v5014_v55, %v9432_v20  ;;  %v5391_v3 = vsel %vm8247_vm1, %v6630_v4, %v5390_v31  ;;  %v5397_v8 = vrot.slane %v7691_v6, 5  ;;  %v6642_v18 = vrot.slane %v5336_v28, 9  ;;  %v9935_v28 = vld [vmem:[#allocation9_spill] sm:$0xff] }
 0x191   : > { %v5029_v9 = vsel %vm7913_vm13, %v5024_v13, %v5028_v21  ;;  %v5394_v56 = vsel %vm8247_vm1, %v5392_v0, %v5393_v19  ;;  %v5474_v11 = vrot.slane %v9194_v61, 5  ;;  %v6631_v20 = vrot.slane %v5325_v16, 9  ;;  %v9934_v13 = vld [vmem:[#allocation10_spill] sm:$0xff]  ;;  %v5327_v19 = vld [vmem:[#allocation2 + $0x3c] sm:$0xe]  ;;  %v7636_v6 = vld [vmem:[#allocation2 + $0x84] sm:$0xff]  }
 0x192   : > { %7277 = vmatmul.mubr.msk.bf16.gmra.mrb[24].mxu0 %vm1722_vm12, %v6611_v59  ;;  %v5400_v26 = vrot.slane %v7692_v62, 5  ;;  %v6613_v39 = vcombine.low %v5019_v42, %v5029_v9  ;;  %v6643_v7 = vrot.slane %v5337_v38, 9  ;;  %v6647_v59 = vcombine.low %v5391_v3, %v5394_v56  ;;  %v7635_v9 = vld [vmem:[#allocation2 + $0x78] sm:$0xff]  }
 0x193   : > { %7125 = vmatmul.mubr.msk.bf16.gmra.mrb[8].mxu1 %vm1722_vm12, %v7631_v2  ;;  %7280 = vmatprep.mubr.msk.bf16.mxu0 %vm1722_vm12, %v6612_v12  ;;  %v5404_v2 = vrot.slane %v9933_v52, 5  ;;  %v9493_v31 = vsel %vm8247_vm1, %v6642_v18, %v5474_v11  ;;  %v5476_v48 = vrot.slane %v5474_v11, 4  ;;  %v5399_v12 = vrot.slane %v5397_v8, 4  ;;  %v5338_v11 = vld [vmem:[#allocation2 + $0xc0] sm:$0xe] }
 0x194   : > { %7128 = vmatprep.mubr.msk.bf16.mxu1 %vm1722_vm12, %v7632_v50  ;;  %v5477_v50 = vrot.slane %v9241_v60, 5  ;;  %v6632_v4 = vrot.slane %v5326_v15, 9  ;;  %v5481_v55 = vrot.slane %v9269_v40, 5  ;;  %v5407_v21 = vrot.slane %v9934_v13, 5  ;;  %v3067_v40 = vld [vmem:[#allocation2 + $0x6c] sm:$0xf] }
 0x195   : > { %v5406_v61 = vrot.slane %v5404_v2, 4  ;;  %v5484_v0 = vrot.slane %v9328_v53, 5  ;;  %v5411_v16 = vrot.slane %v9935_v28, 5  ;;  %v5398_v53 = vsel %vm8247_vm1, %v6631_v20, %v5397_v8 }
 0x196   : > { %v9501_v60 = vsel %vm8247_vm1, %v5476_v48, %v5477_v50  ;;  %v5483_v42 = vrot.slane %v5481_v55, 4  ;;  %v5401_v3 = vsel %vm8247_vm1, %v5399_v12, %v5400_v26  ;;  %v5405_v38 = vsel %vm8247_vm1, %v6632_v4, %v5404_v2  ;;  %v9936_v26 = vld [vmem:[#allocation11_spill] sm:$0xff] }
 0x197   : > { %v6659_v58 = vcombine.low %v9493_v31, %v9501_v60  ;;  %v6633_v15 = vrot.slane %v5327_v19, 9  ;;  %v3284_v52 = vshrl.u32 %v3067_v40, 16  ;;  %v3287_v18 = vshll.u32 %v3067_v40, 16 }
 0x198   : > { %v9523_v56 = vsel %vm8247_vm1, %v5483_v42, %v5484_v0  ;;  %v6648_v20 = vcombine.low %v5398_v53, %v5401_v3  ;;  %v5413_v62 = vrot.slane %v5411_v16, 4  ;;  %v5414_v50 = vrot.slane %v9936_v26, 5  ;;  %v7637_v42 = vld [vmem:[#allocation2 + $0x90] sm:$0xff]   ;;  %v7638_v53 = vld [vmem:[#allocation2 + $0x9c] sm:$0xff]   ;;  %v3073_v3 = vld [vmem:[#allocation2 + $0x84] sm:$0xf] }
 0x199   : > { %v6644_v12 = vrot.slane %v5338_v11, 9  ;;  %v5488_v4 = vrot.slane %v9317_v37, 5  ;;  %v3286_v13 = vrot.slane %v3284_v52, 4  ;;  %v7694_v11 = vld [vmem:[#allocation2 + $0x74] sm:$0x1]  ;;  %v3423_v41 = vshll.u32 %v7703_v10, 16 }
 0x19a   : > { %7281 = vmatmul.mubr.msk.bf16.gmra.mrb[28].mxu0 %vm1722_vm12, %v6613_v39  ;;  %v7693_v39 = vld [vmem:[#allocation2 + $0x70] sm:$0xf]  ;;  %v5415_v0 = vsel %vm8247_vm1, %v5413_v62, %v5414_v50  ;;  %v3335_v62 = vshll.u32 %v3073_v3, 16  ;;  %v7695_v50 = vld [vmem:[#allocation2 + $0x88] sm:$0xf]  ;;  %vm5922_vm0 = vcmask 60416  }
 0x19b   : > { %7129 = vmatmul.mubr.msk.bf16.gmra.mrb[12].mxu1 %vm1722_vm12, %v7633_v35  ;;  %v9510_v35 = vsel %vm8247_vm1, %v6643_v7, %v5481_v55  ;;  %7286 = vmatprep.mubr.msk.bf16.mxu0 %vm1722_vm12, %v6647_v59  ;;  %v3293_v48 = vshll.u32 %v7693_v39, 16  ;;  %v3297_v7 = vshrl.u32 %v7693_v39, 16  ;;  %v5339_v59 = vld [vmem:[#allocation2 + $0xcc] sm:$0xe]  ;;  %v5491_v55 = vrot.slane %v9360_v23, 5 }
 0x19c   : > { %7132 = vmatprep.mubr.msk.bf16.mxu1 %vm1722_vm12, %v7634_v17  ;;  %v5408_v17 = vsel %vm8247_vm1, %v5406_v61, %v5407_v21  ;;  %v6660_v8 = vcombine.low %v9510_v35, %v9523_v56  ;;  %v5412_v61 = vsel %vm8247_vm1, %v6633_v15, %v5411_v16  ;;  %v3289_v21 = vrot.slane %v3287_v18, 5 }
 0x19d   : > { %v6649_v2 = vcombine.low %v5405_v38, %v5408_v17  ;;  %v9539_v19 = vsel %vm8247_vm1, %v6644_v12, %v5488_v4  ;;  %v5490_v28 = vrot.slane %v5488_v4, 4  ;;  %v6645_v40 = vrot.slane %v5339_v59, 9  ;;  %v3076_v59 = vld [vmem:[#allocation2 + $0x90] sm:$0xf]  ;;  %v7639_v12 = vld [vmem:[#allocation2 + $0xa8] sm:$0xff]  }
 0x19e   : > { %v9542_v37 = vrot.slane %v3293_v48, 5  ;;  %v3299_v23 = vrot.slane %v3297_v7, 4  ;;  %v5495_v16 = vrot.slane %v9377_v30, 5  ;;  %v3290_v38 = vor.u32 %v3289_v21, %v3286_v13  ;;  %v3079_v21 = vld [vmem:[#allocation2 + $0x9c] sm:$0xf] }
 0x19f   : > { %v6650_v18 = vcombine.low %v5412_v61, %v5415_v0  ;;  %v3303_v30 = vshll.u32 %v7694_v11, 16  ;;  %v3345_v39 = vshrl.u32 %v7695_v50, 16  ;;  %v9937_v4 = vcombine.low %v9280_v14, %v9296_v49  ;;  %v7640_v0 = vld [vmem:[#allocation2 + $0xb4] sm:$0xff]   ;;  %v7698_v11 = vld [vmem:[#allocation2 + $0xa0] sm:$0xf] }
 0x1a0   : > { %v9554_v15 = vsel %vm8247_vm1, %v6645_v40, %v5495_v16  ;;  %v5497_v52 = vrot.slane %v5495_v16, 4  ;;  %v3291_v7 = vrot.slane %v3290_v38, 4  ;;  %v3337_v13 = vrot.slane %v3335_v62, 5 }
 0x1a1   : > { %v3347_v40 = vrot.slane %v3345_v39, 4  ;;  %v3380_v49 = vshrl.u32 %v3079_v21, 16  ;;  %vm6025_vm3 = vcmask 57344  }
 0x1a2   : > { %7287 = vmatmul.mubr.msk.bf16.vlgmr.msra.gmra.mrb[0].mxu0 %vm1722_vm12, %v6648_v20  ;;  %v3332_v20 = vshrl.u32 %v3073_v3, 16  ;;  %v3296_v16 = vsel %vm7913_vm13, %v3291_v7, %v9542_v37  ;;  %v3383_v3 = vshll.u32 %v3079_v21, 16 }
 0x1a3   : > { %7133 = vmatmul.mubr.msk.bf16.gmra.mrb[16].mxu1 %vm1722_vm12, %v7635_v9  ;;  %7290 = vmatprep.mubr.msk.bf16.mxu0 %vm1722_vm12, %v6649_v2  ;;  %v5498_v9 = vrot.slane %v9438_v63, 5  ;;  %v3300_v63 = vor.u32 %v3299_v23, %v9542_v37  ;;  %v3341_v2 = vshll.u32 %v7695_v50, 16  ;;  %v3359_v23 = vshll.u32 %v3076_v59, 16 }
 0x1a4   : > { %7136 = vmatprep.mubr.msk.bf16.mxu1 %vm1722_vm12, %v7636_v6  ;;  %v9548_v6 = vsel %vm8247_vm1, %v5490_v28, %v5491_v55  ;;  %v3305_v55 = vrot.slane %v3303_v30, 5  ;;  %v3334_v61 = vrot.slane %v3332_v20, 4  ;;  %v3389_v30 = vshll.u32 %v7698_v11, 16 }
 0x1a5   : > { %v6661_v17 = vcombine.low %v9539_v19, %v9548_v6  ;;  %v9560_v26 = vsel %vm8247_vm1, %v5497_v52, %v5498_v9  ;;  %v3301_v22 = vrot.slane %v3300_v63, 4  ;;  %v9570_v28 = vrot.slane %v3341_v2, 5  ;;  %v7696_v9 = vld [vmem:[#allocation2 + $0x94] sm:$0xf]  ;;  %v7697_v52 = vld [vmem:[#allocation2 + $0x8c] sm:$0x1] }
 0x1a6   : > { %v6662_v48 = vcombine.low %v9554_v15, %v9560_v26  ;;  %v3369_v14 = vshrl.u32 %v7696_v9, 16  ;;  %v3393_v63 = vshrl.u32 %v7698_v11, 16  ;;  %v3338_v20 = vor.u32 %v3337_v13, %v3334_v61 }
 0x1a7   : > { %v3306_v38 = vsel %vm7913_vm13, %v3301_v22, %v3305_v55  ;;  %v3348_v37 = vor.u32 %v3347_v40, %v9570_v28  ;;  %v3361_v50 = vrot.slane %v3359_v23, 5  ;;  %v9938_v2 = vcombine.low %v9287_v1, %v9303_v36 }
 0x1a8   : > { %v3371_v7 = vrot.slane %v3369_v14, 4  ;;  %v9939_v22 = vcombine.low %v9312_v44, %v9332_v24  ;;  %v6491_v55 = vcombine.low %v3296_v16, %v3306_v38  ;;  %v9590_v13 = vrot.slane %v3389_v30, 5  ;;  %v7700_v14 = vld [vmem:[#allocation2 + $0xa4] sm:$0x1]  ;;  %v3085_v44 = vld [vmem:[#allocation2 + $0xb4] sm:$0xf] }
 0x1a9   : > { %v3395_v21 = vrot.slane %v3393_v63, 4  ;;  %v3339_v1 = vrot.slane %v3338_v20, 4  ;;  %v3349_v36 = vrot.slane %v3348_v37, 4  ;;  %v7701_v38 = vld [vmem:[#allocation2 + $0xac] sm:$0xf]  ;;  %v3428_v37 = vshrl.u32 %v3085_v44, 16 }
 0x1aa   : > { %7291 = vmatmul.mubr.msk.bf16.gmra.mrb[4].mxu0 %vm1722_vm12, %v6650_v18  ;;  %v3351_v18 = vshll.u32 %v7697_v52, 16  ;;  %v3413_v52 = vshll.u32 %v7701_v38, 16 }
 0x1ab   : > { %7137 = vmatmul.mubr.msk.bf16.gmra.mrb[20].mxu1 %vm1722_vm12, %v7637_v42  ;;  %7294 = vmatprep.mubr.msk.bf16.mxu0 %vm1722_vm12, %v9937_v4  ;;  %v3356_v42 = vshrl.u32 %v3076_v59, 16  ;;  %v3382_v59 = vrot.slane %v3380_v49, 4  ;;  %v7641_v4 = vld [vmem:[#allocation2 + $0xc0] sm:$0xff]   ;;  %v3399_v49 = vshll.u32 %v7700_v14, 16  ;;  %v3396_v24 = vor.u32 %v3395_v21, %v9590_v13 }
 0x1ac   : > { %7140 = vmatprep.mubr.msk.bf16.mxu1 %vm1722_vm12, %v7638_v53  ;;  %v3365_v53 = vshll.u32 %v7696_v9, 16  ;;  %v3353_v61 = vrot.slane %v3351_v18, 5  ;;  %v3417_v18 = vshrl.u32 %v7701_v38, 16  ;;  %v3344_v11 = vsel %vm7913_vm13, %v3339_v1, %v9570_v28 }
 0x1ad   : > { %v3358_v62 = vrot.slane %v3356_v42, 4  ;;  %v7699_v42 = vld [vmem:[#allocation2 + $0x98] sm:$0x1]  ;;  %v3397_v28 = vrot.slane %v3396_v24, 4  ;;  %v3415_v21 = vrot.slane %v3413_v52, 5 }
 0x1ae   : > { %v9584_v39 = vrot.slane %v3365_v53, 5  ;;  %v3375_v23 = vshll.u32 %v7699_v42, 16  ;;  %v3354_v30 = vsel %vm7913_vm13, %v3349_v36, %v3353_v61  ;;  %v3430_v36 = vrot.slane %v3428_v37, 4 }
 0x1af   : > { %v3362_v40 = vor.u32 %v3361_v50, %v3358_v62  ;;  %v3431_v62 = vshll.u32 %v3085_v44, 16  ;;  %v7702_v50 = vld [vmem:[#allocation2 + $0xb8] sm:$0xf]  ;;  %v6493_v1 = vcombine.low %v3344_v11, %v3354_v30  ;;  %v7704_v44 = vld [vmem:[#allocation2 + $0xc4] sm:$0xf] }
 0x1b0   : > { %v3372_v9 = vor.u32 %v3371_v7, %v9584_v39  ;;  %v3377_v20 = vrot.slane %v3375_v23, 5  ;;  %v3441_v7 = vshrl.u32 %v7702_v50, 16  ;;  %v3461_v24 = vshll.u32 %v7704_v44, 16 }
 0x1b1   : > { %v3363_v63 = vrot.slane %v3362_v40, 4  ;;  %v3433_v40 = vrot.slane %v3431_v62, 5 }
 0x1b2   : > { %7295 = vmatmul.mubr.msk.bf16.gmra.mrb[8].mxu0 %vm1722_vm12, %v9938_v2  ;;  %v3437_v2 = vshll.u32 %v7702_v50, 16  ;;  %v3463_v50 = vrot.slane %v3461_v24, 5 }
 0x1b3   : > { %7141 = vmatmul.mubr.msk.bf16.gmra.mrb[24].mxu1 %vm1722_vm12, %v7639_v12  ;;  %v3385_v12 = vrot.slane %v3383_v3, 5  ;;  %7298 = vmatprep.mubr.msk.bf16.mxu0 %vm1722_vm12, %v9939_v22  ;;  %v3401_v22 = vrot.slane %v3399_v49, 5  ;;  %v3368_v23 = vsel %vm7913_vm13, %v3363_v63, %v9584_v39  ;;  %v3434_v38 = vor.u32 %v3433_v40, %v3430_v36 }
 0x1b4   : > { %7144 = vmatprep.mubr.msk.bf16.mxu1 %vm1722_vm12, %v7640_v0  ;;  %v3082_v0 = vld [vmem:[#allocation2 + $0xa8] sm:$0xf]  ;;  %v3439_v42 = vrot.slane %v3437_v2, 5 }
 0x1b5   : > { %v3386_v53 = vor.u32 %v3385_v12, %v3382_v59  ;;  %v3404_v3 = vshrl.u32 %v3082_v0, 16  ;;  %v3407_v16 = vshll.u32 %v3082_v0, 16  ;;  %v9940_v59 = vcombine.low %v9339_v32, %v9352_v33  ;;  %v3088_v33 = vld [vmem:[#allocation2 + $0xc0] sm:$0xf] }
 0x1b6   : > { %v3373_v12 = vrot.slane %v3372_v9, 4  ;;  %v3419_v0 = vrot.slane %v3417_v18, 4  ;;  %v3443_v32 = vrot.slane %v3441_v7, 4  ;;  %v3452_v39 = vshrl.u32 %v3088_v33, 16  ;;  %v7705_v18 = vld [vmem:[#allocation2 + $0xbc] sm:$0x1] }
 0x1b7   : > { %v3409_v61 = vrot.slane %v3407_v16, 5  ;;  %v3465_v16 = vshrl.u32 %v7704_v44, 16  ;;  %v3435_v7 = vrot.slane %v3434_v38, 4 }
 0x1b8   : > { %v3378_v9 = vsel %vm7913_vm13, %v3373_v12, %v3377_v20  ;;  %v3420_v49 = vor.u32 %v3419_v0, %v3415_v21  ;;  %v3444_v52 = vor.u32 %v3443_v32, %v3439_v42  ;;  %v3425_v20 = vrot.slane %v3423_v41, 5 }
 0x1b9   : > { %v3454_v37 = vrot.slane %v3452_v39, 4  ;;  %v3467_v2 = vrot.slane %v3465_v16, 4 }
 0x1ba   : > { %7299 = vmatmul.mubr.msk.bf16.gmra.mrb[12].mxu0 %vm1722_vm12, %v9940_v59  ;;  %v3421_v63 = vrot.slane %v3420_v49, 4  ;;  %v3445_v59 = vrot.slane %v3444_v52, 4 }
 0x1bb   : > { %7145 = vmatmul.mubr.msk.bf16.gmra.mrb[28].mxu1 %vm1722_vm12, %v7641_v4  ;;  %v3387_v4 = vrot.slane %v3386_v53, 4  ;;  %7302 = vmatprep.mubr.msk.bf16.mxu0 %vm1722_vm12, %v6655_v5  ;;  %v3402_v53 = vsel %vm7913_vm13, %v3397_v28, %v3401_v22  ;;  %v3468_v45 = vor.u32 %v3467_v2, %v3463_v50 }
 0x1bc   : > { %7166 = vmatprep.mubr.msk.bf16.mxu1 %vm1722_vm12, %v6491_v55  ;;  %v3406_v55 = vrot.slane %v3404_v3, 4  ;;  %v3455_v3 = vshll.u32 %v3088_v33, 16  ;;  %v3426_v54 = vsel %vm7913_vm13, %v3421_v63, %v3425_v20 }
 0x1bd   : > { %v3392_v5 = vsel %vm7913_vm13, %v3387_v4, %v9590_v13  ;;  %v6494_v13 = vcombine.low %v3368_v23, %v3378_v9  ;;  %v3440_v4 = vsel %vm7913_vm13, %v3435_v7, %v3439_v42 }
 0x1be   : > { %v3410_v14 = vor.u32 %v3409_v61, %v3406_v55  ;;  %v6495_v11 = vcombine.low %v3392_v5, %v3402_v53  ;;  %v3457_v62 = vrot.slane %v3455_v3, 5 }
 0x1c0   : > { %v3411_v30 = vrot.slane %v3410_v14, 4 }
 0x1c2   : > { %7303 = vmatmul.mubr.msk.bf16.gmra.mrb[16].mxu0 %vm1722_vm12, %v6656_v29  ;;  %v3416_v34 = vsel %vm7913_vm13, %v3411_v30, %v3415_v21  ;;  %v3458_v29 = vor.u32 %v3457_v62, %v3454_v37  ;;  %v3469_v21 = vrot.slane %v3468_v45, 4 }
 0x1c3   : > { %7167 = vmatmul.mubr.msk.bf16.vlgmr.msra.gmra.mrb[16].mxu1 %vm1722_vm12, %v9419_v27  ;;  %v3447_v27 = vshll.u32 %v7705_v18, 16  ;;  %7306 = vmatprep.mubr.msk.bf16.mxu0 %vm1722_vm12, %v6657_v43  ;;  %v3471_v43 = vshll.u32 %v7706_v51, 16  ;;  %v6496_v55 = vcombine.low %v3416_v34, %v3426_v54 }
 0x1c4   : > { %7170 = vmatprep.mubr.msk.bf16.mxu1 %vm1722_vm12, %v6493_v1  ;;  %v3459_v61 = vrot.slane %v3458_v29, 4 }
 0x1c5   : > { %v3449_v12 = vrot.slane %v3447_v27, 5  ;;  %v3473_v0 = vrot.slane %v3471_v43, 5 }
 0x1c6   : > { %v3464_v1 = vsel %vm7913_vm13, %v3459_v61, %v3463_v50 }
 0x1c7   : > { %v3450_v22 = vsel %vm7913_vm13, %v3445_v59, %v3449_v12  ;;  %v3474_v25 = vsel %vm7913_vm13, %v3469_v21, %v3473_v0 }
 0x1c8   : > { %v6497_v28 = vcombine.low %v3440_v4, %v3450_v22  ;;  %v6498_v46 = vcombine.low %v3464_v1, %v3474_v25 }
 0x1ca   : > { %7307 = vmatmul.mubr.msk.bf16.gmra.mrb[20].mxu0 %vm1722_vm12, %v6658_v47 }
 0x1cb   : > { %7171 = vmatmul.mubr.msk.bf16.gmra.mrb[20].mxu1 %vm1722_vm12, %v6494_v13  ;;  %7310 = vmatprep.mubr.msk.bf16.mxu0 %vm1722_vm12, %v6659_v58 }
 0x1cc   : > { %7174 = vmatprep.mubr.msk.bf16.mxu1 %vm1722_vm12, %v6495_v11 }
 0x1d2   : > { %7311 = vmatmul.mubr.msk.bf16.gmra.mrb[24].mxu0 %vm1722_vm12, %v6660_v8 }
 0x1d3   : > { %7175 = vmatmul.mubr.msk.bf16.gmra.mrb[24].mxu1 %vm1722_vm12, %v6496_v55  ;;  %7314 = vmatprep.mubr.msk.bf16.mxu0 %vm1722_vm12, %v6661_v17 }
 0x1d4   : > { %7178 = vmatprep.mubr.msk.bf16.mxu1 %vm1722_vm12, %v6497_v28 }
 0x1da   : > { %7315 = vmatmul.mubr.msk.bf16.gmra.mrb[28].mxu0 %vm1722_vm12, %v6662_v48 }
 0x1db   : > { %7179 = vmatmul.mubr.msk.bf16.gmra.mrb[28].mxu1 %vm1722_vm12, %v6498_v46 }
 0x256   : > { %v7118_v57 = vpop.f32.mrb[0].mxu1 }
 0x257   : > { %v2884_v47 = vpop.f32.mrb[1].mxu1 }
 0x258   : > { %v7119_v31 = vpop.f32.mrb[2].mxu1 }
 0x259   : > { %v2887_v60 = vpop.f32.mrb[3].mxu1 }
 0x25e   : > { %v7122_v58 = vpop.f32.mrb[4].mxu1 }
 0x25f   : > { %v2900_v35 = vpop.f32.mrb[5].mxu1 }
 0x260   : > { %v7123_v56 = vpop.f32.mrb[6].mxu1 }
 0x261   : > { %v2903_v8 = vpop.f32.mrb[7].mxu1 }
 0x266   : > { %v9667_v36 = vpop.f32.mrb[8].mxu1 }
 0x267   : > { %v9669_v19 = vpop.f32.mrb[9].mxu1 }
 0x268   : > { %v9671_v6 = vpop.f32.mrb[10].mxu1 }
 0x269   : > { %v9673_v17 = vpop.f32.mrb[11].mxu1 }
 0x26e   : > { %v9675_v15 = vpop.f32.mrb[12].mxu1 }
 0x26f   : > { %v9677_v26 = vpop.f32.mrb[13].mxu1 }
 0x270   : > { %v9679_v48 = vpop.f32.mrb[14].mxu1 }
 0x271   : > { %v9681_v40 = vpop.f32.mrb[15].mxu1 }
 0x275   : > { %v7288_v42 = vpop.f32.mrb[0].mxu0 }
 0x276   : > { %v7320_v32 = vadd.f32 %v7288_v42, %v7118_v57  ;;  %v5635_v33 = vpop.f32.mrb[1].mxu0 }
 0x277   : > { %v7321_v23 = vadd.f32 %v5635_v33, %v2884_v47  ;;  %v7289_v9 = vpop.f32.mrb[2].mxu0 }
 0x278   : > { %v6750_v10 = vpack.c.bf16 %v7320_v32, %v7320_v32  ;;  %v7322_v41 = vadd.f32 %v7289_v9, %v7119_v31  ;;  %v5638_v5 = vpop.f32.mrb[3].mxu0  ;;  %v6029_v39 = vmul.f32 %v7320_v32, %v7320_v32  ;;  %v5959_v27 = vsel %vm5955_vm2, %v7320_v32, 0.0 }
 0x279   : > { %v6748_v53 = vpack.c.bf16 %v7321_v23, %v7321_v23  ;;  %v6027_v14 = vmul.f32 %v7321_v23, %v7321_v23  ;;  %v7323_v49 = vadd.f32 %v5638_v5, %v2887_v60  ;;  %v5956_v44 = vsel %vm5955_vm2, %v7321_v23, 0.0 }
 0x27a   : > { %5925 = vst.msk [vmem:[%s9688_s10 + $0x8] sm:$0xf] %vm5922_vm0, %v6750_v10  ;;  %v6751_v3 = vpack.c.bf16 %v7322_v41, %v7322_v41  ;;  %v6030_v52 = vmul.f32 %v7322_v41, %v7322_v41  ;;  %v6062_v50 = vsel %vm5955_vm2, %v6029_v39, 0.0  ;;  %v5961_v59 = vsel %vm5955_vm2, %v7322_v41, 0.0 }
 0x27b   : > { %5923 = vst.msk [vmem:[%s9688_s10] sm:$0xf] %vm5922_vm0, %v6748_v53  ;;  %v6749_v24 = vpack.c.bf16 %v7323_v49, %v7323_v49  ;;  %v5957_v16 = vsel %vm5955_vm2, %v7323_v49, 0.0  ;;  %v6028_v38 = vmul.f32 %v7323_v49, %v7323_v49  ;;  %v6059_v13 = vsel %vm5955_vm2, %v6027_v14, 0.0 }
 0x27c   : > { %5926 = vst.msk [vmem:[%s9688_s10 + $0xc] sm:$0xf] %vm5922_vm0, %v6751_v3  ;;  %v5958_v18 = vadd.f32 %v5957_v16, %v5956_v44  ;;  %v6064_v12 = vsel %vm5955_vm2, %v6030_v52, 0.0 }
 0x27d   : > { %5924 = vst.msk [vmem:[%s9688_s10 + $0x4] sm:$0xf] %vm5922_vm0, %v6749_v24  ;;  %v6060_v11 = vsel %vm5955_vm2, %v6028_v38, 0.0  ;;  %v7292_v30 = vpop.f32.mrb[4].mxu0 }
 0x27e   : > { %v5960_v63 = vadd.f32 %v5959_v27, %v5958_v18  ;;  %v6061_v20 = vadd.f32 %v6060_v11, %v6059_v13  ;;  %v7324_v37 = vadd.f32 %v7292_v30, %v7122_v58  ;;  %v5651_v62 = vpop.f32.mrb[5].mxu0 }
 0x27f   : > { %v7325_v2 = vadd.f32 %v5651_v62, %v2900_v35  ;;  %v7293_v7 = vpop.f32.mrb[6].mxu0 }
 0x280   : > { %v6063_v34 = vadd.f32 %v6062_v50, %v6061_v20  ;;  %v6754_v54 = vpack.c.bf16 %v7324_v37, %v7324_v37  ;;  %v5654_v29 = vpop.f32.mrb[7].mxu0  ;;  %v5962_v51 = vadd.f32 %v5961_v59, %v5960_v63  ;;  %v7326_v55 = vadd.f32 %v7293_v7, %v7123_v56 }
 0x281   : > { %v6752_v45 = vpack.c.bf16 %v7325_v2, %v7325_v2  ;;  %v5963_v43 = vsel %vm5955_vm2, %v7325_v2, 0.0  ;;  %v6031_v4 = vmul.f32 %v7325_v2, %v7325_v2  ;;  %v7327_v28 = vadd.f32 %v5654_v29, %v2903_v8 }
 0x282   : > { %5929 = vst.msk [vmem:[%s9688_s10 + $0x18] sm:$0xf] %vm5922_vm0, %v6754_v54  ;;  %v6065_v22 = vadd.f32 %v6064_v12, %v6063_v34  ;;  %v5964_v61 = vadd.f32 %v5963_v43, %v5962_v51  ;;  %v6033_v0 = vmul.f32 %v7324_v37, %v7324_v37  ;;  %v6755_v25 = vpack.c.bf16 %v7326_v55, %v7326_v55 }
 0x283   : > { %5927 = vst.msk [vmem:[%s9688_s10 + $0x10] sm:$0xf] %vm5922_vm0, %v6752_v45  ;;  %v6066_v21 = vsel %vm5955_vm2, %v6031_v4, 0.0  ;;  %v6753_v46 = vpack.c.bf16 %v7327_v28, %v7327_v28  ;;  %v5965_v57 = vsel %vm5955_vm2, %v7327_v28, 0.0  ;;  %v6032_v47 = vmul.f32 %v7327_v28, %v7327_v28 }
 0x284   : > { %v6067_v1 = vadd.f32 %v6066_v21, %v6065_v22  ;;  %5930 = vst.msk [vmem:[%s9688_s10 + $0x1c] sm:$0xf] %vm5922_vm0, %v6755_v25  ;;  %v5966_v60 = vadd.f32 %v5965_v57, %v5964_v61  ;;  %v5967_v56 = vsel %vm5955_vm2, %v7324_v37, 0.0  ;;  %v6034_v8 = vmul.f32 %v7326_v55, %v7326_v55 }
 0x285   : > { %v7296_v31 = vpop.f32.mrb[8].mxu0  ;;  %5928 = vst.msk [vmem:[%s9688_s10 + $0x14] sm:$0xf] %vm5922_vm0, %v6753_v46  ;;  %v6068_v42 = vsel %vm5955_vm2, %v6032_v47, 0.0  ;;  %v6070_v23 = vsel %vm5955_vm2, %v6033_v0, 0.0 }
 0x286   : > { %v7328_v58 = vadd.f32 %v7296_v31, %v9667_v36  ;;  %v5667_v35 = vpop.f32.mrb[9].mxu0  ;;  %v5968_v9 = vadd.f32 %v5967_v56, %v5966_v60  ;;  %v6069_v10 = vadd.f32 %v6068_v42, %v6067_v1  ;;  %v5969_v36 = vsel %vm5955_vm2, %v7326_v55, 0.0 }
 0x287   : > { %v7329_v32 = vadd.f32 %v5667_v35, %v9669_v19  ;;  %v7297_v33 = vpop.f32.mrb[10].mxu0  ;;  %v6072_v24 = vsel %vm5955_vm2, %v6034_v8, 0.0 }
 0x288   : > { %v6758_v41 = vpack.c.bf16 %v7328_v58, %v7328_v58  ;;  %v5670_v5 = vpop.f32.mrb[11].mxu0  ;;  %v6071_v39 = vadd.f32 %v6070_v23, %v6069_v10  ;;  %v5970_v3 = vadd.f32 %v5969_v36, %v5968_v9  ;;  %v7330_v19 = vadd.f32 %v7297_v33, %v9671_v6 }
 0x289   : > { %v6756_v53 = vpack.c.bf16 %v7329_v32, %v7329_v32  ;;  %v5971_v14 = vsel %vm5955_vm2, %v7329_v32, 0.0  ;;  %v6035_v49 = vmul.f32 %v7329_v32, %v7329_v32  ;;  %v7331_v44 = vadd.f32 %v5670_v5, %v9673_v17 }
 0x28a   : > { %5933 = vst.msk [vmem:[%s9688_s10 + $0x28] sm:$0xf] %vm5922_vm0, %v6758_v41  ;;  %v6037_v38 = vmul.f32 %v7328_v58, %v7328_v58  ;;  %v5972_v52 = vadd.f32 %v5971_v14, %v5970_v3  ;;  %v6073_v18 = vadd.f32 %v6072_v24, %v6071_v39  ;;  %v6759_v27 = vpack.c.bf16 %v7330_v19, %v7330_v19 }
 0x28b   : > { %5931 = vst.msk [vmem:[%s9688_s10 + $0x20] sm:$0xf] %vm5922_vm0, %v6756_v53  ;;  %v6074_v16 = vsel %vm5955_vm2, %v6035_v49, 0.0  ;;  %v6757_v13 = vpack.c.bf16 %v7331_v44, %v7331_v44  ;;  %v5973_v11 = vsel %vm5955_vm2, %v7331_v44, 0.0  ;;  %v6036_v30 = vmul.f32 %v7331_v44, %v7331_v44 }
 0x28c   : > { %v6075_v20 = vadd.f32 %v6074_v16, %v6073_v18  ;;  %5934 = vst.msk [vmem:[%s9688_s10 + $0x2c] sm:$0xf] %vm5922_vm0, %v6759_v27  ;;  %v5974_v6 = vadd.f32 %v5973_v11, %v5972_v52  ;;  %v5975_v62 = vsel %vm5955_vm2, %v7328_v58, 0.0  ;;  %v6038_v50 = vmul.f32 %v7330_v19, %v7330_v19 }
 0x28d   : > { %v7300_v63 = vpop.f32.mrb[12].mxu0  ;;  %5932 = vst.msk [vmem:[%s9688_s10 + $0x24] sm:$0xf] %vm5922_vm0, %v6757_v13  ;;  %v6076_v2 = vsel %vm5955_vm2, %v6036_v30, 0.0  ;;  %v6078_v12 = vsel %vm5955_vm2, %v6037_v38, 0.0 }
 0x28e   : > { %v7332_v17 = vadd.f32 %v7300_v63, %v9675_v15  ;;  %v5683_v37 = vpop.f32.mrb[13].mxu0  ;;  %v5976_v34 = vadd.f32 %v5975_v62, %v5974_v6  ;;  %v6077_v54 = vadd.f32 %v6076_v2, %v6075_v20  ;;  %v5977_v15 = vsel %vm5955_vm2, %v7330_v19, 0.0 }
 0x28f   : > { %v7333_v7 = vadd.f32 %v5683_v37, %v9677_v26  ;;  %v7301_v59 = vpop.f32.mrb[14].mxu0  ;;  %v6080_v21 = vsel %vm5955_vm2, %v6038_v50, 0.0 }
 0x290   : > { %v6762_v29 = vpack.c.bf16 %v7332_v17, %v7332_v17  ;;  %v5686_v45 = vpop.f32.mrb[15].mxu0  ;;  %v6079_v22 = vadd.f32 %v6078_v12, %v6077_v54  ;;  %v5978_v55 = vadd.f32 %v5977_v15, %v5976_v34  ;;  %v7334_v26 = vadd.f32 %v7301_v59, %v9679_v48 }
 0x291   : > { %v6760_v51 = vpack.c.bf16 %v7333_v7, %v7333_v7  ;;  %v5979_v43 = vsel %vm5955_vm2, %v7333_v7, 0.0  ;;  %v6039_v4 = vmul.f32 %v7333_v7, %v7333_v7  ;;  %v7335_v28 = vadd.f32 %v5686_v45, %v9681_v40 }
 0x292   : > { %5937 = vst.msk [vmem:[%s9688_s10 + $0x38] sm:$0xf] %vm5922_vm0, %v6762_v29  ;;  %v6041_v25 = vmul.f32 %v7332_v17, %v7332_v17  ;;  %v5980_v46 = vadd.f32 %v5979_v43, %v5978_v55  ;;  %v6081_v57 = vadd.f32 %v6080_v21, %v6079_v22  ;;  %v6763_v47 = vpack.c.bf16 %v7334_v26, %v7334_v26 }
 0x293   : > { %5935 = vst.msk [vmem:[%s9688_s10 + $0x30] sm:$0xf] %vm5922_vm0, %v6760_v51  ;;  %v6082_v0 = vsel %vm5955_vm2, %v6039_v4, 0.0  ;;  %v6761_v60 = vpack.c.bf16 %v7335_v28, %v7335_v28  ;;  %v5981_v48 = vsel %vm5955_vm2, %v7335_v28, 0.0  ;;  %v6040_v58 = vmul.f32 %v7335_v28, %v7335_v28 }
 0x294   : > { %v6083_v56 = vadd.f32 %v6082_v0, %v6081_v57  ;;  %5938 = vst.msk [vmem:[%s9688_s10 + $0x3c] sm:$0xf] %vm5922_vm0, %v6763_v47  ;;  %v5982_v8 = vadd.f32 %v5981_v48, %v5980_v46  ;;  %v5983_v33 = vsel %vm5955_vm2, %v7332_v17, 0.0  ;;  %v6042_v23 = vmul.f32 %v7334_v26, %v7334_v26 }
 0x295   : > { %v7304_v40 = vpop.f32.mrb[16].mxu0  ;;  %5936 = vst.msk [vmem:[%s9688_s10 + $0x34] sm:$0xf] %vm5922_vm0, %v6761_v60  ;;  %v6084_v9 = vsel %vm5955_vm2, %v6040_v58, 0.0  ;;  %v6086_v5 = vsel %vm5955_vm2, %v6041_v25, 0.0  ;;  %v5985_v39 = vsel %vm5955_vm2, %v7334_v26, 0.0 }
 0x296   : > { %v7168_v61 = vpop.f32.mrb[16].mxu1  ;;  %v5699_v32 = vpop.f32.mrb[17].mxu0  ;;  %v5984_v36 = vadd.f32 %v5983_v33, %v5982_v8  ;;  %v6085_v53 = vadd.f32 %v6084_v9, %v6083_v56  ;;  %v6088_v27 = vsel %vm5955_vm2, %v6042_v23, 0.0 }
 0x297   : > { %v3674_v1 = vpop.f32.mrb[17].mxu1  ;;  %v7336_v42 = vadd.f32 %v7304_v40, %v7168_v61  ;;  %v7305_v41 = vpop.f32.mrb[18].mxu0 }
 0x298   : > { %v7169_v31 = vpop.f32.mrb[18].mxu1  ;;  %v7337_v10 = vadd.f32 %v5699_v32, %v3674_v1  ;;  %v5702_v49 = vpop.f32.mrb[19].mxu0  ;;  %v6087_v24 = vadd.f32 %v6086_v5, %v6085_v53  ;;  %v5986_v16 = vadd.f32 %v5985_v39, %v5984_v36 }
 0x299   : > { %v3677_v35 = vpop.f32.mrb[19].mxu1  ;;  %v6766_v14 = vpack.c.bf16 %v7336_v42, %v7336_v42  ;;  %v7338_v38 = vadd.f32 %v7305_v41, %v7169_v31  ;;  %v6045_v30 = vmul.f32 %v7336_v42, %v7336_v42  ;;  %v5991_v29 = vsel %vm5955_vm2, %v7336_v42, 0.0 }
 0x29a   : > { %v6764_v3 = vpack.c.bf16 %v7337_v10, %v7337_v10  ;;  %v5987_v19 = vsel %vm5955_vm2, %v7337_v10, 0.0  ;;  %v6043_v44 = vmul.f32 %v7337_v10, %v7337_v10  ;;  %v7339_v52 = vadd.f32 %v5702_v49, %v3677_v35 }
 0x29b   : > { %5941 = vst.msk [vmem:[%s9688_s10 + $0x48] sm:$0xf] %vm5922_vm0, %v6766_v14  ;;  %v5988_v63 = vadd.f32 %v5987_v19, %v5986_v16  ;;  %v6089_v20 = vadd.f32 %v6088_v27, %v6087_v24  ;;  %v6767_v6 = vpack.c.bf16 %v7338_v38, %v7338_v38  ;;  %v6046_v45 = vmul.f32 %v7338_v38, %v7338_v38 }
 0x29c   : > { %5939 = vst.msk [vmem:[%s9688_s10 + $0x40] sm:$0xf] %vm5922_vm0, %v6764_v3  ;;  %v6090_v13 = vsel %vm5955_vm2, %v6043_v44, 0.0  ;;  %v6765_v37 = vpack.c.bf16 %v7339_v52, %v7339_v52  ;;  %v5989_v62 = vsel %vm5955_vm2, %v7339_v52, 0.0  ;;  %v6044_v50 = vmul.f32 %v7339_v52, %v7339_v52 }
 0x29d   : > { %v7308_v2 = vpop.f32.mrb[20].mxu0  ;;  %v6091_v59 = vadd.f32 %v6090_v13, %v6089_v20  ;;  %5942 = vst.msk [vmem:[%s9688_s10 + $0x4c] sm:$0xf] %vm5922_vm0, %v6767_v6  ;;  %v5990_v12 = vadd.f32 %v5989_v62, %v5988_v63  ;;  %v6094_v4 = vsel %vm5955_vm2, %v6045_v30, 0.0  ;;  %v5993_v61 = vsel %vm5955_vm2, %v7338_v38, 0.0 }
 0x29e   : > { %v7172_v18 = vpop.f32.mrb[20].mxu1  ;;  %v5715_v54 = vpop.f32.mrb[21].mxu0  ;;  %5940 = vst.msk [vmem:[%s9688_s10 + $0x44] sm:$0xf] %vm5922_vm0, %v6765_v37  ;;  %v6092_v15 = vsel %vm5955_vm2, %v6044_v50, 0.0  ;;  %v6096_v60 = vsel %vm5955_vm2, %v6046_v45, 0.0 }
 0x29f   : > { %v3690_v11 = vpop.f32.mrb[21].mxu1  ;;  %v7340_v34 = vadd.f32 %v7308_v2, %v7172_v18  ;;  %v7309_v43 = vpop.f32.mrb[22].mxu0  ;;  %v5992_v22 = vadd.f32 %v5991_v29, %v5990_v12  ;;  %v6093_v55 = vadd.f32 %v6092_v15, %v6091_v59 }
 0x2a0   : > { %v7173_v17 = vpop.f32.mrb[22].mxu1  ;;  %v7341_v51 = vadd.f32 %v5715_v54, %v3690_v11  ;;  %v5718_v28 = vpop.f32.mrb[23].mxu0 }
 0x2a1   : > { %v3693_v7 = vpop.f32.mrb[23].mxu1  ;;  %v6770_v26 = vpack.c.bf16 %v7340_v34, %v7340_v34  ;;  %v6095_v25 = vadd.f32 %v6094_v4, %v6093_v55  ;;  %v5994_v46 = vadd.f32 %v5993_v61, %v5992_v22  ;;  %v7342_v57 = vadd.f32 %v7309_v43, %v7173_v17 }
 0x2a2   : > { %v6768_v21 = vpack.c.bf16 %v7341_v51, %v7341_v51  ;;  %v5995_v0 = vsel %vm5955_vm2, %v7341_v51, 0.0  ;;  %v6047_v1 = vmul.f32 %v7341_v51, %v7341_v51  ;;  %v7343_v47 = vadd.f32 %v5718_v28, %v3693_v7 }
 0x2a3   : > { %5945 = vst.msk [vmem:[%s9688_s10 + $0x58] sm:$0xf] %vm5922_vm0, %v6770_v26  ;;  %v6049_v40 = vmul.f32 %v7340_v34, %v7340_v34  ;;  %v5996_v35 = vadd.f32 %v5995_v0, %v5994_v46  ;;  %v6097_v56 = vadd.f32 %v6096_v60, %v6095_v25  ;;  %v6771_v8 = vpack.c.bf16 %v7342_v57, %v7342_v57 }
 0x2a4   : > { %5943 = vst.msk [vmem:[%s9688_s10 + $0x50] sm:$0xf] %vm5922_vm0, %v6768_v21  ;;  %v6098_v48 = vsel %vm5955_vm2, %v6047_v1, 0.0  ;;  %v6769_v32 = vpack.c.bf16 %v7343_v47, %v7343_v47  ;;  %v5997_v33 = vsel %vm5955_vm2, %v7343_v47, 0.0  ;;  %v6048_v23 = vmul.f32 %v7343_v47, %v7343_v47 }
 0x2a5   : > { %v7312_v9 = vpop.f32.mrb[24].mxu0  ;;  %v6099_v41 = vadd.f32 %v6098_v48, %v6097_v56  ;;  %5946 = vst.msk [vmem:[%s9688_s10 + $0x5c] sm:$0xf] %vm5922_vm0, %v6771_v8  ;;  %v5998_v5 = vadd.f32 %v5997_v33, %v5996_v35  ;;  %v5999_v14 = vsel %vm5955_vm2, %v7340_v34, 0.0  ;;  %v6050_v49 = vmul.f32 %v7342_v57, %v7342_v57 }
 0x2a6   : > { %v7176_v31 = vpop.f32.mrb[24].mxu1  ;;  %v5731_v53 = vpop.f32.mrb[25].mxu0  ;;  %5944 = vst.msk [vmem:[%s9688_s10 + $0x54] sm:$0xf] %vm5922_vm0, %v6769_v32  ;;  %v6100_v39 = vsel %vm5955_vm2, %v6048_v23, 0.0  ;;  %v6102_v44 = vsel %vm5955_vm2, %v6049_v40, 0.0 }
 0x2a7   : > { %v3706_v58 = vpop.f32.mrb[25].mxu1  ;;  %v7344_v36 = vadd.f32 %v7312_v9, %v7176_v31  ;;  %v7313_v19 = vpop.f32.mrb[26].mxu0  ;;  %v6000_v24 = vadd.f32 %v5999_v14, %v5998_v5  ;;  %v6101_v16 = vadd.f32 %v6100_v39, %v6099_v41  ;;  %v6001_v18 = vsel %vm5955_vm2, %v7342_v57, 0.0 }
 0x2a8   : > { %v7177_v42 = vpop.f32.mrb[26].mxu1  ;;  %v7345_v3 = vadd.f32 %v5731_v53, %v3706_v58  ;;  %v5734_v52 = vpop.f32.mrb[27].mxu0  ;;  %v6104_v37 = vsel %vm5955_vm2, %v6050_v49, 0.0 }
 0x2a9   : > { %v3709_v10 = vpop.f32.mrb[27].mxu1  ;;  %v6774_v38 = vpack.c.bf16 %v7344_v36, %v7344_v36  ;;  %v6103_v30 = vadd.f32 %v6102_v44, %v6101_v16  ;;  %v6002_v63 = vadd.f32 %v6001_v18, %v6000_v24  ;;  %v7346_v20 = vadd.f32 %v7313_v19, %v7177_v42 }
 0x2aa   : > { %v6772_v27 = vpack.c.bf16 %v7345_v3, %v7345_v3  ;;  %v6003_v13 = vsel %vm5955_vm2, %v7345_v3, 0.0  ;;  %v6051_v11 = vmul.f32 %v7345_v3, %v7345_v3  ;;  %v7347_v6 = vadd.f32 %v5734_v52, %v3709_v10 }
 0x2ab   : > { %5949 = vst.msk [vmem:[%s9688_s10 + $0x68] sm:$0xf] %vm5922_vm0, %v6774_v38  ;;  %v6053_v2 = vmul.f32 %v7344_v36, %v7344_v36  ;;  %v6004_v7 = vadd.f32 %v6003_v13, %v6002_v63  ;;  %v6105_v59 = vadd.f32 %v6104_v37, %v6103_v30  ;;  %v6775_v12 = vpack.c.bf16 %v7346_v20, %v7346_v20 }
 0x2ac   : > { %5947 = vst.msk [vmem:[%s9688_s10 + $0x60] sm:$0xf] %vm5922_vm0, %v6772_v27  ;;  %v6106_v62 = vsel %vm5955_vm2, %v6051_v11, 0.0  ;;  %v6773_v54 = vpack.c.bf16 %v7347_v6, %v7347_v6  ;;  %v6005_v29 = vsel %vm5955_vm2, %v7347_v6, 0.0  ;;  %v6052_v45 = vmul.f32 %v7347_v6, %v7347_v6 }
 0x2ad   : > { %v7316_v15 = vpop.f32.mrb[28].mxu0  ;;  %v6107_v43 = vadd.f32 %v6106_v62, %v6105_v59  ;;  %5950 = vst.msk [vmem:[%s9688_s10 + $0x6c] sm:$0xf] %vm5922_vm0, %v6775_v12  ;;  %v6006_v4 = vadd.f32 %v6005_v29, %v6004_v7  ;;  %v6007_v26 = vsel %vm5955_vm2, %v7344_v36, 0.0  ;;  %v6054_v28 = vmul.f32 %v7346_v20, %v7346_v20 }
 0x2ae   : > { %v7180_v17 = vpop.f32.mrb[28].mxu1  ;;  %v5747_v55 = vpop.f32.mrb[29].mxu0  ;;  %5948 = vst.msk [vmem:[%s9688_s10 + $0x64] sm:$0xf] %vm5922_vm0, %v6773_v54  ;;  %v6108_v61 = vsel %vm5955_vm2, %v6052_v45, 0.0  ;;  %v6110_v1 = vsel %vm5955_vm2, %v6053_v2, 0.0 }
 0x2af   : > { %v3722_v50 = vpop.f32.mrb[29].mxu1  ;;  %v7348_v22 = vadd.f32 %v7316_v15, %v7180_v17  ;;  %v7317_v0 = vpop.f32.mrb[30].mxu0  ;;  %v6008_v25 = vadd.f32 %v6007_v26, %v6006_v4  ;;  %v6109_v46 = vadd.f32 %v6108_v61, %v6107_v43  ;;  %v6009_v31 = vsel %vm5955_vm2, %v7346_v20, 0.0 }
 0x2b0   : > { %v7181_v34 = vpop.f32.mrb[30].mxu1  ;;  %v7349_v21 = vadd.f32 %v5747_v55, %v3722_v50  ;;  %v5750_v47 = vpop.f32.mrb[31].mxu0  ;;  %v6112_v42 = vsel %vm5955_vm2, %v6054_v28, 0.0 }
 0x2b1   : > { %v3725_v51 = vpop.f32.mrb[31].mxu1  ;;  %v6778_v57 = vpack.c.bf16 %v7348_v22, %v7348_v22  ;;  %v6111_v40 = vadd.f32 %v6110_v1, %v6109_v46  ;;  %v6010_v35 = vadd.f32 %v6009_v31, %v6008_v25  ;;  %v7350_v56 = vadd.f32 %v7317_v0, %v7181_v34 }
 0x2b2   : > { %v6776_v60 = vpack.c.bf16 %v7349_v21, %v7349_v21  ;;  %v6011_v48 = vsel %vm5955_vm2, %v7349_v21, 0.0  ;;  %v6055_v58 = vmul.f32 %v7349_v21, %v7349_v21  ;;  %v7351_v8 = vadd.f32 %v5750_v47, %v3725_v51 }
 0x2b3   : > { %5953 = vst.msk [vmem:[%s9688_s10 + $0x78] sm:$0xf] %vm5922_vm0, %v6778_v57  ;;  %v6012_v33 = vadd.f32 %v6011_v48, %v6010_v35  ;;  %v6113_v23 = vadd.f32 %v6112_v42, %v6111_v40  ;;  %v6779_v9 = vpack.c.bf16 %v7350_v56, %v7350_v56  ;;  %v6057_v10 = vmul.f32 %v7348_v22, %v7348_v22 }
 0x2b4   : > { %5951 = vst.msk [vmem:[%s9688_s10 + $0x70] sm:$0xf] %vm5922_vm0, %v6776_v60  ;;  %v6114_v32 = vsel %vm5955_vm2, %v6055_v58, 0.0  ;;  %v6777_v41 = vpack.c.bf16 %v7351_v8, %v7351_v8  ;;  %v6013_v5 = vsel %vm5955_vm2, %v7351_v8, 0.0  ;;  %v6056_v36 = vmul.f32 %v7351_v8, %v7351_v8 }
 0x2b5   : > { %v6115_v53 = vadd.f32 %v6114_v32, %v6113_v23  ;;  %5954 = vst.msk [vmem:[%s9688_s10 + $0x7c] sm:$0xf] %vm5922_vm0, %v6779_v9  ;;  %v6014_v14 = vadd.f32 %v6013_v5, %v6012_v33  ;;  %v6015_v49 = vsel %vm5955_vm2, %v7348_v22, 0.0  ;;  %v6058_v39 = vmul.f32 %v7350_v56, %v7350_v56 }
 0x2b6   : > { %5952 = vst.msk [vmem:[%s9688_s10 + $0x74] sm:$0xf] %vm5922_vm0, %v6777_v41  ;;  %v6116_v3 = vsel %vm5955_vm2, %v6056_v36, 0.0  ;;  %v6118_v24 = vsel %vm5955_vm2, %v6057_v10, 0.0  ;;  %v6017_v16 = vsel %vm5955_vm2, %v7350_v56, 0.0 }
 0x2b7   : > { %v6016_v19 = vadd.f32 %v6015_v49, %v6014_v14  ;;  %v6117_v44 = vadd.f32 %v6116_v3, %v6115_v53  ;;  %v6120_v18 = vsel %vm5955_vm2, %v6058_v39, 0.0 }
 0x2b9   : > { %v6018_v38 = vadd.f32 %v6017_v16, %v6016_v19  ;;  %v6119_v52 = vadd.f32 %v6118_v24, %v6117_v44 }
 0x2bb   : > { %v6019_v27 = vrot.slane %v6018_v38, 4  ;;  %v6121_v13 = vadd.f32 %v6120_v18, %v6119_v52 }
 0x2bd   : > { %v6020_v11 = vadd.f32 %v6019_v27, %v6018_v38  ;;  %v6122_v30 = vrot.slane %v6121_v13, 4 }
 0x2bf   : > { %v6021_v63 = vrot.slane %v6020_v11, 2  ;;  %v6123_v20 = vadd.f32 %v6122_v30, %v6121_v13 }
 0x2c1   : > { %v6022_v6 = vadd.f32 %v6021_v63, %v6020_v11  ;;  %v6124_v17 = vrot.slane %v6123_v20, 2 }
 0x2c3   : > { %v6023_v37 = vrot.slane %v6022_v6, 1  ;;  %v6125_v62 = vadd.f32 %v6124_v17, %v6123_v20 }
 0x2c5   : > { %v6024_v50 = vadd.f32 %v6023_v37, %v6022_v6  ;;  %v6126_v2 = vrot.slane %v6125_v62, 1 }
 0x2c7   : > { %6026 = vst.msk [vmem:[%s353_s14] sm:$0x1] %vm6025_vm3, %v6024_v50  ;;  %v6127_v7 = vadd.f32 %v6126_v2, %v6125_v62 }
 0x2c9   : > { %6128 = vst.msk [vmem:[%s353_s14 + $0x1] sm:$0x1] %vm6025_vm3, %v6127_v7 }
 0x2ca PF: > { %s17_s23 = sadd.s32 1, %s7729_s23   ;;  %s9941_s21 = smov %s7725_s22 }
 0x2cb   : > { %p14_p5 = scmp.ge.s32.totalorder %s17_s23, 4   ;;  %s9942_s22 = smov %s9944_s24 }
 0x2cd   :  { %16 = sbr.rel (!%p14_p5) target bundleno = 2 (0x2), region = 97 }

</bundles_post_ra>
